<compile_context>
chip_gen: v5e
topology: v5e:2x2
jax: 0.10.0
libtpu: 0.0.40
codegen_flags: <defaults>
</compile_context>

<pallas_src>
import math
import numpy as np
import jax
import jax.numpy as jnp
from jax.experimental import pallas as pl
from jax.experimental.pallas import tpu as pltpu


def _round_up(v, m):
    return ((v + m - 1) // m) * m


# ----------------------------------------------------------------------------
# Deterministic numpy precompute: Wigner-d matrices, quadrature, grids
# ----------------------------------------------------------------------------
_WIGNER_CACHE = {}


def _wigner_d_small(l, beta):
    """d^l_{m',m}(beta) as a (2l+1, 2l+1) matrix, indices ordered m', m = -l..l."""
    key = (l, round(float(beta), 12))
    if key in _WIGNER_CACHE:
        return _WIGNER_CACHE[key]
    fact = [math.factorial(n) for n in range(2 * l + 1)]
    d = np.zeros((2 * l + 1, 2 * l + 1), dtype=np.float64)
    cb, sb = np.cos(beta / 2.0), np.sin(beta / 2.0)
    for i_mp, mp in enumerate(range(-l, l + 1)):
        for i_m, m in enumerate(range(-l, l + 1)):
            pref = math.sqrt(fact[l + mp] * fact[l - mp] * fact[l + m] * fact[l - m])
            s_lo, s_hi = max(0, m - mp), min(l + m, l - mp)
            acc = 0.0
            for s in range(s_lo, s_hi + 1):
                num = (-1.0) ** (mp - m + s)
                den = (fact[l + m - s] * fact[s] * fact[mp - m + s] * fact[l - mp - s])
                acc += num / den * (cb ** (2 * l + m - mp - 2 * s)) * (sb ** (mp - m + 2 * s))
            d[i_mp, i_m] = pref * acc
    _WIGNER_CACHE[key] = d
    return d


def _s3_quadrature_weights(b):
    """Driscoll-Healy style beta quadrature weights for 2b beta samples."""
    k = np.arange(b)
    w = np.zeros(2 * b)
    for j in range(2 * b):
        w[j] = (2.0 / b) * np.sin(np.pi * (2 * j + 1) / (4.0 * b)) * np.sum(
            np.sin((2 * j + 1) * (2 * k + 1) * np.pi / (4.0 * b)) / (2 * k + 1))
    return w


def s2_near_identity_grid(n_alpha=6, max_beta=np.pi / 16, n_beta=1):
    beta = np.arange(1, n_beta + 1, dtype=np.float64) * max_beta / n_beta
    alpha = np.linspace(0.0, 2.0 * np.pi, num=n_alpha, endpoint=False)
    B, A = np.meshgrid(beta, alpha, indexing="ij")
    return A.reshape(-1), B.reshape(-1)


def so3_near_identity_grid(n_alpha=6, max_beta=np.pi / 8, n_beta=1,
                           max_gamma=2 * np.pi, n_gamma=6):
    beta = np.arange(1, n_beta + 1, dtype=np.float64) * max_beta / n_beta
    alpha = np.linspace(0.0, 2.0 * np.pi, num=n_alpha, endpoint=False)
    pre_gamma = np.linspace(-max_gamma, max_gamma, num=n_gamma, endpoint=False)
    A, B, preC = np.meshgrid(alpha, beta, pre_gamma, indexing="ij")
    C = preC - A
    return A.reshape(-1), B.reshape(-1), C.reshape(-1)


def _so3_precompute(b_in, b_out, grid_abg):
    nl, Lmax = b_out, 2 * b_out - 1
    N_in, N_out = 2 * b_in, 2 * b_out
    betas_in = np.pi * (2 * np.arange(N_in) + 1) / (4.0 * b_in)
    betas_out = np.pi * (2 * np.arange(N_out) + 1) / (4.0 * b_out)
    w = _s3_quadrature_weights(b_in)
    alpha_g, beta_g, gamma_g = grid_abg
    G = alpha_g.shape[0]

    dW_in = np.zeros((nl, Lmax, N_in, Lmax), np.float64)      # w_j * d^l_{mn}(beta_in_j)
    d_out_s = np.zeros((nl, Lmax, N_out, Lmax), np.float64)   # (2l+1) * d^l_{mn}(beta_out_j)
    Dc = np.zeros((nl, Lmax, Lmax, G), np.complex128)         # conj(D^l_{mn}(R_g))
    fidx_in = np.zeros((nl, Lmax), np.int32)
    fidx_out = np.zeros((nl, Lmax), np.int32)
    for l in range(nl):
        L = 2 * l + 1
        din = np.stack([_wigner_d_small(l, bj) for bj in betas_in], axis=1)    # [L, N_in, L]
        dout = np.stack([_wigner_d_small(l, bj) for bj in betas_out], axis=1)  # [L, N_out, L]
        dW_in[l, :L, :, :L] = din * w[None, :, None]
        d_out_s[l, :L, :, :L] = (2 * l + 1) * dout
        dg = np.stack([_wigner_d_small(l, bg) for bg in beta_g], axis=-1)      # [L, L, G]
        mv = np.arange(-l, l + 1)
        ea = np.exp(1j * mv[:, None, None] * alpha_g[None, None, :])
        eg = np.exp(1j * mv[None, :, None] * gamma_g[None, None, :])
        Dc[l, :L, :L, :] = ea * dg * eg
        fidx_in[l, :L] = (-mv) % N_in
        fidx_out[l, :L] = mv % N_out
    return dict(
        b_in=b_in, b_out=b_out, nl=nl, Lmax=Lmax,
        dW_in=jnp.asarray(dW_in, jnp.float32),
        d_out_s=jnp.asarray(d_out_s, jnp.float32),
        Dc_r=jnp.asarray(Dc.real, jnp.float32),
        Dc_i=jnp.asarray(Dc.imag, jnp.float32),
        fidx_in=fidx_in, fidx_out=fidx_out,
    )


def _s2_precompute(b_in, b_out, grid_ab):
    nl, Lmax = b_out, 2 * b_out - 1
    N_in, N_out = 2 * b_in, 2 * b_out
    betas_in = np.pi * (2 * np.arange(N_in) + 1) / (4.0 * b_in)
    betas_out = np.pi * (2 * np.arange(N_out) + 1) / (4.0 * b_out)
    w = _s3_quadrature_weights(b_in)
    alpha_g, beta_g = grid_ab
    G = alpha_g.shape[0]

    dW0 = np.zeros((nl, Lmax, N_in), np.float64)              # w_j * d^l_{m0}(beta_in_j)
    d_out_s = np.zeros((nl, Lmax, N_out, Lmax), np.float64)
    Dc0 = np.zeros((nl, Lmax, G), np.complex128)              # conj(Y^l_n)-style filter table
    fidx_in = np.zeros((nl, Lmax), np.int32)
    fidx_out = np.zeros((nl, Lmax), np.int32)
    for l in range(nl):
        L = 2 * l + 1
        din = np.stack([_wigner_d_small(l, bj) for bj in betas_in], axis=1)    # [L, N_in, L]
        dout = np.stack([_wigner_d_small(l, bj) for bj in betas_out], axis=1)
        dW0[l, :L, :] = din[:, :, l] * w[None, :]
        d_out_s[l, :L, :, :L] = (2 * l + 1) * dout
        dg0 = np.stack([_wigner_d_small(l, bg)[:, l] for bg in beta_g], axis=-1)  # [L, G]
        mv = np.arange(-l, l + 1)
        Dc0[l, :L, :] = np.exp(1j * mv[:, None] * alpha_g[None, :]) * dg0
        fidx_in[l, :L] = (-mv) % N_in
        fidx_out[l, :L] = mv % N_out
    return dict(
        b_in=b_in, b_out=b_out, nl=nl, Lmax=Lmax,
        dW0=jnp.asarray(dW0, jnp.float32),
        d_out_s=jnp.asarray(d_out_s, jnp.float32),
        Dc0_r=jnp.asarray(Dc0.real, jnp.float32),
        Dc0_i=jnp.asarray(Dc0.imag, jnp.float32),
        fidx_in=fidx_in, fidx_out=fidx_out,
    )


# ----------------------------------------------------------------------------
# Pallas kernels
# ----------------------------------------------------------------------------
def _spectral_mm_kernel(x_ref, y_ref, o_ref):
    # One fused complex block-diagonal matmul: bf16 operands on the MXU, f32 accumulation.
    o_ref[...] = jnp.dot(x_ref[...], y_ref[...], preferred_element_type=jnp.float32)


def pallas_spectral_matmul(Xp, Yp):
    """Xp [Mpad, Kpad] bf16, Yp [Kpad, Npad] bf16 -> [Mpad, Npad] f32.

    All SO(3)/S2 degrees of one convolution are packed as [xr|xi] @ blockdiag([[yr,yi],[-yi,yr]]).
    The N axis is split into a 2-wide 'parallel' grid (both v7x TensorCores; near-free elsewhere).
    """
    Mpad, Kpad = Xp.shape
    _, Npad = Yp.shape
    nhalf = Npad // 2
    flops = 2 * Mpad * Kpad * Npad
    bytes_accessed = (Mpad * Kpad + Kpad * Npad) * 2 + Mpad * Npad * 4
    return pl.pallas_call(
        _spectral_mm_kernel,
        grid=(2,),
        in_specs=[pl.BlockSpec((Mpad, Kpad), lambda j: (0, 0)),
                  pl.BlockSpec((Kpad, nhalf), lambda j: (0, j))],
        out_specs=pl.BlockSpec((Mpad, nhalf), lambda j: (0, j)),
        out_shape=jax.ShapeDtypeStruct((Mpad, Npad), jnp.float32),
        compiler_params=pltpu.CompilerParams(
            dimension_semantics=("parallel",),
            vmem_limit_bytes=32 * 1024 * 1024),
        cost_estimate=pl.CostEstimate(flops=flops, transcendentals=0,
                                      bytes_accessed=bytes_accessed),
    )(Xp, Yp)


def _relu_kernel(x_ref, o_ref):
    o_ref[...] = jnp.maximum(x_ref[...], 0.0)


def pallas_relu(x):
    """Tiled, lane-dense (512-lane) ReLU with a 'parallel' grid; VMEM-safe at any size."""
    shape = x.shape
    n = int(np.prod(shape))
    lane = 512
    rows = _round_up(n, lane) // lane
    if rows <= 512:
        rows_p = _round_up(rows, 8)
        tile_rows = rows_p
    else:
        rows_p = _round_up(rows, 512)
        tile_rows = 512
    total_p = rows_p * lane
    flat = x.reshape(-1).astype(jnp.float32)
    if total_p != n:
        flat = jnp.pad(flat, (0, total_p - n))
    x2 = flat.reshape(rows_p, lane)
    y = pl.pallas_call(
        _relu_kernel,
        grid=(rows_p // tile_rows,),
        in_specs=[pl.BlockSpec((tile_rows, lane), lambda i: (i, 0))],
        out_specs=pl.BlockSpec((tile_rows, lane), lambda i: (i, 0)),
        out_shape=jax.ShapeDtypeStruct((rows_p, lane), jnp.float32),
        compiler_params=pltpu.CompilerParams(
            dimension_semantics=("parallel",),
            vmem_limit_bytes=32 * 1024 * 1024),
    )(x2)
    if total_p != n:
        return y.reshape(-1)[:n].reshape(shape)
    return y.reshape(shape)


def _head_kernel(x_ref, w_ref, b_ref, o_ref):
    # Fused so3_integrate (quadrature-weighted sum) + BatchNorm1d(eval) + Linear(128 -> 1).
    o_ref[...] = jnp.sum(x_ref[...] * w_ref[...], axis=-1, keepdims=True) + b_ref[...]


# ----------------------------------------------------------------------------
# Spectral convolution modules
# ----------------------------------------------------------------------------
class _SpectralConvBase:
    """Pack per-degree complex spectra into one block-diagonal matmul, run the Pallas MXU
    kernel, and inverse-SO(3)-transform the result back to a spatial SO(3) signal."""

    def _init_packing(self, K_l, N_l):
        self.K_l, self.N_l = list(K_l), list(N_l)
        self.x_off = np.concatenate([[0], np.cumsum(2 * np.asarray(self.K_l))])[:-1].astype(int).tolist()
        self.z_off = np.concatenate([[0], np.cumsum(2 * np.asarray(self.N_l))])[:-1].astype(int).tolist()
        self.K_tot = int(2 * np.sum(self.K_l))
        self.N_tot = int(2 * np.sum(self.N_l))
        self.Kpad = _round_up(self.K_tot, 128)   # lane-dense K for bf16 MXU feed
        self.Npad = _round_up(self.N_tot, 256)   # lane-dense output, 2-way splittable

    def _pack_x(self, blocks, B, Lmax):
        Xp = jnp.concatenate(blocks, axis=-1).reshape(B * Lmax, self.K_tot)
        Mpad = _round_up(B * Lmax, 16)
        Xp = jnp.pad(Xp, ((0, Mpad - B * Lmax), (0, self.Kpad - self.K_tot)))
        return Xp.astype(jnp.bfloat16)

    def _pack_y(self, yr_list, yi_list):
        Yp = jnp.zeros((self.Kpad, self.Npad), jnp.float32)
        for l, (yr, yi) in enumerate(zip(yr_list, yi_list)):
            blk = jnp.concatenate(
                [jnp.concatenate([yr, yi], axis=1),
                 jnp.concatenate([-yi, yr], axis=1)], axis=0)       # [2K_l, 2N_l]
            Yp = Yp.at[self.x_off[l]:self.x_off[l] + 2 * self.K_l[l],
                       self.z_off[l]:self.z_off[l] + 2 * self.N_l[l]].set(blk)
        return Yp.astype(jnp.bfloat16)

    def _inverse_transform(self, Zp, B):
        pc = self.pc
        nl, Lmax, N_out = pc["nl"], pc["Lmax"], 2 * pc["b_out"]
        c_out = self.c_out
        M = B * Lmax
        zr_blocks, zi_blocks = [], []
        for l in range(nl):
            L = 2 * l + 1
            Nl = self.N_l[l]
            blk = Zp[:M, self.z_off[l]:self.z_off[l] + 2 * Nl].reshape(B, Lmax, 2, L, c_out)
            pad = ((0, 0), (0, 0), (0, Lmax - L), (0, 0))
            zr_blocks.append(jnp.pad(blk[:, :, 0], pad))
            zi_blocks.append(jnp.pad(blk[:, :, 1], pad))
        Zr = jnp.stack(zr_blocks, axis=0)                # [nl, B, Lmax, Lmax, c_out]
        Zi = jnp.stack(zi_blocks, axis=0)
        d = pc["d_out_s"]                                # [nl, Lmax, N_out(beta), Lmax]
        Tr = jnp.einsum("lbmnc,lmjn->lmnbcj", Zr, d)
        Ti = jnp.einsum("lbmnc,lmjn->lmnbcj", Zi, d)
        P = nl * Lmax * Lmax
        flat_bins = (pc["fidx_out"][:, :, None] * N_out
                     + pc["fidx_out"][:, None, :]).reshape(-1)
        Cr = jnp.zeros((N_out * N_out, B, c_out, N_out), jnp.float32)
        Ci = jnp.zeros((N_out * N_out, B, c_out, N_out), jnp.float32)
        Cr = Cr.at[flat_bins].add(Tr.reshape(P, B, c_out, N_out))
        Ci = Ci.at[flat_bins].add(Ti.reshape(P, B, c_out, N_out))
        Csum = (Cr + 1j * Ci).reshape(N_out, N_out, B, c_out, N_out)
        Csum = jnp.transpose(Csum, (2, 3, 0, 4, 1))      # [B, C, alpha, beta, gamma]
        spatial = jnp.fft.fftn(Csum, axes=(2, 4))
        return jnp.real(spatial).astype(jnp.float32)

    def __call__(self, x):
        B = x.shape[0]
        Xp = self._forward_spectrum_packed(x)            # [Mpad, Kpad]  bf16
        Yp = self._filter_spectrum_packed()              # [Kpad, Npad]  bf16 (constant-folds)
        Zp = pallas_spectral_matmul(Xp, Yp)              # Pallas MXU hot path
        z = self._inverse_transform(Zp, B)               # [B, c_out, 2b_out, 2b_out, 2b_out]
        return z + self.bias


class SO3Convolution(_SpectralConvBase):
    def __init__(self, c_in, c_out, b_in, b_out, grid, key):
        self.c_in, self.c_out, self.b_in, self.b_out = c_in, c_out, b_in, b_out
        self.pc = _so3_precompute(b_in, b_out, grid)
        G = grid[0].shape[0]
        self.scaling = 1.0 / math.sqrt(G * c_in * (b_out ** 3) / (b_in ** 3))
        self.kernel = jax.random.normal(key, (c_in, c_out, G), jnp.float32)
        self.bias = jnp.zeros((1, c_out, 1, 1, 1), jnp.float32)
        self._init_packing([(2 * l + 1) * c_in for l in range(b_out)],
                           [(2 * l + 1) * c_out for l in range(b_out)])

    def _forward_spectrum_packed(self, x):
        pc = self.pc
        nl, Lmax, N_in = pc["nl"], pc["Lmax"], 2 * pc["b_in"]
        B, C = x.shape[0], x.shape[1]
        Xf = jnp.fft.fftn(x.astype(jnp.complex64), axes=(2, 4))      # DFT over alpha, gamma
        Xt = jnp.transpose(Xf, (2, 4, 0, 1, 3)).reshape(N_in * N_in, B, C, N_in)
        flat_idx = (pc["fidx_in"][:, :, None] * N_in + pc["fidx_in"][:, None, :]).reshape(-1)
        Xs = jnp.take(Xt, flat_idx, axis=0).reshape(nl, Lmax, Lmax, B, C, N_in)
        scale = 1.0 / (2.0 * N_in * N_in)
        # TODO(synk): fuse this Wigner-beta contraction into the Pallas spectral matmul itself.
        Fr = jnp.einsum("lmnbcj,lmjn->lbmnc", jnp.real(Xs), pc["dW_in"]) * scale
        Fi = jnp.einsum("lmnbcj,lmjn->lbmnc", jnp.imag(Xs), pc["dW_in"]) * scale
        blocks = []
        for l in range(nl):
            L = 2 * l + 1
            blocks.append(Fr[l, :, :, :L, :].reshape(B, Lmax, L * C))
            blocks.append(Fi[l, :, :, :L, :].reshape(B, Lmax, L * C))
        return self._pack_x(blocks, B, Lmax)

    def _filter_spectrum_packed(self):
        pc = self.pc
        nl = pc["nl"]
        ker = self.kernel * self.scaling
        Fy_r = jnp.einsum("lmng,iog->lmnio", pc["Dc_r"], ker)        # [nl, Lmax, Lmax, Cin, Cout]
        Fy_i = jnp.einsum("lmng,iog->lmnio", pc["Dc_i"], ker)
        yr_list, yi_list = [], []
        for l in range(nl):
            L = 2 * l + 1
            yr = jnp.transpose(Fy_r[l, :L, :L], (0, 2, 1, 3)).reshape(L * self.c_in, L * self.c_out)
            yi = jnp.transpose(Fy_i[l, :L, :L], (0, 2, 1, 3)).reshape(L * self.c_in, L * self.c_out)
            yr_list.append(yr)
            yi_list.append(yi)
        return self._pack_y(yr_list, yi_list)


class S2Convolution(_SpectralConvBase):
    def __init__(self, c_in, c_out, b_in, b_out, grid, key):
        self.c_in, self.c_out, self.b_in, self.b_out = c_in, c_out, b_in, b_out
        self.pc = _s2_precompute(b_in, b_out, grid)
        G = grid[0].shape[0]
        self.scaling = 1.0 / math.sqrt(G * c_in * (b_out ** 2) / (b_in ** 2))
        self.kernel = jax.random.normal(key, (c_in, c_out, G), jnp.float32)
        self.bias = jnp.zeros((1, c_out, 1, 1, 1), jnp.float32)
        self._init_packing([c_in] * b_out,
                           [(2 * l + 1) * c_out for l in range(b_out)])

    def _forward_spectrum_packed(self, x):
        pc = self.pc
        nl, Lmax, N_in = pc["nl"], pc["Lmax"], 2 * pc["b_in"]
        B, C = x.shape[0], x.shape[1]
        Xf = jnp.fft.fft(x.astype(jnp.complex64), axis=2)            # DFT over alpha
        Xt = jnp.transpose(Xf, (2, 0, 1, 3))                         # [Na, B, C, Nb]
        Xs = jnp.take(Xt, pc["fidx_in"].reshape(-1), axis=0).reshape(nl, Lmax, B, C, N_in)
        scale = 1.0 / (2.0 * N_in)
        Fr = jnp.einsum("lmbcj,lmj->lbmc", jnp.real(Xs), pc["dW0"]) * scale
        Fi = jnp.einsum("lmbcj,lmj->lbmc", jnp.imag(Xs), pc["dW0"]) * scale
        blocks = []
        for l in range(nl):
            blocks.append(Fr[l])                                     # [B, Lmax, C]
            blocks.append(Fi[l])
        return self._pack_x(blocks, B, Lmax)

    def _filter_spectrum_packed(self):
        pc = self.pc
        nl = pc["nl"]
        ker = self.kernel * self.scaling
        Fy_r = jnp.einsum("lng,iog->lnio", pc["Dc0_r"], ker)         # [nl, Lmax, Cin, Cout]
        Fy_i = jnp.einsum("lng,iog->lnio", pc["Dc0_i"], ker)
        yr_list, yi_list = [], []
        for l in range(nl):
            L = 2 * l + 1
            yr = jnp.transpose(Fy_r[l, :L], (1, 0, 2)).reshape(self.c_in, L * self.c_out)
            yi = jnp.transpose(Fy_i[l, :L], (1, 0, 2)).reshape(self.c_in, L * self.c_out)
            yr_list.append(yr)
            yi_list.append(yi)
        return self._pack_y(yr_list, yi_list)


# ----------------------------------------------------------------------------
# Full model
# ----------------------------------------------------------------------------
class s2cnn_dhcp_long:
    """JAX/Pallas forward-pass port of the PyTorch s2cnn_dhcp_long module."""

    def __init__(self, bandwidth=8, key=None):
        assert bandwidth % 8 == 0, "bandwidth must be divisible by 8"
        if key is None:
            key = jax.random.PRNGKey(0)
        b = bandwidth
        grid_s2 = s2_near_identity_grid(n_alpha=6, max_beta=np.pi / 16, n_beta=1)
        grid_so3_1 = so3_near_identity_grid(6, np.pi / 16, 1, 2 * np.pi, 6)
        grid_so3_2 = so3_near_identity_grid(6, np.pi / 8, 1, 2 * np.pi, 6)
        grid_so3_3 = so3_near_identity_grid(6, np.pi / 4, 1, 2 * np.pi, 6)
        grid_so3_4 = so3_near_identity_grid(6, np.pi / 2, 1, 2 * np.pi, 6)
        ks = jax.random.split(key, 8)
        self.convs = [
            S2Convolution(3, 16, b, b, grid_s2, ks[0]),
            SO3Convolution(16, 32, b, b // 2, grid_so3_1, ks[1]),
            SO3Convolution(32, 32, b // 2, b // 2, grid_so3_2, ks[2]),
            SO3Convolution(32, 64, b // 2, b // 4, grid_so3_2, ks[3]),
            SO3Convolution(64, 64, b // 4, b // 4, grid_so3_3, ks[4]),
            SO3Convolution(64, 64, b // 4, b // 8, grid_so3_3, ks[5]),
            SO3Convolution(64, 128, b // 8, b // 8, grid_so3_4, ks[6]),
        ]
        # Fused head: so3_integrate + BatchNorm1d(128) + Linear(128, 1).
        # TODO(synk): BatchNorm1d is applied in eval mode with default running stats (mean 0, var 1).
        b_final = b // 8
        N = 2 * b_final
        w_quad = _s3_quadrature_weights(b_final)
        w_spatial = np.broadcast_to(w_quad[None, :, None], (N, N, N)).reshape(-1)   # weight per (a,b,g)
        eps = 1e-5
        w_lin = jax.random.normal(ks[7], (128,), jnp.float32) / math.sqrt(128.0)
        w_comb = (w_lin / math.sqrt(1.0 + eps))[:, None] * jnp.asarray(w_spatial, jnp.float32)[None, :]
        self.head_w = w_comb.reshape(1, -1)                   # [1, 128 * (2*b_final)^3]
        self.head_b = jnp.zeros((1, 1), jnp.float32)

    def __call__(self, x):
        for conv in self.convs:
            x = conv(x)
            x = pallas_relu(x)                                # nn.ReLU after every convolution
        B = x.shape[0]
        x2 = x.reshape(B, -1).astype(jnp.float32)
        return pl.pallas_call(
            _head_kernel,
            out_shape=jax.ShapeDtypeStruct((B, 1), jnp.float32),
        )(x2, self.head_w, self.head_b)


# ----------------------------------------------------------------------------
if __name__ == "__main__":
    key = jax.random.PRNGKey(0)
    kx, kp = jax.random.split(key)

    batch, bandwidth = 2, 8          # PyTorch default bandwidth is 85; small bandwidth for the demo
    x = jax.random.normal(kx, (batch, 3, 2 * bandwidth, 2 * bandwidth), jnp.float32)

    model = s2cnn_dhcp_long(bandwidth=bandwidth, key=kp)
    fwd = jax.jit(lambda xx: model(xx))
    out = jax.block_until_ready(fwd(x))

    assert out.shape == (batch, 1), out.shape
    assert bool(jnp.all(jnp.isfinite(out)))
    print("KERNEL_OK")
</pallas_src>

<mosaic_0001>
module attributes {stable_mosaic.version = 11 : i64} {
  func.func @_spectral_mm_kernel(%arg0: i32, %arg1: memref<32x128xbf16, #tpu.memory_space<vmem>>, %arg2: memref<128x1024xbf16, #tpu.memory_space<vmem>>, %arg3: memref<32x1024xf32, #tpu.memory_space<vmem>>) attributes {dimension_semantics = [#tpu.dimension_semantics<parallel>], iteration_bounds = array<i64: 2>, scalar_prefetch = 0 : i64, scratch_operands = 0 : i64, tpu.core_type = #tpu.core_type<tc>, window_params = [{pipeline_mode = #tpu.pipeline_mode<synchronous>, transform_indices = @transform_0, window_bounds = array<i64: 32, 128>}, {transform_indices = @transform_1, window_bounds = array<i64: 128, 1024>}, {transform_indices = @transform_2, window_bounds = array<i64: 32, 1024>}]} {
    %c0 = arith.constant 0 : index
    %c0_0 = arith.constant 0 : index
    %0 = vector.load %arg1[%c0, %c0_0] : memref<32x128xbf16, #tpu.memory_space<vmem>>, vector<32x128xbf16>
    %c0_1 = arith.constant 0 : index
    %c0_2 = arith.constant 0 : index
    %1 = vector.load %arg2[%c0_1, %c0_2] : memref<128x1024xbf16, #tpu.memory_space<vmem>>, vector<128x1024xbf16>
    %cst = arith.constant dense<0.000000e+00> : vector<32x1024xf32>
    %2 = tpu.matmul %0, %1, %cst {dimension_numbers = #tpu.dot_dimension_numbers<[1], [0], [0], [1], [0, 0, 1, 1], [], []>} : vector<32x128xbf16>, vector<128x1024xbf16>, vector<32x1024xf32> -> vector<32x1024xf32>
    %c0_3 = arith.constant 0 : index
    %c0_4 = arith.constant 0 : index
    %3 = vector.load %arg3[%c0_3, %c0_4] : memref<32x1024xf32, #tpu.memory_space<vmem>>, vector<32x1024xf32>
    tpu.vector_store %arg3[%c0_3, %c0_4], %2 {strides = array<i32>} : memref<32x1024xf32, #tpu.memory_space<vmem>>, vector<32x1024xf32>,
    return
  }
  func.func @transform_0(%arg0: i32) -> (i32, i32) {
    %c0_i32 = arith.constant 0 : i32
    %c0_i32_0 = arith.constant 0 : i32
    %c0_i32_1 = arith.constant 0 : i32
    return %c0_i32, %c0_i32_0 : i32, i32
  }
  func.func @transform_1(%arg0: i32) -> (i32, i32) {
    %c0_i32 = arith.constant 0 : i32
    %c0_i32_0 = arith.constant 0 : i32
    return %c0_i32, %arg0 : i32, i32
  }
  func.func @transform_2(%arg0: i32) -> (i32, i32) {
    %c0_i32 = arith.constant 0 : i32
    %c0_i32_0 = arith.constant 0 : i32
    return %c0_i32, %arg0 : i32, i32
  }
}

module attributes {stable_mosaic.version = 11 : i64} {
  func.func @_relu_kernel(%arg0: i32, %arg1: memref<256x512xf32, #tpu.memory_space<vmem>>, %arg2: memref<256x512xf32, #tpu.memory_space<vmem>>) attributes {dimension_semantics = [#tpu.dimension_semantics<parallel>], iteration_bounds = array<i64: 1>, scalar_prefetch = 0 : i64, scratch_operands = 0 : i64, tpu.core_type = #tpu.core_type<tc>, window_params = [{transform_indices = @transform_0, window_bounds = array<i64: 256, 512>}, {transform_indices = @transform_1, window_bounds = array<i64: 256, 512>}]} {
    %c0 = arith.constant 0 : index
    %c0_0 = arith.constant 0 : index
    %0 = vector.load %arg1[%c0, %c0_0] : memref<256x512xf32, #tpu.memory_space<vmem>>, vector<256x512xf32>
    %cst = arith.constant 0.000000e+00 : f32
    %1 = vector.broadcast %cst : f32 to vector<256x512xf32>
    %2 = arith.maximumf %0, %1 : vector<256x512xf32>
    %c0_1 = arith.constant 0 : index
    %c0_2 = arith.constant 0 : index
    %3 = vector.load %arg2[%c0_1, %c0_2] : memref<256x512xf32, #tpu.memory_space<vmem>>, vector<256x512xf32>
    tpu.vector_store %arg2[%c0_1, %c0_2], %2 {strides = array<i32>} : memref<256x512xf32, #tpu.memory_space<vmem>>, vector<256x512xf32>,
    return
  }
  func.func @transform_0(%arg0: i32) -> (i32, i32) {
    %c0_i32 = arith.constant 0 : i32
    %c0_i32_0 = arith.constant 0 : i32
    return %arg0, %c0_i32 : i32, i32
  }
  func.func @transform_1(%arg0: i32) -> (i32, i32) {
    %c0_i32 = arith.constant 0 : i32
    %c0_i32_0 = arith.constant 0 : i32
    return %arg0, %c0_i32 : i32, i32
  }
}

module attributes {stable_mosaic.version = 11 : i64} {
  func.func @_spectral_mm_kernel(%arg0: i32, %arg1: memref<16x512xbf16, #tpu.memory_space<vmem>>, %arg2: memref<512x512xbf16, #tpu.memory_space<vmem>>, %arg3: memref<16x512xf32, #tpu.memory_space<vmem>>) attributes {dimension_semantics = [#tpu.dimension_semantics<parallel>], iteration_bounds = array<i64: 2>, scalar_prefetch = 0 : i64, scratch_operands = 0 : i64, tpu.core_type = #tpu.core_type<tc>, window_params = [{pipeline_mode = #tpu.pipeline_mode<synchronous>, transform_indices = @transform_0, window_bounds = array<i64: 16, 512>}, {transform_indices = @transform_1, window_bounds = array<i64: 512, 512>}, {transform_indices = @transform_2, window_bounds = array<i64: 16, 512>}]} {
    %c0 = arith.constant 0 : index
    %c0_0 = arith.constant 0 : index
    %0 = vector.load %arg1[%c0, %c0_0] : memref<16x512xbf16, #tpu.memory_space<vmem>>, vector<16x512xbf16>
    %c0_1 = arith.constant 0 : index
    %c0_2 = arith.constant 0 : index
    %1 = vector.load %arg2[%c0_1, %c0_2] : memref<512x512xbf16, #tpu.memory_space<vmem>>, vector<512x512xbf16>
    %cst = arith.constant dense<0.000000e+00> : vector<16x512xf32>
    %2 = tpu.matmul %0, %1, %cst {dimension_numbers = #tpu.dot_dimension_numbers<[1], [0], [0], [1], [0, 0, 1, 1], [], []>} : vector<16x512xbf16>, vector<512x512xbf16>, vector<16x512xf32> -> vector<16x512xf32>
    %c0_3 = arith.constant 0 : index
    %c0_4 = arith.constant 0 : index
    %3 = vector.load %arg3[%c0_3, %c0_4] : memref<16x512xf32, #tpu.memory_space<vmem>>, vector<16x512xf32>
    tpu.vector_store %arg3[%c0_3, %c0_4], %2 {strides = array<i32>} : memref<16x512xf32, #tpu.memory_space<vmem>>, vector<16x512xf32>,
    return
  }
  func.func @transform_0(%arg0: i32) -> (i32, i32) {
    %c0_i32 = arith.constant 0 : i32
    %c0_i32_0 = arith.constant 0 : i32
    %c0_i32_1 = arith.constant 0 : i32
    return %c0_i32, %c0_i32_0 : i32, i32
  }
  func.func @transform_1(%arg0: i32) -> (i32, i32) {
    %c0_i32 = arith.constant 0 : i32
    %c0_i32_0 = arith.constant 0 : i32
    return %c0_i32, %arg0 : i32, i32
  }
  func.func @transform_2(%arg0: i32) -> (i32, i32) {
    %c0_i32 = arith.constant 0 : i32
    %c0_i32_0 = arith.constant 0 : i32
    return %c0_i32, %arg0 : i32, i32
  }
}

module attributes {stable_mosaic.version = 11 : i64} {
  func.func @_relu_kernel(%arg0: i32, %arg1: memref<64x512xf32, #tpu.memory_space<vmem>>, %arg2: memref<64x512xf32, #tpu.memory_space<vmem>>) attributes {dimension_semantics = [#tpu.dimension_semantics<parallel>], iteration_bounds = array<i64: 1>, scalar_prefetch = 0 : i64, scratch_operands = 0 : i64, tpu.core_type = #tpu.core_type<tc>, window_params = [{transform_indices = @transform_0, window_bounds = array<i64: 64, 512>}, {transform_indices = @transform_1, window_bounds = array<i64: 64, 512>}]} {
    %c0 = arith.constant 0 : index
    %c0_0 = arith.constant 0 : index
    %0 = vector.load %arg1[%c0, %c0_0] : memref<64x512xf32, #tpu.memory_space<vmem>>, vector<64x512xf32>
    %cst = arith.constant 0.000000e+00 : f32
    %1 = vector.broadcast %cst : f32 to vector<64x512xf32>
    %2 = arith.maximumf %0, %1 : vector<64x512xf32>
    %c0_1 = arith.constant 0 : index
    %c0_2 = arith.constant 0 : index
    %3 = vector.load %arg2[%c0_1, %c0_2] : memref<64x512xf32, #tpu.memory_space<vmem>>, vector<64x512xf32>
    tpu.vector_store %arg2[%c0_1, %c0_2], %2 {strides = array<i32>} : memref<64x512xf32, #tpu.memory_space<vmem>>, vector<64x512xf32>,
    return
  }
  func.func @transform_0(%arg0: i32) -> (i32, i32) {
    %c0_i32 = arith.constant 0 : i32
    %c0_i32_0 = arith.constant 0 : i32
    return %arg0, %c0_i32 : i32, i32
  }
  func.func @transform_1(%arg0: i32) -> (i32, i32) {
    %c0_i32 = arith.constant 0 : i32
    %c0_i32_0 = arith.constant 0 : i32
    return %arg0, %c0_i32 : i32, i32
  }
}

module attributes {stable_mosaic.version = 11 : i64} {
  func.func @_spectral_mm_kernel(%arg0: i32, %arg1: memref<16x1024xbf16, #tpu.memory_space<vmem>>, %arg2: memref<1024x512xbf16, #tpu.memory_space<vmem>>, %arg3: memref<16x512xf32, #tpu.memory_space<vmem>>) attributes {dimension_semantics = [#tpu.dimension_semantics<parallel>], iteration_bounds = array<i64: 2>, scalar_prefetch = 0 : i64, scratch_operands = 0 : i64, tpu.core_type = #tpu.core_type<tc>, window_params = [{pipeline_mode = #tpu.pipeline_mode<synchronous>, transform_indices = @transform_0, window_bounds = array<i64: 16, 1024>}, {transform_indices = @transform_1, window_bounds = array<i64: 1024, 512>}, {transform_indices = @transform_2, window_bounds = array<i64: 16, 512>}]} {
    %c0 = arith.constant 0 : index
    %c0_0 = arith.constant 0 : index
    %0 = vector.load %arg1[%c0, %c0_0] : memref<16x1024xbf16, #tpu.memory_space<vmem>>, vector<16x1024xbf16>
    %c0_1 = arith.constant 0 : index
    %c0_2 = arith.constant 0 : index
    %1 = vector.load %arg2[%c0_1, %c0_2] : memref<1024x512xbf16, #tpu.memory_space<vmem>>, vector<1024x512xbf16>
    %cst = arith.constant dense<0.000000e+00> : vector<16x512xf32>
    %2 = tpu.matmul %0, %1, %cst {dimension_numbers = #tpu.dot_dimension_numbers<[1], [0], [0], [1], [0, 0, 1, 1], [], []>} : vector<16x1024xbf16>, vector<1024x512xbf16>, vector<16x512xf32> -> vector<16x512xf32>
    %c0_3 = arith.constant 0 : index
    %c0_4 = arith.constant 0 : index
    %3 = vector.load %arg3[%c0_3, %c0_4] : memref<16x512xf32, #tpu.memory_space<vmem>>, vector<16x512xf32>
    tpu.vector_store %arg3[%c0_3, %c0_4], %2 {strides = array<i32>} : memref<16x512xf32, #tpu.memory_space<vmem>>, vector<16x512xf32>,
    return
  }
  func.func @transform_0(%arg0: i32) -> (i32, i32) {
    %c0_i32 = arith.constant 0 : i32
    %c0_i32_0 = arith.constant 0 : i32
    %c0_i32_1 = arith.constant 0 : i32
    return %c0_i32, %c0_i32_0 : i32, i32
  }
  func.func @transform_1(%arg0: i32) -> (i32, i32) {
    %c0_i32 = arith.constant 0 : i32
    %c0_i32_0 = arith.constant 0 : i32
    return %c0_i32, %arg0 : i32, i32
  }
  func.func @transform_2(%arg0: i32) -> (i32, i32) {
    %c0_i32 = arith.constant 0 : i32
    %c0_i32_0 = arith.constant 0 : i32
    return %c0_i32, %arg0 : i32, i32
  }
}

module attributes {stable_mosaic.version = 11 : i64} {
  func.func @_spectral_mm_kernel(%arg0: i32, %arg1: memref<16x256xbf16, #tpu.memory_space<vmem>>, %arg2: memref<256x256xbf16, #tpu.memory_space<vmem>>, %arg3: memref<16x256xf32, #tpu.memory_space<vmem>>) attributes {dimension_semantics = [#tpu.dimension_semantics<parallel>], iteration_bounds = array<i64: 2>, scalar_prefetch = 0 : i64, scratch_operands = 0 : i64, tpu.core_type = #tpu.core_type<tc>, window_params = [{pipeline_mode = #tpu.pipeline_mode<synchronous>, transform_indices = @transform_0, window_bounds = array<i64: 16, 256>}, {transform_indices = @transform_1, window_bounds = array<i64: 256, 256>}, {transform_indices = @transform_2, window_bounds = array<i64: 16, 256>}]} {
    %c0 = arith.constant 0 : index
    %c0_0 = arith.constant 0 : index
    %0 = vector.load %arg1[%c0, %c0_0] : memref<16x256xbf16, #tpu.memory_space<vmem>>, vector<16x256xbf16>
    %c0_1 = arith.constant 0 : index
    %c0_2 = arith.constant 0 : index
    %1 = vector.load %arg2[%c0_1, %c0_2] : memref<256x256xbf16, #tpu.memory_space<vmem>>, vector<256x256xbf16>
    %cst = arith.constant dense<0.000000e+00> : vector<16x256xf32>
    %2 = tpu.matmul %0, %1, %cst {dimension_numbers = #tpu.dot_dimension_numbers<[1], [0], [0], [1], [0, 0, 1, 1], [], []>} : vector<16x256xbf16>, vector<256x256xbf16>, vector<16x256xf32> -> vector<16x256xf32>
    %c0_3 = arith.constant 0 : index
    %c0_4 = arith.constant 0 : index
    %3 = vector.load %arg3[%c0_3, %c0_4] : memref<16x256xf32, #tpu.memory_space<vmem>>, vector<16x256xf32>
    tpu.vector_store %arg3[%c0_3, %c0_4], %2 {strides = array<i32>} : memref<16x256xf32, #tpu.memory_space<vmem>>, vector<16x256xf32>,
    return
  }
  func.func @transform_0(%arg0: i32) -> (i32, i32) {
    %c0_i32 = arith.constant 0 : i32
    %c0_i32_0 = arith.constant 0 : i32
    %c0_i32_1 = arith.constant 0 : i32
    return %c0_i32, %c0_i32_0 : i32, i32
  }
  func.func @transform_1(%arg0: i32) -> (i32, i32) {
    %c0_i32 = arith.constant 0 : i32
    %c0_i32_0 = arith.constant 0 : i32
    return %c0_i32, %arg0 : i32, i32
  }
  func.func @transform_2(%arg0: i32) -> (i32, i32) {
    %c0_i32 = arith.constant 0 : i32
    %c0_i32_0 = arith.constant 0 : i32
    return %c0_i32, %arg0 : i32, i32
  }
}

module attributes {stable_mosaic.version = 11 : i64} {
  func.func @_relu_kernel(%arg0: i32, %arg1: memref<16x512xf32, #tpu.memory_space<vmem>>, %arg2: memref<16x512xf32, #tpu.memory_space<vmem>>) attributes {dimension_semantics = [#tpu.dimension_semantics<parallel>], iteration_bounds = array<i64: 1>, scalar_prefetch = 0 : i64, scratch_operands = 0 : i64, tpu.core_type = #tpu.core_type<tc>, window_params = [{transform_indices = @transform_0, window_bounds = array<i64: 16, 512>}, {transform_indices = @transform_1, window_bounds = array<i64: 16, 512>}]} {
    %c0 = arith.constant 0 : index
    %c0_0 = arith.constant 0 : index
    %0 = vector.load %arg1[%c0, %c0_0] : memref<16x512xf32, #tpu.memory_space<vmem>>, vector<16x512xf32>
    %cst = arith.constant 0.000000e+00 : f32
    %1 = vector.broadcast %cst : f32 to vector<16x512xf32>
    %2 = arith.maximumf %0, %1 : vector<16x512xf32>
    %c0_1 = arith.constant 0 : index
    %c0_2 = arith.constant 0 : index
    %3 = vector.load %arg2[%c0_1, %c0_2] : memref<16x512xf32, #tpu.memory_space<vmem>>, vector<16x512xf32>
    tpu.vector_store %arg2[%c0_1, %c0_2], %2 {strides = array<i32>} : memref<16x512xf32, #tpu.memory_space<vmem>>, vector<16x512xf32>,
    return
  }
  func.func @transform_0(%arg0: i32) -> (i32, i32) {
    %c0_i32 = arith.constant 0 : i32
    %c0_i32_0 = arith.constant 0 : i32
    return %arg0, %c0_i32 : i32, i32
  }
  func.func @transform_1(%arg0: i32) -> (i32, i32) {
    %c0_i32 = arith.constant 0 : i32
    %c0_i32_0 = arith.constant 0 : i32
    return %arg0, %c0_i32 : i32, i32
  }
}

module attributes {stable_mosaic.version = 11 : i64} {
  func.func @_spectral_mm_kernel(%arg0: i32, %arg1: memref<16x512xbf16, #tpu.memory_space<vmem>>, %arg2: memref<512x256xbf16, #tpu.memory_space<vmem>>, %arg3: memref<16x256xf32, #tpu.memory_space<vmem>>) attributes {dimension_semantics = [#tpu.dimension_semantics<parallel>], iteration_bounds = array<i64: 2>, scalar_prefetch = 0 : i64, scratch_operands = 0 : i64, tpu.core_type = #tpu.core_type<tc>, window_params = [{pipeline_mode = #tpu.pipeline_mode<synchronous>, transform_indices = @transform_0, window_bounds = array<i64: 16, 512>}, {transform_indices = @transform_1, window_bounds = array<i64: 512, 256>}, {transform_indices = @transform_2, window_bounds = array<i64: 16, 256>}]} {
    %c0 = arith.constant 0 : index
    %c0_0 = arith.constant 0 : index
    %0 = vector.load %arg1[%c0, %c0_0] : memref<16x512xbf16, #tpu.memory_space<vmem>>, vector<16x512xbf16>
    %c0_1 = arith.constant 0 : index
    %c0_2 = arith.constant 0 : index
    %1 = vector.load %arg2[%c0_1, %c0_2] : memref<512x256xbf16, #tpu.memory_space<vmem>>, vector<512x256xbf16>
    %cst = arith.constant dense<0.000000e+00> : vector<16x256xf32>
    %2 = tpu.matmul %0, %1, %cst {dimension_numbers = #tpu.dot_dimension_numbers<[1], [0], [0], [1], [0, 0, 1, 1], [], []>} : vector<16x512xbf16>, vector<512x256xbf16>, vector<16x256xf32> -> vector<16x256xf32>
    %c0_3 = arith.constant 0 : index
    %c0_4 = arith.constant 0 : index
    %3 = vector.load %arg3[%c0_3, %c0_4] : memref<16x256xf32, #tpu.memory_space<vmem>>, vector<16x256xf32>
    tpu.vector_store %arg3[%c0_3, %c0_4], %2 {strides = array<i32>} : memref<16x256xf32, #tpu.memory_space<vmem>>, vector<16x256xf32>,
    return
  }
  func.func @transform_0(%arg0: i32) -> (i32, i32) {
    %c0_i32 = arith.constant 0 : i32
    %c0_i32_0 = arith.constant 0 : i32
    %c0_i32_1 = arith.constant 0 : i32
    return %c0_i32, %c0_i32_0 : i32, i32
  }
  func.func @transform_1(%arg0: i32) -> (i32, i32) {
    %c0_i32 = arith.constant 0 : i32
    %c0_i32_0 = arith.constant 0 : i32
    return %c0_i32, %arg0 : i32, i32
  }
  func.func @transform_2(%arg0: i32) -> (i32, i32) {
    %c0_i32 = arith.constant 0 : i32
    %c0_i32_0 = arith.constant 0 : i32
    return %c0_i32, %arg0 : i32, i32
  }
}

module attributes {stable_mosaic.version = 11 : i64} {
  func.func @_spectral_mm_kernel(%arg0: i32, %arg1: memref<16x128xbf16, #tpu.memory_space<vmem>>, %arg2: memref<128x128xbf16, #tpu.memory_space<vmem>>, %arg3: memref<16x128xf32, #tpu.memory_space<vmem>>) attributes {dimension_semantics = [#tpu.dimension_semantics<parallel>], iteration_bounds = array<i64: 2>, scalar_prefetch = 0 : i64, scratch_operands = 0 : i64, tpu.core_type = #tpu.core_type<tc>, window_params = [{pipeline_mode = #tpu.pipeline_mode<synchronous>, transform_indices = @transform_0, window_bounds = array<i64: 16, 128>}, {transform_indices = @transform_1, window_bounds = array<i64: 128, 128>}, {transform_indices = @transform_2, window_bounds = array<i64: 16, 128>}]} {
    %c0 = arith.constant 0 : index
    %c0_0 = arith.constant 0 : index
    %0 = vector.load %arg1[%c0, %c0_0] : memref<16x128xbf16, #tpu.memory_space<vmem>>, vector<16x128xbf16>
    %c0_1 = arith.constant 0 : index
    %c0_2 = arith.constant 0 : index
    %1 = vector.load %arg2[%c0_1, %c0_2] : memref<128x128xbf16, #tpu.memory_space<vmem>>, vector<128x128xbf16>
    %cst = arith.constant dense<0.000000e+00> : vector<16x128xf32>
    %2 = tpu.matmul %0, %1, %cst {dimension_numbers = #tpu.dot_dimension_numbers<[1], [0], [0], [1], [0, 0, 1, 1], [], []>} : vector<16x128xbf16>, vector<128x128xbf16>, vector<16x128xf32> -> vector<16x128xf32>
    %c0_3 = arith.constant 0 : index
    %c0_4 = arith.constant 0 : index
    %3 = vector.load %arg3[%c0_3, %c0_4] : memref<16x128xf32, #tpu.memory_space<vmem>>, vector<16x128xf32>
    tpu.vector_store %arg3[%c0_3, %c0_4], %2 {strides = array<i32>} : memref<16x128xf32, #tpu.memory_space<vmem>>, vector<16x128xf32>,
    return
  }
  func.func @transform_0(%arg0: i32) -> (i32, i32) {
    %c0_i32 = arith.constant 0 : i32
    %c0_i32_0 = arith.constant 0 : i32
    %c0_i32_1 = arith.constant 0 : i32
    return %c0_i32, %c0_i32_0 : i32, i32
  }
  func.func @transform_1(%arg0: i32) -> (i32, i32) {
    %c0_i32 = arith.constant 0 : i32
    %c0_i32_0 = arith.constant 0 : i32
    return %c0_i32, %arg0 : i32, i32
  }
  func.func @transform_2(%arg0: i32) -> (i32, i32) {
    %c0_i32 = arith.constant 0 : i32
    %c0_i32_0 = arith.constant 0 : i32
    return %c0_i32, %arg0 : i32, i32
  }
}

module attributes {stable_mosaic.version = 11 : i64} {
  func.func @_relu_kernel(%arg0: i32, %arg1: memref<8x512xf32, #tpu.memory_space<vmem>>, %arg2: memref<8x512xf32, #tpu.memory_space<vmem>>) attributes {dimension_semantics = [#tpu.dimension_semantics<parallel>], iteration_bounds = array<i64: 1>, scalar_prefetch = 0 : i64, scratch_operands = 0 : i64, tpu.core_type = #tpu.core_type<tc>, window_params = [{transform_indices = @transform_0, window_bounds = array<i64: 8, 512>}, {transform_indices = @transform_1, window_bounds = array<i64: 8, 512>}]} {
    %c0 = arith.constant 0 : index
    %c0_0 = arith.constant 0 : index
    %0 = vector.load %arg1[%c0, %c0_0] : memref<8x512xf32, #tpu.memory_space<vmem>>, vector<8x512xf32>
    %cst = arith.constant 0.000000e+00 : f32
    %1 = vector.broadcast %cst : f32 to vector<8x512xf32>
    %2 = arith.maximumf %0, %1 : vector<8x512xf32>
    %c0_1 = arith.constant 0 : index
    %c0_2 = arith.constant 0 : index
    %3 = vector.load %arg2[%c0_1, %c0_2] : memref<8x512xf32, #tpu.memory_space<vmem>>, vector<8x512xf32>
    tpu.vector_store %arg2[%c0_1, %c0_2], %2 {strides = array<i32>} : memref<8x512xf32, #tpu.memory_space<vmem>>, vector<8x512xf32>,
    return
  }
  func.func @transform_0(%arg0: i32) -> (i32, i32) {
    %c0_i32 = arith.constant 0 : i32
    %c0_i32_0 = arith.constant 0 : i32
    return %arg0, %c0_i32 : i32, i32
  }
  func.func @transform_1(%arg0: i32) -> (i32, i32) {
    %c0_i32 = arith.constant 0 : i32
    %c0_i32_0 = arith.constant 0 : i32
    return %arg0, %c0_i32 : i32, i32
  }
}

module attributes {stable_mosaic.version = 11 : i64} {
  func.func @_head_kernel(%arg0: memref<2x1024xf32, #tpu.memory_space<vmem>>, %arg1: memref<1x1024xf32, #tpu.memory_space<vmem>>, %arg2: memref<1x1xf32, #tpu.memory_space<vmem>>, %arg3: memref<2x1xf32, #tpu.memory_space<vmem>>) attributes {dimension_semantics = [], scalar_prefetch = 0 : i64, scratch_operands = 0 : i64, tpu.core_type = #tpu.core_type<tc>} {
    %c0 = arith.constant 0 : index
    %c0_0 = arith.constant 0 : index
    %0 = vector.load %arg0[%c0, %c0_0] : memref<2x1024xf32, #tpu.memory_space<vmem>>, vector<2x1024xf32>
    %c0_1 = arith.constant 0 : index
    %c0_2 = arith.constant 0 : index
    %1 = vector.load %arg1[%c0_1, %c0_2] : memref<1x1024xf32, #tpu.memory_space<vmem>>, vector<1x1024xf32>
    %2 = vector.broadcast %1 : vector<1x1024xf32> to vector<2x1024xf32>
    %3 = arith.mulf %0, %2 : vector<2x1024xf32>
    %cst = arith.constant dense<0.000000e+00> : vector<2xf32>
    %4 = vector.multi_reduction <add>, %3, %cst [1] : vector<2x1024xf32> to vector<2xf32>
    %5 = vector.shape_cast %4 : vector<2xf32> to vector<2x1xf32>
    %c0_3 = arith.constant 0 : index
    %c0_4 = arith.constant 0 : index
    %6 = vector.load %arg2[%c0_3, %c0_4] : memref<1x1xf32, #tpu.memory_space<vmem>>, vector<1x1xf32>
    %7 = vector.broadcast %6 : vector<1x1xf32> to vector<2x1xf32>
    %8 = arith.addf %5, %7 : vector<2x1xf32>
    %c0_5 = arith.constant 0 : index
    %c0_6 = arith.constant 0 : index
    %9 = vector.load %arg3[%c0_5, %c0_6] : memref<2x1xf32, #tpu.memory_space<vmem>>, vector<2x1xf32>
    tpu.vector_store %arg3[%c0_5, %c0_6], %8 {strides = array<i32>} : memref<2x1xf32, #tpu.memory_space<vmem>>, vector<2x1xf32>,
    return
  }
}

</mosaic_0001>

<bundles_post_ra>
// kernel: _lambda_.15
= control target key start
LH: loop header
LB: loop body
LE: loop exit
PB: predicated region body
PF: predicated region fallthrough
CT: control target
= control target key end

     0   :  { %s1425_s9 = smov 0   ;;  %s1427_s10 = smov 0   ;;  %s1877_s0 = inlined_call_operand.vmem [shape: bf16[32,128], index: 0, kind: input, shape index: {}]   ;;  %s1878_s1 = inlined_call_operand.vmem [shape: bf16[128,2048], index: 1, kind: input, shape index: {}]   ;;  %s1879_s2 = inlined_call_operand.vmem [shape: f32[32,2048], index: 2, kind: output, shape index: {}]  }
   0x1   :  { %s1429_s11 = smov 0  }
   0x2 LB: > { %s1015_s12 = sadd.s32 4294967295, %s1408_s11   ;;  %s1442_s13 = sadd.s32 1, %s1408_s11   ;;  %s1408_s11 = sphi %s1429_s11, %s1883_s11   ;;  %s1404_s10 = sphi %s1427_s10, %s1882_s10   ;;  %s1400_s9 = sphi %s1425_s9, %s1881_s9  }
   0x3   : > { %s37_s14 = ssub.s32 %s1408_s11, %s1442_s13  ;;  %s40_s15 = sadd.s32 1, %s1404_s10 }
   0x4   : > { %p38_p0 = scmp.eq.s32.totalorder %s37_s14, 0  ;;  %p47_p1 = scmp.ne.s32.totalorder %s1404_s10, %s1400_s9 }
   0x5   : > { %p48_p2 = scmp.eq.s32.totalorder %s1408_s11, 0  ;;  %p77_p3 = scmp.eq.s32.totalorder %s1015_s12, 1 }
   0x6   : > { %s1453_s16 = scalar_select %p38_p0, %s1404_s10, %s40_s15  }
   0x7   : > { %p49_p4 = por %p48_p2, %p47_p1  ;;  %p1455_p5 = por %p77_p3, %p47_p1 }
   0x8   : > { %p1018_p6 = scmp.ge.s32.totalorder %s1408_s11, 2 }
   0xa   : > { %102 = sbr.rel (%p1018_p6) target bundleno = 83 (0x53), region = 20 }
   0xf   : > { %105 = sbr.rel (!%p49_p4) target bundleno = 83 (0x53), region = 24  ;;  %s107_s18 = sand.u32 (%p49_p4), 1, %s1404_s10  }
  0x10   : > { %s1294_s19 = sshll.u32 (%p49_p4), %s1408_s11, 5  ;;  %s1019_s20 = sshll.u32 (%p49_p4), %s107_s18, 9 }
  0x11   : > { %s1465_s23 = scalar_lea.vmem (%p49_p4), %s1878_s1, %s1294_s19  ;;  %s1470_s24 = scalar_lea.vmem (%p49_p4), [#allocation2], %s1019_s20 }
  0x12   : > { %v125_v0 = vld [vmem:[%s1465_s23] sm:$0xff] (%p49_p4)  ;;  %v127_v1 = vld [vmem:[%s1465_s23 + $0x8] sm:$0xff] (%p49_p4)  ;;  %v129_v2 = vld [vmem:[%s1465_s23 + $0x10] sm:$0xff] (%p49_p4) }
  0x13   : > { %126 = vst [vmem:[%s1470_s24] sm:$0xff] (%p49_p4), %v125_v0  ;;  %v131_v3 = vld [vmem:[%s1465_s23 + $0x18] sm:$0xff] (%p49_p4)  ;;  %v133_v4 = vld [vmem:[%s1465_s23 + $0x40] sm:$0xff] (%p49_p4)  ;;  %v135_v5 = vld [vmem:[%s1465_s23 + $0x48] sm:$0xff] (%p49_p4) }
  0x14   : > { %128 = vst [vmem:[%s1470_s24 + $0x8] sm:$0xff] %v127_v1  ;;  %v137_v6 = vld [vmem:[%s1465_s23 + $0x50] sm:$0xff]  ;;  %v139_v7 = vld [vmem:[%s1465_s23 + $0x58] sm:$0xff]  ;;  %v141_v8 = vld [vmem:[%s1465_s23 + $0x80] sm:$0xff] }
  0x15   : > { %130 = vst [vmem:[%s1470_s24 + $0x10] sm:$0xff] %v129_v2  ;;  %v143_v9 = vld [vmem:[%s1465_s23 + $0x88] sm:$0xff]  ;;  %v145_v10 = vld [vmem:[%s1465_s23 + $0x90] sm:$0xff]  ;;  %v147_v11 = vld [vmem:[%s1465_s23 + $0x98] sm:$0xff] }
  0x16   : > { %132 = vst [vmem:[%s1470_s24 + $0x18] sm:$0xff] %v131_v3  ;;  %v149_v12 = vld [vmem:[%s1465_s23 + $0xc0] sm:$0xff]  ;;  %v151_v13 = vld [vmem:[%s1465_s23 + $0xc8] sm:$0xff]  ;;  %v153_v14 = vld [vmem:[%s1465_s23 + $0xd0] sm:$0xff] }
  0x17   : > { %134 = vst [vmem:[%s1470_s24 + $0x20] sm:$0xff] %v133_v4  ;;  %v155_v15 = vld [vmem:[%s1465_s23 + $0xd8] sm:$0xff]  ;;  %v157_v16 = vld [vmem:[%s1465_s23 + $0x100] sm:$0xff]  ;;  %v159_v17 = vld [vmem:[%s1465_s23 + $0x108] sm:$0xff] }
  0x18   : > { %136 = vst [vmem:[%s1470_s24 + $0x28] sm:$0xff] %v135_v5  ;;  %v161_v18 = vld [vmem:[%s1465_s23 + $0x110] sm:$0xff]  ;;  %v163_v19 = vld [vmem:[%s1465_s23 + $0x118] sm:$0xff]  ;;  %v165_v20 = vld [vmem:[%s1465_s23 + $0x140] sm:$0xff] }
  0x19   : > { %138 = vst [vmem:[%s1470_s24 + $0x30] sm:$0xff] %v137_v6  ;;  %v167_v21 = vld [vmem:[%s1465_s23 + $0x148] sm:$0xff]  ;;  %v169_v22 = vld [vmem:[%s1465_s23 + $0x150] sm:$0xff]  ;;  %v171_v23 = vld [vmem:[%s1465_s23 + $0x158] sm:$0xff] }
  0x1a   : > { %140 = vst [vmem:[%s1470_s24 + $0x38] sm:$0xff] %v139_v7  ;;  %v173_v24 = vld [vmem:[%s1465_s23 + $0x180] sm:$0xff]  ;;  %v175_v25 = vld [vmem:[%s1465_s23 + $0x188] sm:$0xff]  ;;  %v177_v26 = vld [vmem:[%s1465_s23 + $0x190] sm:$0xff] }
  0x1b   : > { %142 = vst [vmem:[%s1470_s24 + $0x40] sm:$0xff] %v141_v8  ;;  %v179_v27 = vld [vmem:[%s1465_s23 + $0x198] sm:$0xff]  ;;  %v181_v28 = vld [vmem:[%s1465_s23 + $0x1c0] sm:$0xff]  ;;  %v183_v29 = vld [vmem:[%s1465_s23 + $0x1c8] sm:$0xff] }
  0x1c   : > { %144 = vst [vmem:[%s1470_s24 + $0x48] sm:$0xff] %v143_v9  ;;  %v185_v30 = vld [vmem:[%s1465_s23 + $0x1d0] sm:$0xff]  ;;  %v187_v31 = vld [vmem:[%s1465_s23 + $0x1d8] sm:$0xff]  ;;  %v189_v32 = vld [vmem:[%s1465_s23 + $0x200] sm:$0xff] }
  0x1d   : > { %146 = vst [vmem:[%s1470_s24 + $0x50] sm:$0xff] %v145_v10  ;;  %v191_v33 = vld [vmem:[%s1465_s23 + $0x208] sm:$0xff]  ;;  %v193_v34 = vld [vmem:[%s1465_s23 + $0x210] sm:$0xff]  ;;  %v195_v35 = vld [vmem:[%s1465_s23 + $0x218] sm:$0xff] }
  0x1e   : > { %148 = vst [vmem:[%s1470_s24 + $0x58] sm:$0xff] %v147_v11  ;;  %v197_v36 = vld [vmem:[%s1465_s23 + $0x240] sm:$0xff]  ;;  %v199_v37 = vld [vmem:[%s1465_s23 + $0x248] sm:$0xff]  ;;  %v201_v38 = vld [vmem:[%s1465_s23 + $0x250] sm:$0xff] }
  0x1f   : > { %150 = vst [vmem:[%s1470_s24 + $0x60] sm:$0xff] %v149_v12  ;;  %v203_v39 = vld [vmem:[%s1465_s23 + $0x258] sm:$0xff]  ;;  %v205_v40 = vld [vmem:[%s1465_s23 + $0x280] sm:$0xff]  ;;  %v207_v41 = vld [vmem:[%s1465_s23 + $0x288] sm:$0xff] }
  0x20   : > { %152 = vst [vmem:[%s1470_s24 + $0x68] sm:$0xff] %v151_v13  ;;  %v209_v42 = vld [vmem:[%s1465_s23 + $0x290] sm:$0xff]  ;;  %v211_v43 = vld [vmem:[%s1465_s23 + $0x298] sm:$0xff]  ;;  %v213_v44 = vld [vmem:[%s1465_s23 + $0x2c0] sm:$0xff] }
  0x21   : > { %154 = vst [vmem:[%s1470_s24 + $0x70] sm:$0xff] %v153_v14  ;;  %v215_v45 = vld [vmem:[%s1465_s23 + $0x2c8] sm:$0xff]  ;;  %v217_v46 = vld [vmem:[%s1465_s23 + $0x2d0] sm:$0xff]  ;;  %v219_v47 = vld [vmem:[%s1465_s23 + $0x2d8] sm:$0xff] }
  0x22   : > { %156 = vst [vmem:[%s1470_s24 + $0x78] sm:$0xff] %v155_v15  ;;  %v221_v48 = vld [vmem:[%s1465_s23 + $0x300] sm:$0xff]  ;;  %v223_v49 = vld [vmem:[%s1465_s23 + $0x308] sm:$0xff]  ;;  %v225_v50 = vld [vmem:[%s1465_s23 + $0x310] sm:$0xff] }
  0x23   : > { %158 = vst [vmem:[%s1470_s24 + $0x80] sm:$0xff] %v157_v16  ;;  %v227_v51 = vld [vmem:[%s1465_s23 + $0x318] sm:$0xff]  ;;  %v229_v52 = vld [vmem:[%s1465_s23 + $0x340] sm:$0xff]  ;;  %v231_v53 = vld [vmem:[%s1465_s23 + $0x348] sm:$0xff] }
  0x24   : > { %160 = vst [vmem:[%s1470_s24 + $0x88] sm:$0xff] %v159_v17  ;;  %v233_v54 = vld [vmem:[%s1465_s23 + $0x350] sm:$0xff]  ;;  %v235_v55 = vld [vmem:[%s1465_s23 + $0x358] sm:$0xff]  ;;  %v237_v56 = vld [vmem:[%s1465_s23 + $0x380] sm:$0xff] }
  0x25   : > { %162 = vst [vmem:[%s1470_s24 + $0x90] sm:$0xff] %v161_v18  ;;  %v239_v57 = vld [vmem:[%s1465_s23 + $0x388] sm:$0xff]  ;;  %v241_v58 = vld [vmem:[%s1465_s23 + $0x390] sm:$0xff]  ;;  %v243_v59 = vld [vmem:[%s1465_s23 + $0x398] sm:$0xff] }
  0x26   : > { %164 = vst [vmem:[%s1470_s24 + $0x98] sm:$0xff] %v163_v19  ;;  %v245_v60 = vld [vmem:[%s1465_s23 + $0x3c0] sm:$0xff]  ;;  %v247_v61 = vld [vmem:[%s1465_s23 + $0x3c8] sm:$0xff]  ;;  %v249_v62 = vld [vmem:[%s1465_s23 + $0x3d0] sm:$0xff] }
  0x27   : > { %166 = vst [vmem:[%s1470_s24 + $0xa0] sm:$0xff] %v165_v20  ;;  %v251_v63 = vld [vmem:[%s1465_s23 + $0x3d8] sm:$0xff] }
  0x28   : > { %168 = vst [vmem:[%s1470_s24 + $0xa8] sm:$0xff] %v167_v21 }
  0x29   : > { %170 = vst [vmem:[%s1470_s24 + $0xb0] sm:$0xff] %v169_v22 }
  0x2a   : > { %172 = vst [vmem:[%s1470_s24 + $0xb8] sm:$0xff] %v171_v23 }
  0x2b   : > { %174 = vst [vmem:[%s1470_s24 + $0xc0] sm:$0xff] %v173_v24 }
  0x2c   : > { %176 = vst [vmem:[%s1470_s24 + $0xc8] sm:$0xff] %v175_v25 }
  0x2d   : > { %178 = vst [vmem:[%s1470_s24 + $0xd0] sm:$0xff] %v177_v26 }
  0x2e   : > { %180 = vst [vmem:[%s1470_s24 + $0xd8] sm:$0xff] %v179_v27 }
  0x2f   : > { %182 = vst [vmem:[%s1470_s24 + $0xe0] sm:$0xff] %v181_v28 }
  0x30   : > { %184 = vst [vmem:[%s1470_s24 + $0xe8] sm:$0xff] %v183_v29 }
  0x31   : > { %186 = vst [vmem:[%s1470_s24 + $0xf0] sm:$0xff] %v185_v30 }
  0x32   : > { %188 = vst [vmem:[%s1470_s24 + $0xf8] sm:$0xff] %v187_v31 }
  0x33   : > { %190 = vst [vmem:[%s1470_s24 + $0x100] sm:$0xff] %v189_v32 }
  0x34   : > { %192 = vst [vmem:[%s1470_s24 + $0x108] sm:$0xff] %v191_v33 }
  0x35   : > { %194 = vst [vmem:[%s1470_s24 + $0x110] sm:$0xff] %v193_v34 }
  0x36   : > { %196 = vst [vmem:[%s1470_s24 + $0x118] sm:$0xff] %v195_v35 }
  0x37   : > { %198 = vst [vmem:[%s1470_s24 + $0x120] sm:$0xff] %v197_v36 }
  0x38   : > { %200 = vst [vmem:[%s1470_s24 + $0x128] sm:$0xff] %v199_v37 }
  0x39   : > { %202 = vst [vmem:[%s1470_s24 + $0x130] sm:$0xff] %v201_v38 }
  0x3a   : > { %204 = vst [vmem:[%s1470_s24 + $0x138] sm:$0xff] %v203_v39 }
  0x3b   : > { %206 = vst [vmem:[%s1470_s24 + $0x140] sm:$0xff] %v205_v40 }
  0x3c   : > { %208 = vst [vmem:[%s1470_s24 + $0x148] sm:$0xff] %v207_v41 }
  0x3d   : > { %210 = vst [vmem:[%s1470_s24 + $0x150] sm:$0xff] %v209_v42 }
  0x3e   : > { %212 = vst [vmem:[%s1470_s24 + $0x158] sm:$0xff] %v211_v43 }
  0x3f   : > { %214 = vst [vmem:[%s1470_s24 + $0x160] sm:$0xff] %v213_v44 }
  0x40   : > { %216 = vst [vmem:[%s1470_s24 + $0x168] sm:$0xff] %v215_v45 }
  0x41   : > { %218 = vst [vmem:[%s1470_s24 + $0x170] sm:$0xff] %v217_v46 }
  0x42   : > { %220 = vst [vmem:[%s1470_s24 + $0x178] sm:$0xff] %v219_v47 }
  0x43   : > { %222 = vst [vmem:[%s1470_s24 + $0x180] sm:$0xff] %v221_v48 }
  0x44   : > { %224 = vst [vmem:[%s1470_s24 + $0x188] sm:$0xff] %v223_v49 }
  0x45   : > { %226 = vst [vmem:[%s1470_s24 + $0x190] sm:$0xff] %v225_v50 }
  0x46   : > { %228 = vst [vmem:[%s1470_s24 + $0x198] sm:$0xff] %v227_v51 }
  0x47   : > { %230 = vst [vmem:[%s1470_s24 + $0x1a0] sm:$0xff] %v229_v52 }
  0x48   : > { %232 = vst [vmem:[%s1470_s24 + $0x1a8] sm:$0xff] %v231_v53 }
  0x49   : > { %234 = vst [vmem:[%s1470_s24 + $0x1b0] sm:$0xff] %v233_v54 }
  0x4a   : > { %236 = vst [vmem:[%s1470_s24 + $0x1b8] sm:$0xff] %v235_v55 }
  0x4b   : > { %238 = vst [vmem:[%s1470_s24 + $0x1c0] sm:$0xff] %v237_v56 }
  0x4c   : > { %240 = vst [vmem:[%s1470_s24 + $0x1c8] sm:$0xff] %v239_v57 }
  0x4d   : > { %242 = vst [vmem:[%s1470_s24 + $0x1d0] sm:$0xff] %v241_v58 }
  0x4e   : > { %244 = vst [vmem:[%s1470_s24 + $0x1d8] sm:$0xff] %v243_v59 }
  0x4f   : > { %246 = vst [vmem:[%s1470_s24 + $0x1e0] sm:$0xff] %v245_v60 }
  0x50   : > { %248 = vst [vmem:[%s1470_s24 + $0x1e8] sm:$0xff] %v247_v61 }
  0x51   : > { %250 = vst [vmem:[%s1470_s24 + $0x1f0] sm:$0xff] %v249_v62 }
  0x52   : > { %252 = vst [vmem:[%s1470_s24 + $0x1f8] sm:$0xff] %v251_v63 }
  0x53 PF: > { %p1022_p7 = scmp.ge.s32.totalorder %s1408_s11, 1  ;;  %p257_p8 = scmp.lt.s32.totalorder %s1408_s11, 3 }
  0x55   : > { %p258_p9 = pnand %p1022_p7, %p257_p8 }
  0x56   : > { %s264_s25 = sand.u32 (!%p258_p9), 1, %s1400_s9  }
  0x57   : > { %261 = sbr.rel (%p258_p9) target bundleno = 326 (0x146), region = 47  ;;  %s1023_s26 = sshll.u32 (!%p258_p9), %s264_s25, 9 }
  0x58   : > { %s1602_s27 = scalar_lea.vmem (!%p258_p9), [#allocation2], %s1023_s26  ;;  %s1024_s4 = sshll.u32 (!%p258_p9), %s264_s25, 8 }
  0x59   : > { %s1760_s5 = scalar_lea.vmem (!%p258_p9), [#allocation3], %s1024_s4 }
  0x5c   : > { %v1259_v0 = vld [vmem:[%s1602_s27 + $0x1c0] sm:$0xf]  ;;  %v1353_v2 = vld [vmem:[%s1602_s27 + $0x1c4] sm:$0xf]  ;;  %v1267_v5 = vld [vmem:[%s1602_s27 + $0x1c8] sm:$0xf] }
  0x5d   : > { %v1357_v1 = vld [vmem:[%s1602_s27 + $0x1dc] sm:$0xf0]  ;;  %v1261_v4 = vld [vmem:[%s1602_s27 + $0x1e0] sm:$0xf0]  ;;  %v1358_v6 = vld [vmem:[%s1602_s27 + $0x1e4] sm:$0xf0] }
  0x5e   : > { %v1260_v3 = vor.u32 %v1357_v1, %v1259_v0  ;;  %v1264_v7 = vor.u32 %v1353_v2, %v1261_v4  ;;  %v1268_v8 = vor.u32 %v1358_v6, %v1267_v5  ;;  %v1354_v9 = vld [vmem:[%s1602_s27 + $0x1cc] sm:$0xf]  ;;  %v1227_v11 = vld [vmem:[%s1602_s27 + $0x180] sm:$0xf]  ;;  %v1345_v14 = vld [vmem:[%s1602_s27 + $0x184] sm:$0xf] }
  0x5f   : > { %v1269_v10 = vld [vmem:[%s1602_s27 + $0x1e8] sm:$0xf0]  ;;  %v1349_v13 = vld [vmem:[%s1602_s27 + $0x19c] sm:$0xf0]  ;;  %v1229_v15 = vld [vmem:[%s1602_s27 + $0x1a0] sm:$0xf0] }
  0x60   : > { %686 = vmatpush.bf16.msra.mxu0 %v1260_v3  ;;  %v1272_v12 = vor.u32 %v1354_v9, %v1269_v10  ;;  %705 = vmatpush.bf16.msra.mxu1 %v1264_v7  ;;  %v1228_v16 = vor.u32 %v1349_v13, %v1227_v11  ;;  %v1232_v17 = vor.u32 %v1345_v14, %v1229_v15  ;;  %v1235_v18 = vld [vmem:[%s1602_s27 + $0x188] sm:$0xf]  ;;  %v1346_v20 = vld [vmem:[%s1602_s27 + $0x18c] sm:$0xf]  ;;  %v1195_v23 = vld [vmem:[%s1602_s27 + $0x140] sm:$0xf] }
  0x61   : > { %724 = vmatpush.bf16.msra.mxu2 %v1268_v8  ;;  %v1350_v19 = vld [vmem:[%s1602_s27 + $0x1a4] sm:$0xf0]  ;;  %v1237_v22 = vld [vmem:[%s1602_s27 + $0x1a8] sm:$0xf0]  ;;  %v1341_v24 = vld [vmem:[%s1602_s27 + $0x15c] sm:$0xf0] }
  0x62   : > { %743 = vmatpush.bf16.msra.mxu3 %v1272_v12  ;;  %v1236_v21 = vor.u32 %v1350_v19, %v1235_v18  ;;  %v1240_v25 = vor.u32 %v1346_v20, %v1237_v22  ;;  %v1337_v26 = vld [vmem:[%s1602_s27 + $0x144] sm:$0xf]  ;;  %v1203_v28 = vld [vmem:[%s1602_s27 + $0x148] sm:$0xf]  ;;  %v1196_v29 = vor.u32 %v1341_v24, %v1195_v23  ;;  %v1338_v31 = vld [vmem:[%s1602_s27 + $0x14c] sm:$0xf] }
  0x63   : > { %v1197_v27 = vld [vmem:[%s1602_s27 + $0x160] sm:$0xf0]  ;;  %v1342_v30 = vld [vmem:[%s1602_s27 + $0x164] sm:$0xf0]  ;;  %v1205_v32 = vld [vmem:[%s1602_s27 + $0x168] sm:$0xf0] }
  0x64   : > { %687 = vmatpush.bf16.msra.mxu0 %v1228_v16  ;;  %706 = vmatpush.bf16.msra.mxu1 %v1232_v17  ;;  %v1200_v33 = vor.u32 %v1337_v26, %v1197_v27  ;;  %v1204_v34 = vor.u32 %v1342_v30, %v1203_v28  ;;  %v1163_v35 = vld [vmem:[%s1602_s27 + $0x100] sm:$0xf]  ;;  %v1329_v37 = vld [vmem:[%s1602_s27 + $0x104] sm:$0xf]  ;;  %v1208_v38 = vor.u32 %v1338_v31, %v1205_v32  ;;  %v1171_v40 = vld [vmem:[%s1602_s27 + $0x108] sm:$0xf] }
  0x65   : > { %725 = vmatpush.bf16.msra.mxu2 %v1236_v21  ;;  %v1333_v36 = vld [vmem:[%s1602_s27 + $0x11c] sm:$0xf0]  ;;  %v1165_v39 = vld [vmem:[%s1602_s27 + $0x120] sm:$0xf0]  ;;  %v1334_v41 = vld [vmem:[%s1602_s27 + $0x124] sm:$0xf0] }
  0x66   : > { %744 = vmatpush.bf16.msra.mxu3 %v1240_v25  ;;  %v1330_v42 = vld [vmem:[%s1602_s27 + $0x10c] sm:$0xf]  ;;  %v1164_v44 = vor.u32 %v1333_v36, %v1163_v35  ;;  %v1168_v45 = vor.u32 %v1329_v37, %v1165_v39  ;;  %v1172_v46 = vor.u32 %v1334_v41, %v1171_v40  ;;  %v1131_v47 = vld [vmem:[%s1602_s27 + $0xc0] sm:$0xf]  ;;  %v1321_v49 = vld [vmem:[%s1602_s27 + $0xc4] sm:$0xf] }
  0x67   : > { %v1173_v43 = vld [vmem:[%s1602_s27 + $0x128] sm:$0xf0]  ;;  %v1325_v48 = vld [vmem:[%s1602_s27 + $0xdc] sm:$0xf0]  ;;  %v1133_v51 = vld [vmem:[%s1602_s27 + $0xe0] sm:$0xf0] }
  0x68   : > { %688 = vmatpush.bf16.msra.mxu0 %v1196_v29  ;;  %707 = vmatpush.bf16.msra.mxu1 %v1200_v33  ;;  %v1176_v50 = vor.u32 %v1330_v42, %v1173_v43  ;;  %v1139_v52 = vld [vmem:[%s1602_s27 + $0xc8] sm:$0xf]  ;;  %v1322_v54 = vld [vmem:[%s1602_s27 + $0xcc] sm:$0xf]  ;;  %v1132_v56 = vor.u32 %v1325_v48, %v1131_v47  ;;  %v1136_v57 = vor.u32 %v1321_v49, %v1133_v51  ;;  %v1099_v59 = vld [vmem:[%s1602_s27 + $0x80] sm:$0xf] }
  0x69   : > { %726 = vmatpush.bf16.msra.mxu2 %v1204_v34  ;;  %v1326_v53 = vld [vmem:[%s1602_s27 + $0xe4] sm:$0xf0]  ;;  %v1141_v55 = vld [vmem:[%s1602_s27 + $0xe8] sm:$0xf0]  ;;  %v1317_v60 = vld [vmem:[%s1602_s27 + $0x9c] sm:$0xf0] }
  0x6a   : > { %745 = vmatpush.bf16.msra.mxu3 %v1208_v38  ;;  %v1140_v58 = vor.u32 %v1326_v53, %v1139_v52  ;;  %v1313_v61 = vld [vmem:[%s1602_s27 + $0x84] sm:$0xf]  ;;  %v1144_v62 = vor.u32 %v1322_v54, %v1141_v55  ;;  %v1107_v0 = vld [vmem:[%s1602_s27 + $0x88] sm:$0xf]  ;;  %v1314_v2 = vld [vmem:[%s1602_s27 + $0x8c] sm:$0xf]  ;;  %v1100_v4 = vor.u32 %v1317_v60, %v1099_v59 }
  0x6b   : > { %v1101_v63 = vld [vmem:[%s1602_s27 + $0xa0] sm:$0xf0]  ;;  %v1318_v1 = vld [vmem:[%s1602_s27 + $0xa4] sm:$0xf0]  ;;  %v1109_v3 = vld [vmem:[%s1602_s27 + $0xa8] sm:$0xf0] }
  0x6c   : > { %689 = vmatpush.bf16.msra.mxu0 %v1164_v44  ;;  %708 = vmatpush.bf16.msra.mxu1 %v1168_v45  ;;  %v1104_v5 = vor.u32 %v1313_v61, %v1101_v63  ;;  %v1108_v6 = vor.u32 %v1318_v1, %v1107_v0  ;;  %v1067_v7 = vld [vmem:[%s1602_s27 + $0x40] sm:$0xf]  ;;  %v1305_v9 = vld [vmem:[%s1602_s27 + $0x44] sm:$0xf]  ;;  %v1112_v10 = vor.u32 %v1314_v2, %v1109_v3  ;;  %v1075_v12 = vld [vmem:[%s1602_s27 + $0x48] sm:$0xf] }
  0x6d   : > { %727 = vmatpush.bf16.msra.mxu2 %v1172_v46  ;;  %v1309_v8 = vld [vmem:[%s1602_s27 + $0x5c] sm:$0xf0]  ;;  %v1069_v11 = vld [vmem:[%s1602_s27 + $0x60] sm:$0xf0]  ;;  %v1310_v13 = vld [vmem:[%s1602_s27 + $0x64] sm:$0xf0] }
  0x6e   : > { %746 = vmatpush.bf16.msra.mxu3 %v1176_v50  ;;  %v1306_v14 = vld [vmem:[%s1602_s27 + $0x4c] sm:$0xf]  ;;  %v1068_v16 = vor.u32 %v1309_v8, %v1067_v7  ;;  %v1035_v17 = vld [vmem:[%s1602_s27] sm:$0xf]  ;;  %v1072_v18 = vor.u32 %v1305_v9, %v1069_v11  ;;  %v1076_v19 = vor.u32 %v1310_v13, %v1075_v12  ;;  %v1297_v21 = vld [vmem:[%s1602_s27 + $0x4] sm:$0xf] }
  0x6f   : > { %v1077_v15 = vld [vmem:[%s1602_s27 + $0x68] sm:$0xf0]  ;;  %v1301_v20 = vld [vmem:[%s1602_s27 + $0x1c] sm:$0xf0]  ;;  %v1037_v22 = vld [vmem:[%s1602_s27 + $0x20] sm:$0xf0] }
  0x70   : > { %690 = vmatpush.bf16.msra.mxu0 %v1132_v56  ;;  %709 = vmatpush.bf16.msra.mxu1 %v1136_v57  ;;  %v1080_v23 = vor.u32 %v1306_v14, %v1077_v15  ;;  %v1043_v24 = vld [vmem:[%s1602_s27 + $0x8] sm:$0xf]  ;;  %v1298_v26 = vld [vmem:[%s1602_s27 + $0xc] sm:$0xf]  ;;  %v1283_v28 = vld [vmem:[%s1602_s27 + $0x1d8] sm:$0xf]  ;;  %v1036_v30 = vor.u32 %v1301_v20, %v1035_v17  ;;  %v1040_v33 = vor.u32 %v1297_v21, %v1037_v22 }
  0x71   : > { %728 = vmatpush.bf16.msra.mxu2 %v1140_v58  ;;  %v1302_v25 = vld [vmem:[%s1602_s27 + $0x24] sm:$0xf0]  ;;  %v1045_v27 = vld [vmem:[%s1602_s27 + $0x28] sm:$0xf0]  ;;  %v1360_v29 = vld [vmem:[%s1602_s27 + $0x1f4] sm:$0xf0] }
  0x72   : > { %747 = vmatpush.bf16.msra.mxu3 %v1144_v62  ;;  %v1356_v31 = vld [vmem:[%s1602_s27 + $0x1dc] sm:$0xf]  ;;  %v1044_v34 = vor.u32 %v1302_v25, %v1043_v24  ;;  %v1675_v35 = vld [vmem:[%s1877_s0] sm:$0xff]  ;;  %v1048_v36 = vor.u32 %v1298_v26, %v1045_v27  ;;  %v1284_v37 = vor.u32 %v1360_v29, %v1283_v28  ;;  %v1275_v38 = vld [vmem:[%s1602_s27 + $0x1d0] sm:$0xf]  ;;  %s1361_s6 = sshll.u32 (%p1455_p5), %s1015_s12, 6 }
  0x73   : > { %v1285_v32 = vld [vmem:[%s1602_s27 + $0x1f8] sm:$0xf0]  ;;  %v1359_v39 = vld [vmem:[%s1602_s27 + $0x1ec] sm:$0xf0]  ;;  %v1355_v40 = vld [vmem:[%s1602_s27 + $0x1d4] sm:$0xf]  ;;  %s1803_s9 = scalar_lea.vmem (%p1455_p5), %s1879_s2, %s1361_s6 }
  0x74   : > { %691 = vmatpush.bf16.msra.mxu0 %v1100_v4  ;;  %710 = vmatpush.bf16.msra.mxu1 %v1104_v5  ;;  %v1288_v41 = vor.u32 %v1356_v31, %v1285_v32  ;;  %v1277_v42 = vld [vmem:[%s1602_s27 + $0x1f0] sm:$0xf0]  ;;  %v1251_v43 = vld [vmem:[%s1602_s27 + $0x198] sm:$0xf]  ;;  %v1348_v45 = vld [vmem:[%s1602_s27 + $0x19c] sm:$0xf]  ;;  %v1276_v47 = vor.u32 %v1359_v39, %v1275_v38 }
  0x75   : > { %729 = vmatpush.bf16.msra.mxu2 %v1108_v6  ;;  %v1352_v44 = vld [vmem:[%s1602_s27 + $0x1b4] sm:$0xf0]  ;;  %v1253_v46 = vld [vmem:[%s1602_s27 + $0x1b8] sm:$0xf0]  ;;  %v1280_v48 = vor.u32 %v1355_v40, %v1277_v42  ;;  %v1243_v50 = vld [vmem:[%s1602_s27 + $0x190] sm:$0xf] }
  0x76   : > { %748 = vmatpush.bf16.msra.mxu3 %v1112_v10  ;;  %v1252_v49 = vor.u32 %v1352_v44, %v1251_v43  ;;  %v1351_v51 = vld [vmem:[%s1602_s27 + $0x1ac] sm:$0xf0]  ;;  %v1347_v52 = vld [vmem:[%s1602_s27 + $0x194] sm:$0xf]  ;;  %v1256_v53 = vor.u32 %v1348_v45, %v1253_v46  ;;  %v1219_v55 = vld [vmem:[%s1602_s27 + $0x158] sm:$0xf] }
  0x77   : > { %v1245_v54 = vld [vmem:[%s1602_s27 + $0x1b0] sm:$0xf0]  ;;  %v1344_v56 = vld [vmem:[%s1602_s27 + $0x174] sm:$0xf0]  ;;  %v1340_v57 = vld [vmem:[%s1602_s27 + $0x15c] sm:$0xf]  ;;  %v1244_v59 = vor.u32 %v1351_v51, %v1243_v50 }
  0x78   : > { %692 = vmatpush.bf16.msra.mxu0 %v1068_v16  ;;  %711 = vmatpush.bf16.msra.mxu1 %v1072_v18  ;;  %v1221_v58 = vld [vmem:[%s1602_s27 + $0x178] sm:$0xf0]  ;;  %v1248_v60 = vor.u32 %v1347_v52, %v1245_v54  ;;  %v1220_v61 = vor.u32 %v1344_v56, %v1219_v55  ;;  %v1211_v62 = vld [vmem:[%s1602_s27 + $0x150] sm:$0xf]  ;;  %v1339_v0 = vld [vmem:[%s1602_s27 + $0x154] sm:$0xf] }
  0x79   : > { %730 = vmatpush.bf16.msra.mxu2 %v1076_v19  ;;  %v1343_v63 = vld [vmem:[%s1602_s27 + $0x16c] sm:$0xf0]  ;;  %v1224_v1 = vor.u32 %v1340_v57, %v1221_v58  ;;  %v1213_v2 = vld [vmem:[%s1602_s27 + $0x170] sm:$0xf0]  ;;  %v1187_v3 = vld [vmem:[%s1602_s27 + $0x118] sm:$0xf] }
  0x7a   : > { %749 = vmatpush.bf16.msra.mxu3 %v1080_v23  ;;  %v1336_v4 = vld [vmem:[%s1602_s27 + $0x134] sm:$0xf0]  ;;  %v1332_v5 = vld [vmem:[%s1602_s27 + $0x11c] sm:$0xf]  ;;  %v1212_v7 = vor.u32 %v1343_v63, %v1211_v62  ;;  %v1216_v8 = vor.u32 %v1339_v0, %v1213_v2  ;;  %v1179_v10 = vld [vmem:[%s1602_s27 + $0x110] sm:$0xf] }
  0x7b   : > { %v1189_v6 = vld [vmem:[%s1602_s27 + $0x138] sm:$0xf0]  ;;  %v1188_v9 = vor.u32 %v1336_v4, %v1187_v3  ;;  %v1335_v11 = vld [vmem:[%s1602_s27 + $0x12c] sm:$0xf0]  ;;  %v1331_v12 = vld [vmem:[%s1602_s27 + $0x114] sm:$0xf] }
  0x7c   : > { %693 = vmatpush.bf16.msra.mxu0 %v1036_v30  ;;  %712 = vmatpush.bf16.msra.mxu1 %v1040_v33  ;;  %v1192_v13 = vor.u32 %v1332_v5, %v1189_v6  ;;  %v1181_v14 = vld [vmem:[%s1602_s27 + $0x130] sm:$0xf0]  ;;  %v1155_v15 = vld [vmem:[%s1602_s27 + $0xd8] sm:$0xf]  ;;  %v1324_v17 = vld [vmem:[%s1602_s27 + $0xdc] sm:$0xf]  ;;  %v1180_v19 = vor.u32 %v1335_v11, %v1179_v10 }
  0x7d   : > { %731 = vmatpush.bf16.msra.mxu2 %v1044_v34  ;;  %v1328_v16 = vld [vmem:[%s1602_s27 + $0xf4] sm:$0xf0]  ;;  %v1157_v18 = vld [vmem:[%s1602_s27 + $0xf8] sm:$0xf0]  ;;  %v1716_v20 = vld [vmem:[%s1877_s0 + $0x8] sm:$0xff]  ;;  %v1184_v21 = vor.u32 %v1331_v12, %v1181_v14 }
  0x7e   : > { %750 = vmatpush.bf16.msra.mxu3 %v1048_v36  ;;  %v1156_v22 = vor.u32 %v1328_v16, %v1155_v15  ;;  %v1147_v23 = vld [vmem:[%s1602_s27 + $0xd0] sm:$0xf]  ;;  %v1323_v25 = vld [vmem:[%s1602_s27 + $0xd4] sm:$0xf]  ;;  %v1160_v26 = vor.u32 %v1324_v17, %v1157_v18  ;;  %v1123_v28 = vld [vmem:[%s1602_s27 + $0x98] sm:$0xf] }
  0x7f   : > { %694 = vmatmul.bf16.vlgmr.msra.gmra.mxu0 %v1675_v35  ;;  %713 = vmatmul.bf16.vlgmr.msra.gmra.mxu1 %v1675_v35  ;;  %v1327_v24 = vld [vmem:[%s1602_s27 + $0xec] sm:$0xf0]  ;;  %v1149_v27 = vld [vmem:[%s1602_s27 + $0xf0] sm:$0xf0]  ;;  %v1320_v29 = vld [vmem:[%s1602_s27 + $0xb4] sm:$0xf0] }
  0x80   : > { %732 = vmatmul.bf16.vlgmr.msra.gmra.mxu2 %v1675_v35  ;;  %762 = vmatpush.bf16.msrb.mxu0 %v1276_v47  ;;  %v1316_v30 = vld [vmem:[%s1602_s27 + $0x9c] sm:$0xf]  ;;  %v1148_v32 = vor.u32 %v1327_v24, %v1147_v23  ;;  %v1152_v33 = vor.u32 %v1323_v25, %v1149_v27  ;;  %v1124_v34 = vor.u32 %v1320_v29, %v1123_v28  ;;  %v1115_v36 = vld [vmem:[%s1602_s27 + $0x90] sm:$0xf]  ;;  %v1315_v38 = vld [vmem:[%s1602_s27 + $0x94] sm:$0xf] }
  0x81   : > { %800 = vmatpush.bf16.msrb.mxu2 %v1284_v37  ;;  %751 = vmatmul.bf16.vlgmr.msra.gmra.mxu3 %v1675_v35  ;;  %v1125_v31 = vld [vmem:[%s1602_s27 + $0xb8] sm:$0xf0]  ;;  %v1319_v37 = vld [vmem:[%s1602_s27 + $0xac] sm:$0xf0]  ;;  %v1117_v40 = vld [vmem:[%s1602_s27 + $0xb0] sm:$0xf0] }
  0x82   : > { %819 = vmatpush.bf16.msrb.mxu3 %v1288_v41  ;;  %781 = vmatpush.bf16.msrb.mxu1 %v1280_v48  ;;  %v1128_v39 = vor.u32 %v1316_v30, %v1125_v31  ;;  %v1091_v41 = vld [vmem:[%s1602_s27 + $0x58] sm:$0xf]  ;;  %v1308_v43 = vld [vmem:[%s1602_s27 + $0x5c] sm:$0xf]  ;;  %v1116_v45 = vor.u32 %v1319_v37, %v1115_v36  ;;  %v1120_v46 = vor.u32 %v1315_v38, %v1117_v40  ;;  %v1083_v48 = vld [vmem:[%s1602_s27 + $0x50] sm:$0xf] }
  0x83   : > { %v1312_v42 = vld [vmem:[%s1602_s27 + $0x74] sm:$0xf0]  ;;  %v1093_v44 = vld [vmem:[%s1602_s27 + $0x78] sm:$0xf0]  ;;  %v1307_v50 = vld [vmem:[%s1602_s27 + $0x54] sm:$0xf] }
  0x84   : > { %763 = vmatpush.bf16.msrb.mxu0 %v1244_v59  ;;  %v1092_v47 = vor.u32 %v1312_v42, %v1091_v41  ;;  %v1096_v51 = vor.u32 %v1308_v43, %v1093_v44  ;;  %v1085_v52 = vld [vmem:[%s1602_s27 + $0x70] sm:$0xf0]  ;;  %v1304_v54 = vld [vmem:[%s1602_s27 + $0x34] sm:$0xf0]  ;;  %v1300_v55 = vld [vmem:[%s1602_s27 + $0x1c] sm:$0xf] }
  0x85   : > { %801 = vmatpush.bf16.msrb.mxu2 %v1252_v49  ;;  %v1311_v49 = vld [vmem:[%s1602_s27 + $0x6c] sm:$0xf0]  ;;  %v1061_v56 = vld [vmem:[%s1602_s27 + $0x38] sm:$0xf0]  ;;  %v1088_v58 = vor.u32 %v1307_v50, %v1085_v52  ;;  %v1299_v63 = vld [vmem:[%s1602_s27 + $0x14] sm:$0xf] }
  0x86   : > { %820 = vmatpush.bf16.msrb.mxu3 %v1256_v53  ;;  %782 = vmatpush.bf16.msrb.mxu1 %v1248_v60  ;;  %v1059_v53 = vld [vmem:[%s1602_s27 + $0x18] sm:$0xf]  ;;  %v1084_v57 = vor.u32 %v1311_v49, %v1083_v48  ;;  %v1051_v60 = vld [vmem:[%s1602_s27 + $0x10] sm:$0xf]  ;;  %v1064_v62 = vor.u32 %v1300_v55, %v1061_v56  ;;  %v1053_v0 = vld [vmem:[%s1602_s27 + $0x30] sm:$0xf0] }
  0x87   : > { %v1060_v59 = vor.u32 %v1304_v54, %v1059_v53  ;;  %v1056_v2 = vor.u32 %v1299_v63, %v1053_v0 }
  0x88   : > { %764 = vmatpush.bf16.msrb.mxu0 %v1212_v7 }
  0x89   : > { %802 = vmatpush.bf16.msrb.mxu2 %v1220_v61  ;;  %v1303_v61 = vld [vmem:[%s1602_s27 + $0x2c] sm:$0xf0] }
  0x8a   : > { %821 = vmatpush.bf16.msrb.mxu3 %v1224_v1  ;;  %783 = vmatpush.bf16.msrb.mxu1 %v1216_v8  ;;  %v1052_v1 = vor.u32 %v1303_v61, %v1051_v60 }
  0x8c   : > { %765 = vmatpush.bf16.msrb.mxu0 %v1180_v19 }
  0x8d   : > { %803 = vmatpush.bf16.msrb.mxu2 %v1188_v9 }
  0x8e   : > { %822 = vmatpush.bf16.msrb.mxu3 %v1192_v13  ;;  %784 = vmatpush.bf16.msrb.mxu1 %v1184_v21 }
  0x8f   : > { %699 = vmatmul.bf16.gmra.mxu0 %v1716_v20  ;;  %718 = vmatmul.bf16.gmra.mxu1 %v1716_v20 }
  0x90   : > { %737 = vmatmul.bf16.gmra.mxu2 %v1716_v20  ;;  %766 = vmatpush.bf16.msrb.mxu0 %v1148_v32 }
  0x91   : > { %804 = vmatpush.bf16.msrb.mxu2 %v1156_v22  ;;  %756 = vmatmul.bf16.gmra.mxu3 %v1716_v20 }
  0x92   : > { %823 = vmatpush.bf16.msrb.mxu3 %v1160_v26  ;;  %785 = vmatpush.bf16.msrb.mxu1 %v1152_v33 }
  0x94   : > { %767 = vmatpush.bf16.msrb.mxu0 %v1116_v45 }
  0x95   : > { %805 = vmatpush.bf16.msrb.mxu2 %v1124_v34 }
  0x96   : > { %824 = vmatpush.bf16.msrb.mxu3 %v1128_v39  ;;  %786 = vmatpush.bf16.msrb.mxu1 %v1120_v46 }
  0x98   : > { %768 = vmatpush.bf16.msrb.mxu0 %v1084_v57 }
  0x99   : > { %806 = vmatpush.bf16.msrb.mxu2 %v1092_v47 }
  0x9a   : > { %825 = vmatpush.bf16.msrb.mxu3 %v1096_v51  ;;  %787 = vmatpush.bf16.msrb.mxu1 %v1088_v58 }
  0x9c   : > { %769 = vmatpush.bf16.msrb.mxu0 %v1052_v1 }
  0x9d   : > { %807 = vmatpush.bf16.msrb.mxu2 %v1060_v59 }
  0x9e   : > { %826 = vmatpush.bf16.msrb.mxu3 %v1064_v62  ;;  %788 = vmatpush.bf16.msrb.mxu1 %v1056_v2 }
  0x9f   : > { %770 = vmatmul.bf16.vlgmr.msrb.gmra.mxu0 %v1675_v35 }
  0xa0   : > { %808 = vmatmul.bf16.vlgmr.msrb.gmra.mxu2 %v1675_v35 }
  0xa1   : > { %789 = vmatmul.bf16.vlgmr.msrb.gmra.mxu1 %v1675_v35  ;;  %827 = vmatmul.bf16.vlgmr.msrb.gmra.mxu3 %v1675_v35 }
  0xaf   : > { %775 = vmatmul.bf16.gmra.mxu0 %v1716_v20 }
  0xb0   : > { %813 = vmatmul.bf16.gmra.mxu2 %v1716_v20 }
  0xb1   : > { %794 = vmatmul.bf16.gmra.mxu1 %v1716_v20  ;;  %832 = vmatmul.bf16.gmra.mxu3 %v1716_v20 }
  0xfc   : > { %v695_v3 = vpop.f32.mrf.mxu0  ;;  %v714_v35 = vpop.f32.mrf.mxu1 }
  0xfd   : > { %838 = vst [vmem:[%s1760_s5] sm:$0xff] %v695_v3 }
  0xfe   : > { %839 = vst [vmem:[%s1760_s5 + $0x8] sm:$0xff] %v714_v35 }
 0x103   : > { %v733_v4 = vpop.f32.mrf.mxu2 }
 0x104   : > { %840 = vst [vmem:[%s1760_s5 + $0x10] sm:$0xff] %v733_v4  ;;  %v752_v5 = vpop.f32.mrf.mxu3  ;;  %v697_v6 = vpop.f32.mrf.mxu0  ;;  %v892_v34 = vld [vmem:[%s1760_s5] sm:$0xff] (%p1455_p5) }
 0x105   : > { %841 = vst [vmem:[%s1760_s5 + $0x18] sm:$0xff] %v752_v5  ;;  %v716_v7 = vpop.f32.mrf.mxu1  ;;  %v894_v36 = vld [vmem:[%s1760_s5 + $0x8] sm:$0xff] (%p1455_p5) }
 0x106   : > { %846 = vst [vmem:[%s1760_s5 + $0x40] sm:$0xff] %v697_v6 }
 0x107   : > { %847 = vst [vmem:[%s1760_s5 + $0x48] sm:$0xff] %v716_v7 }
 0x108   : > { %893 = vst [vmem:[%s1803_s9] sm:$0xff] (%p1455_p5), %v892_v34 }
 0x109   : > { %895 = vst [vmem:[%s1803_s9 + $0x8] sm:$0xff] (%p1455_p5), %v894_v36 }
 0x10b   : > { %v735_v8 = vpop.f32.mrf.mxu2  ;;  %v896_v37 = vld [vmem:[%s1760_s5 + $0x10] sm:$0xff] (%p1455_p5) }
 0x10c   : > { %848 = vst [vmem:[%s1760_s5 + $0x50] sm:$0xff] %v735_v8  ;;  %v754_v9 = vpop.f32.mrf.mxu3  ;;  %v700_v10 = vpop.f32.mrf.mxu0  ;;  %v898_v38 = vld [vmem:[%s1760_s5 + $0x18] sm:$0xff] (%p1455_p5) }
 0x10d   : > { %849 = vst [vmem:[%s1760_s5 + $0x58] sm:$0xff] %v754_v9  ;;  %v719_v11 = vpop.f32.mrf.mxu1  ;;  %v908_v43 = vld [vmem:[%s1760_s5 + $0x40] sm:$0xff] (%p1455_p5) }
 0x10e   : > { %854 = vst [vmem:[%s1760_s5 + $0x80] sm:$0xff] %v700_v10  ;;  %v910_v44 = vld [vmem:[%s1760_s5 + $0x48] sm:$0xff] (%p1455_p5) }
 0x10f   : > { %855 = vst [vmem:[%s1760_s5 + $0x88] sm:$0xff] %v719_v11 }
 0x110   : > { %897 = vst [vmem:[%s1803_s9 + $0x10] sm:$0xff] (%p1455_p5), %v896_v37 }
 0x111   : > { %899 = vst [vmem:[%s1803_s9 + $0x18] sm:$0xff] (%p1455_p5), %v898_v38 }
 0x112   : > { %909 = vst [vmem:[%s1803_s9 + $0x80] sm:$0xff] (%p1455_p5), %v908_v43 }
 0x113   : > { %v738_v12 = vpop.f32.mrf.mxu2  ;;  %v912_v45 = vld [vmem:[%s1760_s5 + $0x50] sm:$0xff] (%p1455_p5)  ;;  %911 = vst [vmem:[%s1803_s9 + $0x88] sm:$0xff] (%p1455_p5), %v910_v44 }
 0x114   : > { %856 = vst [vmem:[%s1760_s5 + $0x90] sm:$0xff] %v738_v12  ;;  %v757_v13 = vpop.f32.mrf.mxu3  ;;  %v702_v14 = vpop.f32.mrf.mxu0  ;;  %v914_v46 = vld [vmem:[%s1760_s5 + $0x58] sm:$0xff] (%p1455_p5) }
 0x115   : > { %857 = vst [vmem:[%s1760_s5 + $0x98] sm:$0xff] %v757_v13  ;;  %v721_v15 = vpop.f32.mrf.mxu1  ;;  %v924_v51 = vld [vmem:[%s1760_s5 + $0x80] sm:$0xff] (%p1455_p5) }
 0x116   : > { %862 = vst [vmem:[%s1760_s5 + $0xc0] sm:$0xff] %v702_v14  ;;  %v926_v52 = vld [vmem:[%s1760_s5 + $0x88] sm:$0xff] (%p1455_p5) }
 0x117   : > { %863 = vst [vmem:[%s1760_s5 + $0xc8] sm:$0xff] %v721_v15 }
 0x118   : > { %913 = vst [vmem:[%s1803_s9 + $0x90] sm:$0xff] (%p1455_p5), %v912_v45 }
 0x119   : > { %915 = vst [vmem:[%s1803_s9 + $0x98] sm:$0xff] (%p1455_p5), %v914_v46 }
 0x11a   : > { %925 = vst [vmem:[%s1803_s9 + $0x100] sm:$0xff] (%p1455_p5), %v924_v51 }
 0x11b   : > { %v740_v16 = vpop.f32.mrf.mxu2  ;;  %v928_v53 = vld [vmem:[%s1760_s5 + $0x90] sm:$0xff] (%p1455_p5)  ;;  %927 = vst [vmem:[%s1803_s9 + $0x108] sm:$0xff] (%p1455_p5), %v926_v52 }
 0x11c   : > { %864 = vst [vmem:[%s1760_s5 + $0xd0] sm:$0xff] %v740_v16  ;;  %v759_v17 = vpop.f32.mrf.mxu3  ;;  %v771_v18 = vpop.f32.mrf.mxu0  ;;  %v930_v54 = vld [vmem:[%s1760_s5 + $0x98] sm:$0xff] (%p1455_p5) }
 0x11d   : > { %865 = vst [vmem:[%s1760_s5 + $0xd8] sm:$0xff] %v759_v17  ;;  %v940_v59 = vld [vmem:[%s1760_s5 + $0xc0] sm:$0xff] (%p1455_p5) }
 0x11e   : > { %842 = vst [vmem:[%s1760_s5 + $0x20] sm:$0xff] %v771_v18  ;;  %v790_v19 = vpop.f32.mrf.mxu1  ;;  %v942_v60 = vld [vmem:[%s1760_s5 + $0xc8] sm:$0xff] (%p1455_p5) }
 0x11f   : > { %843 = vst [vmem:[%s1760_s5 + $0x28] sm:$0xff] %v790_v19 }
 0x120   : > { %929 = vst [vmem:[%s1803_s9 + $0x110] sm:$0xff] (%p1455_p5), %v928_v53 }
 0x121   : > { %931 = vst [vmem:[%s1803_s9 + $0x118] sm:$0xff] (%p1455_p5), %v930_v54 }
 0x122   : > { %941 = vst [vmem:[%s1803_s9 + $0x180] sm:$0xff] (%p1455_p5), %v940_v59 }
 0x123   : > { %v809_v20 = vpop.f32.mrf.mxu2  ;;  %v944_v61 = vld [vmem:[%s1760_s5 + $0xd0] sm:$0xff] (%p1455_p5)  ;;  %943 = vst [vmem:[%s1803_s9 + $0x188] sm:$0xff] (%p1455_p5), %v942_v60 }
 0x124   : > { %844 = vst [vmem:[%s1760_s5 + $0x30] sm:$0xff] %v809_v20  ;;  %v828_v21 = vpop.f32.mrf.mxu3  ;;  %v773_v22 = vpop.f32.mrf.mxu0  ;;  %v946_v62 = vld [vmem:[%s1760_s5 + $0xd8] sm:$0xff] (%p1455_p5) }
 0x125   : > { %845 = vst [vmem:[%s1760_s5 + $0x38] sm:$0xff] %v828_v21  ;;  %v900_v39 = vld [vmem:[%s1760_s5 + $0x20] sm:$0xff] (%p1455_p5) }
 0x126   : > { %850 = vst [vmem:[%s1760_s5 + $0x60] sm:$0xff] %v773_v22  ;;  %v792_v23 = vpop.f32.mrf.mxu1  ;;  %v902_v40 = vld [vmem:[%s1760_s5 + $0x28] sm:$0xff] (%p1455_p5) }
 0x127   : > { %851 = vst [vmem:[%s1760_s5 + $0x68] sm:$0xff] %v792_v23 }
 0x128   : > { %901 = vst [vmem:[%s1803_s9 + $0x20] sm:$0xff] (%p1455_p5), %v900_v39 }
 0x129   : > { %903 = vst [vmem:[%s1803_s9 + $0x28] sm:$0xff] (%p1455_p5), %v902_v40 }
 0x12a   : > { %945 = vst [vmem:[%s1803_s9 + $0x190] sm:$0xff] (%p1455_p5), %v944_v61 }
 0x12b   : > { %v811_v24 = vpop.f32.mrf.mxu2  ;;  %v904_v41 = vld [vmem:[%s1760_s5 + $0x30] sm:$0xff] (%p1455_p5)  ;;  %947 = vst [vmem:[%s1803_s9 + $0x198] sm:$0xff] (%p1455_p5), %v946_v62 }
 0x12c   : > { %852 = vst [vmem:[%s1760_s5 + $0x70] sm:$0xff] %v811_v24  ;;  %v830_v25 = vpop.f32.mrf.mxu3  ;;  %v776_v26 = vpop.f32.mrf.mxu0  ;;  %v906_v42 = vld [vmem:[%s1760_s5 + $0x38] sm:$0xff] (%p1455_p5) }
 0x12d   : > { %853 = vst [vmem:[%s1760_s5 + $0x78] sm:$0xff] %v830_v25  ;;  %v916_v47 = vld [vmem:[%s1760_s5 + $0x60] sm:$0xff] (%p1455_p5) }
 0x12e   : > { %858 = vst [vmem:[%s1760_s5 + $0xa0] sm:$0xff] %v776_v26  ;;  %v795_v27 = vpop.f32.mrf.mxu1  ;;  %v918_v48 = vld [vmem:[%s1760_s5 + $0x68] sm:$0xff] (%p1455_p5) }
 0x12f   : > { %859 = vst [vmem:[%s1760_s5 + $0xa8] sm:$0xff] %v795_v27 }
 0x130   : > { %905 = vst [vmem:[%s1803_s9 + $0x30] sm:$0xff] (%p1455_p5), %v904_v41 }
 0x131   : > { %907 = vst [vmem:[%s1803_s9 + $0x38] sm:$0xff] (%p1455_p5), %v906_v42 }
 0x132   : > { %917 = vst [vmem:[%s1803_s9 + $0xa0] sm:$0xff] (%p1455_p5), %v916_v47 }
 0x133   : > { %v814_v28 = vpop.f32.mrf.mxu2  ;;  %v920_v49 = vld [vmem:[%s1760_s5 + $0x70] sm:$0xff] (%p1455_p5)  ;;  %919 = vst [vmem:[%s1803_s9 + $0xa8] sm:$0xff] (%p1455_p5), %v918_v48 }
 0x134   : > { %860 = vst [vmem:[%s1760_s5 + $0xb0] sm:$0xff] %v814_v28  ;;  %v833_v29 = vpop.f32.mrf.mxu3  ;;  %v778_v30 = vpop.f32.mrf.mxu0  ;;  %v922_v50 = vld [vmem:[%s1760_s5 + $0x78] sm:$0xff] (%p1455_p5) }
 0x135   : > { %861 = vst [vmem:[%s1760_s5 + $0xb8] sm:$0xff] %v833_v29  ;;  %v932_v55 = vld [vmem:[%s1760_s5 + $0xa0] sm:$0xff] (%p1455_p5) }
 0x136   : > { %866 = vst [vmem:[%s1760_s5 + $0xe0] sm:$0xff] %v778_v30  ;;  %v797_v31 = vpop.f32.mrf.mxu1  ;;  %v934_v56 = vld [vmem:[%s1760_s5 + $0xa8] sm:$0xff] (%p1455_p5) }
 0x137   : > { %867 = vst [vmem:[%s1760_s5 + $0xe8] sm:$0xff] %v797_v31 }
 0x138   : > { %921 = vst [vmem:[%s1803_s9 + $0xb0] sm:$0xff] (%p1455_p5), %v920_v49 }
 0x139   : > { %876 = sbr.rel (!%p1455_p5) target bundleno = 326 (0x146), region = 55  ;;  %923 = vst [vmem:[%s1803_s9 + $0xb8] sm:$0xff] (%p1455_p5), %v922_v50 }
 0x13a   : > { %933 = vst [vmem:[%s1803_s9 + $0x120] sm:$0xff] (%p1455_p5), %v932_v55 }
 0x13b   : > { %v816_v32 = vpop.f32.mrf.mxu2  ;;  %v936_v57 = vld [vmem:[%s1760_s5 + $0xb0] sm:$0xff] (%p1455_p5)  ;;  %935 = vst [vmem:[%s1803_s9 + $0x128] sm:$0xff] (%p1455_p5), %v934_v56 }
 0x13c   : > { %868 = vst [vmem:[%s1760_s5 + $0xf0] sm:$0xff] %v816_v32  ;;  %v835_v33 = vpop.f32.mrf.mxu3  ;;  %v938_v58 = vld [vmem:[%s1760_s5 + $0xb8] sm:$0xff] (%p1455_p5) }
 0x13d   : > { %869 = vst [vmem:[%s1760_s5 + $0xf8] sm:$0xff] %v835_v33  ;;  %v948_v63 = vld [vmem:[%s1760_s5 + $0xe0] sm:$0xff] (%p1455_p5) }
 0x13e   : > { %937 = vst [vmem:[%s1803_s9 + $0x130] sm:$0xff] %v936_v57  ;;  %v950_v0 = vld [vmem:[%s1760_s5 + $0xe8] sm:$0xff] }
 0x13f   : > { %939 = vst [vmem:[%s1803_s9 + $0x138] sm:$0xff] %v938_v58 }
 0x140   : > { %949 = vst [vmem:[%s1803_s9 + $0x1a0] sm:$0xff] %v948_v63 }
 0x141   : > { %951 = vst [vmem:[%s1803_s9 + $0x1a8] sm:$0xff] %v950_v0 }
 0x143   : > { %v952_v1 = vld [vmem:[%s1760_s5 + $0xf0] sm:$0xff] }
 0x144   : > { %v954_v2 = vld [vmem:[%s1760_s5 + $0xf8] sm:$0xff]  ;;  %953 = vst [vmem:[%s1803_s9 + $0x1b0] sm:$0xff] %v952_v1 }
 0x145   : > { %955 = vst [vmem:[%s1803_s9 + $0x1b8] sm:$0xff] %v954_v2 }
 0x146 PF: > { %p9_p10 = scmp.ge.s32.totalorder %s1442_s13, 4   ;;  %s1881_s9 = smov %s1404_s10 }
 0x147   : > { %s1882_s10 = smov %s1453_s16  ;;  %s1883_s11 = smov %s1442_s13 }
 0x148   :  { %11 = sbr.rel (!%p9_p10) target bundleno = 2 (0x2), region = 109 }

// kernel: _lambda_.16
= control target key start
LH: loop header
LB: loop body
LE: loop exit
PB: predicated region body
PF: predicated region fallthrough
CT: control target
= control target key end

     0   :  { %s1174_s0 = inlined_call_operand.vmem [shape: f32[256,512], index: 0, kind: input, shape index: {}]   ;;  %s1175_s1 = inlined_call_operand.vmem [shape: f32[256,512], index: 1, kind: output, shape index: {}]  }
   0x1   :  { %v8_v0 = vld [vmem:[%s1174_s0] sm:$0xff]  ;;  %v9_v1 = vld [vmem:[%s1174_s0 + $0x8] sm:$0xff]  ;;  %v10_v2 = vld [vmem:[%s1174_s0 + $0x10] sm:$0xff] }
   0x2   :  { %v136_v3 = vmax.f32 %v8_v0, 0.0  ;;  %v137_v4 = vmax.f32 %v9_v1, 0.0  ;;  %v138_v5 = vmax.f32 %v10_v2, 0.0  ;;  %v11_v6 = vld [vmem:[%s1174_s0 + $0x18] sm:$0xff]  ;;  %v12_v7 = vld [vmem:[%s1174_s0 + $0x20] sm:$0xff]  ;;  %v13_v8 = vld [vmem:[%s1174_s0 + $0x28] sm:$0xff] }
   0x3   :  { %v139_v9 = vmax.f32 %v11_v6, 0.0  ;;  %v14_v10 = vld [vmem:[%s1174_s0 + $0x30] sm:$0xff]  ;;  %v140_v11 = vmax.f32 %v12_v7, 0.0  ;;  %v15_v12 = vld [vmem:[%s1174_s0 + $0x38] sm:$0xff]  ;;  %v141_v13 = vmax.f32 %v13_v8, 0.0  ;;  %v16_v14 = vld [vmem:[%s1174_s0 + $0x40] sm:$0xff] }
   0x4   :  { %264 = vst [vmem:[%s1175_s1] sm:$0xff] %v136_v3  ;;  %v142_v15 = vmax.f32 %v14_v10, 0.0  ;;  %v17_v16 = vld [vmem:[%s1174_s0 + $0x48] sm:$0xff]  ;;  %v143_v17 = vmax.f32 %v15_v12, 0.0  ;;  %v18_v18 = vld [vmem:[%s1174_s0 + $0x50] sm:$0xff]  ;;  %v144_v19 = vmax.f32 %v16_v14, 0.0  ;;  %v19_v20 = vld [vmem:[%s1174_s0 + $0x58] sm:$0xff] }
   0x5   :  { %265 = vst [vmem:[%s1175_s1 + $0x8] sm:$0xff] %v137_v4  ;;  %v145_v21 = vmax.f32 %v17_v16, 0.0  ;;  %v20_v22 = vld [vmem:[%s1174_s0 + $0x60] sm:$0xff]  ;;  %v146_v23 = vmax.f32 %v18_v18, 0.0  ;;  %v21_v24 = vld [vmem:[%s1174_s0 + $0x68] sm:$0xff]  ;;  %v147_v25 = vmax.f32 %v19_v20, 0.0 }
   0x6   :  { %266 = vst [vmem:[%s1175_s1 + $0x10] sm:$0xff] %v138_v5  ;;  %v22_v26 = vld [vmem:[%s1174_s0 + $0x70] sm:$0xff]  ;;  %v148_v27 = vmax.f32 %v20_v22, 0.0  ;;  %v23_v28 = vld [vmem:[%s1174_s0 + $0x78] sm:$0xff]  ;;  %v149_v29 = vmax.f32 %v21_v24, 0.0  ;;  %v24_v30 = vld [vmem:[%s1174_s0 + $0x80] sm:$0xff] }
   0x7   :  { %267 = vst [vmem:[%s1175_s1 + $0x18] sm:$0xff] %v139_v9  ;;  %v150_v31 = vmax.f32 %v22_v26, 0.0  ;;  %v25_v32 = vld [vmem:[%s1174_s0 + $0x88] sm:$0xff]  ;;  %v151_v33 = vmax.f32 %v23_v28, 0.0  ;;  %v26_v34 = vld [vmem:[%s1174_s0 + $0x90] sm:$0xff]  ;;  %v152_v35 = vmax.f32 %v24_v30, 0.0 }
   0x8   :  { %268 = vst [vmem:[%s1175_s1 + $0x20] sm:$0xff] %v140_v11  ;;  %v27_v36 = vld [vmem:[%s1174_s0 + $0x98] sm:$0xff]  ;;  %v153_v37 = vmax.f32 %v25_v32, 0.0  ;;  %v28_v38 = vld [vmem:[%s1174_s0 + $0xa0] sm:$0xff]  ;;  %v154_v39 = vmax.f32 %v26_v34, 0.0  ;;  %v29_v40 = vld [vmem:[%s1174_s0 + $0xa8] sm:$0xff] }
   0x9   :  { %269 = vst [vmem:[%s1175_s1 + $0x28] sm:$0xff] %v141_v13  ;;  %v155_v41 = vmax.f32 %v27_v36, 0.0  ;;  %v30_v42 = vld [vmem:[%s1174_s0 + $0xb0] sm:$0xff]  ;;  %v156_v43 = vmax.f32 %v28_v38, 0.0  ;;  %v31_v44 = vld [vmem:[%s1174_s0 + $0xb8] sm:$0xff]  ;;  %v157_v45 = vmax.f32 %v29_v40, 0.0 }
   0xa   :  { %270 = vst [vmem:[%s1175_s1 + $0x30] sm:$0xff] %v142_v15  ;;  %v32_v46 = vld [vmem:[%s1174_s0 + $0xc0] sm:$0xff]  ;;  %v158_v47 = vmax.f32 %v30_v42, 0.0  ;;  %v33_v48 = vld [vmem:[%s1174_s0 + $0xc8] sm:$0xff]  ;;  %v159_v49 = vmax.f32 %v31_v44, 0.0  ;;  %v34_v50 = vld [vmem:[%s1174_s0 + $0xd0] sm:$0xff] }
   0xb   :  { %271 = vst [vmem:[%s1175_s1 + $0x38] sm:$0xff] %v143_v17  ;;  %v160_v51 = vmax.f32 %v32_v46, 0.0  ;;  %v35_v52 = vld [vmem:[%s1174_s0 + $0xd8] sm:$0xff]  ;;  %v161_v53 = vmax.f32 %v33_v48, 0.0  ;;  %v36_v54 = vld [vmem:[%s1174_s0 + $0xe0] sm:$0xff]  ;;  %v162_v55 = vmax.f32 %v34_v50, 0.0 }
   0xc   :  { %272 = vst [vmem:[%s1175_s1 + $0x40] sm:$0xff] %v144_v19  ;;  %v37_v56 = vld [vmem:[%s1174_s0 + $0xe8] sm:$0xff]  ;;  %v163_v57 = vmax.f32 %v35_v52, 0.0  ;;  %v38_v58 = vld [vmem:[%s1174_s0 + $0xf0] sm:$0xff]  ;;  %v164_v59 = vmax.f32 %v36_v54, 0.0  ;;  %v39_v60 = vld [vmem:[%s1174_s0 + $0xf8] sm:$0xff] }
   0xd   :  { %273 = vst [vmem:[%s1175_s1 + $0x48] sm:$0xff] %v145_v21  ;;  %v165_v61 = vmax.f32 %v37_v56, 0.0  ;;  %v40_v62 = vld [vmem:[%s1174_s0 + $0x100] sm:$0xff]  ;;  %v166_v63 = vmax.f32 %v38_v58, 0.0  ;;  %v41_v0 = vld [vmem:[%s1174_s0 + $0x108] sm:$0xff]  ;;  %v167_v1 = vmax.f32 %v39_v60, 0.0 }
   0xe   :  { %274 = vst [vmem:[%s1175_s1 + $0x50] sm:$0xff] %v146_v23  ;;  %v42_v2 = vld [vmem:[%s1174_s0 + $0x110] sm:$0xff]  ;;  %v168_v3 = vmax.f32 %v40_v62, 0.0  ;;  %v43_v4 = vld [vmem:[%s1174_s0 + $0x118] sm:$0xff]  ;;  %v169_v5 = vmax.f32 %v41_v0, 0.0  ;;  %v44_v6 = vld [vmem:[%s1174_s0 + $0x120] sm:$0xff] }
   0xf   :  { %275 = vst [vmem:[%s1175_s1 + $0x58] sm:$0xff] %v147_v25  ;;  %v170_v7 = vmax.f32 %v42_v2, 0.0  ;;  %v45_v8 = vld [vmem:[%s1174_s0 + $0x128] sm:$0xff]  ;;  %v171_v9 = vmax.f32 %v43_v4, 0.0  ;;  %v46_v10 = vld [vmem:[%s1174_s0 + $0x130] sm:$0xff]  ;;  %v172_v11 = vmax.f32 %v44_v6, 0.0 }
  0x10   :  { %276 = vst [vmem:[%s1175_s1 + $0x60] sm:$0xff] %v148_v27  ;;  %v47_v12 = vld [vmem:[%s1174_s0 + $0x138] sm:$0xff]  ;;  %v173_v13 = vmax.f32 %v45_v8, 0.0  ;;  %v48_v14 = vld [vmem:[%s1174_s0 + $0x140] sm:$0xff]  ;;  %v174_v15 = vmax.f32 %v46_v10, 0.0  ;;  %v49_v16 = vld [vmem:[%s1174_s0 + $0x148] sm:$0xff] }
  0x11   :  { %277 = vst [vmem:[%s1175_s1 + $0x68] sm:$0xff] %v149_v29  ;;  %v175_v17 = vmax.f32 %v47_v12, 0.0  ;;  %v50_v18 = vld [vmem:[%s1174_s0 + $0x150] sm:$0xff]  ;;  %v176_v19 = vmax.f32 %v48_v14, 0.0  ;;  %v51_v20 = vld [vmem:[%s1174_s0 + $0x158] sm:$0xff]  ;;  %v177_v21 = vmax.f32 %v49_v16, 0.0 }
  0x12   :  { %278 = vst [vmem:[%s1175_s1 + $0x70] sm:$0xff] %v150_v31  ;;  %v52_v22 = vld [vmem:[%s1174_s0 + $0x160] sm:$0xff]  ;;  %v178_v23 = vmax.f32 %v50_v18, 0.0  ;;  %v53_v24 = vld [vmem:[%s1174_s0 + $0x168] sm:$0xff]  ;;  %v179_v25 = vmax.f32 %v51_v20, 0.0  ;;  %v54_v26 = vld [vmem:[%s1174_s0 + $0x170] sm:$0xff] }
  0x13   :  { %279 = vst [vmem:[%s1175_s1 + $0x78] sm:$0xff] %v151_v33  ;;  %v180_v27 = vmax.f32 %v52_v22, 0.0  ;;  %v55_v28 = vld [vmem:[%s1174_s0 + $0x178] sm:$0xff]  ;;  %v181_v29 = vmax.f32 %v53_v24, 0.0  ;;  %v56_v30 = vld [vmem:[%s1174_s0 + $0x180] sm:$0xff]  ;;  %v182_v31 = vmax.f32 %v54_v26, 0.0 }
  0x14   :  { %280 = vst [vmem:[%s1175_s1 + $0x80] sm:$0xff] %v152_v35  ;;  %v57_v32 = vld [vmem:[%s1174_s0 + $0x188] sm:$0xff]  ;;  %v183_v33 = vmax.f32 %v55_v28, 0.0  ;;  %v58_v34 = vld [vmem:[%s1174_s0 + $0x190] sm:$0xff]  ;;  %v184_v35 = vmax.f32 %v56_v30, 0.0  ;;  %v59_v36 = vld [vmem:[%s1174_s0 + $0x198] sm:$0xff] }
  0x15   :  { %281 = vst [vmem:[%s1175_s1 + $0x88] sm:$0xff] %v153_v37  ;;  %v185_v37 = vmax.f32 %v57_v32, 0.0  ;;  %v60_v38 = vld [vmem:[%s1174_s0 + $0x1a0] sm:$0xff]  ;;  %v61_v40 = vld [vmem:[%s1174_s0 + $0x1a8] sm:$0xff]  ;;  %v62_v42 = vld [vmem:[%s1174_s0 + $0x1b0] sm:$0xff] }
  0x16   :  { %282 = vst [vmem:[%s1175_s1 + $0x90] sm:$0xff] %v154_v39  ;;  %v186_v39 = vmax.f32 %v58_v34, 0.0  ;;  %v63_v44 = vld [vmem:[%s1174_s0 + $0x1b8] sm:$0xff]  ;;  %v64_v46 = vld [vmem:[%s1174_s0 + $0x1c0] sm:$0xff]  ;;  %v65_v48 = vld [vmem:[%s1174_s0 + $0x1c8] sm:$0xff] }
  0x17   :  { %283 = vst [vmem:[%s1175_s1 + $0x98] sm:$0xff] %v155_v41  ;;  %v187_v41 = vmax.f32 %v59_v36, 0.0  ;;  %v66_v50 = vld [vmem:[%s1174_s0 + $0x1d0] sm:$0xff]  ;;  %v67_v52 = vld [vmem:[%s1174_s0 + $0x1d8] sm:$0xff]  ;;  %v68_v54 = vld [vmem:[%s1174_s0 + $0x1e0] sm:$0xff] }
  0x18   :  { %284 = vst [vmem:[%s1175_s1 + $0xa0] sm:$0xff] %v156_v43  ;;  %v188_v43 = vmax.f32 %v60_v38, 0.0  ;;  %v69_v56 = vld [vmem:[%s1174_s0 + $0x1e8] sm:$0xff]  ;;  %v70_v58 = vld [vmem:[%s1174_s0 + $0x1f0] sm:$0xff]  ;;  %v71_v60 = vld [vmem:[%s1174_s0 + $0x1f8] sm:$0xff] }
  0x19   :  { %285 = vst [vmem:[%s1175_s1 + $0xa8] sm:$0xff] %v157_v45  ;;  %v189_v45 = vmax.f32 %v61_v40, 0.0  ;;  %v72_v62 = vld [vmem:[%s1174_s0 + $0x200] sm:$0xff]  ;;  %v73_v0 = vld [vmem:[%s1174_s0 + $0x208] sm:$0xff]  ;;  %v74_v2 = vld [vmem:[%s1174_s0 + $0x210] sm:$0xff] }
  0x1a   :  { %286 = vst [vmem:[%s1175_s1 + $0xb0] sm:$0xff] %v158_v47  ;;  %v190_v47 = vmax.f32 %v62_v42, 0.0  ;;  %v75_v4 = vld [vmem:[%s1174_s0 + $0x218] sm:$0xff]  ;;  %v76_v6 = vld [vmem:[%s1174_s0 + $0x220] sm:$0xff]  ;;  %v77_v8 = vld [vmem:[%s1174_s0 + $0x228] sm:$0xff] }
  0x1b   :  { %287 = vst [vmem:[%s1175_s1 + $0xb8] sm:$0xff] %v159_v49  ;;  %v191_v49 = vmax.f32 %v63_v44, 0.0  ;;  %v78_v10 = vld [vmem:[%s1174_s0 + $0x230] sm:$0xff]  ;;  %v79_v12 = vld [vmem:[%s1174_s0 + $0x238] sm:$0xff]  ;;  %v80_v14 = vld [vmem:[%s1174_s0 + $0x240] sm:$0xff] }
  0x1c   :  { %288 = vst [vmem:[%s1175_s1 + $0xc0] sm:$0xff] %v160_v51  ;;  %v192_v51 = vmax.f32 %v64_v46, 0.0  ;;  %v81_v16 = vld [vmem:[%s1174_s0 + $0x248] sm:$0xff]  ;;  %v82_v18 = vld [vmem:[%s1174_s0 + $0x250] sm:$0xff]  ;;  %v83_v20 = vld [vmem:[%s1174_s0 + $0x258] sm:$0xff] }
  0x1d   :  { %289 = vst [vmem:[%s1175_s1 + $0xc8] sm:$0xff] %v161_v53  ;;  %v193_v53 = vmax.f32 %v65_v48, 0.0  ;;  %v84_v22 = vld [vmem:[%s1174_s0 + $0x260] sm:$0xff]  ;;  %v85_v24 = vld [vmem:[%s1174_s0 + $0x268] sm:$0xff]  ;;  %v86_v26 = vld [vmem:[%s1174_s0 + $0x270] sm:$0xff] }
  0x1e   :  { %290 = vst [vmem:[%s1175_s1 + $0xd0] sm:$0xff] %v162_v55  ;;  %v194_v55 = vmax.f32 %v66_v50, 0.0  ;;  %v87_v28 = vld [vmem:[%s1174_s0 + $0x278] sm:$0xff]  ;;  %v88_v30 = vld [vmem:[%s1174_s0 + $0x280] sm:$0xff]  ;;  %v89_v32 = vld [vmem:[%s1174_s0 + $0x288] sm:$0xff] }
  0x1f   :  { %291 = vst [vmem:[%s1175_s1 + $0xd8] sm:$0xff] %v163_v57  ;;  %v195_v57 = vmax.f32 %v67_v52, 0.0  ;;  %v90_v34 = vld [vmem:[%s1174_s0 + $0x290] sm:$0xff]  ;;  %v91_v36 = vld [vmem:[%s1174_s0 + $0x298] sm:$0xff]  ;;  %v92_v38 = vld [vmem:[%s1174_s0 + $0x2a0] sm:$0xff] }
  0x20   :  { %292 = vst [vmem:[%s1175_s1 + $0xe0] sm:$0xff] %v164_v59  ;;  %v196_v59 = vmax.f32 %v68_v54, 0.0  ;;  %v93_v40 = vld [vmem:[%s1174_s0 + $0x2a8] sm:$0xff]  ;;  %v94_v42 = vld [vmem:[%s1174_s0 + $0x2b0] sm:$0xff]  ;;  %v95_v44 = vld [vmem:[%s1174_s0 + $0x2b8] sm:$0xff] }
  0x21   :  { %293 = vst [vmem:[%s1175_s1 + $0xe8] sm:$0xff] %v165_v61  ;;  %v197_v61 = vmax.f32 %v69_v56, 0.0  ;;  %v96_v46 = vld [vmem:[%s1174_s0 + $0x2c0] sm:$0xff]  ;;  %v97_v48 = vld [vmem:[%s1174_s0 + $0x2c8] sm:$0xff]  ;;  %v98_v50 = vld [vmem:[%s1174_s0 + $0x2d0] sm:$0xff] }
  0x22   :  { %294 = vst [vmem:[%s1175_s1 + $0xf0] sm:$0xff] %v166_v63  ;;  %v198_v63 = vmax.f32 %v70_v58, 0.0  ;;  %v99_v52 = vld [vmem:[%s1174_s0 + $0x2d8] sm:$0xff]  ;;  %v100_v54 = vld [vmem:[%s1174_s0 + $0x2e0] sm:$0xff]  ;;  %v101_v56 = vld [vmem:[%s1174_s0 + $0x2e8] sm:$0xff] }
  0x23   :  { %295 = vst [vmem:[%s1175_s1 + $0xf8] sm:$0xff] %v167_v1  ;;  %v199_v1 = vmax.f32 %v71_v60, 0.0  ;;  %v102_v58 = vld [vmem:[%s1174_s0 + $0x2f0] sm:$0xff]  ;;  %v103_v60 = vld [vmem:[%s1174_s0 + $0x2f8] sm:$0xff] }
  0x24   :  { %296 = vst [vmem:[%s1175_s1 + $0x100] sm:$0xff] %v168_v3  ;;  %v200_v3 = vmax.f32 %v72_v62, 0.0  ;;  %v104_v62 = vld [vmem:[%s1174_s0 + $0x300] sm:$0xff] }
  0x25   :  { %297 = vst [vmem:[%s1175_s1 + $0x108] sm:$0xff] %v169_v5  ;;  %v201_v5 = vmax.f32 %v73_v0, 0.0  ;;  %v105_v0 = vld [vmem:[%s1174_s0 + $0x308] sm:$0xff] }
  0x26   :  { %298 = vst [vmem:[%s1175_s1 + $0x110] sm:$0xff] %v170_v7  ;;  %v202_v7 = vmax.f32 %v74_v2, 0.0  ;;  %v106_v2 = vld [vmem:[%s1174_s0 + $0x310] sm:$0xff] }
  0x27   :  { %299 = vst [vmem:[%s1175_s1 + $0x118] sm:$0xff] %v171_v9  ;;  %v203_v9 = vmax.f32 %v75_v4, 0.0  ;;  %v107_v4 = vld [vmem:[%s1174_s0 + $0x318] sm:$0xff] }
  0x28   :  { %300 = vst [vmem:[%s1175_s1 + $0x120] sm:$0xff] %v172_v11  ;;  %v204_v11 = vmax.f32 %v76_v6, 0.0  ;;  %v108_v6 = vld [vmem:[%s1174_s0 + $0x320] sm:$0xff] }
  0x29   :  { %301 = vst [vmem:[%s1175_s1 + $0x128] sm:$0xff] %v173_v13  ;;  %v205_v13 = vmax.f32 %v77_v8, 0.0  ;;  %v109_v8 = vld [vmem:[%s1174_s0 + $0x328] sm:$0xff] }
  0x2a   :  { %302 = vst [vmem:[%s1175_s1 + $0x130] sm:$0xff] %v174_v15  ;;  %v206_v15 = vmax.f32 %v78_v10, 0.0  ;;  %v110_v10 = vld [vmem:[%s1174_s0 + $0x330] sm:$0xff] }
  0x2b   :  { %303 = vst [vmem:[%s1175_s1 + $0x138] sm:$0xff] %v175_v17  ;;  %v207_v17 = vmax.f32 %v79_v12, 0.0  ;;  %v111_v12 = vld [vmem:[%s1174_s0 + $0x338] sm:$0xff] }
  0x2c   :  { %304 = vst [vmem:[%s1175_s1 + $0x140] sm:$0xff] %v176_v19  ;;  %v208_v19 = vmax.f32 %v80_v14, 0.0  ;;  %v112_v14 = vld [vmem:[%s1174_s0 + $0x340] sm:$0xff] }
  0x2d   :  { %305 = vst [vmem:[%s1175_s1 + $0x148] sm:$0xff] %v177_v21  ;;  %v209_v21 = vmax.f32 %v81_v16, 0.0  ;;  %v113_v16 = vld [vmem:[%s1174_s0 + $0x348] sm:$0xff] }
  0x2e   :  { %306 = vst [vmem:[%s1175_s1 + $0x150] sm:$0xff] %v178_v23  ;;  %v210_v23 = vmax.f32 %v82_v18, 0.0  ;;  %v114_v18 = vld [vmem:[%s1174_s0 + $0x350] sm:$0xff] }
  0x2f   :  { %307 = vst [vmem:[%s1175_s1 + $0x158] sm:$0xff] %v179_v25  ;;  %v211_v25 = vmax.f32 %v83_v20, 0.0  ;;  %v115_v20 = vld [vmem:[%s1174_s0 + $0x358] sm:$0xff] }
  0x30   :  { %308 = vst [vmem:[%s1175_s1 + $0x160] sm:$0xff] %v180_v27  ;;  %v212_v27 = vmax.f32 %v84_v22, 0.0  ;;  %v116_v22 = vld [vmem:[%s1174_s0 + $0x360] sm:$0xff] }
  0x31   :  { %309 = vst [vmem:[%s1175_s1 + $0x168] sm:$0xff] %v181_v29  ;;  %v213_v29 = vmax.f32 %v85_v24, 0.0  ;;  %v117_v24 = vld [vmem:[%s1174_s0 + $0x368] sm:$0xff] }
  0x32   :  { %310 = vst [vmem:[%s1175_s1 + $0x170] sm:$0xff] %v182_v31  ;;  %v214_v31 = vmax.f32 %v86_v26, 0.0  ;;  %v118_v26 = vld [vmem:[%s1174_s0 + $0x370] sm:$0xff] }
  0x33   :  { %311 = vst [vmem:[%s1175_s1 + $0x178] sm:$0xff] %v183_v33  ;;  %v215_v33 = vmax.f32 %v87_v28, 0.0  ;;  %v119_v28 = vld [vmem:[%s1174_s0 + $0x378] sm:$0xff] }
  0x34   :  { %312 = vst [vmem:[%s1175_s1 + $0x180] sm:$0xff] %v184_v35  ;;  %v216_v35 = vmax.f32 %v88_v30, 0.0  ;;  %v120_v30 = vld [vmem:[%s1174_s0 + $0x380] sm:$0xff] }
  0x35   :  { %313 = vst [vmem:[%s1175_s1 + $0x188] sm:$0xff] %v185_v37  ;;  %v217_v37 = vmax.f32 %v89_v32, 0.0  ;;  %v121_v32 = vld [vmem:[%s1174_s0 + $0x388] sm:$0xff] }
  0x36   :  { %314 = vst [vmem:[%s1175_s1 + $0x190] sm:$0xff] %v186_v39  ;;  %v218_v39 = vmax.f32 %v90_v34, 0.0  ;;  %v122_v34 = vld [vmem:[%s1174_s0 + $0x390] sm:$0xff] }
  0x37   :  { %315 = vst [vmem:[%s1175_s1 + $0x198] sm:$0xff] %v187_v41  ;;  %v219_v41 = vmax.f32 %v91_v36, 0.0  ;;  %v123_v36 = vld [vmem:[%s1174_s0 + $0x398] sm:$0xff] }
  0x38   :  { %316 = vst [vmem:[%s1175_s1 + $0x1a0] sm:$0xff] %v188_v43  ;;  %v220_v43 = vmax.f32 %v92_v38, 0.0  ;;  %v124_v38 = vld [vmem:[%s1174_s0 + $0x3a0] sm:$0xff] }
  0x39   :  { %317 = vst [vmem:[%s1175_s1 + $0x1a8] sm:$0xff] %v189_v45  ;;  %v221_v45 = vmax.f32 %v93_v40, 0.0  ;;  %v125_v40 = vld [vmem:[%s1174_s0 + $0x3a8] sm:$0xff] }
  0x3a   :  { %318 = vst [vmem:[%s1175_s1 + $0x1b0] sm:$0xff] %v190_v47  ;;  %v222_v47 = vmax.f32 %v94_v42, 0.0  ;;  %v126_v42 = vld [vmem:[%s1174_s0 + $0x3b0] sm:$0xff] }
  0x3b   :  { %319 = vst [vmem:[%s1175_s1 + $0x1b8] sm:$0xff] %v191_v49  ;;  %v223_v49 = vmax.f32 %v95_v44, 0.0  ;;  %v127_v44 = vld [vmem:[%s1174_s0 + $0x3b8] sm:$0xff] }
  0x3c   :  { %320 = vst [vmem:[%s1175_s1 + $0x1c0] sm:$0xff] %v192_v51  ;;  %v224_v51 = vmax.f32 %v96_v46, 0.0  ;;  %v128_v46 = vld [vmem:[%s1174_s0 + $0x3c0] sm:$0xff] }
  0x3d   :  { %321 = vst [vmem:[%s1175_s1 + $0x1c8] sm:$0xff] %v193_v53  ;;  %v225_v53 = vmax.f32 %v97_v48, 0.0  ;;  %v129_v48 = vld [vmem:[%s1174_s0 + $0x3c8] sm:$0xff] }
  0x3e   :  { %322 = vst [vmem:[%s1175_s1 + $0x1d0] sm:$0xff] %v194_v55  ;;  %v226_v55 = vmax.f32 %v98_v50, 0.0  ;;  %v130_v50 = vld [vmem:[%s1174_s0 + $0x3d0] sm:$0xff] }
  0x3f   :  { %323 = vst [vmem:[%s1175_s1 + $0x1d8] sm:$0xff] %v195_v57  ;;  %v227_v57 = vmax.f32 %v99_v52, 0.0  ;;  %v131_v52 = vld [vmem:[%s1174_s0 + $0x3d8] sm:$0xff] }
  0x40   :  { %324 = vst [vmem:[%s1175_s1 + $0x1e0] sm:$0xff] %v196_v59  ;;  %v228_v59 = vmax.f32 %v100_v54, 0.0  ;;  %v132_v54 = vld [vmem:[%s1174_s0 + $0x3e0] sm:$0xff] }
  0x41   :  { %325 = vst [vmem:[%s1175_s1 + $0x1e8] sm:$0xff] %v197_v61  ;;  %v229_v61 = vmax.f32 %v101_v56, 0.0  ;;  %v133_v56 = vld [vmem:[%s1174_s0 + $0x3e8] sm:$0xff] }
  0x42   :  { %326 = vst [vmem:[%s1175_s1 + $0x1f0] sm:$0xff] %v198_v63  ;;  %v230_v63 = vmax.f32 %v102_v58, 0.0  ;;  %v134_v58 = vld [vmem:[%s1174_s0 + $0x3f0] sm:$0xff] }
  0x43   :  { %327 = vst [vmem:[%s1175_s1 + $0x1f8] sm:$0xff] %v199_v1  ;;  %v231_v1 = vmax.f32 %v103_v60, 0.0  ;;  %v135_v60 = vld [vmem:[%s1174_s0 + $0x3f8] sm:$0xff] }
  0x44   :  { %328 = vst [vmem:[%s1175_s1 + $0x200] sm:$0xff] %v200_v3  ;;  %v232_v3 = vmax.f32 %v104_v62, 0.0  ;;  %v262_v62 = vmax.f32 %v134_v58, 0.0 }
  0x45   :  { %329 = vst [vmem:[%s1175_s1 + $0x208] sm:$0xff] %v201_v5  ;;  %v233_v5 = vmax.f32 %v105_v0, 0.0 }
  0x46   :  { %330 = vst [vmem:[%s1175_s1 + $0x210] sm:$0xff] %v202_v7  ;;  %v234_v7 = vmax.f32 %v106_v2, 0.0 }
  0x47   :  { %331 = vst [vmem:[%s1175_s1 + $0x218] sm:$0xff] %v203_v9  ;;  %v235_v9 = vmax.f32 %v107_v4, 0.0 }
  0x48   :  { %332 = vst [vmem:[%s1175_s1 + $0x220] sm:$0xff] %v204_v11  ;;  %v236_v11 = vmax.f32 %v108_v6, 0.0 }
  0x49   :  { %333 = vst [vmem:[%s1175_s1 + $0x228] sm:$0xff] %v205_v13  ;;  %v237_v13 = vmax.f32 %v109_v8, 0.0 }
  0x4a   :  { %334 = vst [vmem:[%s1175_s1 + $0x230] sm:$0xff] %v206_v15  ;;  %v238_v15 = vmax.f32 %v110_v10, 0.0 }
  0x4b   :  { %335 = vst [vmem:[%s1175_s1 + $0x238] sm:$0xff] %v207_v17  ;;  %v239_v17 = vmax.f32 %v111_v12, 0.0 }
  0x4c   :  { %336 = vst [vmem:[%s1175_s1 + $0x240] sm:$0xff] %v208_v19  ;;  %v240_v19 = vmax.f32 %v112_v14, 0.0 }
  0x4d   :  { %337 = vst [vmem:[%s1175_s1 + $0x248] sm:$0xff] %v209_v21  ;;  %v241_v21 = vmax.f32 %v113_v16, 0.0 }
  0x4e   :  { %338 = vst [vmem:[%s1175_s1 + $0x250] sm:$0xff] %v210_v23  ;;  %v242_v23 = vmax.f32 %v114_v18, 0.0 }
  0x4f   :  { %339 = vst [vmem:[%s1175_s1 + $0x258] sm:$0xff] %v211_v25  ;;  %v243_v25 = vmax.f32 %v115_v20, 0.0 }
  0x50   :  { %340 = vst [vmem:[%s1175_s1 + $0x260] sm:$0xff] %v212_v27  ;;  %v244_v27 = vmax.f32 %v116_v22, 0.0 }
  0x51   :  { %341 = vst [vmem:[%s1175_s1 + $0x268] sm:$0xff] %v213_v29  ;;  %v245_v29 = vmax.f32 %v117_v24, 0.0 }
  0x52   :  { %342 = vst [vmem:[%s1175_s1 + $0x270] sm:$0xff] %v214_v31  ;;  %v246_v31 = vmax.f32 %v118_v26, 0.0 }
  0x53   :  { %343 = vst [vmem:[%s1175_s1 + $0x278] sm:$0xff] %v215_v33  ;;  %v247_v33 = vmax.f32 %v119_v28, 0.0 }
  0x54   :  { %344 = vst [vmem:[%s1175_s1 + $0x280] sm:$0xff] %v216_v35  ;;  %v248_v35 = vmax.f32 %v120_v30, 0.0 }
  0x55   :  { %345 = vst [vmem:[%s1175_s1 + $0x288] sm:$0xff] %v217_v37  ;;  %v249_v37 = vmax.f32 %v121_v32, 0.0 }
  0x56   :  { %346 = vst [vmem:[%s1175_s1 + $0x290] sm:$0xff] %v218_v39  ;;  %v250_v39 = vmax.f32 %v122_v34, 0.0 }
  0x57   :  { %347 = vst [vmem:[%s1175_s1 + $0x298] sm:$0xff] %v219_v41  ;;  %v251_v41 = vmax.f32 %v123_v36, 0.0 }
  0x58   :  { %348 = vst [vmem:[%s1175_s1 + $0x2a0] sm:$0xff] %v220_v43  ;;  %v252_v43 = vmax.f32 %v124_v38, 0.0 }
  0x59   :  { %349 = vst [vmem:[%s1175_s1 + $0x2a8] sm:$0xff] %v221_v45  ;;  %v253_v45 = vmax.f32 %v125_v40, 0.0 }
  0x5a   :  { %350 = vst [vmem:[%s1175_s1 + $0x2b0] sm:$0xff] %v222_v47  ;;  %v254_v47 = vmax.f32 %v126_v42, 0.0 }
  0x5b   :  { %351 = vst [vmem:[%s1175_s1 + $0x2b8] sm:$0xff] %v223_v49  ;;  %v255_v49 = vmax.f32 %v127_v44, 0.0 }
  0x5c   :  { %352 = vst [vmem:[%s1175_s1 + $0x2c0] sm:$0xff] %v224_v51  ;;  %v256_v51 = vmax.f32 %v128_v46, 0.0 }
  0x5d   :  { %353 = vst [vmem:[%s1175_s1 + $0x2c8] sm:$0xff] %v225_v53  ;;  %v257_v53 = vmax.f32 %v129_v48, 0.0 }
  0x5e   :  { %354 = vst [vmem:[%s1175_s1 + $0x2d0] sm:$0xff] %v226_v55  ;;  %v258_v55 = vmax.f32 %v130_v50, 0.0 }
  0x5f   :  { %355 = vst [vmem:[%s1175_s1 + $0x2d8] sm:$0xff] %v227_v57  ;;  %v259_v57 = vmax.f32 %v131_v52, 0.0 }
  0x60   :  { %356 = vst [vmem:[%s1175_s1 + $0x2e0] sm:$0xff] %v228_v59  ;;  %v260_v59 = vmax.f32 %v132_v54, 0.0 }
  0x61   :  { %357 = vst [vmem:[%s1175_s1 + $0x2e8] sm:$0xff] %v229_v61  ;;  %v261_v61 = vmax.f32 %v133_v56, 0.0 }
  0x62   :  { %358 = vst [vmem:[%s1175_s1 + $0x2f0] sm:$0xff] %v230_v63  ;;  %v263_v63 = vmax.f32 %v135_v60, 0.0 }
  0x63   :  { %359 = vst [vmem:[%s1175_s1 + $0x2f8] sm:$0xff] %v231_v1 }
  0x64   :  { %360 = vst [vmem:[%s1175_s1 + $0x300] sm:$0xff] %v232_v3 }
  0x65   :  { %361 = vst [vmem:[%s1175_s1 + $0x308] sm:$0xff] %v233_v5 }
  0x66   :  { %362 = vst [vmem:[%s1175_s1 + $0x310] sm:$0xff] %v234_v7 }
  0x67   :  { %363 = vst [vmem:[%s1175_s1 + $0x318] sm:$0xff] %v235_v9 }
  0x68   :  { %364 = vst [vmem:[%s1175_s1 + $0x320] sm:$0xff] %v236_v11 }
  0x69   :  { %365 = vst [vmem:[%s1175_s1 + $0x328] sm:$0xff] %v237_v13 }
  0x6a   :  { %366 = vst [vmem:[%s1175_s1 + $0x330] sm:$0xff] %v238_v15 }
  0x6b   :  { %367 = vst [vmem:[%s1175_s1 + $0x338] sm:$0xff] %v239_v17 }
  0x6c   :  { %368 = vst [vmem:[%s1175_s1 + $0x340] sm:$0xff] %v240_v19 }
  0x6d   :  { %369 = vst [vmem:[%s1175_s1 + $0x348] sm:$0xff] %v241_v21 }
  0x6e   :  { %370 = vst [vmem:[%s1175_s1 + $0x350] sm:$0xff] %v242_v23 }
  0x6f   :  { %371 = vst [vmem:[%s1175_s1 + $0x358] sm:$0xff] %v243_v25 }
  0x70   :  { %372 = vst [vmem:[%s1175_s1 + $0x360] sm:$0xff] %v244_v27 }
  0x71   :  { %373 = vst [vmem:[%s1175_s1 + $0x368] sm:$0xff] %v245_v29 }
  0x72   :  { %374 = vst [vmem:[%s1175_s1 + $0x370] sm:$0xff] %v246_v31 }
  0x73   :  { %375 = vst [vmem:[%s1175_s1 + $0x378] sm:$0xff] %v247_v33 }
  0x74   :  { %376 = vst [vmem:[%s1175_s1 + $0x380] sm:$0xff] %v248_v35 }
  0x75   :  { %377 = vst [vmem:[%s1175_s1 + $0x388] sm:$0xff] %v249_v37 }
  0x76   :  { %378 = vst [vmem:[%s1175_s1 + $0x390] sm:$0xff] %v250_v39 }
  0x77   :  { %379 = vst [vmem:[%s1175_s1 + $0x398] sm:$0xff] %v251_v41 }
  0x78   :  { %380 = vst [vmem:[%s1175_s1 + $0x3a0] sm:$0xff] %v252_v43 }
  0x79   :  { %381 = vst [vmem:[%s1175_s1 + $0x3a8] sm:$0xff] %v253_v45 }
  0x7a   :  { %382 = vst [vmem:[%s1175_s1 + $0x3b0] sm:$0xff] %v254_v47 }
  0x7b   :  { %383 = vst [vmem:[%s1175_s1 + $0x3b8] sm:$0xff] %v255_v49 }
  0x7c   :  { %384 = vst [vmem:[%s1175_s1 + $0x3c0] sm:$0xff] %v256_v51 }
  0x7d   :  { %385 = vst [vmem:[%s1175_s1 + $0x3c8] sm:$0xff] %v257_v53 }
  0x7e   :  { %386 = vst [vmem:[%s1175_s1 + $0x3d0] sm:$0xff] %v258_v55 }
  0x7f   :  { %387 = vst [vmem:[%s1175_s1 + $0x3d8] sm:$0xff] %v259_v57 }
  0x80   :  { %388 = vst [vmem:[%s1175_s1 + $0x3e0] sm:$0xff] %v260_v59 }
  0x81   :  { %389 = vst [vmem:[%s1175_s1 + $0x3e8] sm:$0xff] %v261_v61 }
  0x82   :  { %390 = vst [vmem:[%s1175_s1 + $0x3f0] sm:$0xff] %v262_v62 }
  0x83   :  { %391 = vst [vmem:[%s1175_s1 + $0x3f8] sm:$0xff] %v263_v63 }

// kernel: _lambda_.17
= control target key start
LH: loop header
LB: loop body
LE: loop exit
PB: predicated region body
PF: predicated region fallthrough
CT: control target
= control target key end

     0   :  { %s2275_s9 = smov 0   ;;  %s2277_s10 = smov 0   ;;  %s2923_s0 = inlined_call_operand.vmem [shape: bf16[16,512], index: 0, kind: input, shape index: {}]   ;;  %s2924_s1 = inlined_call_operand.vmem [shape: bf16[512,1024], index: 1, kind: input, shape index: {}]   ;;  %s2925_s2 = inlined_call_operand.vmem [shape: f32[16,1024], index: 2, kind: output, shape index: {}]  }
   0x1   :  { %s2279_s11 = smov 0  }
   0x2 LB: > { %s1535_s12 = sadd.s32 4294967295, %s2258_s11   ;;  %s2292_s13 = sadd.s32 1, %s2258_s11   ;;  %s2258_s11 = sphi %s2279_s11, %s2929_s11   ;;  %s2254_s10 = sphi %s2277_s10, %s2928_s10   ;;  %s2250_s9 = sphi %s2275_s9, %s2927_s9  }
   0x3   : > { %s37_s14 = ssub.s32 %s2258_s11, %s2292_s13  ;;  %s40_s15 = sadd.s32 1, %s2254_s10 }
   0x4   : > { %p38_p0 = scmp.eq.s32.totalorder %s37_s14, 0  ;;  %p47_p1 = scmp.ne.s32.totalorder %s2254_s10, %s2250_s9 }
   0x5   : > { %p48_p2 = scmp.eq.s32.totalorder %s2258_s11, 0  ;;  %p77_p3 = scmp.eq.s32.totalorder %s1535_s12, 1 }
   0x6   : > { %s2303_s16 = scalar_select %p38_p0, %s2254_s10, %s40_s15  }
   0x7   : > { %p49_p4 = por %p48_p2, %p47_p1  ;;  %p2305_p5 = por %p77_p3, %p47_p1 }
   0x8   : > { %p1538_p6 = scmp.ge.s32.totalorder %s2258_s11, 2 }
   0xa   : > { %102 = sbr.rel (%p1538_p6) target bundleno = 147 (0x93), region = 20 }
   0xf   : > { %105 = sbr.rel (!%p49_p4) target bundleno = 147 (0x93), region = 24  ;;  %s107_s18 = sand.u32 (%p49_p4), 1, %s2254_s10  }
  0x10   : > { %s2078_s19 = sshll.u32 (%p49_p4), %s2258_s11, 4  ;;  %s1539_s20 = sshll.u32 (%p49_p4), %s107_s18, 10 }
  0x11   : > { %s2315_s23 = scalar_lea.vmem (%p49_p4), %s2924_s1, %s2078_s19  ;;  %s2320_s24 = scalar_lea.vmem (%p49_p4), [#allocation2], %s1539_s20 }
  0x12   : > { %v125_v0 = vld [vmem:[%s2315_s23] sm:$0xff] (%p49_p4)  ;;  %v127_v1 = vld [vmem:[%s2315_s23 + $0x8] sm:$0xff] (%p49_p4) }
  0x13   : > { %v129_v2 = vld [vmem:[%s2315_s23 + $0x20] sm:$0xff] (%p49_p4)  ;;  %126 = vst [vmem:[%s2320_s24] sm:$0xff] (%p49_p4), %v125_v0  ;;  %v131_v3 = vld [vmem:[%s2315_s23 + $0x28] sm:$0xff] (%p49_p4) }
  0x14   : > { %128 = vst [vmem:[%s2320_s24 + $0x8] sm:$0xff] %v127_v1  ;;  %v133_v4 = vld [vmem:[%s2315_s23 + $0x40] sm:$0xff]  ;;  %v135_v5 = vld [vmem:[%s2315_s23 + $0x48] sm:$0xff] }
  0x15   : > { %130 = vst [vmem:[%s2320_s24 + $0x10] sm:$0xff] %v129_v2  ;;  %v137_v6 = vld [vmem:[%s2315_s23 + $0x60] sm:$0xff]  ;;  %v139_v7 = vld [vmem:[%s2315_s23 + $0x68] sm:$0xff] }
  0x16   : > { %132 = vst [vmem:[%s2320_s24 + $0x18] sm:$0xff] %v131_v3  ;;  %v141_v8 = vld [vmem:[%s2315_s23 + $0x80] sm:$0xff]  ;;  %v143_v9 = vld [vmem:[%s2315_s23 + $0x88] sm:$0xff] }
  0x17   : > { %134 = vst [vmem:[%s2320_s24 + $0x20] sm:$0xff] %v133_v4  ;;  %v145_v10 = vld [vmem:[%s2315_s23 + $0xa0] sm:$0xff]  ;;  %v147_v11 = vld [vmem:[%s2315_s23 + $0xa8] sm:$0xff] }
  0x18   : > { %136 = vst [vmem:[%s2320_s24 + $0x28] sm:$0xff] %v135_v5  ;;  %v149_v12 = vld [vmem:[%s2315_s23 + $0xc0] sm:$0xff]  ;;  %v151_v13 = vld [vmem:[%s2315_s23 + $0xc8] sm:$0xff] }
  0x19   : > { %138 = vst [vmem:[%s2320_s24 + $0x30] sm:$0xff] %v137_v6  ;;  %v153_v14 = vld [vmem:[%s2315_s23 + $0xe0] sm:$0xff]  ;;  %v155_v15 = vld [vmem:[%s2315_s23 + $0xe8] sm:$0xff] }
  0x1a   : > { %140 = vst [vmem:[%s2320_s24 + $0x38] sm:$0xff] %v139_v7  ;;  %v157_v16 = vld [vmem:[%s2315_s23 + $0x100] sm:$0xff]  ;;  %v159_v17 = vld [vmem:[%s2315_s23 + $0x108] sm:$0xff] }
  0x1b   : > { %142 = vst [vmem:[%s2320_s24 + $0x40] sm:$0xff] %v141_v8  ;;  %v161_v18 = vld [vmem:[%s2315_s23 + $0x120] sm:$0xff]  ;;  %v163_v19 = vld [vmem:[%s2315_s23 + $0x128] sm:$0xff] }
  0x1c   : > { %144 = vst [vmem:[%s2320_s24 + $0x48] sm:$0xff] %v143_v9  ;;  %v165_v20 = vld [vmem:[%s2315_s23 + $0x140] sm:$0xff]  ;;  %v167_v21 = vld [vmem:[%s2315_s23 + $0x148] sm:$0xff] }
  0x1d   : > { %146 = vst [vmem:[%s2320_s24 + $0x50] sm:$0xff] %v145_v10  ;;  %v169_v22 = vld [vmem:[%s2315_s23 + $0x160] sm:$0xff]  ;;  %v171_v23 = vld [vmem:[%s2315_s23 + $0x168] sm:$0xff] }
  0x1e   : > { %148 = vst [vmem:[%s2320_s24 + $0x58] sm:$0xff] %v147_v11  ;;  %v173_v24 = vld [vmem:[%s2315_s23 + $0x180] sm:$0xff]  ;;  %v175_v25 = vld [vmem:[%s2315_s23 + $0x188] sm:$0xff] }
  0x1f   : > { %150 = vst [vmem:[%s2320_s24 + $0x60] sm:$0xff] %v149_v12  ;;  %v177_v26 = vld [vmem:[%s2315_s23 + $0x1a0] sm:$0xff]  ;;  %v179_v27 = vld [vmem:[%s2315_s23 + $0x1a8] sm:$0xff] }
  0x20   : > { %152 = vst [vmem:[%s2320_s24 + $0x68] sm:$0xff] %v151_v13  ;;  %v181_v28 = vld [vmem:[%s2315_s23 + $0x1c0] sm:$0xff]  ;;  %v183_v29 = vld [vmem:[%s2315_s23 + $0x1c8] sm:$0xff] }
  0x21   : > { %154 = vst [vmem:[%s2320_s24 + $0x70] sm:$0xff] %v153_v14  ;;  %v185_v30 = vld [vmem:[%s2315_s23 + $0x1e0] sm:$0xff]  ;;  %v187_v31 = vld [vmem:[%s2315_s23 + $0x1e8] sm:$0xff] }
  0x22   : > { %156 = vst [vmem:[%s2320_s24 + $0x78] sm:$0xff] %v155_v15  ;;  %v189_v32 = vld [vmem:[%s2315_s23 + $0x200] sm:$0xff]  ;;  %v191_v33 = vld [vmem:[%s2315_s23 + $0x208] sm:$0xff] }
  0x23   : > { %158 = vst [vmem:[%s2320_s24 + $0x80] sm:$0xff] %v157_v16  ;;  %v193_v34 = vld [vmem:[%s2315_s23 + $0x220] sm:$0xff]  ;;  %v195_v35 = vld [vmem:[%s2315_s23 + $0x228] sm:$0xff] }
  0x24   : > { %160 = vst [vmem:[%s2320_s24 + $0x88] sm:$0xff] %v159_v17  ;;  %v197_v36 = vld [vmem:[%s2315_s23 + $0x240] sm:$0xff]  ;;  %v199_v37 = vld [vmem:[%s2315_s23 + $0x248] sm:$0xff] }
  0x25   : > { %162 = vst [vmem:[%s2320_s24 + $0x90] sm:$0xff] %v161_v18  ;;  %v201_v38 = vld [vmem:[%s2315_s23 + $0x260] sm:$0xff]  ;;  %v203_v39 = vld [vmem:[%s2315_s23 + $0x268] sm:$0xff] }
  0x26   : > { %164 = vst [vmem:[%s2320_s24 + $0x98] sm:$0xff] %v163_v19  ;;  %v205_v40 = vld [vmem:[%s2315_s23 + $0x280] sm:$0xff]  ;;  %v207_v41 = vld [vmem:[%s2315_s23 + $0x288] sm:$0xff] }
  0x27   : > { %166 = vst [vmem:[%s2320_s24 + $0xa0] sm:$0xff] %v165_v20  ;;  %v209_v42 = vld [vmem:[%s2315_s23 + $0x2a0] sm:$0xff]  ;;  %v211_v43 = vld [vmem:[%s2315_s23 + $0x2a8] sm:$0xff] }
  0x28   : > { %168 = vst [vmem:[%s2320_s24 + $0xa8] sm:$0xff] %v167_v21  ;;  %v213_v44 = vld [vmem:[%s2315_s23 + $0x2c0] sm:$0xff]  ;;  %v215_v45 = vld [vmem:[%s2315_s23 + $0x2c8] sm:$0xff] }
  0x29   : > { %170 = vst [vmem:[%s2320_s24 + $0xb0] sm:$0xff] %v169_v22  ;;  %v217_v46 = vld [vmem:[%s2315_s23 + $0x2e0] sm:$0xff]  ;;  %v219_v47 = vld [vmem:[%s2315_s23 + $0x2e8] sm:$0xff] }
  0x2a   : > { %172 = vst [vmem:[%s2320_s24 + $0xb8] sm:$0xff] %v171_v23  ;;  %v221_v48 = vld [vmem:[%s2315_s23 + $0x300] sm:$0xff]  ;;  %v223_v49 = vld [vmem:[%s2315_s23 + $0x308] sm:$0xff] }
  0x2b   : > { %174 = vst [vmem:[%s2320_s24 + $0xc0] sm:$0xff] %v173_v24  ;;  %v225_v50 = vld [vmem:[%s2315_s23 + $0x320] sm:$0xff]  ;;  %v227_v51 = vld [vmem:[%s2315_s23 + $0x328] sm:$0xff] }
  0x2c   : > { %176 = vst [vmem:[%s2320_s24 + $0xc8] sm:$0xff] %v175_v25  ;;  %v229_v52 = vld [vmem:[%s2315_s23 + $0x340] sm:$0xff]  ;;  %v231_v53 = vld [vmem:[%s2315_s23 + $0x348] sm:$0xff] }
  0x2d   : > { %178 = vst [vmem:[%s2320_s24 + $0xd0] sm:$0xff] %v177_v26  ;;  %v233_v54 = vld [vmem:[%s2315_s23 + $0x360] sm:$0xff]  ;;  %v235_v55 = vld [vmem:[%s2315_s23 + $0x368] sm:$0xff] }
  0x2e   : > { %180 = vst [vmem:[%s2320_s24 + $0xd8] sm:$0xff] %v179_v27  ;;  %v237_v56 = vld [vmem:[%s2315_s23 + $0x380] sm:$0xff]  ;;  %v239_v57 = vld [vmem:[%s2315_s23 + $0x388] sm:$0xff] }
  0x2f   : > { %182 = vst [vmem:[%s2320_s24 + $0xe0] sm:$0xff] %v181_v28  ;;  %v241_v58 = vld [vmem:[%s2315_s23 + $0x3a0] sm:$0xff]  ;;  %v243_v59 = vld [vmem:[%s2315_s23 + $0x3a8] sm:$0xff] }
  0x30   : > { %184 = vst [vmem:[%s2320_s24 + $0xe8] sm:$0xff] %v183_v29  ;;  %v245_v60 = vld [vmem:[%s2315_s23 + $0x3c0] sm:$0xff]  ;;  %v247_v61 = vld [vmem:[%s2315_s23 + $0x3c8] sm:$0xff] }
  0x31   : > { %186 = vst [vmem:[%s2320_s24 + $0xf0] sm:$0xff] %v185_v30  ;;  %v249_v62 = vld [vmem:[%s2315_s23 + $0x3e0] sm:$0xff]  ;;  %v251_v63 = vld [vmem:[%s2315_s23 + $0x3e8] sm:$0xff] }
  0x32   : > { %188 = vst [vmem:[%s2320_s24 + $0xf8] sm:$0xff] %v187_v31  ;;  %v253_v0 = vld [vmem:[%s2315_s23 + $0x400] sm:$0xff]  ;;  %v255_v1 = vld [vmem:[%s2315_s23 + $0x408] sm:$0xff] }
  0x33   : > { %190 = vst [vmem:[%s2320_s24 + $0x100] sm:$0xff] %v189_v32  ;;  %v257_v2 = vld [vmem:[%s2315_s23 + $0x420] sm:$0xff]  ;;  %v259_v3 = vld [vmem:[%s2315_s23 + $0x428] sm:$0xff] }
  0x34   : > { %192 = vst [vmem:[%s2320_s24 + $0x108] sm:$0xff] %v191_v33  ;;  %v261_v4 = vld [vmem:[%s2315_s23 + $0x440] sm:$0xff]  ;;  %v263_v5 = vld [vmem:[%s2315_s23 + $0x448] sm:$0xff] }
  0x35   : > { %194 = vst [vmem:[%s2320_s24 + $0x110] sm:$0xff] %v193_v34  ;;  %v265_v6 = vld [vmem:[%s2315_s23 + $0x460] sm:$0xff]  ;;  %v267_v7 = vld [vmem:[%s2315_s23 + $0x468] sm:$0xff] }
  0x36   : > { %196 = vst [vmem:[%s2320_s24 + $0x118] sm:$0xff] %v195_v35  ;;  %v269_v8 = vld [vmem:[%s2315_s23 + $0x480] sm:$0xff]  ;;  %v271_v9 = vld [vmem:[%s2315_s23 + $0x488] sm:$0xff] }
  0x37   : > { %198 = vst [vmem:[%s2320_s24 + $0x120] sm:$0xff] %v197_v36  ;;  %v273_v10 = vld [vmem:[%s2315_s23 + $0x4a0] sm:$0xff]  ;;  %v275_v11 = vld [vmem:[%s2315_s23 + $0x4a8] sm:$0xff] }
  0x38   : > { %200 = vst [vmem:[%s2320_s24 + $0x128] sm:$0xff] %v199_v37  ;;  %v277_v12 = vld [vmem:[%s2315_s23 + $0x4c0] sm:$0xff]  ;;  %v279_v13 = vld [vmem:[%s2315_s23 + $0x4c8] sm:$0xff] }
  0x39   : > { %202 = vst [vmem:[%s2320_s24 + $0x130] sm:$0xff] %v201_v38  ;;  %v281_v14 = vld [vmem:[%s2315_s23 + $0x4e0] sm:$0xff]  ;;  %v283_v15 = vld [vmem:[%s2315_s23 + $0x4e8] sm:$0xff] }
  0x3a   : > { %204 = vst [vmem:[%s2320_s24 + $0x138] sm:$0xff] %v203_v39  ;;  %v285_v16 = vld [vmem:[%s2315_s23 + $0x500] sm:$0xff]  ;;  %v287_v17 = vld [vmem:[%s2315_s23 + $0x508] sm:$0xff] }
  0x3b   : > { %206 = vst [vmem:[%s2320_s24 + $0x140] sm:$0xff] %v205_v40  ;;  %v289_v18 = vld [vmem:[%s2315_s23 + $0x520] sm:$0xff]  ;;  %v291_v19 = vld [vmem:[%s2315_s23 + $0x528] sm:$0xff] }
  0x3c   : > { %208 = vst [vmem:[%s2320_s24 + $0x148] sm:$0xff] %v207_v41  ;;  %v293_v20 = vld [vmem:[%s2315_s23 + $0x540] sm:$0xff]  ;;  %v295_v21 = vld [vmem:[%s2315_s23 + $0x548] sm:$0xff] }
  0x3d   : > { %210 = vst [vmem:[%s2320_s24 + $0x150] sm:$0xff] %v209_v42  ;;  %v297_v22 = vld [vmem:[%s2315_s23 + $0x560] sm:$0xff]  ;;  %v299_v23 = vld [vmem:[%s2315_s23 + $0x568] sm:$0xff] }
  0x3e   : > { %212 = vst [vmem:[%s2320_s24 + $0x158] sm:$0xff] %v211_v43  ;;  %v301_v24 = vld [vmem:[%s2315_s23 + $0x580] sm:$0xff]  ;;  %v303_v25 = vld [vmem:[%s2315_s23 + $0x588] sm:$0xff] }
  0x3f   : > { %214 = vst [vmem:[%s2320_s24 + $0x160] sm:$0xff] %v213_v44  ;;  %v305_v26 = vld [vmem:[%s2315_s23 + $0x5a0] sm:$0xff]  ;;  %v307_v27 = vld [vmem:[%s2315_s23 + $0x5a8] sm:$0xff] }
  0x40   : > { %216 = vst [vmem:[%s2320_s24 + $0x168] sm:$0xff] %v215_v45  ;;  %v309_v28 = vld [vmem:[%s2315_s23 + $0x5c0] sm:$0xff]  ;;  %v311_v29 = vld [vmem:[%s2315_s23 + $0x5c8] sm:$0xff] }
  0x41   : > { %218 = vst [vmem:[%s2320_s24 + $0x170] sm:$0xff] %v217_v46  ;;  %v313_v30 = vld [vmem:[%s2315_s23 + $0x5e0] sm:$0xff]  ;;  %v315_v31 = vld [vmem:[%s2315_s23 + $0x5e8] sm:$0xff] }
  0x42   : > { %220 = vst [vmem:[%s2320_s24 + $0x178] sm:$0xff] %v219_v47  ;;  %v317_v32 = vld [vmem:[%s2315_s23 + $0x600] sm:$0xff]  ;;  %v319_v33 = vld [vmem:[%s2315_s23 + $0x608] sm:$0xff] }
  0x43   : > { %222 = vst [vmem:[%s2320_s24 + $0x180] sm:$0xff] %v221_v48  ;;  %v321_v34 = vld [vmem:[%s2315_s23 + $0x620] sm:$0xff]  ;;  %v323_v35 = vld [vmem:[%s2315_s23 + $0x628] sm:$0xff] }
  0x44   : > { %224 = vst [vmem:[%s2320_s24 + $0x188] sm:$0xff] %v223_v49  ;;  %v325_v36 = vld [vmem:[%s2315_s23 + $0x640] sm:$0xff]  ;;  %v327_v37 = vld [vmem:[%s2315_s23 + $0x648] sm:$0xff] }
  0x45   : > { %226 = vst [vmem:[%s2320_s24 + $0x190] sm:$0xff] %v225_v50  ;;  %v329_v38 = vld [vmem:[%s2315_s23 + $0x660] sm:$0xff]  ;;  %v331_v39 = vld [vmem:[%s2315_s23 + $0x668] sm:$0xff] }
  0x46   : > { %228 = vst [vmem:[%s2320_s24 + $0x198] sm:$0xff] %v227_v51  ;;  %v333_v40 = vld [vmem:[%s2315_s23 + $0x680] sm:$0xff]  ;;  %v335_v41 = vld [vmem:[%s2315_s23 + $0x688] sm:$0xff] }
  0x47   : > { %230 = vst [vmem:[%s2320_s24 + $0x1a0] sm:$0xff] %v229_v52  ;;  %v337_v42 = vld [vmem:[%s2315_s23 + $0x6a0] sm:$0xff]  ;;  %v339_v43 = vld [vmem:[%s2315_s23 + $0x6a8] sm:$0xff] }
  0x48   : > { %232 = vst [vmem:[%s2320_s24 + $0x1a8] sm:$0xff] %v231_v53  ;;  %v341_v44 = vld [vmem:[%s2315_s23 + $0x6c0] sm:$0xff]  ;;  %v343_v45 = vld [vmem:[%s2315_s23 + $0x6c8] sm:$0xff] }
  0x49   : > { %234 = vst [vmem:[%s2320_s24 + $0x1b0] sm:$0xff] %v233_v54  ;;  %v345_v46 = vld [vmem:[%s2315_s23 + $0x6e0] sm:$0xff]  ;;  %v347_v47 = vld [vmem:[%s2315_s23 + $0x6e8] sm:$0xff] }
  0x4a   : > { %236 = vst [vmem:[%s2320_s24 + $0x1b8] sm:$0xff] %v235_v55  ;;  %v349_v48 = vld [vmem:[%s2315_s23 + $0x700] sm:$0xff]  ;;  %v351_v49 = vld [vmem:[%s2315_s23 + $0x708] sm:$0xff] }
  0x4b   : > { %238 = vst [vmem:[%s2320_s24 + $0x1c0] sm:$0xff] %v237_v56  ;;  %v353_v50 = vld [vmem:[%s2315_s23 + $0x720] sm:$0xff]  ;;  %v355_v51 = vld [vmem:[%s2315_s23 + $0x728] sm:$0xff] }
  0x4c   : > { %240 = vst [vmem:[%s2320_s24 + $0x1c8] sm:$0xff] %v239_v57  ;;  %v357_v52 = vld [vmem:[%s2315_s23 + $0x740] sm:$0xff]  ;;  %v359_v53 = vld [vmem:[%s2315_s23 + $0x748] sm:$0xff] }
  0x4d   : > { %242 = vst [vmem:[%s2320_s24 + $0x1d0] sm:$0xff] %v241_v58  ;;  %v361_v54 = vld [vmem:[%s2315_s23 + $0x760] sm:$0xff]  ;;  %v363_v55 = vld [vmem:[%s2315_s23 + $0x768] sm:$0xff] }
  0x4e   : > { %244 = vst [vmem:[%s2320_s24 + $0x1d8] sm:$0xff] %v243_v59  ;;  %v365_v56 = vld [vmem:[%s2315_s23 + $0x780] sm:$0xff]  ;;  %v367_v57 = vld [vmem:[%s2315_s23 + $0x788] sm:$0xff] }
  0x4f   : > { %246 = vst [vmem:[%s2320_s24 + $0x1e0] sm:$0xff] %v245_v60  ;;  %v369_v58 = vld [vmem:[%s2315_s23 + $0x7a0] sm:$0xff]  ;;  %v371_v59 = vld [vmem:[%s2315_s23 + $0x7a8] sm:$0xff] }
  0x50   : > { %248 = vst [vmem:[%s2320_s24 + $0x1e8] sm:$0xff] %v247_v61  ;;  %v373_v60 = vld [vmem:[%s2315_s23 + $0x7c0] sm:$0xff]  ;;  %v375_v61 = vld [vmem:[%s2315_s23 + $0x7c8] sm:$0xff] }
  0x51   : > { %250 = vst [vmem:[%s2320_s24 + $0x1f0] sm:$0xff] %v249_v62  ;;  %v377_v62 = vld [vmem:[%s2315_s23 + $0x7e0] sm:$0xff] }
  0x52   : > { %252 = vst [vmem:[%s2320_s24 + $0x1f8] sm:$0xff] %v251_v63  ;;  %v379_v63 = vld [vmem:[%s2315_s23 + $0x7e8] sm:$0xff] }
  0x53   : > { %254 = vst [vmem:[%s2320_s24 + $0x200] sm:$0xff] %v253_v0 }
  0x54   : > { %256 = vst [vmem:[%s2320_s24 + $0x208] sm:$0xff] %v255_v1 }
  0x55   : > { %258 = vst [vmem:[%s2320_s24 + $0x210] sm:$0xff] %v257_v2 }
  0x56   : > { %260 = vst [vmem:[%s2320_s24 + $0x218] sm:$0xff] %v259_v3 }
  0x57   : > { %262 = vst [vmem:[%s2320_s24 + $0x220] sm:$0xff] %v261_v4 }
  0x58   : > { %264 = vst [vmem:[%s2320_s24 + $0x228] sm:$0xff] %v263_v5 }
  0x59   : > { %266 = vst [vmem:[%s2320_s24 + $0x230] sm:$0xff] %v265_v6 }
  0x5a   : > { %268 = vst [vmem:[%s2320_s24 + $0x238] sm:$0xff] %v267_v7 }
  0x5b   : > { %270 = vst [vmem:[%s2320_s24 + $0x240] sm:$0xff] %v269_v8 }
  0x5c   : > { %272 = vst [vmem:[%s2320_s24 + $0x248] sm:$0xff] %v271_v9 }
  0x5d   : > { %274 = vst [vmem:[%s2320_s24 + $0x250] sm:$0xff] %v273_v10 }
  0x5e   : > { %276 = vst [vmem:[%s2320_s24 + $0x258] sm:$0xff] %v275_v11 }
  0x5f   : > { %278 = vst [vmem:[%s2320_s24 + $0x260] sm:$0xff] %v277_v12 }
  0x60   : > { %280 = vst [vmem:[%s2320_s24 + $0x268] sm:$0xff] %v279_v13 }
  0x61   : > { %282 = vst [vmem:[%s2320_s24 + $0x270] sm:$0xff] %v281_v14 }
  0x62   : > { %284 = vst [vmem:[%s2320_s24 + $0x278] sm:$0xff] %v283_v15 }
  0x63   : > { %286 = vst [vmem:[%s2320_s24 + $0x280] sm:$0xff] %v285_v16 }
  0x64   : > { %288 = vst [vmem:[%s2320_s24 + $0x288] sm:$0xff] %v287_v17 }
  0x65   : > { %290 = vst [vmem:[%s2320_s24 + $0x290] sm:$0xff] %v289_v18 }
  0x66   : > { %292 = vst [vmem:[%s2320_s24 + $0x298] sm:$0xff] %v291_v19 }
  0x67   : > { %294 = vst [vmem:[%s2320_s24 + $0x2a0] sm:$0xff] %v293_v20 }
  0x68   : > { %296 = vst [vmem:[%s2320_s24 + $0x2a8] sm:$0xff] %v295_v21 }
  0x69   : > { %298 = vst [vmem:[%s2320_s24 + $0x2b0] sm:$0xff] %v297_v22 }
  0x6a   : > { %300 = vst [vmem:[%s2320_s24 + $0x2b8] sm:$0xff] %v299_v23 }
  0x6b   : > { %302 = vst [vmem:[%s2320_s24 + $0x2c0] sm:$0xff] %v301_v24 }
  0x6c   : > { %304 = vst [vmem:[%s2320_s24 + $0x2c8] sm:$0xff] %v303_v25 }
  0x6d   : > { %306 = vst [vmem:[%s2320_s24 + $0x2d0] sm:$0xff] %v305_v26 }
  0x6e   : > { %308 = vst [vmem:[%s2320_s24 + $0x2d8] sm:$0xff] %v307_v27 }
  0x6f   : > { %310 = vst [vmem:[%s2320_s24 + $0x2e0] sm:$0xff] %v309_v28 }
  0x70   : > { %312 = vst [vmem:[%s2320_s24 + $0x2e8] sm:$0xff] %v311_v29 }
  0x71   : > { %314 = vst [vmem:[%s2320_s24 + $0x2f0] sm:$0xff] %v313_v30 }
  0x72   : > { %316 = vst [vmem:[%s2320_s24 + $0x2f8] sm:$0xff] %v315_v31 }
  0x73   : > { %318 = vst [vmem:[%s2320_s24 + $0x300] sm:$0xff] %v317_v32 }
  0x74   : > { %320 = vst [vmem:[%s2320_s24 + $0x308] sm:$0xff] %v319_v33 }
  0x75   : > { %322 = vst [vmem:[%s2320_s24 + $0x310] sm:$0xff] %v321_v34 }
  0x76   : > { %324 = vst [vmem:[%s2320_s24 + $0x318] sm:$0xff] %v323_v35 }
  0x77   : > { %326 = vst [vmem:[%s2320_s24 + $0x320] sm:$0xff] %v325_v36 }
  0x78   : > { %328 = vst [vmem:[%s2320_s24 + $0x328] sm:$0xff] %v327_v37 }
  0x79   : > { %330 = vst [vmem:[%s2320_s24 + $0x330] sm:$0xff] %v329_v38 }
  0x7a   : > { %332 = vst [vmem:[%s2320_s24 + $0x338] sm:$0xff] %v331_v39 }
  0x7b   : > { %334 = vst [vmem:[%s2320_s24 + $0x340] sm:$0xff] %v333_v40 }
  0x7c   : > { %336 = vst [vmem:[%s2320_s24 + $0x348] sm:$0xff] %v335_v41 }
  0x7d   : > { %338 = vst [vmem:[%s2320_s24 + $0x350] sm:$0xff] %v337_v42 }
  0x7e   : > { %340 = vst [vmem:[%s2320_s24 + $0x358] sm:$0xff] %v339_v43 }
  0x7f   : > { %342 = vst [vmem:[%s2320_s24 + $0x360] sm:$0xff] %v341_v44 }
  0x80   : > { %344 = vst [vmem:[%s2320_s24 + $0x368] sm:$0xff] %v343_v45 }
  0x81   : > { %346 = vst [vmem:[%s2320_s24 + $0x370] sm:$0xff] %v345_v46 }
  0x82   : > { %348 = vst [vmem:[%s2320_s24 + $0x378] sm:$0xff] %v347_v47 }
  0x83   : > { %350 = vst [vmem:[%s2320_s24 + $0x380] sm:$0xff] %v349_v48 }
  0x84   : > { %352 = vst [vmem:[%s2320_s24 + $0x388] sm:$0xff] %v351_v49 }
  0x85   : > { %354 = vst [vmem:[%s2320_s24 + $0x390] sm:$0xff] %v353_v50 }
  0x86   : > { %356 = vst [vmem:[%s2320_s24 + $0x398] sm:$0xff] %v355_v51 }
  0x87   : > { %358 = vst [vmem:[%s2320_s24 + $0x3a0] sm:$0xff] %v357_v52 }
  0x88   : > { %360 = vst [vmem:[%s2320_s24 + $0x3a8] sm:$0xff] %v359_v53 }
  0x89   : > { %362 = vst [vmem:[%s2320_s24 + $0x3b0] sm:$0xff] %v361_v54 }
  0x8a   : > { %364 = vst [vmem:[%s2320_s24 + $0x3b8] sm:$0xff] %v363_v55 }
  0x8b   : > { %366 = vst [vmem:[%s2320_s24 + $0x3c0] sm:$0xff] %v365_v56 }
  0x8c   : > { %368 = vst [vmem:[%s2320_s24 + $0x3c8] sm:$0xff] %v367_v57 }
  0x8d   : > { %370 = vst [vmem:[%s2320_s24 + $0x3d0] sm:$0xff] %v369_v58 }
  0x8e   : > { %372 = vst [vmem:[%s2320_s24 + $0x3d8] sm:$0xff] %v371_v59 }
  0x8f   : > { %374 = vst [vmem:[%s2320_s24 + $0x3e0] sm:$0xff] %v373_v60 }
  0x90   : > { %376 = vst [vmem:[%s2320_s24 + $0x3e8] sm:$0xff] %v375_v61 }
  0x91   : > { %378 = vst [vmem:[%s2320_s24 + $0x3f0] sm:$0xff] %v377_v62 }
  0x92   : > { %380 = vst [vmem:[%s2320_s24 + $0x3f8] sm:$0xff] %v379_v63 }
  0x93 PF: > { %p1542_p7 = scmp.ge.s32.totalorder %s2258_s11, 1  ;;  %p385_p8 = scmp.lt.s32.totalorder %s2258_s11, 3 }
  0x95   : > { %p386_p9 = pnand %p1542_p7, %p385_p8 }
  0x96   : > { %s392_s25 = sand.u32 (!%p386_p9), 1, %s2250_s9  }
  0x97   : > { %389 = sbr.rel (%p386_p9) target bundleno = 441 (0x1b9), region = 47  ;;  %s1543_s26 = sshll.u32 (!%p386_p9), %s392_s25, 10 }
  0x98   : > { %s2580_s27 = scalar_lea.vmem (!%p386_p9), [#allocation2], %s1543_s26  ;;  %s1544_s23 = sshll.u32 (!%p386_p9), %s392_s25, 6 }
  0x99   : > { %s2888_s24 = scalar_lea.vmem (!%p386_p9), [#allocation3], %s1544_s23 }
  0x9c   : > { %v1675_v0 = vld [vmem:[%s2580_s27 + $0xe0] sm:$0xf]  ;;  %v2113_v1 = vld [vmem:[%s2580_s27 + $0xec] sm:$0xf0]  ;;  %s2211_s9 = sshll.u32 (%p2305_p5), %s1535_s12, 5 }
  0x9d   : > { %v1803_v2 = vld [vmem:[%s2580_s27 + $0x1e0] sm:$0xf]  ;;  %v1676_v3 = vor.u32 %v2113_v1, %v1675_v0  ;;  %v2145_v4 = vld [vmem:[%s2580_s27 + $0x1ec] sm:$0xf0] }
  0x9e   : > { %v1931_v5 = vld [vmem:[%s2580_s27 + $0x2e0] sm:$0xf]  ;;  %v2177_v6 = vld [vmem:[%s2580_s27 + $0x2ec] sm:$0xf0]  ;;  %v1804_v7 = vor.u32 %v2145_v4, %v1803_v2 }
  0x9f   : > { %v1932_v8 = vor.u32 %v2177_v6, %v1931_v5  ;;  %v2059_v9 = vld [vmem:[%s2580_s27 + $0x3e0] sm:$0xf]  ;;  %v2209_v10 = vld [vmem:[%s2580_s27 + $0x3ec] sm:$0xf0]  ;;  %1206 = vmatpush.bf16.msra.mxu0 %v1676_v3 }
  0xa0   : > { %v1659_v11 = vld [vmem:[%s2580_s27 + $0xc0] sm:$0xf]  ;;  %v2060_v12 = vor.u32 %v2209_v10, %v2059_v9  ;;  %v2109_v13 = vld [vmem:[%s2580_s27 + $0xcc] sm:$0xf0]  ;;  %1220 = vmatpush.bf16.msra.mxu1 %v1804_v7 }
  0xa1   : > { %v1787_v14 = vld [vmem:[%s2580_s27 + $0x1c0] sm:$0xf]  ;;  %v2141_v15 = vld [vmem:[%s2580_s27 + $0x1cc] sm:$0xf0]  ;;  %1234 = vmatpush.bf16.msra.mxu2 %v1932_v8  ;;  %v1660_v16 = vor.u32 %v2109_v13, %v1659_v11 }
  0xa2   : > { %v1788_v17 = vor.u32 %v2141_v15, %v1787_v14  ;;  %v1915_v18 = vld [vmem:[%s2580_s27 + $0x2c0] sm:$0xf]  ;;  %v2173_v19 = vld [vmem:[%s2580_s27 + $0x2cc] sm:$0xf0]  ;;  %1248 = vmatpush.bf16.msra.mxu3 %v2060_v12 }
  0xa3   : > { %v2043_v20 = vld [vmem:[%s2580_s27 + $0x3c0] sm:$0xf]  ;;  %v1916_v21 = vor.u32 %v2173_v19, %v1915_v18  ;;  %v2205_v22 = vld [vmem:[%s2580_s27 + $0x3cc] sm:$0xf0]  ;;  %1207 = vmatpush.bf16.msra.mxu0 %v1660_v16 }
  0xa4   : > { %v1643_v23 = vld [vmem:[%s2580_s27 + $0xa0] sm:$0xf]  ;;  %v2105_v24 = vld [vmem:[%s2580_s27 + $0xac] sm:$0xf0]  ;;  %v2044_v25 = vor.u32 %v2205_v22, %v2043_v20  ;;  %1221 = vmatpush.bf16.msra.mxu1 %v1788_v17 }
  0xa5   : > { %v1771_v26 = vld [vmem:[%s2580_s27 + $0x1a0] sm:$0xf]  ;;  %v2137_v27 = vld [vmem:[%s2580_s27 + $0x1ac] sm:$0xf0]  ;;  %v1644_v29 = vor.u32 %v2105_v24, %v1643_v23  ;;  %1235 = vmatpush.bf16.msra.mxu2 %v1916_v21 }
  0xa6   : > { %v1899_v28 = vld [vmem:[%s2580_s27 + $0x2a0] sm:$0xf]  ;;  %v2169_v30 = vld [vmem:[%s2580_s27 + $0x2ac] sm:$0xf0]  ;;  %v1772_v33 = vor.u32 %v2137_v27, %v1771_v26  ;;  %1249 = vmatpush.bf16.msra.mxu3 %v2044_v25 }
  0xa7   : > { %v2027_v31 = vld [vmem:[%s2580_s27 + $0x3a0] sm:$0xf]  ;;  %v2201_v32 = vld [vmem:[%s2580_s27 + $0x3ac] sm:$0xf0]  ;;  %v1900_v34 = vor.u32 %v2169_v30, %v1899_v28  ;;  %1208 = vmatpush.bf16.msra.mxu0 %v1644_v29  ;;  %v2111_v28 = vld [vmem:[%s2580_s27 + $0xe4] sm:$0xf] }
  0xa8   : > { %v1627_v35 = vld [vmem:[%s2580_s27 + $0x80] sm:$0xf]  ;;  %v2101_v36 = vld [vmem:[%s2580_s27 + $0x8c] sm:$0xf0]  ;;  %v2028_v38 = vor.u32 %v2201_v32, %v2027_v31  ;;  %1222 = vmatpush.bf16.msra.mxu1 %v1772_v33  ;;  %v1677_v29 = vld [vmem:[%s2580_s27 + $0xf0] sm:$0xf0] }
  0xa9   : > { %v1755_v37 = vld [vmem:[%s2580_s27 + $0x180] sm:$0xf]  ;;  %v2133_v39 = vld [vmem:[%s2580_s27 + $0x18c] sm:$0xf0]  ;;  %v1628_v44 = vor.u32 %v2101_v36, %v1627_v35  ;;  %1236 = vmatpush.bf16.msra.mxu2 %v1900_v34  ;;  %v2143_v30 = vld [vmem:[%s2580_s27 + $0x1e4] sm:$0xf] }
  0xaa   : > { %v1883_v40 = vld [vmem:[%s2580_s27 + $0x280] sm:$0xf]  ;;  %v2165_v41 = vld [vmem:[%s2580_s27 + $0x28c] sm:$0xf0]  ;;  %v1756_v45 = vor.u32 %v2133_v39, %v1755_v37  ;;  %1250 = vmatpush.bf16.msra.mxu3 %v2028_v38  ;;  %v1805_v32 = vld [vmem:[%s2580_s27 + $0x1f0] sm:$0xf0] }
  0xab   : > { %v2011_v42 = vld [vmem:[%s2580_s27 + $0x380] sm:$0xf]  ;;  %v2197_v43 = vld [vmem:[%s2580_s27 + $0x38c] sm:$0xf0]  ;;  %v1884_v46 = vor.u32 %v2165_v41, %v1883_v40  ;;  %1209 = vmatpush.bf16.msra.mxu0 %v1628_v44  ;;  %v2175_v33 = vld [vmem:[%s2580_s27 + $0x2e4] sm:$0xf]  ;;  %v1680_v40 = vor.u32 %v2111_v28, %v1677_v29  ;;  %v1808_v41 = vor.u32 %v2143_v30, %v1805_v32 }
  0xac   : > { %v1611_v47 = vld [vmem:[%s2580_s27 + $0x60] sm:$0xf]  ;;  %v2097_v48 = vld [vmem:[%s2580_s27 + $0x6c] sm:$0xf0]  ;;  %v2012_v50 = vor.u32 %v2197_v43, %v2011_v42  ;;  %1223 = vmatpush.bf16.msra.mxu1 %v1756_v45  ;;  %v1933_v34 = vld [vmem:[%s2580_s27 + $0x2f0] sm:$0xf0] }
  0xad   : > { %v1739_v49 = vld [vmem:[%s2580_s27 + $0x160] sm:$0xf]  ;;  %v2129_v51 = vld [vmem:[%s2580_s27 + $0x16c] sm:$0xf0]  ;;  %v1612_v56 = vor.u32 %v2097_v48, %v1611_v47  ;;  %1237 = vmatpush.bf16.msra.mxu2 %v1884_v46  ;;  %v2207_v37 = vld [vmem:[%s2580_s27 + $0x3e4] sm:$0xf]  ;;  %v1936_v42 = vor.u32 %v2175_v33, %v1933_v34 }
  0xae   : > { %v1867_v52 = vld [vmem:[%s2580_s27 + $0x260] sm:$0xf]  ;;  %v2161_v53 = vld [vmem:[%s2580_s27 + $0x26c] sm:$0xf0]  ;;  %v1740_v57 = vor.u32 %v2129_v51, %v1739_v49  ;;  %1251 = vmatpush.bf16.msra.mxu3 %v2012_v50  ;;  %v2061_v38 = vld [vmem:[%s2580_s27 + $0x3f0] sm:$0xf0] }
  0xaf   : > { %v1995_v54 = vld [vmem:[%s2580_s27 + $0x360] sm:$0xf]  ;;  %v2193_v55 = vld [vmem:[%s2580_s27 + $0x36c] sm:$0xf0]  ;;  %v1868_v58 = vor.u32 %v2161_v53, %v1867_v52  ;;  %1210 = vmatpush.bf16.msra.mxu0 %v1612_v56  ;;  %v2107_v43 = vld [vmem:[%s2580_s27 + $0xc4] sm:$0xf]  ;;  %v2064_v46 = vor.u32 %v2207_v37, %v2061_v38 }
  0xb0   : > { %v1595_v59 = vld [vmem:[%s2580_s27 + $0x40] sm:$0xf]  ;;  %v2093_v60 = vld [vmem:[%s2580_s27 + $0x4c] sm:$0xf0]  ;;  %v1996_v62 = vor.u32 %v2193_v55, %v1995_v54  ;;  %1224 = vmatpush.bf16.msra.mxu1 %v1740_v57  ;;  %v1661_v44 = vld [vmem:[%s2580_s27 + $0xd0] sm:$0xf0] }
  0xb1   : > { %v1723_v61 = vld [vmem:[%s2580_s27 + $0x140] sm:$0xf]  ;;  %v2125_v63 = vld [vmem:[%s2580_s27 + $0x14c] sm:$0xf0]  ;;  %v1596_v4 = vor.u32 %v2093_v60, %v1595_v59  ;;  %1238 = vmatpush.bf16.msra.mxu2 %v1868_v58  ;;  %v2139_v45 = vld [vmem:[%s2580_s27 + $0x1c4] sm:$0xf]  ;;  %v1664_v52 = vor.u32 %v2107_v43, %v1661_v44 }
  0xb2   : > { %v1851_v0 = vld [vmem:[%s2580_s27 + $0x240] sm:$0xf]  ;;  %v2157_v1 = vld [vmem:[%s2580_s27 + $0x24c] sm:$0xf0]  ;;  %v1724_v5 = vor.u32 %v2125_v63, %v1723_v61  ;;  %1252 = vmatpush.bf16.msra.mxu3 %v1996_v62  ;;  %v1789_v47 = vld [vmem:[%s2580_s27 + $0x1d0] sm:$0xf0] }
  0xb3   : > { %v1979_v2 = vld [vmem:[%s2580_s27 + $0x340] sm:$0xf]  ;;  %v2189_v3 = vld [vmem:[%s2580_s27 + $0x34c] sm:$0xf0]  ;;  %v1852_v6 = vor.u32 %v2157_v1, %v1851_v0  ;;  %1211 = vmatpush.bf16.msra.mxu0 %v1596_v4  ;;  %v2171_v48 = vld [vmem:[%s2580_s27 + $0x2c4] sm:$0xf]  ;;  %v1792_v53 = vor.u32 %v2139_v45, %v1789_v47 }
  0xb4   : > { %v1579_v7 = vld [vmem:[%s2580_s27 + $0x20] sm:$0xf]  ;;  %v2089_v8 = vld [vmem:[%s2580_s27 + $0x2c] sm:$0xf0]  ;;  %v1980_v10 = vor.u32 %v2189_v3, %v1979_v2  ;;  %1225 = vmatpush.bf16.msra.mxu1 %v1724_v5  ;;  %v1917_v49 = vld [vmem:[%s2580_s27 + $0x2d0] sm:$0xf0] }
  0xb5   : > { %v1707_v9 = vld [vmem:[%s2580_s27 + $0x120] sm:$0xf]  ;;  %v2121_v11 = vld [vmem:[%s2580_s27 + $0x12c] sm:$0xf0]  ;;  %v1580_v16 = vor.u32 %v2089_v8, %v1579_v7  ;;  %1239 = vmatpush.bf16.msra.mxu2 %v1852_v6  ;;  %v2203_v50 = vld [vmem:[%s2580_s27 + $0x3c4] sm:$0xf]  ;;  %v1920_v54 = vor.u32 %v2171_v48, %v1917_v49 }
  0xb6   : > { %v1835_v12 = vld [vmem:[%s2580_s27 + $0x220] sm:$0xf]  ;;  %v2153_v13 = vld [vmem:[%s2580_s27 + $0x22c] sm:$0xf0]  ;;  %v1708_v19 = vor.u32 %v2121_v11, %v1707_v9  ;;  %1253 = vmatpush.bf16.msra.mxu3 %v1980_v10  ;;  %v2045_v51 = vld [vmem:[%s2580_s27 + $0x3d0] sm:$0xf0] }
  0xb7   : > { %v1963_v14 = vld [vmem:[%s2580_s27 + $0x320] sm:$0xf]  ;;  %v2185_v15 = vld [vmem:[%s2580_s27 + $0x32c] sm:$0xf0]  ;;  %v1836_v20 = vor.u32 %v2153_v13, %v1835_v12  ;;  %1212 = vmatpush.bf16.msra.mxu0 %v1580_v16  ;;  %v2103_v55 = vld [vmem:[%s2580_s27 + $0xa4] sm:$0xf]  ;;  %v2048_v58 = vor.u32 %v2203_v50, %v2045_v51 }
  0xb8   : > { %v1563_v17 = vld [vmem:[%s2580_s27] sm:$0xf]  ;;  %v2085_v18 = vld [vmem:[%s2580_s27 + $0xc] sm:$0xf0]  ;;  %v1964_v24 = vor.u32 %v2185_v15, %v1963_v14  ;;  %1226 = vmatpush.bf16.msra.mxu1 %v1708_v19  ;;  %v1645_v56 = vld [vmem:[%s2580_s27 + $0xb0] sm:$0xf0] }
  0xb9   : > { %v1691_v21 = vld [vmem:[%s2580_s27 + $0x100] sm:$0xf]  ;;  %v2117_v22 = vld [vmem:[%s2580_s27 + $0x10c] sm:$0xf0]  ;;  %v1564_v31 = vor.u32 %v2085_v18, %v1563_v17  ;;  %1240 = vmatpush.bf16.msra.mxu2 %v1836_v20  ;;  %v2135_v57 = vld [vmem:[%s2580_s27 + $0x1a4] sm:$0xf]  ;;  %v1648_v1 = vor.u32 %v2103_v55, %v1645_v56 }
  0xba   : > { %v1819_v23 = vld [vmem:[%s2580_s27 + $0x200] sm:$0xf]  ;;  %v2149_v25 = vld [vmem:[%s2580_s27 + $0x20c] sm:$0xf0]  ;;  %v1692_v35 = vor.u32 %v2117_v22, %v1691_v21  ;;  %1254 = vmatpush.bf16.msra.mxu3 %v1964_v24  ;;  %v1773_v59 = vld [vmem:[%s2580_s27 + $0x1b0] sm:$0xf0] }
  0xbb   : > { %v1947_v26 = vld [vmem:[%s2580_s27 + $0x300] sm:$0xf]  ;;  %v2181_v27 = vld [vmem:[%s2580_s27 + $0x30c] sm:$0xf0]  ;;  %v1820_v36 = vor.u32 %v2149_v25, %v1819_v23  ;;  %1213 = vmatpush.bf16.msra.mxu0 %v1564_v31  ;;  %v2167_v60 = vld [vmem:[%s2580_s27 + $0x2a4] sm:$0xf]  ;;  %v1776_v5 = vor.u32 %v2135_v57, %v1773_v59 }
  0xbc   : > { %v1948_v39 = vor.u32 %v2181_v27, %v1947_v26  ;;  %1227 = vmatpush.bf16.msra.mxu1 %v1692_v35  ;;  %v1901_v61 = vld [vmem:[%s2580_s27 + $0x2b0] sm:$0xf0]  ;;  %v2199_v62 = vld [vmem:[%s2580_s27 + $0x3a4] sm:$0xf]  ;;  %v1555_v3 = vld [vmem:[%s2923_s0 + $0x8] sm:$0xf] }
  0xbd   : > { %1241 = vmatpush.bf16.msra.mxu2 %v1820_v36  ;;  %v2029_v63 = vld [vmem:[%s2580_s27 + $0x3b0] sm:$0xf0]  ;;  %v2099_v0 = vld [vmem:[%s2580_s27 + $0x84] sm:$0xf]  ;;  %v2082_v4 = vld [vmem:[%s2923_s0 + $0x14] sm:$0xf0]  ;;  %v1904_v6 = vor.u32 %v2167_v60, %v1901_v61 }
  0xbe   : > { %1255 = vmatpush.bf16.msra.mxu3 %v1948_v39  ;;  %v1629_v2 = vld [vmem:[%s2580_s27 + $0x90] sm:$0xf0]  ;;  %v2131_v7 = vld [vmem:[%s2580_s27 + $0x184] sm:$0xf]  ;;  %v2679_v8 = vor.u32 %v2082_v4, %v1555_v3  ;;  %v2080_v9 = vld [vmem:[%s2923_s0 + $0xc] sm:$0xf]  ;;  %v2032_v11 = vor.u32 %v2199_v62, %v2029_v63 }
  0xbf   : > { %1262 = vmatpush.bf16.msrb.mxu0 %v1680_v40  ;;  %v1557_v10 = vld [vmem:[%s2923_s0 + $0x18] sm:$0xf0]  ;;  %v1757_v12 = vld [vmem:[%s2580_s27 + $0x190] sm:$0xf0]  ;;  %v2163_v13 = vld [vmem:[%s2580_s27 + $0x284] sm:$0xf]  ;;  %v1632_v19 = vor.u32 %v2099_v0, %v1629_v2 }
  0xc0   : > { %1276 = vmatpush.bf16.msrb.mxu1 %v1808_v41  ;;  %v1885_v14 = vld [vmem:[%s2580_s27 + $0x290] sm:$0xf0]  ;;  %v2690_v15 = vor.u32 %v2080_v9, %v1557_v10  ;;  %v2195_v16 = vld [vmem:[%s2580_s27 + $0x384] sm:$0xf]  ;;  %1242 = vmatmul.bf16.vlgmr.msra.gmra.mxu2 %v2679_v8  ;;  %v1547_v21 = vld [vmem:[%s2923_s0] sm:$0xf]  ;;  %v1760_v23 = vor.u32 %v2131_v7, %v1757_v12 }
  0xc1   : > { %1290 = vmatpush.bf16.msrb.mxu2 %v1936_v42  ;;  %v2013_v17 = vld [vmem:[%s2580_s27 + $0x390] sm:$0xf0]  ;;  %v2095_v18 = vld [vmem:[%s2580_s27 + $0x64] sm:$0xf]  ;;  %v2081_v22 = vld [vmem:[%s2923_s0 + $0xc] sm:$0xf0]  ;;  %v1888_v24 = vor.u32 %v2163_v13, %v1885_v14 }
  0xc2   : > { %1304 = vmatpush.bf16.msrb.mxu3 %v2064_v46  ;;  %v1613_v20 = vld [vmem:[%s2580_s27 + $0x70] sm:$0xf0]  ;;  %v2127_v25 = vld [vmem:[%s2580_s27 + $0x164] sm:$0xf]  ;;  %v2705_v26 = vor.u32 %v2081_v22, %v1547_v21  ;;  %v2016_v29 = vor.u32 %v2195_v16, %v2013_v17  ;;  %v1683_v9 = vld [vmem:[%s2580_s27 + $0xe8] sm:$0xf] }
  0xc3   : > { %1263 = vmatpush.bf16.msrb.mxu0 %v1664_v52  ;;  %1256 = vmatmul.bf16.vlgmr.msra.gmra.mxu3 %v2690_v15  ;;  %v2079_v27 = vld [vmem:[%s2923_s0 + $0x4] sm:$0xf]  ;;  %v1549_v28 = vld [vmem:[%s2923_s0 + $0x10] sm:$0xf0]  ;;  %v1616_v36 = vor.u32 %v2095_v18, %v1613_v20  ;;  %v2114_v10 = vld [vmem:[%s2580_s27 + $0xf4] sm:$0xf0] }
  0xc4   : > { %1277 = vmatpush.bf16.msrb.mxu1 %v1792_v53  ;;  %v1741_v30 = vld [vmem:[%s2580_s27 + $0x170] sm:$0xf0]  ;;  %v2159_v31 = vld [vmem:[%s2580_s27 + $0x264] sm:$0xf]  ;;  %v2716_v33 = vor.u32 %v2079_v27, %v1549_v28  ;;  %1214 = vmatmul.bf16.vlgmr.msra.gmra.mxu0 %v2705_v26  ;;  %v2146_v13 = vld [vmem:[%s2580_s27 + $0x1f4] sm:$0xf0]  ;;  %v1684_v22 = vor.u32 %v2114_v10, %v1683_v9 }
  0xc5   : > { %1291 = vmatpush.bf16.msrb.mxu2 %v1920_v54  ;;  %v1869_v32 = vld [vmem:[%s2580_s27 + $0x270] sm:$0xf0]  ;;  %v2191_v34 = vld [vmem:[%s2580_s27 + $0x364] sm:$0xf]  ;;  %v1744_v37 = vor.u32 %v2127_v25, %v1741_v30  ;;  %v1939_v14 = vld [vmem:[%s2580_s27 + $0x2e8] sm:$0xf] }
  0xc6   : > { %1305 = vmatpush.bf16.msrb.mxu3 %v2048_v58  ;;  %v1997_v35 = vld [vmem:[%s2580_s27 + $0x370] sm:$0xf0]  ;;  %1228 = vmatmul.bf16.vlgmr.msra.gmra.mxu1 %v2716_v33  ;;  %v1872_v38 = vor.u32 %v2159_v31, %v1869_v32  ;;  %v2091_v39 = vld [vmem:[%s2580_s27 + $0x44] sm:$0xf]  ;;  %v2178_v16 = vld [vmem:[%s2580_s27 + $0x2f4] sm:$0xf0] }
  0xc7   : > { %1264 = vmatpush.bf16.msrb.mxu0 %v1648_v1  ;;  %v1597_v40 = vld [vmem:[%s2580_s27 + $0x50] sm:$0xf0]  ;;  %v2123_v41 = vld [vmem:[%s2580_s27 + $0x144] sm:$0xf]  ;;  %v2000_v42 = vor.u32 %v2191_v34, %v1997_v35  ;;  %v2210_v20 = vld [vmem:[%s2580_s27 + $0x3f4] sm:$0xf0] }
  0xc8   : > { %1278 = vmatpush.bf16.msrb.mxu1 %v1776_v5  ;;  %v1725_v43 = vld [vmem:[%s2580_s27 + $0x150] sm:$0xf0]  ;;  %v2155_v44 = vld [vmem:[%s2580_s27 + $0x244] sm:$0xf]  ;;  %v1600_v48 = vor.u32 %v2091_v39, %v1597_v40  ;;  %v1667_v25 = vld [vmem:[%s2580_s27 + $0xc8] sm:$0xf] }
  0xc9   : > { %1292 = vmatpush.bf16.msrb.mxu2 %v1904_v6  ;;  %v1853_v45 = vld [vmem:[%s2580_s27 + $0x250] sm:$0xf0]  ;;  %v2187_v46 = vld [vmem:[%s2580_s27 + $0x344] sm:$0xf]  ;;  %v1728_v49 = vor.u32 %v2123_v41, %v1725_v43  ;;  %v2110_v27 = vld [vmem:[%s2580_s27 + $0xd4] sm:$0xf0] }
  0xca   : > { %1306 = vmatpush.bf16.msrb.mxu3 %v2032_v11  ;;  %v1981_v47 = vld [vmem:[%s2580_s27 + $0x350] sm:$0xf0]  ;;  %v1856_v50 = vor.u32 %v2155_v44, %v1853_v45  ;;  %v2087_v51 = vld [vmem:[%s2580_s27 + $0x24] sm:$0xf]  ;;  %v1811_v11 = vld [vmem:[%s2580_s27 + $0x1e8] sm:$0xf] }
  0xcb   : > { %1265 = vmatpush.bf16.msrb.mxu0 %v1632_v19  ;;  %v1581_v52 = vld [vmem:[%s2580_s27 + $0x30] sm:$0xf0]  ;;  %v2119_v53 = vld [vmem:[%s2580_s27 + $0x124] sm:$0xf]  ;;  %v1984_v54 = vor.u32 %v2187_v46, %v1981_v47  ;;  %v2067_v19 = vld [vmem:[%s2580_s27 + $0x3e8] sm:$0xf] }
  0xcc   : > { %1279 = vmatpush.bf16.msrb.mxu1 %v1760_v23  ;;  %v1709_v55 = vld [vmem:[%s2580_s27 + $0x130] sm:$0xf0]  ;;  %v2151_v56 = vld [vmem:[%s2580_s27 + $0x224] sm:$0xf]  ;;  %v1584_v60 = vor.u32 %v2087_v51, %v1581_v52  ;;  %v1812_v23 = vor.u32 %v2146_v13, %v1811_v11  ;;  %v1795_v28 = vld [vmem:[%s2580_s27 + $0x1c8] sm:$0xf] }
  0xcd   : > { %1293 = vmatpush.bf16.msrb.mxu2 %v1888_v24  ;;  %v1837_v57 = vld [vmem:[%s2580_s27 + $0x230] sm:$0xf0]  ;;  %v2183_v58 = vld [vmem:[%s2580_s27 + $0x324] sm:$0xf]  ;;  %v1712_v63 = vor.u32 %v2119_v53, %v1709_v55  ;;  %v1940_v24 = vor.u32 %v2178_v16, %v1939_v14  ;;  %v2142_v30 = vld [vmem:[%s2580_s27 + $0x1d4] sm:$0xf0] }
  0xce   : > { %1307 = vmatpush.bf16.msrb.mxu3 %v2016_v29  ;;  %v1965_v59 = vld [vmem:[%s2580_s27 + $0x330] sm:$0xf0]  ;;  %v2083_v61 = vld [vmem:[%s2580_s27 + $0x4] sm:$0xf]  ;;  %v1840_v0 = vor.u32 %v2151_v56, %v1837_v57  ;;  %v2068_v29 = vor.u32 %v2210_v20, %v2067_v19  ;;  %v1923_v31 = vld [vmem:[%s2580_s27 + $0x2c8] sm:$0xf] }
  0xcf   : > { %1266 = vmatpush.bf16.msrb.mxu0 %v1616_v36  ;;  %v1565_v62 = vld [vmem:[%s2580_s27 + $0x10] sm:$0xf0]  ;;  %v2115_v1 = vld [vmem:[%s2580_s27 + $0x104] sm:$0xf]  ;;  %v1968_v4 = vor.u32 %v2183_v58, %v1965_v59  ;;  %v2174_v32 = vld [vmem:[%s2580_s27 + $0x2d4] sm:$0xf0]  ;;  %v1668_v36 = vor.u32 %v2110_v27, %v1667_v25 }
  0xd0   : > { %1280 = vmatpush.bf16.msrb.mxu1 %v1744_v37  ;;  %v1693_v2 = vld [vmem:[%s2580_s27 + $0x110] sm:$0xf0]  ;;  %v2147_v3 = vld [vmem:[%s2580_s27 + $0x204] sm:$0xf]  ;;  %v1568_v12 = vor.u32 %v2083_v61, %v1565_v62  ;;  %v2051_v34 = vld [vmem:[%s2580_s27 + $0x3c8] sm:$0xf]  ;;  %v1796_v37 = vor.u32 %v2142_v30, %v1795_v28 }
  0xd1   : > { %1294 = vmatpush.bf16.msrb.mxu2 %v1872_v38  ;;  %v1821_v5 = vld [vmem:[%s2580_s27 + $0x210] sm:$0xf0]  ;;  %v2179_v6 = vld [vmem:[%s2580_s27 + $0x304] sm:$0xf]  ;;  %v1696_v17 = vor.u32 %v2115_v1, %v1693_v2  ;;  %v2206_v35 = vld [vmem:[%s2580_s27 + $0x3d4] sm:$0xf0]  ;;  %v1924_v38 = vor.u32 %v2174_v32, %v1923_v31 }
  0xd2   : > { %1308 = vmatpush.bf16.msrb.mxu3 %v2000_v42  ;;  %v1949_v7 = vld [vmem:[%s2580_s27 + $0x310] sm:$0xf0]  ;;  %v1824_v18 = vor.u32 %v2147_v3, %v1821_v5  ;;  %v1651_v39 = vld [vmem:[%s2580_s27 + $0xa8] sm:$0xf]  ;;  %v2106_v40 = vld [vmem:[%s2580_s27 + $0xb4] sm:$0xf0]  ;;  %v2052_v42 = vor.u32 %v2206_v35, %v2051_v34 }
  0xd3   : > { %1267 = vmatpush.bf16.msrb.mxu0 %v1600_v48  ;;  %v1952_v21 = vor.u32 %v2179_v6, %v1949_v7  ;;  %v1779_v41 = vld [vmem:[%s2580_s27 + $0x1a8] sm:$0xf]  ;;  %v2138_v43 = vld [vmem:[%s2580_s27 + $0x1b4] sm:$0xf0]  ;;  %v1652_v48 = vor.u32 %v2106_v40, %v1651_v39 }
  0xd4   : > { %1281 = vmatpush.bf16.msrb.mxu1 %v1728_v49  ;;  %v1907_v44 = vld [vmem:[%s2580_s27 + $0x2a8] sm:$0xf]  ;;  %v2170_v45 = vld [vmem:[%s2580_s27 + $0x2b4] sm:$0xf0]  ;;  %v1780_v49 = vor.u32 %v2138_v43, %v1779_v41 }
  0xd5   : > { %1295 = vmatpush.bf16.msrb.mxu2 %v1856_v50  ;;  %v2035_v46 = vld [vmem:[%s2580_s27 + $0x3a8] sm:$0xf]  ;;  %v2202_v47 = vld [vmem:[%s2580_s27 + $0x3b4] sm:$0xf0]  ;;  %v1908_v50 = vor.u32 %v2170_v45, %v1907_v44 }
  0xd6   : > { %1309 = vmatpush.bf16.msrb.mxu3 %v1984_v54  ;;  %v1635_v51 = vld [vmem:[%s2580_s27 + $0x88] sm:$0xf]  ;;  %v2102_v52 = vld [vmem:[%s2580_s27 + $0x94] sm:$0xf0]  ;;  %v2036_v54 = vor.u32 %v2202_v47, %v2035_v46 }
  0xd7   : > { %1268 = vmatpush.bf16.msrb.mxu0 %v1584_v60  ;;  %v1763_v53 = vld [vmem:[%s2580_s27 + $0x188] sm:$0xf]  ;;  %v2134_v55 = vld [vmem:[%s2580_s27 + $0x194] sm:$0xf0]  ;;  %v1636_v60 = vor.u32 %v2102_v52, %v1635_v51  ;;  %v1813_v52 = vld [vmem:[%s2580_s27 + $0x1f8] sm:$0xf0] }
  0xd8   : > { %1282 = vmatpush.bf16.msrb.mxu1 %v1712_v63  ;;  %v1891_v56 = vld [vmem:[%s2580_s27 + $0x288] sm:$0xf]  ;;  %v2166_v57 = vld [vmem:[%s2580_s27 + $0x294] sm:$0xf0]  ;;  %v1764_v61 = vor.u32 %v2134_v55, %v1763_v53  ;;  %v2176_v53 = vld [vmem:[%s2580_s27 + $0x2ec] sm:$0xf] }
  0xd9   : > { %1296 = vmatpush.bf16.msrb.mxu2 %v1840_v0  ;;  %v2019_v58 = vld [vmem:[%s2580_s27 + $0x388] sm:$0xf]  ;;  %v2198_v59 = vld [vmem:[%s2580_s27 + $0x394] sm:$0xf0]  ;;  %v1892_v62 = vor.u32 %v2166_v57, %v1891_v56  ;;  %v2208_v57 = vld [vmem:[%s2580_s27 + $0x3ec] sm:$0xf] }
  0xda   : > { %1310 = vmatpush.bf16.msrb.mxu3 %v1968_v4  ;;  %v1619_v63 = vld [vmem:[%s2580_s27 + $0x68] sm:$0xf]  ;;  %v2098_v0 = vld [vmem:[%s2580_s27 + $0x74] sm:$0xf0]  ;;  %v2020_v2 = vor.u32 %v2198_v59, %v2019_v58  ;;  %v2069_v58 = vld [vmem:[%s2580_s27 + $0x3f8] sm:$0xf0] }
  0xdb   : > { %1269 = vmatpush.bf16.msrb.mxu0 %v1568_v12  ;;  %v1747_v1 = vld [vmem:[%s2580_s27 + $0x168] sm:$0xf]  ;;  %v2130_v3 = vld [vmem:[%s2580_s27 + $0x174] sm:$0xf0]  ;;  %v1620_v9 = vor.u32 %v2098_v0, %v1619_v63  ;;  %v2108_v63 = vld [vmem:[%s2580_s27 + $0xcc] sm:$0xf] }
  0xdc   : > { %1283 = vmatpush.bf16.msrb.mxu1 %v1696_v17  ;;  %v1875_v4 = vld [vmem:[%s2580_s27 + $0x268] sm:$0xf]  ;;  %v2162_v5 = vld [vmem:[%s2580_s27 + $0x274] sm:$0xf0]  ;;  %v1748_v10 = vor.u32 %v2130_v3, %v1747_v1  ;;  %v1669_v0 = vld [vmem:[%s2580_s27 + $0xd8] sm:$0xf0] }
  0xdd   : > { %1297 = vmatpush.bf16.msrb.mxu2 %v1824_v18  ;;  %v2003_v6 = vld [vmem:[%s2580_s27 + $0x368] sm:$0xf]  ;;  %v2194_v7 = vld [vmem:[%s2580_s27 + $0x374] sm:$0xf0]  ;;  %v1876_v11 = vor.u32 %v2162_v5, %v1875_v4  ;;  %v2140_v1 = vld [vmem:[%s2580_s27 + $0x1cc] sm:$0xf] }
  0xde   : > { %1311 = vmatpush.bf16.msrb.mxu3 %v1952_v21  ;;  %1270 = vmatmul.bf16.vlgmr.msrb.gmra.mxu0 %v2705_v26  ;;  %v1603_v12 = vld [vmem:[%s2580_s27 + $0x48] sm:$0xf]  ;;  %v2094_v13 = vld [vmem:[%s2580_s27 + $0x54] sm:$0xf0]  ;;  %v2004_v16 = vor.u32 %v2194_v7, %v2003_v6  ;;  %v1797_v3 = vld [vmem:[%s2580_s27 + $0x1d8] sm:$0xf0] }
  0xdf   : > { %1318 = vmatpush.bf16.msra.mxu0 %v1684_v22  ;;  %1284 = vmatmul.bf16.vlgmr.msrb.gmra.mxu1 %v2716_v33  ;;  %v1731_v14 = vld [vmem:[%s2580_s27 + $0x148] sm:$0xf]  ;;  %v2126_v17 = vld [vmem:[%s2580_s27 + $0x154] sm:$0xf0]  ;;  %v1604_v22 = vor.u32 %v2094_v13, %v1603_v12  ;;  %v2172_v4 = vld [vmem:[%s2580_s27 + $0x2cc] sm:$0xf] }
  0xe0   : > { %1332 = vmatpush.bf16.msra.mxu1 %v1812_v23  ;;  %1298 = vmatmul.bf16.vlgmr.msrb.gmra.mxu2 %v2679_v8  ;;  %v1859_v18 = vld [vmem:[%s2580_s27 + $0x248] sm:$0xf]  ;;  %v2158_v19 = vld [vmem:[%s2580_s27 + $0x254] sm:$0xf0]  ;;  %v1732_v23 = vor.u32 %v2126_v17, %v1731_v14  ;;  %v1925_v5 = vld [vmem:[%s2580_s27 + $0x2d8] sm:$0xf0] }
  0xe1   : > { %1346 = vmatpush.bf16.msra.mxu2 %v1940_v24  ;;  %1312 = vmatmul.bf16.vlgmr.msrb.gmra.mxu3 %v2690_v15  ;;  %v1987_v20 = vld [vmem:[%s2580_s27 + $0x348] sm:$0xf]  ;;  %v2190_v21 = vld [vmem:[%s2580_s27 + $0x354] sm:$0xf0]  ;;  %v1860_v24 = vor.u32 %v2158_v19, %v1859_v18  ;;  %v2204_v6 = vld [vmem:[%s2580_s27 + $0x3cc] sm:$0xf] }
  0xe2   : > { %1360 = vmatpush.bf16.msra.mxu3 %v2068_v29  ;;  %v1587_v25 = vld [vmem:[%s2580_s27 + $0x28] sm:$0xf]  ;;  %v2090_v27 = vld [vmem:[%s2580_s27 + $0x34] sm:$0xf0]  ;;  %v1988_v29 = vor.u32 %v2190_v21, %v1987_v20  ;;  %v2053_v7 = vld [vmem:[%s2580_s27 + $0x3d8] sm:$0xf0] }
  0xe3   : > { %1319 = vmatpush.bf16.msra.mxu0 %v1668_v36  ;;  %v1715_v28 = vld [vmem:[%s2580_s27 + $0x128] sm:$0xf]  ;;  %v2122_v30 = vld [vmem:[%s2580_s27 + $0x134] sm:$0xf0]  ;;  %v1588_v36 = vor.u32 %v2090_v27, %v1587_v25  ;;  %v2104_v12 = vld [vmem:[%s2580_s27 + $0xac] sm:$0xf] }
  0xe4   : > { %1333 = vmatpush.bf16.msra.mxu1 %v1796_v37  ;;  %v1843_v31 = vld [vmem:[%s2580_s27 + $0x228] sm:$0xf]  ;;  %v2154_v32 = vld [vmem:[%s2580_s27 + $0x234] sm:$0xf0]  ;;  %v1716_v39 = vor.u32 %v2122_v30, %v1715_v28  ;;  %v1653_v13 = vld [vmem:[%s2580_s27 + $0xb8] sm:$0xf0] }
  0xe5   : > { %1347 = vmatpush.bf16.msra.mxu2 %v1924_v38  ;;  %v1971_v34 = vld [vmem:[%s2580_s27 + $0x328] sm:$0xf]  ;;  %v2186_v35 = vld [vmem:[%s2580_s27 + $0x334] sm:$0xf0]  ;;  %v1844_v40 = vor.u32 %v2154_v32, %v1843_v31  ;;  %v2136_v14 = vld [vmem:[%s2580_s27 + $0x1ac] sm:$0xf] }
  0xe6   : > { %1361 = vmatpush.bf16.msra.mxu3 %v2052_v42  ;;  %v1571_v37 = vld [vmem:[%s2580_s27 + $0x8] sm:$0xf]  ;;  %v2086_v38 = vld [vmem:[%s2580_s27 + $0x14] sm:$0xf0]  ;;  %v1972_v44 = vor.u32 %v2186_v35, %v1971_v34  ;;  %v1781_v17 = vld [vmem:[%s2580_s27 + $0x1b8] sm:$0xf0] }
  0xe7   : > { %1320 = vmatpush.bf16.msra.mxu0 %v1652_v48  ;;  %v1699_v41 = vld [vmem:[%s2580_s27 + $0x108] sm:$0xf]  ;;  %v2118_v42 = vld [vmem:[%s2580_s27 + $0x114] sm:$0xf0]  ;;  %v2112_v48 = vld [vmem:[%s2580_s27 + $0xec] sm:$0xf]  ;;  %v1572_v51 = vor.u32 %v2086_v38, %v1571_v37 }
  0xe8   : > { %1334 = vmatpush.bf16.msra.mxu1 %v1780_v49  ;;  %v1827_v43 = vld [vmem:[%s2580_s27 + $0x208] sm:$0xf]  ;;  %v2150_v45 = vld [vmem:[%s2580_s27 + $0x214] sm:$0xf0]  ;;  %v1685_v49 = vld [vmem:[%s2580_s27 + $0xf8] sm:$0xf0]  ;;  %v1700_v55 = vor.u32 %v2118_v42, %v1699_v41 }
  0xe9   : > { %1348 = vmatpush.bf16.msra.mxu2 %v1908_v50  ;;  %v1955_v46 = vld [vmem:[%s2580_s27 + $0x308] sm:$0xf]  ;;  %v2182_v47 = vld [vmem:[%s2580_s27 + $0x314] sm:$0xf0]  ;;  %v2144_v50 = vld [vmem:[%s2580_s27 + $0x1ec] sm:$0xf]  ;;  %v1828_v56 = vor.u32 %v2150_v45, %v1827_v43 }
  0xea   : > { %1362 = vmatpush.bf16.msra.mxu3 %v2036_v54  ;;  %v1941_v54 = vld [vmem:[%s2580_s27 + $0x2f8] sm:$0xf0]  ;;  %v1956_v59 = vor.u32 %v2182_v47, %v1955_v46  ;;  %v2168_v18 = vld [vmem:[%s2580_s27 + $0x2ac] sm:$0xf] }
  0xeb   : > { %1321 = vmatpush.bf16.msra.mxu0 %v1636_v60  ;;  %v1688_v60 = vor.u32 %v2112_v48, %v1685_v49  ;;  %v1909_v19 = vld [vmem:[%s2580_s27 + $0x2b8] sm:$0xf0]  ;;  %v2200_v20 = vld [vmem:[%s2580_s27 + $0x3ac] sm:$0xf] }
  0xec   : > { %1335 = vmatpush.bf16.msra.mxu1 %v1764_v61  ;;  %v1816_v61 = vor.u32 %v2144_v50, %v1813_v52  ;;  %v2037_v21 = vld [vmem:[%s2580_s27 + $0x3b8] sm:$0xf0]  ;;  %v2100_v25 = vld [vmem:[%s2580_s27 + $0x8c] sm:$0xf] }
  0xed   : > { %1349 = vmatpush.bf16.msra.mxu2 %v1892_v62  ;;  %v1944_v62 = vor.u32 %v2176_v53, %v1941_v54  ;;  %v1637_v27 = vld [vmem:[%s2580_s27 + $0x98] sm:$0xf0]  ;;  %v2132_v28 = vld [vmem:[%s2580_s27 + $0x18c] sm:$0xf] }
  0xee   : > { %1363 = vmatpush.bf16.msra.mxu3 %v2020_v2  ;;  %v2072_v2 = vor.u32 %v2208_v57, %v2069_v58  ;;  %v1765_v30 = vld [vmem:[%s2580_s27 + $0x198] sm:$0xf0]  ;;  %v2164_v31 = vld [vmem:[%s2580_s27 + $0x28c] sm:$0xf] }
  0xef   : > { %1322 = vmatpush.bf16.msra.mxu0 %v1620_v9  ;;  %v1672_v9 = vor.u32 %v2108_v63, %v1669_v0  ;;  %v1893_v32 = vld [vmem:[%s2580_s27 + $0x298] sm:$0xf0]  ;;  %v2196_v34 = vld [vmem:[%s2580_s27 + $0x38c] sm:$0xf]  ;;  %v1768_v37 = vor.u32 %v2132_v28, %v1765_v30 }
  0xf0   : > { %1336 = vmatpush.bf16.msra.mxu1 %v1748_v10  ;;  %v1800_v10 = vor.u32 %v2140_v1, %v1797_v3  ;;  %v2021_v35 = vld [vmem:[%s2580_s27 + $0x398] sm:$0xf0]  ;;  %v1896_v38 = vor.u32 %v2164_v31, %v1893_v32  ;;  %v2128_v41 = vld [vmem:[%s2580_s27 + $0x16c] sm:$0xf] }
  0xf1   : > { %1350 = vmatpush.bf16.msra.mxu2 %v1876_v11  ;;  %v1928_v11 = vor.u32 %v2172_v4, %v1925_v5  ;;  %v2024_v42 = vor.u32 %v2196_v34, %v2021_v35  ;;  %v1749_v43 = vld [vmem:[%s2580_s27 + $0x178] sm:$0xf0]  ;;  %v2192_v46 = vld [vmem:[%s2580_s27 + $0x36c] sm:$0xf] }
  0xf2   : > { %1364 = vmatpush.bf16.msra.mxu3 %v2004_v16  ;;  %v2056_v16 = vor.u32 %v2204_v6, %v2053_v7  ;;  %v1877_v45 = vld [vmem:[%s2580_s27 + $0x278] sm:$0xf0]  ;;  %v1752_v49 = vor.u32 %v2128_v41, %v1749_v43  ;;  %v2124_v53 = vld [vmem:[%s2580_s27 + $0x14c] sm:$0xf] }
  0xf3   : > { %1323 = vmatpush.bf16.msra.mxu0 %v1604_v22  ;;  %v1656_v22 = vor.u32 %v2104_v12, %v1653_v13  ;;  %v2005_v47 = vld [vmem:[%s2580_s27 + $0x378] sm:$0xf0]  ;;  %v2188_v58 = vld [vmem:[%s2580_s27 + $0x34c] sm:$0xf] }
  0xf4   : > { %1337 = vmatpush.bf16.msra.mxu1 %v1732_v23  ;;  %v1784_v23 = vor.u32 %v2136_v14, %v1781_v17  ;;  %v1605_v52 = vld [vmem:[%s2580_s27 + $0x58] sm:$0xf0]  ;;  %v2008_v54 = vor.u32 %v2192_v46, %v2005_v47  ;;  %v2088_v63 = vld [vmem:[%s2580_s27 + $0x2c] sm:$0xf] }
  0xf5   : > { %1351 = vmatpush.bf16.msra.mxu2 %v1860_v24  ;;  %v1912_v24 = vor.u32 %v2168_v18, %v1909_v19  ;;  %v1861_v57 = vld [vmem:[%s2580_s27 + $0x258] sm:$0xf0]  ;;  %v2120_v1 = vld [vmem:[%s2580_s27 + $0x12c] sm:$0xf] }
  0xf6   : > { %1365 = vmatpush.bf16.msra.mxu3 %v1988_v29  ;;  %v2040_v29 = vor.u32 %v2200_v20, %v2037_v21  ;;  %v1589_v0 = vld [vmem:[%s2580_s27 + $0x38] sm:$0xf0]  ;;  %v2152_v4 = vld [vmem:[%s2580_s27 + $0x22c] sm:$0xf] }
  0xf7   : > { %1324 = vmatpush.bf16.msra.mxu0 %v1588_v36  ;;  %v1640_v36 = vor.u32 %v2100_v25, %v1637_v27  ;;  %v1717_v3 = vld [vmem:[%s2580_s27 + $0x138] sm:$0xf0]  ;;  %v2184_v6 = vld [vmem:[%s2580_s27 + $0x32c] sm:$0xf] }
  0xf8   : > { %1338 = vmatpush.bf16.msra.mxu1 %v1716_v39  ;;  %v2096_v39 = vld [vmem:[%s2580_s27 + $0x6c] sm:$0xf]  ;;  %v1845_v5 = vld [vmem:[%s2580_s27 + $0x238] sm:$0xf0] }
  0xf9   : > { %1352 = vmatpush.bf16.msra.mxu2 %v1844_v40  ;;  %v1621_v40 = vld [vmem:[%s2580_s27 + $0x78] sm:$0xf0]  ;;  %v2084_v12 = vld [vmem:[%s2580_s27 + $0xc] sm:$0xf] }
  0xfa   : > { %1366 = vmatpush.bf16.msra.mxu3 %v1972_v44  ;;  %v2160_v44 = vld [vmem:[%s2580_s27 + $0x26c] sm:$0xf]  ;;  %v1624_v48 = vor.u32 %v2096_v39, %v1621_v40  ;;  %v1973_v7 = vld [vmem:[%s2580_s27 + $0x338] sm:$0xf0] }
  0xfb   : > { %1325 = vmatpush.bf16.msra.mxu0 %v1572_v51  ;;  %v1880_v50 = vor.u32 %v2160_v44, %v1877_v45  ;;  %v2092_v51 = vld [vmem:[%s2580_s27 + $0x4c] sm:$0xf]  ;;  %v1573_v13 = vld [vmem:[%s2580_s27 + $0x18] sm:$0xf0] }
  0xfc   : > { %1339 = vmatpush.bf16.msra.mxu1 %v1700_v55  ;;  %v1733_v55 = vld [vmem:[%s2580_s27 + $0x158] sm:$0xf0]  ;;  %v2116_v14 = vld [vmem:[%s2580_s27 + $0x10c] sm:$0xf] }
  0xfd   : > { %1353 = vmatpush.bf16.msra.mxu2 %v1828_v56  ;;  %v2156_v56 = vld [vmem:[%s2580_s27 + $0x24c] sm:$0xf]  ;;  %v1701_v17 = vld [vmem:[%s2580_s27 + $0x118] sm:$0xf0] }
  0xfe   : > { %1367 = vmatpush.bf16.msra.mxu3 %v1956_v59  ;;  %1326 = vmatmul.bf16.vlgmr.msra.gmra.mxu0 %v2705_v26  ;;  %v1989_v59 = vld [vmem:[%s2580_s27 + $0x358] sm:$0xf0]  ;;  %v2148_v18 = vld [vmem:[%s2580_s27 + $0x20c] sm:$0xf] }
  0xff   : > { %1374 = vmatpush.bf16.msrb.mxu0 %v1688_v60  ;;  %1340 = vmatmul.bf16.vlgmr.msra.gmra.mxu1 %v2716_v33  ;;  %v1608_v60 = vor.u32 %v2092_v51, %v1605_v52  ;;  %v1829_v19 = vld [vmem:[%s2580_s27 + $0x218] sm:$0xf0]  ;;  %v2180_v20 = vld [vmem:[%s2580_s27 + $0x30c] sm:$0xf] }
 0x100   : > { %1388 = vmatpush.bf16.msrb.mxu1 %v1816_v61  ;;  %1354 = vmatmul.bf16.vlgmr.msra.gmra.mxu2 %v2679_v8  ;;  %v1736_v61 = vor.u32 %v2124_v53, %v1733_v55  ;;  %v1957_v21 = vld [vmem:[%s2580_s27 + $0x318] sm:$0xf0]  ;;  %s1447_s27 = scalar_lea.vmem (%p2305_p5), %s2925_s2, %s2211_s9 }
 0x101   : > { %1402 = vmatpush.bf16.msrb.mxu2 %v1944_v62  ;;  %1368 = vmatmul.bf16.vlgmr.msra.gmra.mxu3 %v2690_v15  ;;  %v1864_v62 = vor.u32 %v2156_v56, %v1861_v57  ;;  %v1960_v25 = vor.u32 %v2180_v20, %v1957_v21 }
 0x102   : > { %1416 = vmatpush.bf16.msrb.mxu3 %v2072_v2  ;;  %v1992_v2 = vor.u32 %v2188_v58, %v1989_v59 }
 0x103   : > { %1375 = vmatpush.bf16.msrb.mxu0 %v1672_v9  ;;  %v1592_v9 = vor.u32 %v2088_v63, %v1589_v0 }
 0x104   : > { %1389 = vmatpush.bf16.msrb.mxu1 %v1800_v10  ;;  %v1720_v10 = vor.u32 %v2120_v1, %v1717_v3 }
 0x105   : > { %1403 = vmatpush.bf16.msrb.mxu2 %v1928_v11  ;;  %v1848_v11 = vor.u32 %v2152_v4, %v1845_v5 }
 0x106   : > { %1417 = vmatpush.bf16.msrb.mxu3 %v2056_v16  ;;  %v1976_v16 = vor.u32 %v2184_v6, %v1973_v7 }
 0x107   : > { %1376 = vmatpush.bf16.msrb.mxu0 %v1656_v22  ;;  %v1576_v22 = vor.u32 %v2084_v12, %v1573_v13 }
 0x108   : > { %1390 = vmatpush.bf16.msrb.mxu1 %v1784_v23  ;;  %v1704_v23 = vor.u32 %v2116_v14, %v1701_v17 }
 0x109   : > { %1404 = vmatpush.bf16.msrb.mxu2 %v1912_v24  ;;  %v1832_v24 = vor.u32 %v2148_v18, %v1829_v19 }
 0x10a   : > { %1418 = vmatpush.bf16.msrb.mxu3 %v2040_v29 }
 0x10b   : > { %1377 = vmatpush.bf16.msrb.mxu0 %v1640_v36 }
 0x10c   : > { %1391 = vmatpush.bf16.msrb.mxu1 %v1768_v37 }
 0x10d   : > { %1405 = vmatpush.bf16.msrb.mxu2 %v1896_v38 }
 0x10e   : > { %1419 = vmatpush.bf16.msrb.mxu3 %v2024_v42 }
 0x10f   : > { %1378 = vmatpush.bf16.msrb.mxu0 %v1624_v48 }
 0x110   : > { %1392 = vmatpush.bf16.msrb.mxu1 %v1752_v49 }
 0x111   : > { %1406 = vmatpush.bf16.msrb.mxu2 %v1880_v50 }
 0x112   : > { %1420 = vmatpush.bf16.msrb.mxu3 %v2008_v54 }
 0x113   : > { %1379 = vmatpush.bf16.msrb.mxu0 %v1608_v60 }
 0x114   : > { %1393 = vmatpush.bf16.msrb.mxu1 %v1736_v61 }
 0x115   : > { %1407 = vmatpush.bf16.msrb.mxu2 %v1864_v62 }
 0x116   : > { %1421 = vmatpush.bf16.msrb.mxu3 %v1992_v2 }
 0x117   : > { %1380 = vmatpush.bf16.msrb.mxu0 %v1592_v9 }
 0x118   : > { %1394 = vmatpush.bf16.msrb.mxu1 %v1720_v10 }
 0x119   : > { %1408 = vmatpush.bf16.msrb.mxu2 %v1848_v11 }
 0x11a   : > { %1422 = vmatpush.bf16.msrb.mxu3 %v1976_v16 }
 0x11b   : > { %1381 = vmatpush.bf16.msrb.mxu0 %v1576_v22 }
 0x11c   : > { %1395 = vmatpush.bf16.msrb.mxu1 %v1704_v23 }
 0x11d   : > { %1409 = vmatpush.bf16.msrb.mxu2 %v1832_v24 }
 0x11e   : > { %1423 = vmatpush.bf16.msrb.mxu3 %v1960_v25  ;;  %1382 = vmatmul.bf16.vlgmr.msrb.gmra.mxu0 %v2705_v26 }
 0x11f   : > { %1396 = vmatmul.bf16.vlgmr.msrb.gmra.mxu1 %v2716_v33 }
 0x120   : > { %1410 = vmatmul.bf16.vlgmr.msrb.gmra.mxu2 %v2679_v8 }
 0x121   : > { %1424 = vmatmul.bf16.vlgmr.msrb.gmra.mxu3 %v2690_v15 }
 0x141   : > { %v1215_v27 = vpop.f32.mrf.mxu0 }
 0x143   : > { %v1229_v28 = vpop.f32.mrf.mxu1  ;;  %v1243_v30 = vpop.f32.mrf.mxu2 }
 0x144   : > { %v1230_v29 = vadd.f32 %v1229_v28, %v1215_v27 }
 0x146   : > { %v1257_v31 = vpop.f32.mrf.mxu3  ;;  %v1244_v32 = vadd.f32 %v1243_v30, %v1230_v29 }
 0x148   : > { %v1258_v34 = vadd.f32 %v1257_v31, %v1244_v32 }
 0x149   : > { %v1217_v26 = vpop.f32.mrf.mxu0 }
 0x14a   : > { %1430 = vst [vmem:[%s2888_s24] sm:$0xff] %v1258_v34 }
 0x14b   : > { %v1231_v33 = vpop.f32.mrf.mxu1  ;;  %v1245_v35 = vpop.f32.mrf.mxu2 }
 0x14c   : > { %v1232_v8 = vadd.f32 %v1231_v33, %v1217_v26 }
 0x14e   : > { %v1259_v15 = vpop.f32.mrf.mxu3  ;;  %v1246_v36 = vadd.f32 %v1245_v35, %v1232_v8 }
 0x150   : > { %v1260_v37 = vadd.f32 %v1259_v15, %v1246_v36 }
 0x151   : > { %v1460_v18 = vld [vmem:[%s2888_s24] sm:$0xff] (%p2305_p5) }
 0x152   : > { %1434 = vst [vmem:[%s2888_s24 + $0x20] sm:$0xff] %v1260_v37 }
 0x153   : > { %1461 = vst [vmem:[%s1447_s27] sm:$0xff] (%p2305_p5), %v1460_v18 }
 0x159   : > { %v1468_v22 = vld [vmem:[%s2888_s24 + $0x20] sm:$0xff] (%p2305_p5) }
 0x15a   : > { %1469 = vst [vmem:[%s1447_s27 + $0x40] sm:$0xff] (%p2305_p5), %v1468_v22 }
 0x15b   : > { %v1271_v38 = vpop.f32.mrf.mxu0 }
 0x15c   : > { %v1285_v39 = vpop.f32.mrf.mxu1 }
 0x15d   : > { %v1286_v40 = vadd.f32 %v1285_v39, %v1271_v38 }
 0x163   : > { %v1299_v41 = vpop.f32.mrf.mxu2  ;;  %v1273_v45 = vpop.f32.mrf.mxu0 }
 0x164   : > { %v1300_v42 = vadd.f32 %v1299_v41, %v1286_v40  ;;  %v1313_v43 = vpop.f32.mrf.mxu3  ;;  %v1287_v46 = vpop.f32.mrf.mxu1 }
 0x165   : > { %v1288_v47 = vadd.f32 %v1287_v46, %v1273_v45 }
 0x166   : > { %v1314_v44 = vadd.f32 %v1313_v43, %v1300_v42 }
 0x168   : > { %1431 = vst [vmem:[%s2888_s24 + $0x8] sm:$0xff] %v1314_v44 }
 0x16b   : > { %v1301_v48 = vpop.f32.mrf.mxu2 }
 0x16c   : > { %v1302_v49 = vadd.f32 %v1301_v48, %v1288_v47  ;;  %v1315_v50 = vpop.f32.mrf.mxu3 }
 0x16e   : > { %v1316_v51 = vadd.f32 %v1315_v50, %v1302_v49 }
 0x16f   : > { %v1462_v19 = vld [vmem:[%s2888_s24 + $0x8] sm:$0xff] (%p2305_p5) }
 0x170   : > { %1435 = vst [vmem:[%s2888_s24 + $0x28] sm:$0xff] %v1316_v51 }
 0x171   : > { %1463 = vst [vmem:[%s1447_s27 + $0x8] sm:$0xff] (%p2305_p5), %v1462_v19 }
 0x177   : > { %v1470_v23 = vld [vmem:[%s2888_s24 + $0x28] sm:$0xff] (%p2305_p5) }
 0x178   : > { %1471 = vst [vmem:[%s1447_s27 + $0x48] sm:$0xff] (%p2305_p5), %v1470_v23 }
 0x17b   : > { %v1327_v52 = vpop.f32.mrf.mxu0 }
 0x17c   : > { %v1341_v53 = vpop.f32.mrf.mxu1 }
 0x17d   : > { %v1342_v54 = vadd.f32 %v1341_v53, %v1327_v52 }
 0x183   : > { %v1355_v55 = vpop.f32.mrf.mxu2  ;;  %v1329_v59 = vpop.f32.mrf.mxu0 }
 0x184   : > { %v1356_v56 = vadd.f32 %v1355_v55, %v1342_v54  ;;  %v1369_v57 = vpop.f32.mrf.mxu3  ;;  %v1343_v60 = vpop.f32.mrf.mxu1 }
 0x185   : > { %v1344_v61 = vadd.f32 %v1343_v60, %v1329_v59 }
 0x186   : > { %v1370_v58 = vadd.f32 %v1369_v57, %v1356_v56 }
 0x188   : > { %1432 = vst [vmem:[%s2888_s24 + $0x10] sm:$0xff] %v1370_v58 }
 0x18b   : > { %v1357_v62 = vpop.f32.mrf.mxu2 }
 0x18c   : > { %v1358_v63 = vadd.f32 %v1357_v62, %v1344_v61  ;;  %v1371_v0 = vpop.f32.mrf.mxu3 }
 0x18e   : > { %v1372_v1 = vadd.f32 %v1371_v0, %v1358_v63 }
 0x18f   : > { %v1464_v20 = vld [vmem:[%s2888_s24 + $0x10] sm:$0xff] (%p2305_p5) }
 0x190   : > { %1436 = vst [vmem:[%s2888_s24 + $0x30] sm:$0xff] %v1372_v1 }
 0x191   : > { %1465 = vst [vmem:[%s1447_s27 + $0x10] sm:$0xff] (%p2305_p5), %v1464_v20 }
 0x197   : > { %v1472_v24 = vld [vmem:[%s2888_s24 + $0x30] sm:$0xff] (%p2305_p5) }
 0x198   : > { %1473 = vst [vmem:[%s1447_s27 + $0x50] sm:$0xff] (%p2305_p5), %v1472_v24 }
 0x19b   : > { %v1383_v2 = vpop.f32.mrf.mxu0 }
 0x19c   : > { %v1397_v3 = vpop.f32.mrf.mxu1 }
 0x19d   : > { %v1398_v4 = vadd.f32 %v1397_v3, %v1383_v2 }
 0x1a3   : > { %v1411_v5 = vpop.f32.mrf.mxu2  ;;  %v1385_v10 = vpop.f32.mrf.mxu0 }
 0x1a4   : > { %v1412_v6 = vadd.f32 %v1411_v5, %v1398_v4  ;;  %v1425_v7 = vpop.f32.mrf.mxu3  ;;  %v1399_v11 = vpop.f32.mrf.mxu1 }
 0x1a5   : > { %v1400_v12 = vadd.f32 %v1399_v11, %v1385_v10 }
 0x1a6   : > { %v1426_v9 = vadd.f32 %v1425_v7, %v1412_v6 }
 0x1a8   : > { %1433 = vst [vmem:[%s2888_s24 + $0x18] sm:$0xff] %v1426_v9 }
 0x1ab   : > { %v1413_v13 = vpop.f32.mrf.mxu2 }
 0x1ac   : > { %v1414_v14 = vadd.f32 %v1413_v13, %v1400_v12  ;;  %v1427_v16 = vpop.f32.mrf.mxu3  ;;  %1444 = sbr.rel (!%p2305_p5) target bundleno = 441 (0x1b9), region = 55 }
 0x1ae   : > { %v1428_v17 = vadd.f32 %v1427_v16, %v1414_v14 }
 0x1af   : > { %v1466_v21 = vld [vmem:[%s2888_s24 + $0x18] sm:$0xff] (%p2305_p5) }
 0x1b0   : > { %1437 = vst [vmem:[%s2888_s24 + $0x38] sm:$0xff] %v1428_v17 }
 0x1b1   : > { %1467 = vst [vmem:[%s1447_s27 + $0x18] sm:$0xff] %v1466_v21 }
 0x1b7   : > { %v1474_v25 = vld [vmem:[%s2888_s24 + $0x38] sm:$0xff] }
 0x1b8   : > { %1475 = vst [vmem:[%s1447_s27 + $0x58] sm:$0xff] %v1474_v25 }
 0x1b9 PF: > { %p9_p10 = scmp.ge.s32.totalorder %s2292_s13, 4   ;;  %s2927_s9 = smov %s2254_s10 }
 0x1ba   : > { %s2928_s10 = smov %s2303_s16  ;;  %s2929_s11 = smov %s2292_s13 }
 0x1bb   :  { %11 = sbr.rel (!%p9_p10) target bundleno = 2 (0x2), region = 109 }

// kernel: _lambda_.18
= control target key start
LH: loop header
LB: loop body
LE: loop exit
PB: predicated region body
PF: predicated region fallthrough
CT: control target
= control target key end

     0   :  { %s310_s0 = inlined_call_operand.vmem [shape: f32[64,512], index: 0, kind: input, shape index: {}]   ;;  %s311_s1 = inlined_call_operand.vmem [shape: f32[64,512], index: 1, kind: output, shape index: {}]  }
   0x1   :  { %v8_v0 = vld [vmem:[%s310_s0] sm:$0xff]  ;;  %v9_v1 = vld [vmem:[%s310_s0 + $0x8] sm:$0xff]  ;;  %v10_v2 = vld [vmem:[%s310_s0 + $0x10] sm:$0xff] }
   0x2   :  { %v40_v3 = vmax.f32 %v8_v0, 0.0  ;;  %v41_v4 = vmax.f32 %v9_v1, 0.0  ;;  %v42_v5 = vmax.f32 %v10_v2, 0.0  ;;  %v11_v6 = vld [vmem:[%s310_s0 + $0x18] sm:$0xff]  ;;  %v12_v7 = vld [vmem:[%s310_s0 + $0x20] sm:$0xff]  ;;  %v13_v8 = vld [vmem:[%s310_s0 + $0x28] sm:$0xff] }
   0x3   :  { %v43_v9 = vmax.f32 %v11_v6, 0.0  ;;  %v14_v10 = vld [vmem:[%s310_s0 + $0x30] sm:$0xff]  ;;  %v44_v11 = vmax.f32 %v12_v7, 0.0  ;;  %v15_v12 = vld [vmem:[%s310_s0 + $0x38] sm:$0xff]  ;;  %v45_v13 = vmax.f32 %v13_v8, 0.0  ;;  %v16_v14 = vld [vmem:[%s310_s0 + $0x40] sm:$0xff] }
   0x4   :  { %72 = vst [vmem:[%s311_s1] sm:$0xff] %v40_v3  ;;  %v46_v15 = vmax.f32 %v14_v10, 0.0  ;;  %v17_v16 = vld [vmem:[%s310_s0 + $0x48] sm:$0xff]  ;;  %v47_v17 = vmax.f32 %v15_v12, 0.0  ;;  %v18_v18 = vld [vmem:[%s310_s0 + $0x50] sm:$0xff]  ;;  %v48_v19 = vmax.f32 %v16_v14, 0.0  ;;  %v19_v20 = vld [vmem:[%s310_s0 + $0x58] sm:$0xff] }
   0x5   :  { %73 = vst [vmem:[%s311_s1 + $0x8] sm:$0xff] %v41_v4  ;;  %v49_v21 = vmax.f32 %v17_v16, 0.0  ;;  %v20_v22 = vld [vmem:[%s310_s0 + $0x60] sm:$0xff]  ;;  %v50_v23 = vmax.f32 %v18_v18, 0.0  ;;  %v21_v24 = vld [vmem:[%s310_s0 + $0x68] sm:$0xff]  ;;  %v51_v25 = vmax.f32 %v19_v20, 0.0 }
   0x6   :  { %74 = vst [vmem:[%s311_s1 + $0x10] sm:$0xff] %v42_v5  ;;  %v22_v26 = vld [vmem:[%s310_s0 + $0x70] sm:$0xff]  ;;  %v52_v27 = vmax.f32 %v20_v22, 0.0  ;;  %v23_v28 = vld [vmem:[%s310_s0 + $0x78] sm:$0xff]  ;;  %v53_v29 = vmax.f32 %v21_v24, 0.0  ;;  %v24_v30 = vld [vmem:[%s310_s0 + $0x80] sm:$0xff] }
   0x7   :  { %75 = vst [vmem:[%s311_s1 + $0x18] sm:$0xff] %v43_v9  ;;  %v54_v31 = vmax.f32 %v22_v26, 0.0  ;;  %v25_v32 = vld [vmem:[%s310_s0 + $0x88] sm:$0xff]  ;;  %v55_v33 = vmax.f32 %v23_v28, 0.0  ;;  %v26_v34 = vld [vmem:[%s310_s0 + $0x90] sm:$0xff]  ;;  %v56_v35 = vmax.f32 %v24_v30, 0.0 }
   0x8   :  { %76 = vst [vmem:[%s311_s1 + $0x20] sm:$0xff] %v44_v11  ;;  %v27_v36 = vld [vmem:[%s310_s0 + $0x98] sm:$0xff]  ;;  %v57_v37 = vmax.f32 %v25_v32, 0.0  ;;  %v28_v38 = vld [vmem:[%s310_s0 + $0xa0] sm:$0xff]  ;;  %v58_v39 = vmax.f32 %v26_v34, 0.0  ;;  %v29_v40 = vld [vmem:[%s310_s0 + $0xa8] sm:$0xff] }
   0x9   :  { %77 = vst [vmem:[%s311_s1 + $0x28] sm:$0xff] %v45_v13  ;;  %v59_v41 = vmax.f32 %v27_v36, 0.0  ;;  %v30_v42 = vld [vmem:[%s310_s0 + $0xb0] sm:$0xff]  ;;  %v60_v43 = vmax.f32 %v28_v38, 0.0  ;;  %v31_v44 = vld [vmem:[%s310_s0 + $0xb8] sm:$0xff]  ;;  %v61_v45 = vmax.f32 %v29_v40, 0.0 }
   0xa   :  { %78 = vst [vmem:[%s311_s1 + $0x30] sm:$0xff] %v46_v15  ;;  %v32_v46 = vld [vmem:[%s310_s0 + $0xc0] sm:$0xff]  ;;  %v62_v47 = vmax.f32 %v30_v42, 0.0  ;;  %v33_v48 = vld [vmem:[%s310_s0 + $0xc8] sm:$0xff]  ;;  %v63_v49 = vmax.f32 %v31_v44, 0.0  ;;  %v34_v50 = vld [vmem:[%s310_s0 + $0xd0] sm:$0xff] }
   0xb   :  { %79 = vst [vmem:[%s311_s1 + $0x38] sm:$0xff] %v47_v17  ;;  %v64_v51 = vmax.f32 %v32_v46, 0.0  ;;  %v35_v52 = vld [vmem:[%s310_s0 + $0xd8] sm:$0xff]  ;;  %v65_v53 = vmax.f32 %v33_v48, 0.0  ;;  %v36_v54 = vld [vmem:[%s310_s0 + $0xe0] sm:$0xff]  ;;  %v66_v55 = vmax.f32 %v34_v50, 0.0 }
   0xc   :  { %80 = vst [vmem:[%s311_s1 + $0x40] sm:$0xff] %v48_v19  ;;  %v37_v56 = vld [vmem:[%s310_s0 + $0xe8] sm:$0xff]  ;;  %v67_v57 = vmax.f32 %v35_v52, 0.0  ;;  %v38_v58 = vld [vmem:[%s310_s0 + $0xf0] sm:$0xff]  ;;  %v68_v59 = vmax.f32 %v36_v54, 0.0  ;;  %v39_v60 = vld [vmem:[%s310_s0 + $0xf8] sm:$0xff] }
   0xd   :  { %81 = vst [vmem:[%s311_s1 + $0x48] sm:$0xff] %v49_v21  ;;  %v69_v61 = vmax.f32 %v37_v56, 0.0  ;;  %v70_v62 = vmax.f32 %v38_v58, 0.0  ;;  %v71_v63 = vmax.f32 %v39_v60, 0.0 }
   0xe   :  { %82 = vst [vmem:[%s311_s1 + $0x50] sm:$0xff] %v50_v23 }
   0xf   :  { %83 = vst [vmem:[%s311_s1 + $0x58] sm:$0xff] %v51_v25 }
  0x10   :  { %84 = vst [vmem:[%s311_s1 + $0x60] sm:$0xff] %v52_v27 }
  0x11   :  { %85 = vst [vmem:[%s311_s1 + $0x68] sm:$0xff] %v53_v29 }
  0x12   :  { %86 = vst [vmem:[%s311_s1 + $0x70] sm:$0xff] %v54_v31 }
  0x13   :  { %87 = vst [vmem:[%s311_s1 + $0x78] sm:$0xff] %v55_v33 }
  0x14   :  { %88 = vst [vmem:[%s311_s1 + $0x80] sm:$0xff] %v56_v35 }
  0x15   :  { %89 = vst [vmem:[%s311_s1 + $0x88] sm:$0xff] %v57_v37 }
  0x16   :  { %90 = vst [vmem:[%s311_s1 + $0x90] sm:$0xff] %v58_v39 }
  0x17   :  { %91 = vst [vmem:[%s311_s1 + $0x98] sm:$0xff] %v59_v41 }
  0x18   :  { %92 = vst [vmem:[%s311_s1 + $0xa0] sm:$0xff] %v60_v43 }
  0x19   :  { %93 = vst [vmem:[%s311_s1 + $0xa8] sm:$0xff] %v61_v45 }
  0x1a   :  { %94 = vst [vmem:[%s311_s1 + $0xb0] sm:$0xff] %v62_v47 }
  0x1b   :  { %95 = vst [vmem:[%s311_s1 + $0xb8] sm:$0xff] %v63_v49 }
  0x1c   :  { %96 = vst [vmem:[%s311_s1 + $0xc0] sm:$0xff] %v64_v51 }
  0x1d   :  { %97 = vst [vmem:[%s311_s1 + $0xc8] sm:$0xff] %v65_v53 }
  0x1e   :  { %98 = vst [vmem:[%s311_s1 + $0xd0] sm:$0xff] %v66_v55 }
  0x1f   :  { %99 = vst [vmem:[%s311_s1 + $0xd8] sm:$0xff] %v67_v57 }
  0x20   :  { %100 = vst [vmem:[%s311_s1 + $0xe0] sm:$0xff] %v68_v59 }
  0x21   :  { %101 = vst [vmem:[%s311_s1 + $0xe8] sm:$0xff] %v69_v61 }
  0x22   :  { %102 = vst [vmem:[%s311_s1 + $0xf0] sm:$0xff] %v70_v62 }
  0x23   :  { %103 = vst [vmem:[%s311_s1 + $0xf8] sm:$0xff] %v71_v63 }

// kernel: _lambda_.19
= control target key start
LH: loop header
LB: loop body
LE: loop exit
PB: predicated region body
PF: predicated region fallthrough
CT: control target
= control target key end

     0   :  { %s4207_s9 = smov 0   ;;  %s4209_s10 = smov 0   ;;  %s5418_s0 = inlined_call_operand.vmem [shape: bf16[16,1024], index: 0, kind: input, shape index: {}]   ;;  %s5419_s1 = inlined_call_operand.vmem [shape: bf16[1024,1024], index: 1, kind: input, shape index: {}]   ;;  %s5420_s2 = inlined_call_operand.vmem [shape: f32[16,1024], index: 2, kind: output, shape index: {}]  }
   0x1   :  { %s4211_s11 = smov 0  }
   0x2 LB: > { %s2807_s12 = sadd.s32 4294967295, %s4190_s11   ;;  %s4224_s13 = sadd.s32 1, %s4190_s11   ;;  %s4190_s11 = sphi %s4211_s11, %s5424_s11   ;;  %s4186_s10 = sphi %s4209_s10, %s5423_s10   ;;  %s4182_s9 = sphi %s4207_s9, %s5422_s9  }
   0x3   : > { %s37_s14 = ssub.s32 %s4190_s11, %s4224_s13  ;;  %s40_s15 = sadd.s32 1, %s4186_s10 }
   0x4   : > { %p38_p0 = scmp.eq.s32.totalorder %s37_s14, 0  ;;  %p47_p1 = scmp.ne.s32.totalorder %s4186_s10, %s4182_s9 }
   0x5   : > { %p48_p2 = scmp.eq.s32.totalorder %s4190_s11, 0  ;;  %p77_p3 = scmp.eq.s32.totalorder %s2807_s12, 1 }
   0x6   : > { %s4235_s16 = scalar_select %p38_p0, %s4186_s10, %s40_s15  }
   0x7   : > { %p49_p4 = por %p48_p2, %p47_p1  ;;  %p4237_p5 = por %p77_p3, %p47_p1 }
   0x8   : > { %p2810_p6 = scmp.ge.s32.totalorder %s4190_s11, 2 }
   0xa   : > { %102 = sbr.rel (%p2810_p6) target bundleno = 275 (0x113), region = 20 }
   0xf   : > { %105 = sbr.rel (!%p49_p4) target bundleno = 275 (0x113), region = 24  ;;  %s107_s18 = sand.u32 (%p49_p4), 1, %s4186_s10  }
  0x10   : > { %s3878_s19 = sshll.u32 (%p49_p4), %s4190_s11, 4  ;;  %s2811_s20 = sshll.u32 (%p49_p4), %s107_s18, 11 }
  0x11   : > { %s4247_s23 = scalar_lea.vmem (%p49_p4), %s5419_s1, %s3878_s19  ;;  %s4252_s24 = scalar_lea.vmem (%p49_p4), [#allocation2], %s2811_s20 }
  0x12   : > { %v125_v0 = vld [vmem:[%s4247_s23] sm:$0xff] (%p49_p4)  ;;  %v127_v1 = vld [vmem:[%s4247_s23 + $0x8] sm:$0xff] (%p49_p4) }
  0x13   : > { %v129_v2 = vld [vmem:[%s4247_s23 + $0x20] sm:$0xff] (%p49_p4)  ;;  %126 = vst [vmem:[%s4252_s24] sm:$0xff] (%p49_p4), %v125_v0  ;;  %v131_v3 = vld [vmem:[%s4247_s23 + $0x28] sm:$0xff] (%p49_p4) }
  0x14   : > { %128 = vst [vmem:[%s4252_s24 + $0x8] sm:$0xff] %v127_v1  ;;  %v133_v4 = vld [vmem:[%s4247_s23 + $0x40] sm:$0xff]  ;;  %v135_v5 = vld [vmem:[%s4247_s23 + $0x48] sm:$0xff] }
  0x15   : > { %130 = vst [vmem:[%s4252_s24 + $0x10] sm:$0xff] %v129_v2  ;;  %v137_v6 = vld [vmem:[%s4247_s23 + $0x60] sm:$0xff]  ;;  %v139_v7 = vld [vmem:[%s4247_s23 + $0x68] sm:$0xff] }
  0x16   : > { %132 = vst [vmem:[%s4252_s24 + $0x18] sm:$0xff] %v131_v3  ;;  %v141_v8 = vld [vmem:[%s4247_s23 + $0x80] sm:$0xff]  ;;  %v143_v9 = vld [vmem:[%s4247_s23 + $0x88] sm:$0xff] }
  0x17   : > { %134 = vst [vmem:[%s4252_s24 + $0x20] sm:$0xff] %v133_v4  ;;  %v145_v10 = vld [vmem:[%s4247_s23 + $0xa0] sm:$0xff]  ;;  %v147_v11 = vld [vmem:[%s4247_s23 + $0xa8] sm:$0xff] }
  0x18   : > { %136 = vst [vmem:[%s4252_s24 + $0x28] sm:$0xff] %v135_v5  ;;  %v149_v12 = vld [vmem:[%s4247_s23 + $0xc0] sm:$0xff]  ;;  %v151_v13 = vld [vmem:[%s4247_s23 + $0xc8] sm:$0xff] }
  0x19   : > { %138 = vst [vmem:[%s4252_s24 + $0x30] sm:$0xff] %v137_v6  ;;  %v153_v14 = vld [vmem:[%s4247_s23 + $0xe0] sm:$0xff]  ;;  %v155_v15 = vld [vmem:[%s4247_s23 + $0xe8] sm:$0xff] }
  0x1a   : > { %140 = vst [vmem:[%s4252_s24 + $0x38] sm:$0xff] %v139_v7  ;;  %v157_v16 = vld [vmem:[%s4247_s23 + $0x100] sm:$0xff]  ;;  %v159_v17 = vld [vmem:[%s4247_s23 + $0x108] sm:$0xff] }
  0x1b   : > { %142 = vst [vmem:[%s4252_s24 + $0x40] sm:$0xff] %v141_v8  ;;  %v161_v18 = vld [vmem:[%s4247_s23 + $0x120] sm:$0xff]  ;;  %v163_v19 = vld [vmem:[%s4247_s23 + $0x128] sm:$0xff] }
  0x1c   : > { %144 = vst [vmem:[%s4252_s24 + $0x48] sm:$0xff] %v143_v9  ;;  %v165_v20 = vld [vmem:[%s4247_s23 + $0x140] sm:$0xff]  ;;  %v167_v21 = vld [vmem:[%s4247_s23 + $0x148] sm:$0xff] }
  0x1d   : > { %146 = vst [vmem:[%s4252_s24 + $0x50] sm:$0xff] %v145_v10  ;;  %v169_v22 = vld [vmem:[%s4247_s23 + $0x160] sm:$0xff]  ;;  %v171_v23 = vld [vmem:[%s4247_s23 + $0x168] sm:$0xff] }
  0x1e   : > { %148 = vst [vmem:[%s4252_s24 + $0x58] sm:$0xff] %v147_v11  ;;  %v173_v24 = vld [vmem:[%s4247_s23 + $0x180] sm:$0xff]  ;;  %v175_v25 = vld [vmem:[%s4247_s23 + $0x188] sm:$0xff] }
  0x1f   : > { %150 = vst [vmem:[%s4252_s24 + $0x60] sm:$0xff] %v149_v12  ;;  %v177_v26 = vld [vmem:[%s4247_s23 + $0x1a0] sm:$0xff]  ;;  %v179_v27 = vld [vmem:[%s4247_s23 + $0x1a8] sm:$0xff] }
  0x20   : > { %152 = vst [vmem:[%s4252_s24 + $0x68] sm:$0xff] %v151_v13  ;;  %v181_v28 = vld [vmem:[%s4247_s23 + $0x1c0] sm:$0xff]  ;;  %v183_v29 = vld [vmem:[%s4247_s23 + $0x1c8] sm:$0xff] }
  0x21   : > { %154 = vst [vmem:[%s4252_s24 + $0x70] sm:$0xff] %v153_v14  ;;  %v185_v30 = vld [vmem:[%s4247_s23 + $0x1e0] sm:$0xff]  ;;  %v187_v31 = vld [vmem:[%s4247_s23 + $0x1e8] sm:$0xff] }
  0x22   : > { %156 = vst [vmem:[%s4252_s24 + $0x78] sm:$0xff] %v155_v15  ;;  %v189_v32 = vld [vmem:[%s4247_s23 + $0x200] sm:$0xff]  ;;  %v191_v33 = vld [vmem:[%s4247_s23 + $0x208] sm:$0xff] }
  0x23   : > { %158 = vst [vmem:[%s4252_s24 + $0x80] sm:$0xff] %v157_v16  ;;  %v193_v34 = vld [vmem:[%s4247_s23 + $0x220] sm:$0xff]  ;;  %v195_v35 = vld [vmem:[%s4247_s23 + $0x228] sm:$0xff] }
  0x24   : > { %160 = vst [vmem:[%s4252_s24 + $0x88] sm:$0xff] %v159_v17  ;;  %v197_v36 = vld [vmem:[%s4247_s23 + $0x240] sm:$0xff]  ;;  %v199_v37 = vld [vmem:[%s4247_s23 + $0x248] sm:$0xff] }
  0x25   : > { %162 = vst [vmem:[%s4252_s24 + $0x90] sm:$0xff] %v161_v18  ;;  %v201_v38 = vld [vmem:[%s4247_s23 + $0x260] sm:$0xff]  ;;  %v203_v39 = vld [vmem:[%s4247_s23 + $0x268] sm:$0xff] }
  0x26   : > { %164 = vst [vmem:[%s4252_s24 + $0x98] sm:$0xff] %v163_v19  ;;  %v205_v40 = vld [vmem:[%s4247_s23 + $0x280] sm:$0xff]  ;;  %v207_v41 = vld [vmem:[%s4247_s23 + $0x288] sm:$0xff] }
  0x27   : > { %166 = vst [vmem:[%s4252_s24 + $0xa0] sm:$0xff] %v165_v20  ;;  %v209_v42 = vld [vmem:[%s4247_s23 + $0x2a0] sm:$0xff]  ;;  %v211_v43 = vld [vmem:[%s4247_s23 + $0x2a8] sm:$0xff] }
  0x28   : > { %168 = vst [vmem:[%s4252_s24 + $0xa8] sm:$0xff] %v167_v21  ;;  %v213_v44 = vld [vmem:[%s4247_s23 + $0x2c0] sm:$0xff]  ;;  %v215_v45 = vld [vmem:[%s4247_s23 + $0x2c8] sm:$0xff] }
  0x29   : > { %170 = vst [vmem:[%s4252_s24 + $0xb0] sm:$0xff] %v169_v22  ;;  %v217_v46 = vld [vmem:[%s4247_s23 + $0x2e0] sm:$0xff]  ;;  %v219_v47 = vld [vmem:[%s4247_s23 + $0x2e8] sm:$0xff] }
  0x2a   : > { %172 = vst [vmem:[%s4252_s24 + $0xb8] sm:$0xff] %v171_v23  ;;  %v221_v48 = vld [vmem:[%s4247_s23 + $0x300] sm:$0xff]  ;;  %v223_v49 = vld [vmem:[%s4247_s23 + $0x308] sm:$0xff] }
  0x2b   : > { %174 = vst [vmem:[%s4252_s24 + $0xc0] sm:$0xff] %v173_v24  ;;  %v225_v50 = vld [vmem:[%s4247_s23 + $0x320] sm:$0xff]  ;;  %v227_v51 = vld [vmem:[%s4247_s23 + $0x328] sm:$0xff] }
  0x2c   : > { %176 = vst [vmem:[%s4252_s24 + $0xc8] sm:$0xff] %v175_v25  ;;  %v229_v52 = vld [vmem:[%s4247_s23 + $0x340] sm:$0xff]  ;;  %v231_v53 = vld [vmem:[%s4247_s23 + $0x348] sm:$0xff] }
  0x2d   : > { %178 = vst [vmem:[%s4252_s24 + $0xd0] sm:$0xff] %v177_v26  ;;  %v233_v54 = vld [vmem:[%s4247_s23 + $0x360] sm:$0xff]  ;;  %v235_v55 = vld [vmem:[%s4247_s23 + $0x368] sm:$0xff] }
  0x2e   : > { %180 = vst [vmem:[%s4252_s24 + $0xd8] sm:$0xff] %v179_v27  ;;  %v237_v56 = vld [vmem:[%s4247_s23 + $0x380] sm:$0xff]  ;;  %v239_v57 = vld [vmem:[%s4247_s23 + $0x388] sm:$0xff] }
  0x2f   : > { %182 = vst [vmem:[%s4252_s24 + $0xe0] sm:$0xff] %v181_v28  ;;  %v241_v58 = vld [vmem:[%s4247_s23 + $0x3a0] sm:$0xff]  ;;  %v243_v59 = vld [vmem:[%s4247_s23 + $0x3a8] sm:$0xff] }
  0x30   : > { %184 = vst [vmem:[%s4252_s24 + $0xe8] sm:$0xff] %v183_v29  ;;  %v245_v60 = vld [vmem:[%s4247_s23 + $0x3c0] sm:$0xff]  ;;  %v247_v61 = vld [vmem:[%s4247_s23 + $0x3c8] sm:$0xff] }
  0x31   : > { %186 = vst [vmem:[%s4252_s24 + $0xf0] sm:$0xff] %v185_v30  ;;  %v249_v62 = vld [vmem:[%s4247_s23 + $0x3e0] sm:$0xff]  ;;  %v251_v63 = vld [vmem:[%s4247_s23 + $0x3e8] sm:$0xff] }
  0x32   : > { %188 = vst [vmem:[%s4252_s24 + $0xf8] sm:$0xff] %v187_v31  ;;  %v253_v0 = vld [vmem:[%s4247_s23 + $0x400] sm:$0xff]  ;;  %v255_v1 = vld [vmem:[%s4247_s23 + $0x408] sm:$0xff] }
  0x33   : > { %190 = vst [vmem:[%s4252_s24 + $0x100] sm:$0xff] %v189_v32  ;;  %v257_v2 = vld [vmem:[%s4247_s23 + $0x420] sm:$0xff]  ;;  %v259_v3 = vld [vmem:[%s4247_s23 + $0x428] sm:$0xff] }
  0x34   : > { %192 = vst [vmem:[%s4252_s24 + $0x108] sm:$0xff] %v191_v33  ;;  %v261_v4 = vld [vmem:[%s4247_s23 + $0x440] sm:$0xff]  ;;  %v263_v5 = vld [vmem:[%s4247_s23 + $0x448] sm:$0xff] }
  0x35   : > { %194 = vst [vmem:[%s4252_s24 + $0x110] sm:$0xff] %v193_v34  ;;  %v265_v6 = vld [vmem:[%s4247_s23 + $0x460] sm:$0xff]  ;;  %v267_v7 = vld [vmem:[%s4247_s23 + $0x468] sm:$0xff] }
  0x36   : > { %196 = vst [vmem:[%s4252_s24 + $0x118] sm:$0xff] %v195_v35  ;;  %v269_v8 = vld [vmem:[%s4247_s23 + $0x480] sm:$0xff]  ;;  %v271_v9 = vld [vmem:[%s4247_s23 + $0x488] sm:$0xff] }
  0x37   : > { %198 = vst [vmem:[%s4252_s24 + $0x120] sm:$0xff] %v197_v36  ;;  %v273_v10 = vld [vmem:[%s4247_s23 + $0x4a0] sm:$0xff]  ;;  %v275_v11 = vld [vmem:[%s4247_s23 + $0x4a8] sm:$0xff] }
  0x38   : > { %200 = vst [vmem:[%s4252_s24 + $0x128] sm:$0xff] %v199_v37  ;;  %v277_v12 = vld [vmem:[%s4247_s23 + $0x4c0] sm:$0xff]  ;;  %v279_v13 = vld [vmem:[%s4247_s23 + $0x4c8] sm:$0xff] }
  0x39   : > { %202 = vst [vmem:[%s4252_s24 + $0x130] sm:$0xff] %v201_v38  ;;  %v281_v14 = vld [vmem:[%s4247_s23 + $0x4e0] sm:$0xff]  ;;  %v283_v15 = vld [vmem:[%s4247_s23 + $0x4e8] sm:$0xff] }
  0x3a   : > { %204 = vst [vmem:[%s4252_s24 + $0x138] sm:$0xff] %v203_v39  ;;  %v285_v16 = vld [vmem:[%s4247_s23 + $0x500] sm:$0xff]  ;;  %v287_v17 = vld [vmem:[%s4247_s23 + $0x508] sm:$0xff] }
  0x3b   : > { %206 = vst [vmem:[%s4252_s24 + $0x140] sm:$0xff] %v205_v40  ;;  %v289_v18 = vld [vmem:[%s4247_s23 + $0x520] sm:$0xff]  ;;  %v291_v19 = vld [vmem:[%s4247_s23 + $0x528] sm:$0xff] }
  0x3c   : > { %208 = vst [vmem:[%s4252_s24 + $0x148] sm:$0xff] %v207_v41  ;;  %v293_v20 = vld [vmem:[%s4247_s23 + $0x540] sm:$0xff]  ;;  %v295_v21 = vld [vmem:[%s4247_s23 + $0x548] sm:$0xff] }
  0x3d   : > { %210 = vst [vmem:[%s4252_s24 + $0x150] sm:$0xff] %v209_v42  ;;  %v297_v22 = vld [vmem:[%s4247_s23 + $0x560] sm:$0xff]  ;;  %v299_v23 = vld [vmem:[%s4247_s23 + $0x568] sm:$0xff] }
  0x3e   : > { %212 = vst [vmem:[%s4252_s24 + $0x158] sm:$0xff] %v211_v43  ;;  %v301_v24 = vld [vmem:[%s4247_s23 + $0x580] sm:$0xff]  ;;  %v303_v25 = vld [vmem:[%s4247_s23 + $0x588] sm:$0xff] }
  0x3f   : > { %214 = vst [vmem:[%s4252_s24 + $0x160] sm:$0xff] %v213_v44  ;;  %v305_v26 = vld [vmem:[%s4247_s23 + $0x5a0] sm:$0xff]  ;;  %v307_v27 = vld [vmem:[%s4247_s23 + $0x5a8] sm:$0xff] }
  0x40   : > { %216 = vst [vmem:[%s4252_s24 + $0x168] sm:$0xff] %v215_v45  ;;  %v309_v28 = vld [vmem:[%s4247_s23 + $0x5c0] sm:$0xff]  ;;  %v311_v29 = vld [vmem:[%s4247_s23 + $0x5c8] sm:$0xff] }
  0x41   : > { %218 = vst [vmem:[%s4252_s24 + $0x170] sm:$0xff] %v217_v46  ;;  %v313_v30 = vld [vmem:[%s4247_s23 + $0x5e0] sm:$0xff]  ;;  %v315_v31 = vld [vmem:[%s4247_s23 + $0x5e8] sm:$0xff] }
  0x42   : > { %220 = vst [vmem:[%s4252_s24 + $0x178] sm:$0xff] %v219_v47  ;;  %v317_v32 = vld [vmem:[%s4247_s23 + $0x600] sm:$0xff]  ;;  %v319_v33 = vld [vmem:[%s4247_s23 + $0x608] sm:$0xff] }
  0x43   : > { %222 = vst [vmem:[%s4252_s24 + $0x180] sm:$0xff] %v221_v48  ;;  %v321_v34 = vld [vmem:[%s4247_s23 + $0x620] sm:$0xff]  ;;  %v323_v35 = vld [vmem:[%s4247_s23 + $0x628] sm:$0xff] }
  0x44   : > { %224 = vst [vmem:[%s4252_s24 + $0x188] sm:$0xff] %v223_v49  ;;  %v325_v36 = vld [vmem:[%s4247_s23 + $0x640] sm:$0xff]  ;;  %v327_v37 = vld [vmem:[%s4247_s23 + $0x648] sm:$0xff] }
  0x45   : > { %226 = vst [vmem:[%s4252_s24 + $0x190] sm:$0xff] %v225_v50  ;;  %v329_v38 = vld [vmem:[%s4247_s23 + $0x660] sm:$0xff]  ;;  %v331_v39 = vld [vmem:[%s4247_s23 + $0x668] sm:$0xff] }
  0x46   : > { %228 = vst [vmem:[%s4252_s24 + $0x198] sm:$0xff] %v227_v51  ;;  %v333_v40 = vld [vmem:[%s4247_s23 + $0x680] sm:$0xff]  ;;  %v335_v41 = vld [vmem:[%s4247_s23 + $0x688] sm:$0xff] }
  0x47   : > { %230 = vst [vmem:[%s4252_s24 + $0x1a0] sm:$0xff] %v229_v52  ;;  %v337_v42 = vld [vmem:[%s4247_s23 + $0x6a0] sm:$0xff]  ;;  %v339_v43 = vld [vmem:[%s4247_s23 + $0x6a8] sm:$0xff] }
  0x48   : > { %232 = vst [vmem:[%s4252_s24 + $0x1a8] sm:$0xff] %v231_v53  ;;  %v341_v44 = vld [vmem:[%s4247_s23 + $0x6c0] sm:$0xff]  ;;  %v343_v45 = vld [vmem:[%s4247_s23 + $0x6c8] sm:$0xff] }
  0x49   : > { %234 = vst [vmem:[%s4252_s24 + $0x1b0] sm:$0xff] %v233_v54  ;;  %v345_v46 = vld [vmem:[%s4247_s23 + $0x6e0] sm:$0xff]  ;;  %v347_v47 = vld [vmem:[%s4247_s23 + $0x6e8] sm:$0xff] }
  0x4a   : > { %236 = vst [vmem:[%s4252_s24 + $0x1b8] sm:$0xff] %v235_v55  ;;  %v349_v48 = vld [vmem:[%s4247_s23 + $0x700] sm:$0xff]  ;;  %v351_v49 = vld [vmem:[%s4247_s23 + $0x708] sm:$0xff] }
  0x4b   : > { %238 = vst [vmem:[%s4252_s24 + $0x1c0] sm:$0xff] %v237_v56  ;;  %v353_v50 = vld [vmem:[%s4247_s23 + $0x720] sm:$0xff]  ;;  %v355_v51 = vld [vmem:[%s4247_s23 + $0x728] sm:$0xff] }
  0x4c   : > { %240 = vst [vmem:[%s4252_s24 + $0x1c8] sm:$0xff] %v239_v57  ;;  %v357_v52 = vld [vmem:[%s4247_s23 + $0x740] sm:$0xff]  ;;  %v359_v53 = vld [vmem:[%s4247_s23 + $0x748] sm:$0xff] }
  0x4d   : > { %242 = vst [vmem:[%s4252_s24 + $0x1d0] sm:$0xff] %v241_v58  ;;  %v361_v54 = vld [vmem:[%s4247_s23 + $0x760] sm:$0xff]  ;;  %v363_v55 = vld [vmem:[%s4247_s23 + $0x768] sm:$0xff] }
  0x4e   : > { %244 = vst [vmem:[%s4252_s24 + $0x1d8] sm:$0xff] %v243_v59  ;;  %v365_v56 = vld [vmem:[%s4247_s23 + $0x780] sm:$0xff]  ;;  %v367_v57 = vld [vmem:[%s4247_s23 + $0x788] sm:$0xff] }
  0x4f   : > { %246 = vst [vmem:[%s4252_s24 + $0x1e0] sm:$0xff] %v245_v60  ;;  %v369_v58 = vld [vmem:[%s4247_s23 + $0x7a0] sm:$0xff]  ;;  %v371_v59 = vld [vmem:[%s4247_s23 + $0x7a8] sm:$0xff] }
  0x50   : > { %248 = vst [vmem:[%s4252_s24 + $0x1e8] sm:$0xff] %v247_v61  ;;  %v373_v60 = vld [vmem:[%s4247_s23 + $0x7c0] sm:$0xff]  ;;  %v375_v61 = vld [vmem:[%s4247_s23 + $0x7c8] sm:$0xff] }
  0x51   : > { %250 = vst [vmem:[%s4252_s24 + $0x1f0] sm:$0xff] %v249_v62  ;;  %v377_v62 = vld [vmem:[%s4247_s23 + $0x7e0] sm:$0xff] }
  0x52   : > { %252 = vst [vmem:[%s4252_s24 + $0x1f8] sm:$0xff] %v251_v63  ;;  %v379_v63 = vld [vmem:[%s4247_s23 + $0x7e8] sm:$0xff] }
  0x53   : > { %254 = vst [vmem:[%s4252_s24 + $0x200] sm:$0xff] %v253_v0  ;;  %v381_v0 = vld [vmem:[%s4247_s23 + $0x800] sm:$0xff] }
  0x54   : > { %256 = vst [vmem:[%s4252_s24 + $0x208] sm:$0xff] %v255_v1  ;;  %v383_v1 = vld [vmem:[%s4247_s23 + $0x808] sm:$0xff] }
  0x55   : > { %258 = vst [vmem:[%s4252_s24 + $0x210] sm:$0xff] %v257_v2  ;;  %v385_v2 = vld [vmem:[%s4247_s23 + $0x820] sm:$0xff] }
  0x56   : > { %260 = vst [vmem:[%s4252_s24 + $0x218] sm:$0xff] %v259_v3  ;;  %v387_v3 = vld [vmem:[%s4247_s23 + $0x828] sm:$0xff] }
  0x57   : > { %262 = vst [vmem:[%s4252_s24 + $0x220] sm:$0xff] %v261_v4  ;;  %v389_v4 = vld [vmem:[%s4247_s23 + $0x840] sm:$0xff] }
  0x58   : > { %264 = vst [vmem:[%s4252_s24 + $0x228] sm:$0xff] %v263_v5  ;;  %v391_v5 = vld [vmem:[%s4247_s23 + $0x848] sm:$0xff] }
  0x59   : > { %266 = vst [vmem:[%s4252_s24 + $0x230] sm:$0xff] %v265_v6  ;;  %v393_v6 = vld [vmem:[%s4247_s23 + $0x860] sm:$0xff] }
  0x5a   : > { %268 = vst [vmem:[%s4252_s24 + $0x238] sm:$0xff] %v267_v7  ;;  %v395_v7 = vld [vmem:[%s4247_s23 + $0x868] sm:$0xff] }
  0x5b   : > { %270 = vst [vmem:[%s4252_s24 + $0x240] sm:$0xff] %v269_v8  ;;  %v397_v8 = vld [vmem:[%s4247_s23 + $0x880] sm:$0xff] }
  0x5c   : > { %272 = vst [vmem:[%s4252_s24 + $0x248] sm:$0xff] %v271_v9  ;;  %v399_v9 = vld [vmem:[%s4247_s23 + $0x888] sm:$0xff] }
  0x5d   : > { %274 = vst [vmem:[%s4252_s24 + $0x250] sm:$0xff] %v273_v10  ;;  %v401_v10 = vld [vmem:[%s4247_s23 + $0x8a0] sm:$0xff] }
  0x5e   : > { %276 = vst [vmem:[%s4252_s24 + $0x258] sm:$0xff] %v275_v11  ;;  %v403_v11 = vld [vmem:[%s4247_s23 + $0x8a8] sm:$0xff] }
  0x5f   : > { %278 = vst [vmem:[%s4252_s24 + $0x260] sm:$0xff] %v277_v12  ;;  %v405_v12 = vld [vmem:[%s4247_s23 + $0x8c0] sm:$0xff] }
  0x60   : > { %280 = vst [vmem:[%s4252_s24 + $0x268] sm:$0xff] %v279_v13  ;;  %v407_v13 = vld [vmem:[%s4247_s23 + $0x8c8] sm:$0xff] }
  0x61   : > { %282 = vst [vmem:[%s4252_s24 + $0x270] sm:$0xff] %v281_v14  ;;  %v409_v14 = vld [vmem:[%s4247_s23 + $0x8e0] sm:$0xff] }
  0x62   : > { %284 = vst [vmem:[%s4252_s24 + $0x278] sm:$0xff] %v283_v15  ;;  %v411_v15 = vld [vmem:[%s4247_s23 + $0x8e8] sm:$0xff] }
  0x63   : > { %286 = vst [vmem:[%s4252_s24 + $0x280] sm:$0xff] %v285_v16  ;;  %v413_v16 = vld [vmem:[%s4247_s23 + $0x900] sm:$0xff] }
  0x64   : > { %288 = vst [vmem:[%s4252_s24 + $0x288] sm:$0xff] %v287_v17  ;;  %v415_v17 = vld [vmem:[%s4247_s23 + $0x908] sm:$0xff] }
  0x65   : > { %290 = vst [vmem:[%s4252_s24 + $0x290] sm:$0xff] %v289_v18  ;;  %v417_v18 = vld [vmem:[%s4247_s23 + $0x920] sm:$0xff] }
  0x66   : > { %292 = vst [vmem:[%s4252_s24 + $0x298] sm:$0xff] %v291_v19  ;;  %v419_v19 = vld [vmem:[%s4247_s23 + $0x928] sm:$0xff] }
  0x67   : > { %294 = vst [vmem:[%s4252_s24 + $0x2a0] sm:$0xff] %v293_v20  ;;  %v421_v20 = vld [vmem:[%s4247_s23 + $0x940] sm:$0xff] }
  0x68   : > { %296 = vst [vmem:[%s4252_s24 + $0x2a8] sm:$0xff] %v295_v21  ;;  %v423_v21 = vld [vmem:[%s4247_s23 + $0x948] sm:$0xff] }
  0x69   : > { %298 = vst [vmem:[%s4252_s24 + $0x2b0] sm:$0xff] %v297_v22  ;;  %v425_v22 = vld [vmem:[%s4247_s23 + $0x960] sm:$0xff] }
  0x6a   : > { %300 = vst [vmem:[%s4252_s24 + $0x2b8] sm:$0xff] %v299_v23  ;;  %v427_v23 = vld [vmem:[%s4247_s23 + $0x968] sm:$0xff] }
  0x6b   : > { %302 = vst [vmem:[%s4252_s24 + $0x2c0] sm:$0xff] %v301_v24  ;;  %v429_v24 = vld [vmem:[%s4247_s23 + $0x980] sm:$0xff] }
  0x6c   : > { %304 = vst [vmem:[%s4252_s24 + $0x2c8] sm:$0xff] %v303_v25  ;;  %v431_v25 = vld [vmem:[%s4247_s23 + $0x988] sm:$0xff] }
  0x6d   : > { %306 = vst [vmem:[%s4252_s24 + $0x2d0] sm:$0xff] %v305_v26  ;;  %v433_v26 = vld [vmem:[%s4247_s23 + $0x9a0] sm:$0xff] }
  0x6e   : > { %308 = vst [vmem:[%s4252_s24 + $0x2d8] sm:$0xff] %v307_v27  ;;  %v435_v27 = vld [vmem:[%s4247_s23 + $0x9a8] sm:$0xff] }
  0x6f   : > { %310 = vst [vmem:[%s4252_s24 + $0x2e0] sm:$0xff] %v309_v28  ;;  %v437_v28 = vld [vmem:[%s4247_s23 + $0x9c0] sm:$0xff] }
  0x70   : > { %312 = vst [vmem:[%s4252_s24 + $0x2e8] sm:$0xff] %v311_v29  ;;  %v439_v29 = vld [vmem:[%s4247_s23 + $0x9c8] sm:$0xff] }
  0x71   : > { %314 = vst [vmem:[%s4252_s24 + $0x2f0] sm:$0xff] %v313_v30  ;;  %v441_v30 = vld [vmem:[%s4247_s23 + $0x9e0] sm:$0xff] }
  0x72   : > { %316 = vst [vmem:[%s4252_s24 + $0x2f8] sm:$0xff] %v315_v31  ;;  %v443_v31 = vld [vmem:[%s4247_s23 + $0x9e8] sm:$0xff] }
  0x73   : > { %318 = vst [vmem:[%s4252_s24 + $0x300] sm:$0xff] %v317_v32  ;;  %v445_v32 = vld [vmem:[%s4247_s23 + $0xa00] sm:$0xff] }
  0x74   : > { %320 = vst [vmem:[%s4252_s24 + $0x308] sm:$0xff] %v319_v33  ;;  %v447_v33 = vld [vmem:[%s4247_s23 + $0xa08] sm:$0xff] }
  0x75   : > { %322 = vst [vmem:[%s4252_s24 + $0x310] sm:$0xff] %v321_v34  ;;  %v449_v34 = vld [vmem:[%s4247_s23 + $0xa20] sm:$0xff] }
  0x76   : > { %324 = vst [vmem:[%s4252_s24 + $0x318] sm:$0xff] %v323_v35  ;;  %v451_v35 = vld [vmem:[%s4247_s23 + $0xa28] sm:$0xff] }
  0x77   : > { %326 = vst [vmem:[%s4252_s24 + $0x320] sm:$0xff] %v325_v36  ;;  %v453_v36 = vld [vmem:[%s4247_s23 + $0xa40] sm:$0xff] }
  0x78   : > { %328 = vst [vmem:[%s4252_s24 + $0x328] sm:$0xff] %v327_v37  ;;  %v455_v37 = vld [vmem:[%s4247_s23 + $0xa48] sm:$0xff] }
  0x79   : > { %330 = vst [vmem:[%s4252_s24 + $0x330] sm:$0xff] %v329_v38  ;;  %v457_v38 = vld [vmem:[%s4247_s23 + $0xa60] sm:$0xff] }
  0x7a   : > { %332 = vst [vmem:[%s4252_s24 + $0x338] sm:$0xff] %v331_v39  ;;  %v459_v39 = vld [vmem:[%s4247_s23 + $0xa68] sm:$0xff] }
  0x7b   : > { %334 = vst [vmem:[%s4252_s24 + $0x340] sm:$0xff] %v333_v40  ;;  %v461_v40 = vld [vmem:[%s4247_s23 + $0xa80] sm:$0xff] }
  0x7c   : > { %336 = vst [vmem:[%s4252_s24 + $0x348] sm:$0xff] %v335_v41  ;;  %v463_v41 = vld [vmem:[%s4247_s23 + $0xa88] sm:$0xff] }
  0x7d   : > { %338 = vst [vmem:[%s4252_s24 + $0x350] sm:$0xff] %v337_v42  ;;  %v465_v42 = vld [vmem:[%s4247_s23 + $0xaa0] sm:$0xff] }
  0x7e   : > { %340 = vst [vmem:[%s4252_s24 + $0x358] sm:$0xff] %v339_v43  ;;  %v467_v43 = vld [vmem:[%s4247_s23 + $0xaa8] sm:$0xff] }
  0x7f   : > { %342 = vst [vmem:[%s4252_s24 + $0x360] sm:$0xff] %v341_v44  ;;  %v469_v44 = vld [vmem:[%s4247_s23 + $0xac0] sm:$0xff] }
  0x80   : > { %344 = vst [vmem:[%s4252_s24 + $0x368] sm:$0xff] %v343_v45  ;;  %v471_v45 = vld [vmem:[%s4247_s23 + $0xac8] sm:$0xff] }
  0x81   : > { %346 = vst [vmem:[%s4252_s24 + $0x370] sm:$0xff] %v345_v46  ;;  %v473_v46 = vld [vmem:[%s4247_s23 + $0xae0] sm:$0xff] }
  0x82   : > { %348 = vst [vmem:[%s4252_s24 + $0x378] sm:$0xff] %v347_v47  ;;  %v475_v47 = vld [vmem:[%s4247_s23 + $0xae8] sm:$0xff] }
  0x83   : > { %350 = vst [vmem:[%s4252_s24 + $0x380] sm:$0xff] %v349_v48  ;;  %v477_v48 = vld [vmem:[%s4247_s23 + $0xb00] sm:$0xff] }
  0x84   : > { %352 = vst [vmem:[%s4252_s24 + $0x388] sm:$0xff] %v351_v49  ;;  %v479_v49 = vld [vmem:[%s4247_s23 + $0xb08] sm:$0xff] }
  0x85   : > { %354 = vst [vmem:[%s4252_s24 + $0x390] sm:$0xff] %v353_v50  ;;  %v481_v50 = vld [vmem:[%s4247_s23 + $0xb20] sm:$0xff] }
  0x86   : > { %356 = vst [vmem:[%s4252_s24 + $0x398] sm:$0xff] %v355_v51  ;;  %v483_v51 = vld [vmem:[%s4247_s23 + $0xb28] sm:$0xff] }
  0x87   : > { %358 = vst [vmem:[%s4252_s24 + $0x3a0] sm:$0xff] %v357_v52  ;;  %v485_v52 = vld [vmem:[%s4247_s23 + $0xb40] sm:$0xff] }
  0x88   : > { %360 = vst [vmem:[%s4252_s24 + $0x3a8] sm:$0xff] %v359_v53  ;;  %v487_v53 = vld [vmem:[%s4247_s23 + $0xb48] sm:$0xff] }
  0x89   : > { %362 = vst [vmem:[%s4252_s24 + $0x3b0] sm:$0xff] %v361_v54  ;;  %v489_v54 = vld [vmem:[%s4247_s23 + $0xb60] sm:$0xff] }
  0x8a   : > { %364 = vst [vmem:[%s4252_s24 + $0x3b8] sm:$0xff] %v363_v55  ;;  %v491_v55 = vld [vmem:[%s4247_s23 + $0xb68] sm:$0xff] }
  0x8b   : > { %366 = vst [vmem:[%s4252_s24 + $0x3c0] sm:$0xff] %v365_v56  ;;  %v493_v56 = vld [vmem:[%s4247_s23 + $0xb80] sm:$0xff] }
  0x8c   : > { %368 = vst [vmem:[%s4252_s24 + $0x3c8] sm:$0xff] %v367_v57  ;;  %v495_v57 = vld [vmem:[%s4247_s23 + $0xb88] sm:$0xff] }
  0x8d   : > { %370 = vst [vmem:[%s4252_s24 + $0x3d0] sm:$0xff] %v369_v58  ;;  %v497_v58 = vld [vmem:[%s4247_s23 + $0xba0] sm:$0xff] }
  0x8e   : > { %372 = vst [vmem:[%s4252_s24 + $0x3d8] sm:$0xff] %v371_v59  ;;  %v499_v59 = vld [vmem:[%s4247_s23 + $0xba8] sm:$0xff] }
  0x8f   : > { %374 = vst [vmem:[%s4252_s24 + $0x3e0] sm:$0xff] %v373_v60  ;;  %v501_v60 = vld [vmem:[%s4247_s23 + $0xbc0] sm:$0xff] }
  0x90   : > { %376 = vst [vmem:[%s4252_s24 + $0x3e8] sm:$0xff] %v375_v61  ;;  %v503_v61 = vld [vmem:[%s4247_s23 + $0xbc8] sm:$0xff] }
  0x91   : > { %378 = vst [vmem:[%s4252_s24 + $0x3f0] sm:$0xff] %v377_v62  ;;  %v505_v62 = vld [vmem:[%s4247_s23 + $0xbe0] sm:$0xff] }
  0x92   : > { %380 = vst [vmem:[%s4252_s24 + $0x3f8] sm:$0xff] %v379_v63  ;;  %v507_v63 = vld [vmem:[%s4247_s23 + $0xbe8] sm:$0xff] }
  0x93   : > { %382 = vst [vmem:[%s4252_s24 + $0x400] sm:$0xff] %v381_v0  ;;  %v509_v0 = vld [vmem:[%s4247_s23 + $0xc00] sm:$0xff] }
  0x94   : > { %384 = vst [vmem:[%s4252_s24 + $0x408] sm:$0xff] %v383_v1  ;;  %v511_v1 = vld [vmem:[%s4247_s23 + $0xc08] sm:$0xff] }
  0x95   : > { %386 = vst [vmem:[%s4252_s24 + $0x410] sm:$0xff] %v385_v2  ;;  %v513_v2 = vld [vmem:[%s4247_s23 + $0xc20] sm:$0xff] }
  0x96   : > { %388 = vst [vmem:[%s4252_s24 + $0x418] sm:$0xff] %v387_v3  ;;  %v515_v3 = vld [vmem:[%s4247_s23 + $0xc28] sm:$0xff] }
  0x97   : > { %390 = vst [vmem:[%s4252_s24 + $0x420] sm:$0xff] %v389_v4  ;;  %v517_v4 = vld [vmem:[%s4247_s23 + $0xc40] sm:$0xff] }
  0x98   : > { %392 = vst [vmem:[%s4252_s24 + $0x428] sm:$0xff] %v391_v5  ;;  %v519_v5 = vld [vmem:[%s4247_s23 + $0xc48] sm:$0xff] }
  0x99   : > { %394 = vst [vmem:[%s4252_s24 + $0x430] sm:$0xff] %v393_v6  ;;  %v521_v6 = vld [vmem:[%s4247_s23 + $0xc60] sm:$0xff] }
  0x9a   : > { %396 = vst [vmem:[%s4252_s24 + $0x438] sm:$0xff] %v395_v7  ;;  %v523_v7 = vld [vmem:[%s4247_s23 + $0xc68] sm:$0xff] }
  0x9b   : > { %398 = vst [vmem:[%s4252_s24 + $0x440] sm:$0xff] %v397_v8  ;;  %v525_v8 = vld [vmem:[%s4247_s23 + $0xc80] sm:$0xff] }
  0x9c   : > { %400 = vst [vmem:[%s4252_s24 + $0x448] sm:$0xff] %v399_v9  ;;  %v527_v9 = vld [vmem:[%s4247_s23 + $0xc88] sm:$0xff] }
  0x9d   : > { %402 = vst [vmem:[%s4252_s24 + $0x450] sm:$0xff] %v401_v10  ;;  %v529_v10 = vld [vmem:[%s4247_s23 + $0xca0] sm:$0xff] }
  0x9e   : > { %404 = vst [vmem:[%s4252_s24 + $0x458] sm:$0xff] %v403_v11  ;;  %v531_v11 = vld [vmem:[%s4247_s23 + $0xca8] sm:$0xff] }
  0x9f   : > { %406 = vst [vmem:[%s4252_s24 + $0x460] sm:$0xff] %v405_v12  ;;  %v533_v12 = vld [vmem:[%s4247_s23 + $0xcc0] sm:$0xff] }
  0xa0   : > { %408 = vst [vmem:[%s4252_s24 + $0x468] sm:$0xff] %v407_v13  ;;  %v535_v13 = vld [vmem:[%s4247_s23 + $0xcc8] sm:$0xff] }
  0xa1   : > { %410 = vst [vmem:[%s4252_s24 + $0x470] sm:$0xff] %v409_v14  ;;  %v537_v14 = vld [vmem:[%s4247_s23 + $0xce0] sm:$0xff] }
  0xa2   : > { %412 = vst [vmem:[%s4252_s24 + $0x478] sm:$0xff] %v411_v15  ;;  %v539_v15 = vld [vmem:[%s4247_s23 + $0xce8] sm:$0xff] }
  0xa3   : > { %414 = vst [vmem:[%s4252_s24 + $0x480] sm:$0xff] %v413_v16  ;;  %v541_v16 = vld [vmem:[%s4247_s23 + $0xd00] sm:$0xff] }
  0xa4   : > { %416 = vst [vmem:[%s4252_s24 + $0x488] sm:$0xff] %v415_v17  ;;  %v543_v17 = vld [vmem:[%s4247_s23 + $0xd08] sm:$0xff] }
  0xa5   : > { %418 = vst [vmem:[%s4252_s24 + $0x490] sm:$0xff] %v417_v18  ;;  %v545_v18 = vld [vmem:[%s4247_s23 + $0xd20] sm:$0xff] }
  0xa6   : > { %420 = vst [vmem:[%s4252_s24 + $0x498] sm:$0xff] %v419_v19  ;;  %v547_v19 = vld [vmem:[%s4247_s23 + $0xd28] sm:$0xff] }
  0xa7   : > { %422 = vst [vmem:[%s4252_s24 + $0x4a0] sm:$0xff] %v421_v20  ;;  %v549_v20 = vld [vmem:[%s4247_s23 + $0xd40] sm:$0xff] }
  0xa8   : > { %424 = vst [vmem:[%s4252_s24 + $0x4a8] sm:$0xff] %v423_v21  ;;  %v551_v21 = vld [vmem:[%s4247_s23 + $0xd48] sm:$0xff] }
  0xa9   : > { %426 = vst [vmem:[%s4252_s24 + $0x4b0] sm:$0xff] %v425_v22  ;;  %v553_v22 = vld [vmem:[%s4247_s23 + $0xd60] sm:$0xff] }
  0xaa   : > { %428 = vst [vmem:[%s4252_s24 + $0x4b8] sm:$0xff] %v427_v23  ;;  %v555_v23 = vld [vmem:[%s4247_s23 + $0xd68] sm:$0xff] }
  0xab   : > { %430 = vst [vmem:[%s4252_s24 + $0x4c0] sm:$0xff] %v429_v24  ;;  %v557_v24 = vld [vmem:[%s4247_s23 + $0xd80] sm:$0xff] }
  0xac   : > { %432 = vst [vmem:[%s4252_s24 + $0x4c8] sm:$0xff] %v431_v25  ;;  %v559_v25 = vld [vmem:[%s4247_s23 + $0xd88] sm:$0xff] }
  0xad   : > { %434 = vst [vmem:[%s4252_s24 + $0x4d0] sm:$0xff] %v433_v26  ;;  %v561_v26 = vld [vmem:[%s4247_s23 + $0xda0] sm:$0xff] }
  0xae   : > { %436 = vst [vmem:[%s4252_s24 + $0x4d8] sm:$0xff] %v435_v27  ;;  %v563_v27 = vld [vmem:[%s4247_s23 + $0xda8] sm:$0xff] }
  0xaf   : > { %438 = vst [vmem:[%s4252_s24 + $0x4e0] sm:$0xff] %v437_v28  ;;  %v565_v28 = vld [vmem:[%s4247_s23 + $0xdc0] sm:$0xff] }
  0xb0   : > { %440 = vst [vmem:[%s4252_s24 + $0x4e8] sm:$0xff] %v439_v29  ;;  %v567_v29 = vld [vmem:[%s4247_s23 + $0xdc8] sm:$0xff] }
  0xb1   : > { %442 = vst [vmem:[%s4252_s24 + $0x4f0] sm:$0xff] %v441_v30  ;;  %v569_v30 = vld [vmem:[%s4247_s23 + $0xde0] sm:$0xff] }
  0xb2   : > { %444 = vst [vmem:[%s4252_s24 + $0x4f8] sm:$0xff] %v443_v31  ;;  %v571_v31 = vld [vmem:[%s4247_s23 + $0xde8] sm:$0xff] }
  0xb3   : > { %446 = vst [vmem:[%s4252_s24 + $0x500] sm:$0xff] %v445_v32  ;;  %v573_v32 = vld [vmem:[%s4247_s23 + $0xe00] sm:$0xff] }
  0xb4   : > { %448 = vst [vmem:[%s4252_s24 + $0x508] sm:$0xff] %v447_v33  ;;  %v575_v33 = vld [vmem:[%s4247_s23 + $0xe08] sm:$0xff] }
  0xb5   : > { %450 = vst [vmem:[%s4252_s24 + $0x510] sm:$0xff] %v449_v34  ;;  %v577_v34 = vld [vmem:[%s4247_s23 + $0xe20] sm:$0xff] }
  0xb6   : > { %452 = vst [vmem:[%s4252_s24 + $0x518] sm:$0xff] %v451_v35  ;;  %v579_v35 = vld [vmem:[%s4247_s23 + $0xe28] sm:$0xff] }
  0xb7   : > { %454 = vst [vmem:[%s4252_s24 + $0x520] sm:$0xff] %v453_v36  ;;  %v581_v36 = vld [vmem:[%s4247_s23 + $0xe40] sm:$0xff] }
  0xb8   : > { %456 = vst [vmem:[%s4252_s24 + $0x528] sm:$0xff] %v455_v37  ;;  %v583_v37 = vld [vmem:[%s4247_s23 + $0xe48] sm:$0xff] }
  0xb9   : > { %458 = vst [vmem:[%s4252_s24 + $0x530] sm:$0xff] %v457_v38  ;;  %v585_v38 = vld [vmem:[%s4247_s23 + $0xe60] sm:$0xff] }
  0xba   : > { %460 = vst [vmem:[%s4252_s24 + $0x538] sm:$0xff] %v459_v39  ;;  %v587_v39 = vld [vmem:[%s4247_s23 + $0xe68] sm:$0xff] }
  0xbb   : > { %462 = vst [vmem:[%s4252_s24 + $0x540] sm:$0xff] %v461_v40  ;;  %v589_v40 = vld [vmem:[%s4247_s23 + $0xe80] sm:$0xff] }
  0xbc   : > { %464 = vst [vmem:[%s4252_s24 + $0x548] sm:$0xff] %v463_v41  ;;  %v591_v41 = vld [vmem:[%s4247_s23 + $0xe88] sm:$0xff] }
  0xbd   : > { %466 = vst [vmem:[%s4252_s24 + $0x550] sm:$0xff] %v465_v42  ;;  %v593_v42 = vld [vmem:[%s4247_s23 + $0xea0] sm:$0xff] }
  0xbe   : > { %468 = vst [vmem:[%s4252_s24 + $0x558] sm:$0xff] %v467_v43  ;;  %v595_v43 = vld [vmem:[%s4247_s23 + $0xea8] sm:$0xff] }
  0xbf   : > { %470 = vst [vmem:[%s4252_s24 + $0x560] sm:$0xff] %v469_v44  ;;  %v597_v44 = vld [vmem:[%s4247_s23 + $0xec0] sm:$0xff] }
  0xc0   : > { %472 = vst [vmem:[%s4252_s24 + $0x568] sm:$0xff] %v471_v45  ;;  %v599_v45 = vld [vmem:[%s4247_s23 + $0xec8] sm:$0xff] }
  0xc1   : > { %474 = vst [vmem:[%s4252_s24 + $0x570] sm:$0xff] %v473_v46  ;;  %v601_v46 = vld [vmem:[%s4247_s23 + $0xee0] sm:$0xff] }
  0xc2   : > { %476 = vst [vmem:[%s4252_s24 + $0x578] sm:$0xff] %v475_v47  ;;  %v603_v47 = vld [vmem:[%s4247_s23 + $0xee8] sm:$0xff] }
  0xc3   : > { %478 = vst [vmem:[%s4252_s24 + $0x580] sm:$0xff] %v477_v48  ;;  %v605_v48 = vld [vmem:[%s4247_s23 + $0xf00] sm:$0xff] }
  0xc4   : > { %480 = vst [vmem:[%s4252_s24 + $0x588] sm:$0xff] %v479_v49  ;;  %v607_v49 = vld [vmem:[%s4247_s23 + $0xf08] sm:$0xff] }
  0xc5   : > { %482 = vst [vmem:[%s4252_s24 + $0x590] sm:$0xff] %v481_v50  ;;  %v609_v50 = vld [vmem:[%s4247_s23 + $0xf20] sm:$0xff] }
  0xc6   : > { %484 = vst [vmem:[%s4252_s24 + $0x598] sm:$0xff] %v483_v51  ;;  %v611_v51 = vld [vmem:[%s4247_s23 + $0xf28] sm:$0xff] }
  0xc7   : > { %486 = vst [vmem:[%s4252_s24 + $0x5a0] sm:$0xff] %v485_v52  ;;  %v613_v52 = vld [vmem:[%s4247_s23 + $0xf40] sm:$0xff] }
  0xc8   : > { %488 = vst [vmem:[%s4252_s24 + $0x5a8] sm:$0xff] %v487_v53  ;;  %v615_v53 = vld [vmem:[%s4247_s23 + $0xf48] sm:$0xff] }
  0xc9   : > { %490 = vst [vmem:[%s4252_s24 + $0x5b0] sm:$0xff] %v489_v54  ;;  %v617_v54 = vld [vmem:[%s4247_s23 + $0xf60] sm:$0xff] }
  0xca   : > { %492 = vst [vmem:[%s4252_s24 + $0x5b8] sm:$0xff] %v491_v55  ;;  %v619_v55 = vld [vmem:[%s4247_s23 + $0xf68] sm:$0xff] }
  0xcb   : > { %494 = vst [vmem:[%s4252_s24 + $0x5c0] sm:$0xff] %v493_v56  ;;  %v621_v56 = vld [vmem:[%s4247_s23 + $0xf80] sm:$0xff] }
  0xcc   : > { %496 = vst [vmem:[%s4252_s24 + $0x5c8] sm:$0xff] %v495_v57  ;;  %v623_v57 = vld [vmem:[%s4247_s23 + $0xf88] sm:$0xff] }
  0xcd   : > { %498 = vst [vmem:[%s4252_s24 + $0x5d0] sm:$0xff] %v497_v58  ;;  %v625_v58 = vld [vmem:[%s4247_s23 + $0xfa0] sm:$0xff] }
  0xce   : > { %500 = vst [vmem:[%s4252_s24 + $0x5d8] sm:$0xff] %v499_v59  ;;  %v627_v59 = vld [vmem:[%s4247_s23 + $0xfa8] sm:$0xff] }
  0xcf   : > { %502 = vst [vmem:[%s4252_s24 + $0x5e0] sm:$0xff] %v501_v60  ;;  %v629_v60 = vld [vmem:[%s4247_s23 + $0xfc0] sm:$0xff] }
  0xd0   : > { %504 = vst [vmem:[%s4252_s24 + $0x5e8] sm:$0xff] %v503_v61  ;;  %v631_v61 = vld [vmem:[%s4247_s23 + $0xfc8] sm:$0xff] }
  0xd1   : > { %506 = vst [vmem:[%s4252_s24 + $0x5f0] sm:$0xff] %v505_v62  ;;  %v633_v62 = vld [vmem:[%s4247_s23 + $0xfe0] sm:$0xff] }
  0xd2   : > { %508 = vst [vmem:[%s4252_s24 + $0x5f8] sm:$0xff] %v507_v63  ;;  %v635_v63 = vld [vmem:[%s4247_s23 + $0xfe8] sm:$0xff] }
  0xd3   : > { %510 = vst [vmem:[%s4252_s24 + $0x600] sm:$0xff] %v509_v0 }
  0xd4   : > { %512 = vst [vmem:[%s4252_s24 + $0x608] sm:$0xff] %v511_v1 }
  0xd5   : > { %514 = vst [vmem:[%s4252_s24 + $0x610] sm:$0xff] %v513_v2 }
  0xd6   : > { %516 = vst [vmem:[%s4252_s24 + $0x618] sm:$0xff] %v515_v3 }
  0xd7   : > { %518 = vst [vmem:[%s4252_s24 + $0x620] sm:$0xff] %v517_v4 }
  0xd8   : > { %520 = vst [vmem:[%s4252_s24 + $0x628] sm:$0xff] %v519_v5 }
  0xd9   : > { %522 = vst [vmem:[%s4252_s24 + $0x630] sm:$0xff] %v521_v6 }
  0xda   : > { %524 = vst [vmem:[%s4252_s24 + $0x638] sm:$0xff] %v523_v7 }
  0xdb   : > { %526 = vst [vmem:[%s4252_s24 + $0x640] sm:$0xff] %v525_v8 }
  0xdc   : > { %528 = vst [vmem:[%s4252_s24 + $0x648] sm:$0xff] %v527_v9 }
  0xdd   : > { %530 = vst [vmem:[%s4252_s24 + $0x650] sm:$0xff] %v529_v10 }
  0xde   : > { %532 = vst [vmem:[%s4252_s24 + $0x658] sm:$0xff] %v531_v11 }
  0xdf   : > { %534 = vst [vmem:[%s4252_s24 + $0x660] sm:$0xff] %v533_v12 }
  0xe0   : > { %536 = vst [vmem:[%s4252_s24 + $0x668] sm:$0xff] %v535_v13 }
  0xe1   : > { %538 = vst [vmem:[%s4252_s24 + $0x670] sm:$0xff] %v537_v14 }
  0xe2   : > { %540 = vst [vmem:[%s4252_s24 + $0x678] sm:$0xff] %v539_v15 }
  0xe3   : > { %542 = vst [vmem:[%s4252_s24 + $0x680] sm:$0xff] %v541_v16 }
  0xe4   : > { %544 = vst [vmem:[%s4252_s24 + $0x688] sm:$0xff] %v543_v17 }
  0xe5   : > { %546 = vst [vmem:[%s4252_s24 + $0x690] sm:$0xff] %v545_v18 }
  0xe6   : > { %548 = vst [vmem:[%s4252_s24 + $0x698] sm:$0xff] %v547_v19 }
  0xe7   : > { %550 = vst [vmem:[%s4252_s24 + $0x6a0] sm:$0xff] %v549_v20 }
  0xe8   : > { %552 = vst [vmem:[%s4252_s24 + $0x6a8] sm:$0xff] %v551_v21 }
  0xe9   : > { %554 = vst [vmem:[%s4252_s24 + $0x6b0] sm:$0xff] %v553_v22 }
  0xea   : > { %556 = vst [vmem:[%s4252_s24 + $0x6b8] sm:$0xff] %v555_v23 }
  0xeb   : > { %558 = vst [vmem:[%s4252_s24 + $0x6c0] sm:$0xff] %v557_v24 }
  0xec   : > { %560 = vst [vmem:[%s4252_s24 + $0x6c8] sm:$0xff] %v559_v25 }
  0xed   : > { %562 = vst [vmem:[%s4252_s24 + $0x6d0] sm:$0xff] %v561_v26 }
  0xee   : > { %564 = vst [vmem:[%s4252_s24 + $0x6d8] sm:$0xff] %v563_v27 }
  0xef   : > { %566 = vst [vmem:[%s4252_s24 + $0x6e0] sm:$0xff] %v565_v28 }
  0xf0   : > { %568 = vst [vmem:[%s4252_s24 + $0x6e8] sm:$0xff] %v567_v29 }
  0xf1   : > { %570 = vst [vmem:[%s4252_s24 + $0x6f0] sm:$0xff] %v569_v30 }
  0xf2   : > { %572 = vst [vmem:[%s4252_s24 + $0x6f8] sm:$0xff] %v571_v31 }
  0xf3   : > { %574 = vst [vmem:[%s4252_s24 + $0x700] sm:$0xff] %v573_v32 }
  0xf4   : > { %576 = vst [vmem:[%s4252_s24 + $0x708] sm:$0xff] %v575_v33 }
  0xf5   : > { %578 = vst [vmem:[%s4252_s24 + $0x710] sm:$0xff] %v577_v34 }
  0xf6   : > { %580 = vst [vmem:[%s4252_s24 + $0x718] sm:$0xff] %v579_v35 }
  0xf7   : > { %582 = vst [vmem:[%s4252_s24 + $0x720] sm:$0xff] %v581_v36 }
  0xf8   : > { %584 = vst [vmem:[%s4252_s24 + $0x728] sm:$0xff] %v583_v37 }
  0xf9   : > { %586 = vst [vmem:[%s4252_s24 + $0x730] sm:$0xff] %v585_v38 }
  0xfa   : > { %588 = vst [vmem:[%s4252_s24 + $0x738] sm:$0xff] %v587_v39 }
  0xfb   : > { %590 = vst [vmem:[%s4252_s24 + $0x740] sm:$0xff] %v589_v40 }
  0xfc   : > { %592 = vst [vmem:[%s4252_s24 + $0x748] sm:$0xff] %v591_v41 }
  0xfd   : > { %594 = vst [vmem:[%s4252_s24 + $0x750] sm:$0xff] %v593_v42 }
  0xfe   : > { %596 = vst [vmem:[%s4252_s24 + $0x758] sm:$0xff] %v595_v43 }
  0xff   : > { %598 = vst [vmem:[%s4252_s24 + $0x760] sm:$0xff] %v597_v44 }
 0x100   : > { %600 = vst [vmem:[%s4252_s24 + $0x768] sm:$0xff] %v599_v45 }
 0x101   : > { %602 = vst [vmem:[%s4252_s24 + $0x770] sm:$0xff] %v601_v46 }
 0x102   : > { %604 = vst [vmem:[%s4252_s24 + $0x778] sm:$0xff] %v603_v47 }
 0x103   : > { %606 = vst [vmem:[%s4252_s24 + $0x780] sm:$0xff] %v605_v48 }
 0x104   : > { %608 = vst [vmem:[%s4252_s24 + $0x788] sm:$0xff] %v607_v49 }
 0x105   : > { %610 = vst [vmem:[%s4252_s24 + $0x790] sm:$0xff] %v609_v50 }
 0x106   : > { %612 = vst [vmem:[%s4252_s24 + $0x798] sm:$0xff] %v611_v51 }
 0x107   : > { %614 = vst [vmem:[%s4252_s24 + $0x7a0] sm:$0xff] %v613_v52 }
 0x108   : > { %616 = vst [vmem:[%s4252_s24 + $0x7a8] sm:$0xff] %v615_v53 }
 0x109   : > { %618 = vst [vmem:[%s4252_s24 + $0x7b0] sm:$0xff] %v617_v54 }
 0x10a   : > { %620 = vst [vmem:[%s4252_s24 + $0x7b8] sm:$0xff] %v619_v55 }
 0x10b   : > { %622 = vst [vmem:[%s4252_s24 + $0x7c0] sm:$0xff] %v621_v56 }
 0x10c   : > { %624 = vst [vmem:[%s4252_s24 + $0x7c8] sm:$0xff] %v623_v57 }
 0x10d   : > { %626 = vst [vmem:[%s4252_s24 + $0x7d0] sm:$0xff] %v625_v58 }
 0x10e   : > { %628 = vst [vmem:[%s4252_s24 + $0x7d8] sm:$0xff] %v627_v59 }
 0x10f   : > { %630 = vst [vmem:[%s4252_s24 + $0x7e0] sm:$0xff] %v629_v60 }
 0x110   : > { %632 = vst [vmem:[%s4252_s24 + $0x7e8] sm:$0xff] %v631_v61 }
 0x111   : > { %634 = vst [vmem:[%s4252_s24 + $0x7f0] sm:$0xff] %v633_v62 }
 0x112   : > { %636 = vst [vmem:[%s4252_s24 + $0x7f8] sm:$0xff] %v635_v63 }
 0x113 PF: > { %p2814_p7 = scmp.ge.s32.totalorder %s4190_s11, 1  ;;  %p641_p8 = scmp.lt.s32.totalorder %s4190_s11, 3 }
 0x115   : > { %p642_p9 = pnand %p2814_p7, %p641_p8 }
 0x116   : > { %s648_s25 = sand.u32 (!%p642_p9), 1, %s4182_s9  }
 0x117   : > { %645 = sbr.rel (%p642_p9) target bundleno = 699 (0x2bb), region = 47  ;;  %s2815_s26 = sshll.u32 (!%p642_p9), %s648_s25, 11 }
 0x118   : > { %s4768_s27 = scalar_lea.vmem (!%p642_p9), [#allocation2], %s2815_s26  ;;  %s5284_s20 = sshll.u32 (!%p642_p9), %s648_s25, 6 }
 0x119   : > { %s5301_s9 = scalar_lea.vmem (!%p642_p9), [#allocation3], %s5284_s20 }
 0x11c   : > { %v2963_v0 = vld [vmem:[%s4768_s27 + $0xe0] sm:$0xf]  ;;  %v3917_v1 = vld [vmem:[%s4768_s27 + $0xec] sm:$0xf0]  ;;  %s4143_s25 = sshll.u32 (%p4237_p5), %s2807_s12, 5 }
 0x11d   : > { %v3091_v2 = vld [vmem:[%s4768_s27 + $0x1e0] sm:$0xf]  ;;  %v2964_v3 = vor.u32 %v3917_v1, %v2963_v0  ;;  %v3949_v4 = vld [vmem:[%s4768_s27 + $0x1ec] sm:$0xf0]  ;;  %s2719_s22 = scalar_lea.vmem (%p4237_p5), %s5420_s2, %s4143_s25 }
 0x11e   : > { %v3219_v5 = vld [vmem:[%s4768_s27 + $0x2e0] sm:$0xf]  ;;  %v3981_v6 = vld [vmem:[%s4768_s27 + $0x2ec] sm:$0xf0]  ;;  %v3092_v7 = vor.u32 %v3949_v4, %v3091_v2 }
 0x11f   : > { %v3220_v8 = vor.u32 %v3981_v6, %v3219_v5  ;;  %v3347_v9 = vld [vmem:[%s4768_s27 + $0x3e0] sm:$0xf]  ;;  %v4013_v10 = vld [vmem:[%s4768_s27 + $0x3ec] sm:$0xf0]  ;;  %2254 = vmatpush.bf16.msra.mxu0 %v2964_v3 }
 0x120   : > { %v2947_v11 = vld [vmem:[%s4768_s27 + $0xc0] sm:$0xf]  ;;  %v3348_v12 = vor.u32 %v4013_v10, %v3347_v9  ;;  %v3913_v13 = vld [vmem:[%s4768_s27 + $0xcc] sm:$0xf0]  ;;  %2268 = vmatpush.bf16.msra.mxu1 %v3092_v7 }
 0x121   : > { %v3075_v14 = vld [vmem:[%s4768_s27 + $0x1c0] sm:$0xf]  ;;  %v3945_v15 = vld [vmem:[%s4768_s27 + $0x1cc] sm:$0xf0]  ;;  %2282 = vmatpush.bf16.msra.mxu2 %v3220_v8  ;;  %v2948_v16 = vor.u32 %v3913_v13, %v2947_v11 }
 0x122   : > { %v3076_v17 = vor.u32 %v3945_v15, %v3075_v14  ;;  %v3203_v18 = vld [vmem:[%s4768_s27 + $0x2c0] sm:$0xf]  ;;  %v3977_v19 = vld [vmem:[%s4768_s27 + $0x2cc] sm:$0xf0]  ;;  %2296 = vmatpush.bf16.msra.mxu3 %v3348_v12 }
 0x123   : > { %v3331_v20 = vld [vmem:[%s4768_s27 + $0x3c0] sm:$0xf]  ;;  %v3204_v21 = vor.u32 %v3977_v19, %v3203_v18  ;;  %v4009_v22 = vld [vmem:[%s4768_s27 + $0x3cc] sm:$0xf0]  ;;  %2255 = vmatpush.bf16.msra.mxu0 %v2948_v16 }
 0x124   : > { %v2931_v23 = vld [vmem:[%s4768_s27 + $0xa0] sm:$0xf]  ;;  %v3909_v24 = vld [vmem:[%s4768_s27 + $0xac] sm:$0xf0]  ;;  %v3332_v25 = vor.u32 %v4009_v22, %v3331_v20  ;;  %2269 = vmatpush.bf16.msra.mxu1 %v3076_v17 }
 0x125   : > { %v3059_v26 = vld [vmem:[%s4768_s27 + $0x1a0] sm:$0xf]  ;;  %v3941_v27 = vld [vmem:[%s4768_s27 + $0x1ac] sm:$0xf0]  ;;  %v2932_v29 = vor.u32 %v3909_v24, %v2931_v23  ;;  %2283 = vmatpush.bf16.msra.mxu2 %v3204_v21 }
 0x126   : > { %v3187_v28 = vld [vmem:[%s4768_s27 + $0x2a0] sm:$0xf]  ;;  %v3973_v30 = vld [vmem:[%s4768_s27 + $0x2ac] sm:$0xf0]  ;;  %v3060_v33 = vor.u32 %v3941_v27, %v3059_v26  ;;  %2297 = vmatpush.bf16.msra.mxu3 %v3332_v25 }
 0x127   : > { %v3315_v31 = vld [vmem:[%s4768_s27 + $0x3a0] sm:$0xf]  ;;  %v4005_v32 = vld [vmem:[%s4768_s27 + $0x3ac] sm:$0xf0]  ;;  %v3188_v34 = vor.u32 %v3973_v30, %v3187_v28  ;;  %2256 = vmatpush.bf16.msra.mxu0 %v2932_v29 }
 0x128   : > { %v2915_v35 = vld [vmem:[%s4768_s27 + $0x80] sm:$0xf]  ;;  %v3905_v36 = vld [vmem:[%s4768_s27 + $0x8c] sm:$0xf0]  ;;  %v3316_v38 = vor.u32 %v4005_v32, %v3315_v31  ;;  %2270 = vmatpush.bf16.msra.mxu1 %v3060_v33 }
 0x129   : > { %v3043_v37 = vld [vmem:[%s4768_s27 + $0x180] sm:$0xf]  ;;  %v3937_v39 = vld [vmem:[%s4768_s27 + $0x18c] sm:$0xf0]  ;;  %v2916_v44 = vor.u32 %v3905_v36, %v2915_v35  ;;  %2284 = vmatpush.bf16.msra.mxu2 %v3188_v34 }
 0x12a   : > { %v3171_v40 = vld [vmem:[%s4768_s27 + $0x280] sm:$0xf]  ;;  %v3969_v41 = vld [vmem:[%s4768_s27 + $0x28c] sm:$0xf0]  ;;  %v3044_v45 = vor.u32 %v3937_v39, %v3043_v37  ;;  %2298 = vmatpush.bf16.msra.mxu3 %v3316_v38 }
 0x12b   : > { %v3299_v42 = vld [vmem:[%s4768_s27 + $0x380] sm:$0xf]  ;;  %v4001_v43 = vld [vmem:[%s4768_s27 + $0x38c] sm:$0xf0]  ;;  %v3172_v46 = vor.u32 %v3969_v41, %v3171_v40  ;;  %2257 = vmatpush.bf16.msra.mxu0 %v2916_v44 }
 0x12c   : > { %v2899_v47 = vld [vmem:[%s4768_s27 + $0x60] sm:$0xf]  ;;  %v3901_v48 = vld [vmem:[%s4768_s27 + $0x6c] sm:$0xf0]  ;;  %v3300_v50 = vor.u32 %v4001_v43, %v3299_v42  ;;  %2271 = vmatpush.bf16.msra.mxu1 %v3044_v45 }
 0x12d   : > { %v3027_v49 = vld [vmem:[%s4768_s27 + $0x160] sm:$0xf]  ;;  %v3933_v51 = vld [vmem:[%s4768_s27 + $0x16c] sm:$0xf0]  ;;  %v2900_v56 = vor.u32 %v3901_v48, %v2899_v47  ;;  %2285 = vmatpush.bf16.msra.mxu2 %v3172_v46 }
 0x12e   : > { %v3155_v52 = vld [vmem:[%s4768_s27 + $0x260] sm:$0xf]  ;;  %v3965_v53 = vld [vmem:[%s4768_s27 + $0x26c] sm:$0xf0]  ;;  %v3028_v57 = vor.u32 %v3933_v51, %v3027_v49  ;;  %2299 = vmatpush.bf16.msra.mxu3 %v3300_v50 }
 0x12f   : > { %v3283_v54 = vld [vmem:[%s4768_s27 + $0x360] sm:$0xf]  ;;  %v3997_v55 = vld [vmem:[%s4768_s27 + $0x36c] sm:$0xf0]  ;;  %v3156_v58 = vor.u32 %v3965_v53, %v3155_v52  ;;  %2258 = vmatpush.bf16.msra.mxu0 %v2900_v56 }
 0x130   : > { %v2883_v59 = vld [vmem:[%s4768_s27 + $0x40] sm:$0xf]  ;;  %v3897_v60 = vld [vmem:[%s4768_s27 + $0x4c] sm:$0xf0]  ;;  %v3284_v62 = vor.u32 %v3997_v55, %v3283_v54  ;;  %2272 = vmatpush.bf16.msra.mxu1 %v3028_v57  ;;  %v2827_v54 = vld [vmem:[%s5418_s0 + $0x8] sm:$0xf] }
 0x131   : > { %v3011_v61 = vld [vmem:[%s4768_s27 + $0x140] sm:$0xf]  ;;  %v3929_v63 = vld [vmem:[%s4768_s27 + $0x14c] sm:$0xf0]  ;;  %v2884_v4 = vor.u32 %v3897_v60, %v2883_v59  ;;  %2286 = vmatpush.bf16.msra.mxu2 %v3156_v58  ;;  %v3884_v59 = vld [vmem:[%s5418_s0 + $0x24] sm:$0xf0] }
 0x132   : > { %v3139_v0 = vld [vmem:[%s4768_s27 + $0x240] sm:$0xf]  ;;  %v3961_v1 = vld [vmem:[%s4768_s27 + $0x24c] sm:$0xf0]  ;;  %v3012_v5 = vor.u32 %v3929_v63, %v3011_v61  ;;  %2300 = vmatpush.bf16.msra.mxu3 %v3284_v62 }
 0x133   : > { %v3267_v2 = vld [vmem:[%s4768_s27 + $0x340] sm:$0xf]  ;;  %v3993_v3 = vld [vmem:[%s4768_s27 + $0x34c] sm:$0xf0]  ;;  %v3140_v6 = vor.u32 %v3961_v1, %v3139_v0  ;;  %2259 = vmatpush.bf16.msra.mxu0 %v2884_v4  ;;  %v4869_v1 = vor.u32 %v3884_v59, %v2827_v54 }
 0x134   : > { %v2867_v7 = vld [vmem:[%s4768_s27 + $0x20] sm:$0xf]  ;;  %v3893_v8 = vld [vmem:[%s4768_s27 + $0x2c] sm:$0xf0]  ;;  %v3268_v10 = vor.u32 %v3993_v3, %v3267_v2  ;;  %2273 = vmatpush.bf16.msra.mxu1 %v3012_v5 }
 0x135   : > { %v2995_v9 = vld [vmem:[%s4768_s27 + $0x120] sm:$0xf]  ;;  %v3925_v11 = vld [vmem:[%s4768_s27 + $0x12c] sm:$0xf0]  ;;  %v2868_v16 = vor.u32 %v3893_v8, %v2867_v7  ;;  %2287 = vmatpush.bf16.msra.mxu2 %v3140_v6  ;;  %v3879_v6 = vld [vmem:[%s5418_s0 + $0x4] sm:$0xf] }
 0x136   : > { %v3123_v12 = vld [vmem:[%s4768_s27 + $0x220] sm:$0xf]  ;;  %v3957_v13 = vld [vmem:[%s4768_s27 + $0x22c] sm:$0xf0]  ;;  %v2996_v19 = vor.u32 %v3925_v11, %v2995_v9  ;;  %2301 = vmatpush.bf16.msra.mxu3 %v3268_v10  ;;  %v2821_v7 = vld [vmem:[%s5418_s0 + $0x20] sm:$0xf0] }
 0x137   : > { %v3251_v14 = vld [vmem:[%s4768_s27 + $0x320] sm:$0xf]  ;;  %v3989_v15 = vld [vmem:[%s4768_s27 + $0x32c] sm:$0xf0]  ;;  %v3124_v20 = vor.u32 %v3957_v13, %v3123_v12  ;;  %2260 = vmatpush.bf16.msra.mxu0 %v2868_v16  ;;  %v3880_v8 = vld [vmem:[%s5418_s0 + $0xc] sm:$0xf]  ;;  %v4885_v10 = vor.u32 %v3879_v6, %v2821_v7 }
 0x138   : > { %v2851_v17 = vld [vmem:[%s4768_s27] sm:$0xf]  ;;  %v3889_v18 = vld [vmem:[%s4768_s27 + $0xc] sm:$0xf0]  ;;  %v3252_v24 = vor.u32 %v3989_v15, %v3251_v14  ;;  %2274 = vmatpush.bf16.msra.mxu1 %v2996_v19  ;;  %v2829_v11 = vld [vmem:[%s5418_s0 + $0x28] sm:$0xf0] }
 0x139   : > { %v2979_v21 = vld [vmem:[%s4768_s27 + $0x100] sm:$0xf]  ;;  %v3921_v22 = vld [vmem:[%s4768_s27 + $0x10c] sm:$0xf0]  ;;  %v2852_v31 = vor.u32 %v3889_v18, %v2851_v17  ;;  %2288 = vmatpush.bf16.msra.mxu2 %v3124_v20  ;;  %v4893_v17 = vor.u32 %v3880_v8, %v2829_v11 }
 0x13a   : > { %v3107_v23 = vld [vmem:[%s4768_s27 + $0x200] sm:$0xf]  ;;  %v3953_v25 = vld [vmem:[%s4768_s27 + $0x20c] sm:$0xf0]  ;;  %v2980_v35 = vor.u32 %v3921_v22, %v2979_v21  ;;  %2302 = vmatpush.bf16.msra.mxu3 %v3252_v24 }
 0x13b   : > { %v3235_v26 = vld [vmem:[%s4768_s27 + $0x300] sm:$0xf]  ;;  %v3985_v27 = vld [vmem:[%s4768_s27 + $0x30c] sm:$0xf0]  ;;  %v3108_v36 = vor.u32 %v3953_v25, %v3107_v23  ;;  %2261 = vmatpush.bf16.msra.mxu0 %v2852_v31 }
 0x13c   : > { %v3475_v28 = vld [vmem:[%s4768_s27 + $0x4e0] sm:$0xf]  ;;  %v4045_v29 = vld [vmem:[%s4768_s27 + $0x4ec] sm:$0xf0]  ;;  %v3236_v39 = vor.u32 %v3985_v27, %v3235_v26  ;;  %2275 = vmatpush.bf16.msra.mxu1 %v2980_v35 }
 0x13d   : > { %v3603_v30 = vld [vmem:[%s4768_s27 + $0x5e0] sm:$0xf]  ;;  %v4077_v32 = vld [vmem:[%s4768_s27 + $0x5ec] sm:$0xf0]  ;;  %v3476_v40 = vor.u32 %v4045_v29, %v3475_v28  ;;  %2289 = vmatpush.bf16.msra.mxu2 %v3108_v36 }
 0x13e   : > { %v3731_v33 = vld [vmem:[%s4768_s27 + $0x6e0] sm:$0xf]  ;;  %v4109_v34 = vld [vmem:[%s4768_s27 + $0x6ec] sm:$0xf0]  ;;  %v3604_v43 = vor.u32 %v4077_v32, %v3603_v30  ;;  %2303 = vmatpush.bf16.msra.mxu3 %v3236_v39 }
 0x13f   : > { %v3859_v37 = vld [vmem:[%s4768_s27 + $0x7e0] sm:$0xf]  ;;  %v4141_v38 = vld [vmem:[%s4768_s27 + $0x7ec] sm:$0xf0]  ;;  %v3732_v44 = vor.u32 %v4109_v34, %v3731_v33  ;;  %2310 = vmatpush.bf16.msrb.mxu0 %v3476_v40  ;;  %2276 = vmatmul.bf16.vlgmr.msra.gmra.mxu1 %v4885_v10 }
 0x140   : > { %v3459_v41 = vld [vmem:[%s4768_s27 + $0x4c0] sm:$0xf]  ;;  %v4041_v42 = vld [vmem:[%s4768_s27 + $0x4cc] sm:$0xf0]  ;;  %v3860_v48 = vor.u32 %v4141_v38, %v3859_v37  ;;  %2324 = vmatpush.bf16.msrb.mxu1 %v3604_v43  ;;  %2290 = vmatmul.bf16.vlgmr.msra.gmra.mxu2 %v4869_v1 }
 0x141   : > { %v3587_v45 = vld [vmem:[%s4768_s27 + $0x5c0] sm:$0xf]  ;;  %v4073_v46 = vld [vmem:[%s4768_s27 + $0x5cc] sm:$0xf0]  ;;  %v3460_v55 = vor.u32 %v4041_v42, %v3459_v41  ;;  %2338 = vmatpush.bf16.msrb.mxu2 %v3732_v44  ;;  %2304 = vmatmul.bf16.vlgmr.msra.gmra.mxu3 %v4893_v17 }
 0x142   : > { %v3715_v47 = vld [vmem:[%s4768_s27 + $0x6c0] sm:$0xf]  ;;  %v4105_v49 = vld [vmem:[%s4768_s27 + $0x6cc] sm:$0xf0]  ;;  %v3588_v60 = vor.u32 %v4073_v46, %v3587_v45  ;;  %2352 = vmatpush.bf16.msrb.mxu3 %v3860_v48 }
 0x143   : > { %v3843_v50 = vld [vmem:[%s4768_s27 + $0x7c0] sm:$0xf]  ;;  %v4137_v51 = vld [vmem:[%s4768_s27 + $0x7cc] sm:$0xf0]  ;;  %v3716_v61 = vor.u32 %v4105_v49, %v3715_v47  ;;  %2311 = vmatpush.bf16.msrb.mxu0 %v3460_v55 }
 0x144   : > { %v2819_v52 = vld [vmem:[%s5418_s0] sm:$0xf]  ;;  %v4037_v57 = vld [vmem:[%s4768_s27 + $0x4ac] sm:$0xf0]  ;;  %v3844_v2 = vor.u32 %v4137_v51, %v3843_v50  ;;  %2325 = vmatpush.bf16.msrb.mxu1 %v3588_v60 }
 0x145   : > { %v3883_v53 = vld [vmem:[%s5418_s0 + $0x1c] sm:$0xf0]  ;;  %v4069_v63 = vld [vmem:[%s4768_s27 + $0x5ac] sm:$0xf0]  ;;  %2339 = vmatpush.bf16.msrb.mxu2 %v3716_v61 }
 0x146   : > { %v3443_v56 = vld [vmem:[%s4768_s27 + $0x4a0] sm:$0xf]  ;;  %v4861_v58 = vor.u32 %v3883_v53, %v2819_v52  ;;  %v4101_v3 = vld [vmem:[%s4768_s27 + $0x6ac] sm:$0xf0]  ;;  %2353 = vmatpush.bf16.msrb.mxu3 %v3844_v2 }
 0x147   : > { %v3571_v62 = vld [vmem:[%s4768_s27 + $0x5a0] sm:$0xf]  ;;  %v4133_v5 = vld [vmem:[%s4768_s27 + $0x7ac] sm:$0xf0]  ;;  %v3444_v9 = vor.u32 %v4037_v57, %v3443_v56 }
 0x148   : > { %v3699_v0 = vld [vmem:[%s4768_s27 + $0x6a0] sm:$0xf]  ;;  %2262 = vmatmul.bf16.vlgmr.msra.gmra.mxu0 %v4861_v58  ;;  %v3572_v12 = vor.u32 %v4069_v63, %v3571_v62  ;;  %v4033_v15 = vld [vmem:[%s4768_s27 + $0x48c] sm:$0xf0] }
 0x149   : > { %v3827_v4 = vld [vmem:[%s4768_s27 + $0x7a0] sm:$0xf]  ;;  %v3700_v13 = vor.u32 %v4101_v3, %v3699_v0  ;;  %v4065_v19 = vld [vmem:[%s4768_s27 + $0x58c] sm:$0xf0]  ;;  %2312 = vmatpush.bf16.msrb.mxu0 %v3444_v9  ;;  %v3915_v9 = vld [vmem:[%s4768_s27 + $0xe4] sm:$0xf] }
 0x14a   : > { %v3427_v14 = vld [vmem:[%s4768_s27 + $0x480] sm:$0xf]  ;;  %v3828_v18 = vor.u32 %v4133_v5, %v3827_v4  ;;  %v4097_v21 = vld [vmem:[%s4768_s27 + $0x68c] sm:$0xf0]  ;;  %2326 = vmatpush.bf16.msrb.mxu1 %v3572_v12  ;;  %v2965_v12 = vld [vmem:[%s4768_s27 + $0xf0] sm:$0xf0] }
 0x14b   : > { %v3555_v16 = vld [vmem:[%s4768_s27 + $0x580] sm:$0xf]  ;;  %v4129_v23 = vld [vmem:[%s4768_s27 + $0x78c] sm:$0xf0]  ;;  %v3428_v24 = vor.u32 %v4033_v15, %v3427_v14  ;;  %2340 = vmatpush.bf16.msrb.mxu2 %v3700_v13  ;;  %v3947_v13 = vld [vmem:[%s4768_s27 + $0x1e4] sm:$0xf] }
 0x14c   : > { %v3683_v20 = vld [vmem:[%s4768_s27 + $0x680] sm:$0xf]  ;;  %v3556_v25 = vor.u32 %v4065_v19, %v3555_v16  ;;  %v4029_v28 = vld [vmem:[%s4768_s27 + $0x46c] sm:$0xf0]  ;;  %2354 = vmatpush.bf16.msrb.mxu3 %v3828_v18  ;;  %v3093_v14 = vld [vmem:[%s4768_s27 + $0x1f0] sm:$0xf0] }
 0x14d   : > { %v3811_v22 = vld [vmem:[%s4768_s27 + $0x780] sm:$0xf]  ;;  %v3684_v26 = vor.u32 %v4097_v21, %v3683_v20  ;;  %v4061_v31 = vld [vmem:[%s4768_s27 + $0x56c] sm:$0xf0]  ;;  %2313 = vmatpush.bf16.msrb.mxu0 %v3428_v24  ;;  %v3979_v15 = vld [vmem:[%s4768_s27 + $0x2e4] sm:$0xf] }
 0x14e   : > { %v3411_v27 = vld [vmem:[%s4768_s27 + $0x460] sm:$0xf]  ;;  %v3812_v30 = vor.u32 %v4129_v23, %v3811_v22  ;;  %v4093_v33 = vld [vmem:[%s4768_s27 + $0x66c] sm:$0xf0]  ;;  %2327 = vmatpush.bf16.msrb.mxu1 %v3556_v25  ;;  %v3221_v16 = vld [vmem:[%s4768_s27 + $0x2f0] sm:$0xf0] }
 0x14f   : > { %v3539_v29 = vld [vmem:[%s4768_s27 + $0x560] sm:$0xf]  ;;  %v4125_v35 = vld [vmem:[%s4768_s27 + $0x76c] sm:$0xf0]  ;;  %v3412_v36 = vor.u32 %v4029_v28, %v3411_v27  ;;  %2341 = vmatpush.bf16.msrb.mxu2 %v3684_v26  ;;  %v4011_v18 = vld [vmem:[%s4768_s27 + $0x3e4] sm:$0xf] }
 0x150   : > { %v3667_v32 = vld [vmem:[%s4768_s27 + $0x660] sm:$0xf]  ;;  %v3540_v37 = vor.u32 %v4061_v31, %v3539_v29  ;;  %v4025_v40 = vld [vmem:[%s4768_s27 + $0x44c] sm:$0xf0]  ;;  %2355 = vmatpush.bf16.msrb.mxu3 %v3812_v30  ;;  %v3349_v20 = vld [vmem:[%s4768_s27 + $0x3f0] sm:$0xf0]  ;;  %v2968_v29 = vor.u32 %v3915_v9, %v2965_v12 }
 0x151   : > { %v3795_v34 = vld [vmem:[%s4768_s27 + $0x760] sm:$0xf]  ;;  %v3668_v38 = vor.u32 %v4093_v33, %v3667_v32  ;;  %v4057_v43 = vld [vmem:[%s4768_s27 + $0x54c] sm:$0xf0]  ;;  %2314 = vmatpush.bf16.msrb.mxu0 %v3412_v36  ;;  %v2843_v25 = vld [vmem:[%s5418_s0 + $0x18] sm:$0xf]  ;;  %v3096_v33 = vor.u32 %v3947_v13, %v3093_v14 }
 0x152   : > { %v3395_v39 = vld [vmem:[%s4768_s27 + $0x440] sm:$0xf]  ;;  %v3796_v42 = vor.u32 %v4125_v35, %v3795_v34  ;;  %v4089_v45 = vld [vmem:[%s4768_s27 + $0x64c] sm:$0xf0]  ;;  %2328 = vmatpush.bf16.msrb.mxu1 %v3540_v37  ;;  %v3886_v26 = vld [vmem:[%s5418_s0 + $0x34] sm:$0xf0]  ;;  %v3224_v34 = vor.u32 %v3979_v15, %v3221_v16 }
 0x153   : > { %v3523_v41 = vld [vmem:[%s4768_s27 + $0x540] sm:$0xf]  ;;  %v4121_v47 = vld [vmem:[%s4768_s27 + $0x74c] sm:$0xf0]  ;;  %v3396_v48 = vor.u32 %v4025_v40, %v3395_v39  ;;  %2342 = vmatpush.bf16.msrb.mxu2 %v3668_v38  ;;  %v3881_v27 = vld [vmem:[%s5418_s0 + $0x14] sm:$0xf]  ;;  %v3352_v38 = vor.u32 %v4011_v18, %v3349_v20 }
 0x154   : > { %v3651_v44 = vld [vmem:[%s4768_s27 + $0x640] sm:$0xf]  ;;  %v3524_v50 = vor.u32 %v4057_v43, %v3523_v41  ;;  %v4021_v52 = vld [vmem:[%s4768_s27 + $0x42c] sm:$0xf0]  ;;  %2356 = vmatpush.bf16.msrb.mxu3 %v3796_v42  ;;  %v2837_v30 = vld [vmem:[%s5418_s0 + $0x30] sm:$0xf0]  ;;  %v4974_v43 = vor.u32 %v3886_v26, %v2843_v25 }
 0x155   : > { %v3779_v46 = vld [vmem:[%s4768_s27 + $0x740] sm:$0xf]  ;;  %v3652_v51 = vor.u32 %v4089_v45, %v3651_v44  ;;  %v4053_v54 = vld [vmem:[%s4768_s27 + $0x52c] sm:$0xf0]  ;;  %2315 = vmatpush.bf16.msrb.mxu0 %v3396_v48  ;;  %v3882_v31 = vld [vmem:[%s5418_s0 + $0x1c] sm:$0xf]  ;;  %v4976_v44 = vor.u32 %v3881_v27, %v2837_v30 }
 0x156   : > { %v3379_v49 = vld [vmem:[%s4768_s27 + $0x420] sm:$0xf]  ;;  %v3780_v55 = vor.u32 %v4121_v47, %v3779_v46  ;;  %v4085_v57 = vld [vmem:[%s4768_s27 + $0x62c] sm:$0xf0]  ;;  %2329 = vmatpush.bf16.msrb.mxu1 %v3524_v50  ;;  %v2845_v32 = vld [vmem:[%s5418_s0 + $0x38] sm:$0xf0] }
 0x157   : > { %v3507_v53 = vld [vmem:[%s4768_s27 + $0x520] sm:$0xf]  ;;  %v4117_v60 = vld [vmem:[%s4768_s27 + $0x72c] sm:$0xf0]  ;;  %v3380_v63 = vor.u32 %v4021_v52, %v3379_v49  ;;  %2343 = vmatpush.bf16.msrb.mxu2 %v3652_v51  ;;  %v3911_v35 = vld [vmem:[%s4768_s27 + $0xc4] sm:$0xf]  ;;  %v4980_v47 = vor.u32 %v3882_v31, %v2845_v32 }
 0x158   : > { %v3635_v56 = vld [vmem:[%s4768_s27 + $0x620] sm:$0xf]  ;;  %v4017_v62 = vld [vmem:[%s4768_s27 + $0x40c] sm:$0xf0]  ;;  %v3508_v5 = vor.u32 %v4053_v54, %v3507_v53  ;;  %2357 = vmatpush.bf16.msrb.mxu3 %v3780_v55  ;;  %v2949_v36 = vld [vmem:[%s4768_s27 + $0xd0] sm:$0xf0] }
 0x159   : > { %v3763_v59 = vld [vmem:[%s4768_s27 + $0x720] sm:$0xf]  ;;  %v4049_v2 = vld [vmem:[%s4768_s27 + $0x50c] sm:$0xf0]  ;;  %v3636_v6 = vor.u32 %v4085_v57, %v3635_v56  ;;  %2316 = vmatpush.bf16.msrb.mxu0 %v3380_v63  ;;  %v3943_v37 = vld [vmem:[%s4768_s27 + $0x1c4] sm:$0xf]  ;;  %v2952_v48 = vor.u32 %v3911_v35, %v2949_v36 }
 0x15a   : > { %v3363_v61 = vld [vmem:[%s4768_s27 + $0x400] sm:$0xf]  ;;  %v4081_v4 = vld [vmem:[%s4768_s27 + $0x60c] sm:$0xf0]  ;;  %v3764_v11 = vor.u32 %v4117_v60, %v3763_v59  ;;  %2330 = vmatpush.bf16.msrb.mxu1 %v3508_v5  ;;  %v3077_v40 = vld [vmem:[%s4768_s27 + $0x1d0] sm:$0xf0] }
 0x15b   : > { %v3491_v0 = vld [vmem:[%s4768_s27 + $0x500] sm:$0xf]  ;;  %v4113_v8 = vld [vmem:[%s4768_s27 + $0x70c] sm:$0xf0]  ;;  %v3364_v19 = vor.u32 %v4017_v62, %v3363_v61  ;;  %2344 = vmatpush.bf16.msrb.mxu2 %v3636_v6  ;;  %v3975_v41 = vld [vmem:[%s4768_s27 + $0x2c4] sm:$0xf]  ;;  %v3080_v49 = vor.u32 %v3943_v37, %v3077_v40 }
 0x15c   : > { %v3619_v3 = vld [vmem:[%s4768_s27 + $0x600] sm:$0xf]  ;;  %v2835_v21 = vld [vmem:[%s5418_s0 + $0x10] sm:$0xf]  ;;  %v3492_v23 = vor.u32 %v4049_v2, %v3491_v0  ;;  %2358 = vmatpush.bf16.msrb.mxu3 %v3764_v11  ;;  %v3205_v42 = vld [vmem:[%s4768_s27 + $0x2d0] sm:$0xf0] }
 0x15d   : > { %v3747_v7 = vld [vmem:[%s4768_s27 + $0x700] sm:$0xf]  ;;  %v3885_v22 = vld [vmem:[%s5418_s0 + $0x2c] sm:$0xf0]  ;;  %v3620_v24 = vor.u32 %v4081_v4, %v3619_v3  ;;  %2317 = vmatpush.bf16.msrb.mxu0 %v3364_v19  ;;  %v4007_v45 = vld [vmem:[%s4768_s27 + $0x3c4] sm:$0xf]  ;;  %v3208_v50 = vor.u32 %v3975_v41, %v3205_v42 }
 0x15e   : > { %v3748_v28 = vor.u32 %v4113_v8, %v3747_v7  ;;  %v4969_v39 = vor.u32 %v3885_v22, %v2835_v21  ;;  %2331 = vmatpush.bf16.msrb.mxu1 %v3492_v23  ;;  %v3333_v46 = vld [vmem:[%s4768_s27 + $0x3d0] sm:$0xf0]  ;;  %v3907_v51 = vld [vmem:[%s4768_s27 + $0xa4] sm:$0xf] }
 0x15f   : > { %2345 = vmatpush.bf16.msrb.mxu2 %v3620_v24  ;;  %v2933_v52 = vld [vmem:[%s4768_s27 + $0xb0] sm:$0xf0]  ;;  %v3939_v53 = vld [vmem:[%s4768_s27 + $0x1a4] sm:$0xf]  ;;  %v3336_v54 = vor.u32 %v4007_v45, %v3333_v46 }
 0x160   : > { %2359 = vmatpush.bf16.msrb.mxu3 %v3748_v28  ;;  %2318 = vmatmul.bf16.vlgmr.msrb.gmra.mxu0 %v4969_v39  ;;  %v3061_v55 = vld [vmem:[%s4768_s27 + $0x1b0] sm:$0xf0]  ;;  %v3971_v56 = vld [vmem:[%s4768_s27 + $0x2a4] sm:$0xf]  ;;  %v2936_v61 = vor.u32 %v3907_v51, %v2933_v52 }
 0x161   : > { %2366 = vmatpush.bf16.msra.mxu0 %v2968_v29  ;;  %v3189_v57 = vld [vmem:[%s4768_s27 + $0x2b0] sm:$0xf0]  ;;  %2332 = vmatmul.bf16.vlgmr.msrb.gmra.mxu1 %v4976_v44  ;;  %v4003_v59 = vld [vmem:[%s4768_s27 + $0x3a4] sm:$0xf]  ;;  %v3064_v62 = vor.u32 %v3939_v53, %v3061_v55 }
 0x162   : > { %2380 = vmatpush.bf16.msra.mxu1 %v3096_v33  ;;  %2346 = vmatmul.bf16.vlgmr.msrb.gmra.mxu2 %v4974_v43  ;;  %v3317_v60 = vld [vmem:[%s4768_s27 + $0x3b0] sm:$0xf0]  ;;  %v3192_v63 = vor.u32 %v3971_v56, %v3189_v57  ;;  %v3903_v0 = vld [vmem:[%s4768_s27 + $0x84] sm:$0xf] }
 0x163   : > { %2394 = vmatpush.bf16.msra.mxu2 %v3224_v34  ;;  %2360 = vmatmul.bf16.vlgmr.msrb.gmra.mxu3 %v4980_v47  ;;  %v2917_v2 = vld [vmem:[%s4768_s27 + $0x90] sm:$0xf0]  ;;  %v3935_v3 = vld [vmem:[%s4768_s27 + $0x184] sm:$0xf]  ;;  %v3320_v4 = vor.u32 %v4003_v59, %v3317_v60 }
 0x164   : > { %2408 = vmatpush.bf16.msra.mxu3 %v3352_v38  ;;  %v3045_v5 = vld [vmem:[%s4768_s27 + $0x190] sm:$0xf0]  ;;  %v3967_v6 = vld [vmem:[%s4768_s27 + $0x284] sm:$0xf]  ;;  %v2920_v11 = vor.u32 %v3903_v0, %v2917_v2 }
 0x165   : > { %2367 = vmatpush.bf16.msra.mxu0 %v2952_v48  ;;  %v3173_v7 = vld [vmem:[%s4768_s27 + $0x290] sm:$0xf0]  ;;  %v3999_v8 = vld [vmem:[%s4768_s27 + $0x384] sm:$0xf]  ;;  %v3048_v12 = vor.u32 %v3935_v3, %v3045_v5 }
 0x166   : > { %2381 = vmatpush.bf16.msra.mxu1 %v3080_v49  ;;  %v3301_v9 = vld [vmem:[%s4768_s27 + $0x390] sm:$0xf0]  ;;  %v3176_v13 = vor.u32 %v3967_v6, %v3173_v7  ;;  %v3899_v14 = vld [vmem:[%s4768_s27 + $0x64] sm:$0xf] }
 0x167   : > { %2395 = vmatpush.bf16.msra.mxu2 %v3208_v50  ;;  %v2901_v15 = vld [vmem:[%s4768_s27 + $0x70] sm:$0xf0]  ;;  %v3931_v16 = vld [vmem:[%s4768_s27 + $0x164] sm:$0xf]  ;;  %v3304_v18 = vor.u32 %v3999_v8, %v3301_v9 }
 0x168   : > { %2409 = vmatpush.bf16.msra.mxu3 %v3336_v54  ;;  %v3029_v19 = vld [vmem:[%s4768_s27 + $0x170] sm:$0xf0]  ;;  %v3963_v20 = vld [vmem:[%s4768_s27 + $0x264] sm:$0xf]  ;;  %v2904_v24 = vor.u32 %v3899_v14, %v2901_v15 }
 0x169   : > { %2368 = vmatpush.bf16.msra.mxu0 %v2936_v61  ;;  %v3157_v21 = vld [vmem:[%s4768_s27 + $0x270] sm:$0xf0]  ;;  %v3995_v22 = vld [vmem:[%s4768_s27 + $0x364] sm:$0xf]  ;;  %v3032_v25 = vor.u32 %v3931_v16, %v3029_v19 }
 0x16a   : > { %2382 = vmatpush.bf16.msra.mxu1 %v3064_v62  ;;  %v3285_v23 = vld [vmem:[%s4768_s27 + $0x370] sm:$0xf0]  ;;  %v3160_v26 = vor.u32 %v3963_v20, %v3157_v21  ;;  %v3895_v27 = vld [vmem:[%s4768_s27 + $0x44] sm:$0xf] }
 0x16b   : > { %2396 = vmatpush.bf16.msra.mxu2 %v3192_v63  ;;  %v2885_v28 = vld [vmem:[%s4768_s27 + $0x50] sm:$0xf0]  ;;  %v3927_v29 = vld [vmem:[%s4768_s27 + $0x144] sm:$0xf]  ;;  %v3288_v30 = vor.u32 %v3995_v22, %v3285_v23 }
 0x16c   : > { %2410 = vmatpush.bf16.msra.mxu3 %v3320_v4  ;;  %v3013_v31 = vld [vmem:[%s4768_s27 + $0x150] sm:$0xf0]  ;;  %v3959_v32 = vld [vmem:[%s4768_s27 + $0x244] sm:$0xf]  ;;  %v2888_v36 = vor.u32 %v3895_v27, %v2885_v28 }
 0x16d   : > { %2369 = vmatpush.bf16.msra.mxu0 %v2920_v11  ;;  %v3141_v33 = vld [vmem:[%s4768_s27 + $0x250] sm:$0xf0]  ;;  %v3991_v34 = vld [vmem:[%s4768_s27 + $0x344] sm:$0xf]  ;;  %v3016_v37 = vor.u32 %v3927_v29, %v3013_v31 }
 0x16e   : > { %2383 = vmatpush.bf16.msra.mxu1 %v3048_v12  ;;  %v3269_v35 = vld [vmem:[%s4768_s27 + $0x350] sm:$0xf0]  ;;  %v3144_v38 = vor.u32 %v3959_v32, %v3141_v33  ;;  %v3891_v40 = vld [vmem:[%s4768_s27 + $0x24] sm:$0xf] }
 0x16f   : > { %2397 = vmatpush.bf16.msra.mxu2 %v3176_v13  ;;  %v2869_v41 = vld [vmem:[%s4768_s27 + $0x30] sm:$0xf0]  ;;  %v3923_v42 = vld [vmem:[%s4768_s27 + $0x124] sm:$0xf]  ;;  %v3272_v45 = vor.u32 %v3991_v34, %v3269_v35 }
 0x170   : > { %2411 = vmatpush.bf16.msra.mxu3 %v3304_v18  ;;  %v2997_v46 = vld [vmem:[%s4768_s27 + $0x130] sm:$0xf0]  ;;  %v3955_v48 = vld [vmem:[%s4768_s27 + $0x224] sm:$0xf]  ;;  %v2872_v52 = vor.u32 %v3891_v40, %v2869_v41 }
 0x171   : > { %2370 = vmatpush.bf16.msra.mxu0 %v2904_v24  ;;  %v3125_v49 = vld [vmem:[%s4768_s27 + $0x230] sm:$0xf0]  ;;  %v3987_v50 = vld [vmem:[%s4768_s27 + $0x324] sm:$0xf]  ;;  %v3000_v55 = vor.u32 %v3923_v42, %v2997_v46 }
 0x172   : > { %2384 = vmatpush.bf16.msra.mxu1 %v3032_v25  ;;  %v3253_v51 = vld [vmem:[%s4768_s27 + $0x330] sm:$0xf0]  ;;  %v3887_v53 = vld [vmem:[%s4768_s27 + $0x4] sm:$0xf]  ;;  %v3128_v56 = vor.u32 %v3955_v48, %v3125_v49 }
 0x173   : > { %2398 = vmatpush.bf16.msra.mxu2 %v3160_v26  ;;  %v2853_v54 = vld [vmem:[%s4768_s27 + $0x10] sm:$0xf0]  ;;  %v3919_v57 = vld [vmem:[%s4768_s27 + $0x104] sm:$0xf]  ;;  %v3256_v61 = vor.u32 %v3987_v50, %v3253_v51 }
 0x174   : > { %2412 = vmatpush.bf16.msra.mxu3 %v3288_v30  ;;  %v2981_v59 = vld [vmem:[%s4768_s27 + $0x110] sm:$0xf0]  ;;  %v3951_v60 = vld [vmem:[%s4768_s27 + $0x204] sm:$0xf]  ;;  %v2856_v5 = vor.u32 %v3887_v53, %v2853_v54 }
 0x175   : > { %2371 = vmatpush.bf16.msra.mxu0 %v2888_v36  ;;  %v3109_v62 = vld [vmem:[%s4768_s27 + $0x210] sm:$0xf0]  ;;  %v3983_v63 = vld [vmem:[%s4768_s27 + $0x304] sm:$0xf]  ;;  %v2984_v9 = vor.u32 %v3919_v57, %v2981_v59 }
 0x176   : > { %2385 = vmatpush.bf16.msra.mxu1 %v3016_v37  ;;  %v3237_v0 = vld [vmem:[%s4768_s27 + $0x310] sm:$0xf0]  ;;  %v4043_v2 = vld [vmem:[%s4768_s27 + $0x4e4] sm:$0xf]  ;;  %v3112_v11 = vor.u32 %v3951_v60, %v3109_v62 }
 0x177   : > { %2399 = vmatpush.bf16.msra.mxu2 %v3144_v38  ;;  %v3477_v3 = vld [vmem:[%s4768_s27 + $0x4f0] sm:$0xf0]  ;;  %v4075_v4 = vld [vmem:[%s4768_s27 + $0x5e4] sm:$0xf]  ;;  %v3240_v14 = vor.u32 %v3983_v63, %v3237_v0 }
 0x178   : > { %2413 = vmatpush.bf16.msra.mxu3 %v3272_v45  ;;  %v3605_v6 = vld [vmem:[%s4768_s27 + $0x5f0] sm:$0xf0]  ;;  %v4107_v7 = vld [vmem:[%s4768_s27 + $0x6e4] sm:$0xf]  ;;  %v3480_v15 = vor.u32 %v4043_v2, %v3477_v3 }
 0x179   : > { %2372 = vmatpush.bf16.msra.mxu0 %v2872_v52  ;;  %v3733_v8 = vld [vmem:[%s4768_s27 + $0x6f0] sm:$0xf0]  ;;  %v4139_v12 = vld [vmem:[%s4768_s27 + $0x7e4] sm:$0xf]  ;;  %v3608_v16 = vor.u32 %v4075_v4, %v3605_v6 }
 0x17a   : > { %2386 = vmatpush.bf16.msra.mxu1 %v3000_v55  ;;  %v3861_v13 = vld [vmem:[%s4768_s27 + $0x7f0] sm:$0xf0]  ;;  %v3736_v18 = vor.u32 %v4107_v7, %v3733_v8  ;;  %v4039_v19 = vld [vmem:[%s4768_s27 + $0x4c4] sm:$0xf] }
 0x17b   : > { %2400 = vmatpush.bf16.msra.mxu2 %v3128_v56  ;;  %v3461_v20 = vld [vmem:[%s4768_s27 + $0x4d0] sm:$0xf0]  ;;  %v4071_v21 = vld [vmem:[%s4768_s27 + $0x5c4] sm:$0xf]  ;;  %v3864_v22 = vor.u32 %v4139_v12, %v3861_v13 }
 0x17c   : > { %2414 = vmatpush.bf16.msra.mxu3 %v3256_v61  ;;  %v3589_v23 = vld [vmem:[%s4768_s27 + $0x5d0] sm:$0xf0]  ;;  %v4103_v24 = vld [vmem:[%s4768_s27 + $0x6c4] sm:$0xf]  ;;  %v3464_v28 = vor.u32 %v4039_v19, %v3461_v20 }
 0x17d   : > { %2373 = vmatpush.bf16.msra.mxu0 %v2856_v5  ;;  %v3717_v25 = vld [vmem:[%s4768_s27 + $0x6d0] sm:$0xf0]  ;;  %v4135_v26 = vld [vmem:[%s4768_s27 + $0x7c4] sm:$0xf]  ;;  %v3592_v29 = vor.u32 %v4071_v21, %v3589_v23 }
 0x17e   : > { %2387 = vmatpush.bf16.msra.mxu1 %v2984_v9  ;;  %v3845_v27 = vld [vmem:[%s4768_s27 + $0x7d0] sm:$0xf0]  ;;  %v3720_v30 = vor.u32 %v4103_v24, %v3717_v25  ;;  %v4035_v31 = vld [vmem:[%s4768_s27 + $0x4a4] sm:$0xf] }
 0x17f   : > { %2401 = vmatpush.bf16.msra.mxu2 %v3112_v11  ;;  %v3445_v32 = vld [vmem:[%s4768_s27 + $0x4b0] sm:$0xf0]  ;;  %v4067_v33 = vld [vmem:[%s4768_s27 + $0x5a4] sm:$0xf]  ;;  %v3848_v34 = vor.u32 %v4135_v26, %v3845_v27 }
 0x180   : > { %2415 = vmatpush.bf16.msra.mxu3 %v3240_v14  ;;  %v3573_v35 = vld [vmem:[%s4768_s27 + $0x5b0] sm:$0xf0]  ;;  %v4099_v36 = vld [vmem:[%s4768_s27 + $0x6a4] sm:$0xf]  ;;  %2374 = vmatmul.bf16.vlgmr.msra.gmra.mxu0 %v4861_v58  ;;  %v3448_v41 = vor.u32 %v4035_v31, %v3445_v32 }
 0x181   : > { %2422 = vmatpush.bf16.msrb.mxu0 %v3480_v15  ;;  %v3701_v37 = vld [vmem:[%s4768_s27 + $0x6b0] sm:$0xf0]  ;;  %v4131_v38 = vld [vmem:[%s4768_s27 + $0x7a4] sm:$0xf]  ;;  %2388 = vmatmul.bf16.vlgmr.msra.gmra.mxu1 %v4885_v10  ;;  %v3576_v42 = vor.u32 %v4067_v33, %v3573_v35 }
 0x182   : > { %2436 = vmatpush.bf16.msrb.mxu1 %v3608_v16  ;;  %v3829_v40 = vld [vmem:[%s4768_s27 + $0x7b0] sm:$0xf0]  ;;  %2402 = vmatmul.bf16.vlgmr.msra.gmra.mxu2 %v4869_v1  ;;  %v3704_v45 = vor.u32 %v4099_v36, %v3701_v37  ;;  %v4031_v46 = vld [vmem:[%s4768_s27 + $0x484] sm:$0xf] }
 0x183   : > { %2450 = vmatpush.bf16.msrb.mxu2 %v3736_v18  ;;  %2416 = vmatmul.bf16.vlgmr.msra.gmra.mxu3 %v4893_v17  ;;  %v3429_v48 = vld [vmem:[%s4768_s27 + $0x490] sm:$0xf0]  ;;  %v4063_v49 = vld [vmem:[%s4768_s27 + $0x584] sm:$0xf]  ;;  %v3832_v50 = vor.u32 %v4131_v38, %v3829_v40 }
 0x184   : > { %2464 = vmatpush.bf16.msrb.mxu3 %v3864_v22  ;;  %v3557_v51 = vld [vmem:[%s4768_s27 + $0x590] sm:$0xf0]  ;;  %v4095_v52 = vld [vmem:[%s4768_s27 + $0x684] sm:$0xf]  ;;  %v3432_v56 = vor.u32 %v4031_v46, %v3429_v48  ;;  %v2971_v48 = vld [vmem:[%s4768_s27 + $0xe8] sm:$0xf] }
 0x185   : > { %2423 = vmatpush.bf16.msrb.mxu0 %v3464_v28  ;;  %v3685_v53 = vld [vmem:[%s4768_s27 + $0x690] sm:$0xf0]  ;;  %v4127_v54 = vld [vmem:[%s4768_s27 + $0x784] sm:$0xf]  ;;  %v3560_v57 = vor.u32 %v4063_v49, %v3557_v51  ;;  %v3918_v49 = vld [vmem:[%s4768_s27 + $0xf4] sm:$0xf0] }
 0x186   : > { %2437 = vmatpush.bf16.msrb.mxu1 %v3592_v29  ;;  %v3813_v55 = vld [vmem:[%s4768_s27 + $0x790] sm:$0xf0]  ;;  %v3688_v59 = vor.u32 %v4095_v52, %v3685_v53  ;;  %v4027_v60 = vld [vmem:[%s4768_s27 + $0x464] sm:$0xf]  ;;  %v3950_v52 = vld [vmem:[%s4768_s27 + $0x1f4] sm:$0xf0] }
 0x187   : > { %2451 = vmatpush.bf16.msrb.mxu2 %v3720_v30  ;;  %v3413_v61 = vld [vmem:[%s4768_s27 + $0x470] sm:$0xf0]  ;;  %v4059_v62 = vld [vmem:[%s4768_s27 + $0x564] sm:$0xf]  ;;  %v3816_v63 = vor.u32 %v4127_v54, %v3813_v55  ;;  %v3227_v53 = vld [vmem:[%s4768_s27 + $0x2e8] sm:$0xf] }
 0x188   : > { %2465 = vmatpush.bf16.msrb.mxu3 %v3848_v34  ;;  %v3541_v0 = vld [vmem:[%s4768_s27 + $0x570] sm:$0xf0]  ;;  %v4091_v2 = vld [vmem:[%s4768_s27 + $0x664] sm:$0xf]  ;;  %v3416_v6 = vor.u32 %v4027_v60, %v3413_v61  ;;  %v3982_v54 = vld [vmem:[%s4768_s27 + $0x2f4] sm:$0xf0]  ;;  %v2972_v61 = vor.u32 %v3918_v49, %v2971_v48 }
 0x189   : > { %2424 = vmatpush.bf16.msrb.mxu0 %v3448_v41  ;;  %v3669_v3 = vld [vmem:[%s4768_s27 + $0x670] sm:$0xf0]  ;;  %v4123_v4 = vld [vmem:[%s4768_s27 + $0x764] sm:$0xf]  ;;  %v3544_v7 = vor.u32 %v4059_v62, %v3541_v0  ;;  %v2955_v0 = vld [vmem:[%s4768_s27 + $0xc8] sm:$0xf] }
 0x18a   : > { %2438 = vmatpush.bf16.msrb.mxu1 %v3576_v42  ;;  %v3797_v5 = vld [vmem:[%s4768_s27 + $0x770] sm:$0xf0]  ;;  %v3672_v8 = vor.u32 %v4091_v2, %v3669_v3  ;;  %v4023_v9 = vld [vmem:[%s4768_s27 + $0x444] sm:$0xf]  ;;  %v3914_v2 = vld [vmem:[%s4768_s27 + $0xd4] sm:$0xf0] }
 0x18b   : > { %2452 = vmatpush.bf16.msrb.mxu2 %v3704_v45  ;;  %v3397_v11 = vld [vmem:[%s4768_s27 + $0x450] sm:$0xf0]  ;;  %v4055_v12 = vld [vmem:[%s4768_s27 + $0x544] sm:$0xf]  ;;  %v3800_v13 = vor.u32 %v4123_v4, %v3797_v5  ;;  %v3083_v3 = vld [vmem:[%s4768_s27 + $0x1c8] sm:$0xf] }
 0x18c   : > { %2466 = vmatpush.bf16.msrb.mxu3 %v3832_v50  ;;  %v3525_v14 = vld [vmem:[%s4768_s27 + $0x550] sm:$0xf0]  ;;  %v4087_v15 = vld [vmem:[%s4768_s27 + $0x644] sm:$0xf]  ;;  %v3400_v20 = vor.u32 %v4023_v9, %v3397_v11  ;;  %v3099_v50 = vld [vmem:[%s4768_s27 + $0x1e8] sm:$0xf]  ;;  %v2956_v11 = vor.u32 %v3914_v2, %v2955_v0 }
 0x18d   : > { %2425 = vmatpush.bf16.msrb.mxu0 %v3432_v56  ;;  %v3653_v16 = vld [vmem:[%s4768_s27 + $0x650] sm:$0xf0]  ;;  %v4119_v18 = vld [vmem:[%s4768_s27 + $0x744] sm:$0xf]  ;;  %v3528_v21 = vor.u32 %v4055_v12, %v3525_v14  ;;  %v3100_v62 = vor.u32 %v3950_v52, %v3099_v50  ;;  %v3946_v5 = vld [vmem:[%s4768_s27 + $0x1d4] sm:$0xf0] }
 0x18e   : > { %2439 = vmatpush.bf16.msrb.mxu1 %v3560_v57  ;;  %v3781_v19 = vld [vmem:[%s4768_s27 + $0x750] sm:$0xf0]  ;;  %v3656_v22 = vor.u32 %v4087_v15, %v3653_v16  ;;  %v4019_v23 = vld [vmem:[%s4768_s27 + $0x424] sm:$0xf]  ;;  %v3355_v57 = vld [vmem:[%s4768_s27 + $0x3e8] sm:$0xf]  ;;  %v3084_v12 = vor.u32 %v3946_v5, %v3083_v3 }
 0x18f   : > { %2453 = vmatpush.bf16.msrb.mxu2 %v3688_v59  ;;  %v3381_v24 = vld [vmem:[%s4768_s27 + $0x430] sm:$0xf0]  ;;  %v4051_v25 = vld [vmem:[%s4768_s27 + $0x524] sm:$0xf]  ;;  %v3784_v26 = vor.u32 %v4119_v18, %v3781_v19  ;;  %v4014_v59 = vld [vmem:[%s4768_s27 + $0x3f4] sm:$0xf0] }
 0x190   : > { %2467 = vmatpush.bf16.msrb.mxu3 %v3816_v63  ;;  %v3509_v27 = vld [vmem:[%s4768_s27 + $0x530] sm:$0xf0]  ;;  %v4083_v28 = vld [vmem:[%s4768_s27 + $0x624] sm:$0xf]  ;;  %v3384_v32 = vor.u32 %v4019_v23, %v3381_v24  ;;  %v3228_v63 = vor.u32 %v3982_v54, %v3227_v53  ;;  %v3356_v4 = vor.u32 %v4014_v59, %v3355_v57  ;;  %v4010_v9 = vld [vmem:[%s4768_s27 + $0x3d4] sm:$0xf0] }
 0x191   : > { %2426 = vmatpush.bf16.msrb.mxu0 %v3416_v6  ;;  %v3637_v29 = vld [vmem:[%s4768_s27 + $0x630] sm:$0xf0]  ;;  %v4115_v30 = vld [vmem:[%s4768_s27 + $0x724] sm:$0xf]  ;;  %v3512_v35 = vor.u32 %v4051_v25, %v3509_v27  ;;  %v3211_v6 = vld [vmem:[%s4768_s27 + $0x2c8] sm:$0xf] }
 0x192   : > { %2440 = vmatpush.bf16.msrb.mxu1 %v3544_v7  ;;  %v3765_v31 = vld [vmem:[%s4768_s27 + $0x730] sm:$0xf0]  ;;  %v4015_v33 = vld [vmem:[%s4768_s27 + $0x404] sm:$0xf]  ;;  %v3640_v36 = vor.u32 %v4083_v28, %v3637_v29  ;;  %v3978_v7 = vld [vmem:[%s4768_s27 + $0x2d4] sm:$0xf0] }
 0x193   : > { %2454 = vmatpush.bf16.msrb.mxu2 %v3672_v8  ;;  %v3365_v34 = vld [vmem:[%s4768_s27 + $0x410] sm:$0xf0]  ;;  %v4047_v37 = vld [vmem:[%s4768_s27 + $0x504] sm:$0xf]  ;;  %v3768_v41 = vor.u32 %v4115_v30, %v3765_v31  ;;  %v3339_v8 = vld [vmem:[%s4768_s27 + $0x3c8] sm:$0xf] }
 0x194   : > { %2468 = vmatpush.bf16.msrb.mxu3 %v3800_v13  ;;  %v3493_v38 = vld [vmem:[%s4768_s27 + $0x510] sm:$0xf0]  ;;  %v4079_v40 = vld [vmem:[%s4768_s27 + $0x604] sm:$0xf]  ;;  %v3368_v51 = vor.u32 %v4015_v33, %v3365_v34  ;;  %v3212_v13 = vor.u32 %v3978_v7, %v3211_v6  ;;  %v2939_v14 = vld [vmem:[%s4768_s27 + $0xa8] sm:$0xf]  ;;  %v3340_v18 = vor.u32 %v4010_v9, %v3339_v8 }
 0x195   : > { %2427 = vmatpush.bf16.msrb.mxu0 %v3400_v20  ;;  %v3621_v42 = vld [vmem:[%s4768_s27 + $0x610] sm:$0xf0]  ;;  %v4111_v45 = vld [vmem:[%s4768_s27 + $0x704] sm:$0xf]  ;;  %v3496_v55 = vor.u32 %v4047_v37, %v3493_v38  ;;  %v3910_v15 = vld [vmem:[%s4768_s27 + $0xb4] sm:$0xf0] }
 0x196   : > { %2441 = vmatpush.bf16.msrb.mxu1 %v3528_v21  ;;  %v3749_v46 = vld [vmem:[%s4768_s27 + $0x710] sm:$0xf0]  ;;  %v3624_v56 = vor.u32 %v4079_v40, %v3621_v42  ;;  %v3067_v16 = vld [vmem:[%s4768_s27 + $0x1a8] sm:$0xf]  ;;  %v3942_v19 = vld [vmem:[%s4768_s27 + $0x1b4] sm:$0xf0]  ;;  %v2940_v24 = vor.u32 %v3910_v15, %v2939_v14 }
 0x197   : > { %2455 = vmatpush.bf16.msrb.mxu2 %v3656_v22  ;;  %v3752_v60 = vor.u32 %v4111_v45, %v3749_v46  ;;  %v3195_v20 = vld [vmem:[%s4768_s27 + $0x2a8] sm:$0xf]  ;;  %v3974_v21 = vld [vmem:[%s4768_s27 + $0x2b4] sm:$0xf0]  ;;  %v3068_v25 = vor.u32 %v3942_v19, %v3067_v16 }
 0x198   : > { %2469 = vmatpush.bf16.msrb.mxu3 %v3784_v26  ;;  %v3323_v22 = vld [vmem:[%s4768_s27 + $0x3a8] sm:$0xf]  ;;  %v4006_v23 = vld [vmem:[%s4768_s27 + $0x3b4] sm:$0xf0]  ;;  %v3196_v26 = vor.u32 %v3974_v21, %v3195_v20 }
 0x199   : > { %2428 = vmatpush.bf16.msrb.mxu0 %v3384_v32  ;;  %v2923_v27 = vld [vmem:[%s4768_s27 + $0x88] sm:$0xf]  ;;  %v3906_v28 = vld [vmem:[%s4768_s27 + $0x94] sm:$0xf0]  ;;  %v3324_v30 = vor.u32 %v4006_v23, %v3323_v22 }
 0x19a   : > { %2442 = vmatpush.bf16.msrb.mxu1 %v3512_v35  ;;  %v3051_v29 = vld [vmem:[%s4768_s27 + $0x188] sm:$0xf]  ;;  %v3938_v31 = vld [vmem:[%s4768_s27 + $0x194] sm:$0xf0] }
 0x19b   : > { %2456 = vmatpush.bf16.msrb.mxu2 %v3640_v36  ;;  %v3179_v32 = vld [vmem:[%s4768_s27 + $0x288] sm:$0xf]  ;;  %v3970_v33 = vld [vmem:[%s4768_s27 + $0x294] sm:$0xf0]  ;;  %v2924_v36 = vor.u32 %v3906_v28, %v2923_v27  ;;  %v3052_v37 = vor.u32 %v3938_v31, %v3051_v29 }
 0x19c   : > { %2470 = vmatpush.bf16.msrb.mxu3 %v3768_v41  ;;  %v3307_v34 = vld [vmem:[%s4768_s27 + $0x388] sm:$0xf]  ;;  %v4002_v35 = vld [vmem:[%s4768_s27 + $0x394] sm:$0xf0]  ;;  %v3180_v38 = vor.u32 %v3970_v33, %v3179_v32 }
 0x19d   : > { %2429 = vmatpush.bf16.msrb.mxu0 %v3368_v51  ;;  %v2907_v40 = vld [vmem:[%s4768_s27 + $0x68] sm:$0xf]  ;;  %v3902_v41 = vld [vmem:[%s4768_s27 + $0x74] sm:$0xf0]  ;;  %v3308_v45 = vor.u32 %v4002_v35, %v3307_v34 }
 0x19e   : > { %2443 = vmatpush.bf16.msrb.mxu1 %v3496_v55  ;;  %v3035_v42 = vld [vmem:[%s4768_s27 + $0x168] sm:$0xf]  ;;  %v3934_v46 = vld [vmem:[%s4768_s27 + $0x174] sm:$0xf0]  ;;  %v2908_v52 = vor.u32 %v3902_v41, %v2907_v40 }
 0x19f   : > { %2457 = vmatpush.bf16.msrb.mxu2 %v3624_v56  ;;  %v3163_v48 = vld [vmem:[%s4768_s27 + $0x268] sm:$0xf]  ;;  %v3966_v49 = vld [vmem:[%s4768_s27 + $0x274] sm:$0xf0]  ;;  %v3036_v53 = vor.u32 %v3934_v46, %v3035_v42 }
 0x1a0   : > { %2471 = vmatpush.bf16.msrb.mxu3 %v3752_v60  ;;  %2430 = vmatmul.bf16.vlgmr.msrb.gmra.mxu0 %v4969_v39  ;;  %v3291_v50 = vld [vmem:[%s4768_s27 + $0x368] sm:$0xf]  ;;  %v3998_v51 = vld [vmem:[%s4768_s27 + $0x374] sm:$0xf0]  ;;  %v3164_v54 = vor.u32 %v3966_v49, %v3163_v48 }
 0x1a1   : > { %2478 = vmatpush.bf16.msra.mxu0 %v2972_v61  ;;  %2444 = vmatmul.bf16.vlgmr.msrb.gmra.mxu1 %v4976_v44  ;;  %v2891_v55 = vld [vmem:[%s4768_s27 + $0x48] sm:$0xf]  ;;  %v3898_v56 = vld [vmem:[%s4768_s27 + $0x54] sm:$0xf0]  ;;  %v3292_v59 = vor.u32 %v3998_v51, %v3291_v50 }
 0x1a2   : > { %2492 = vmatpush.bf16.msra.mxu1 %v3100_v62  ;;  %2458 = vmatmul.bf16.vlgmr.msrb.gmra.mxu2 %v4974_v43  ;;  %v3019_v57 = vld [vmem:[%s4768_s27 + $0x148] sm:$0xf]  ;;  %v3930_v60 = vld [vmem:[%s4768_s27 + $0x154] sm:$0xf0]  ;;  %v2892_v2 = vor.u32 %v3898_v56, %v2891_v55 }
 0x1a3   : > { %2506 = vmatpush.bf16.msra.mxu2 %v3228_v63  ;;  %2472 = vmatmul.bf16.vlgmr.msrb.gmra.mxu3 %v4980_v47  ;;  %v3147_v61 = vld [vmem:[%s4768_s27 + $0x248] sm:$0xf]  ;;  %v3962_v62 = vld [vmem:[%s4768_s27 + $0x254] sm:$0xf0]  ;;  %v3020_v3 = vor.u32 %v3930_v60, %v3019_v57 }
 0x1a4   : > { %2520 = vmatpush.bf16.msra.mxu3 %v3356_v4  ;;  %v3275_v63 = vld [vmem:[%s4768_s27 + $0x348] sm:$0xf]  ;;  %v3994_v0 = vld [vmem:[%s4768_s27 + $0x354] sm:$0xf0]  ;;  %v3148_v4 = vor.u32 %v3962_v62, %v3147_v61 }
 0x1a5   : > { %2479 = vmatpush.bf16.msra.mxu0 %v2956_v11  ;;  %v2875_v5 = vld [vmem:[%s4768_s27 + $0x28] sm:$0xf]  ;;  %v3894_v6 = vld [vmem:[%s4768_s27 + $0x34] sm:$0xf0]  ;;  %v3276_v8 = vor.u32 %v3994_v0, %v3275_v63 }
 0x1a6   : > { %2493 = vmatpush.bf16.msra.mxu1 %v3084_v12  ;;  %v3003_v7 = vld [vmem:[%s4768_s27 + $0x128] sm:$0xf]  ;;  %v3926_v9 = vld [vmem:[%s4768_s27 + $0x134] sm:$0xf0]  ;;  %v2876_v15 = vor.u32 %v3894_v6, %v2875_v5 }
 0x1a7   : > { %2507 = vmatpush.bf16.msra.mxu2 %v3212_v13  ;;  %v3131_v11 = vld [vmem:[%s4768_s27 + $0x228] sm:$0xf]  ;;  %v3958_v12 = vld [vmem:[%s4768_s27 + $0x234] sm:$0xf0]  ;;  %v3004_v19 = vor.u32 %v3926_v9, %v3003_v7 }
 0x1a8   : > { %2521 = vmatpush.bf16.msra.mxu3 %v3340_v18  ;;  %v3259_v13 = vld [vmem:[%s4768_s27 + $0x328] sm:$0xf]  ;;  %v3990_v14 = vld [vmem:[%s4768_s27 + $0x334] sm:$0xf0]  ;;  %v3132_v20 = vor.u32 %v3958_v12, %v3131_v11 }
 0x1a9   : > { %2480 = vmatpush.bf16.msra.mxu0 %v2940_v24  ;;  %v2859_v16 = vld [vmem:[%s4768_s27 + $0x8] sm:$0xf]  ;;  %v3890_v18 = vld [vmem:[%s4768_s27 + $0x14] sm:$0xf0]  ;;  %v3260_v24 = vor.u32 %v3990_v14, %v3259_v13 }
 0x1aa   : > { %2494 = vmatpush.bf16.msra.mxu1 %v3068_v25  ;;  %v2987_v21 = vld [vmem:[%s4768_s27 + $0x108] sm:$0xf]  ;;  %v3922_v22 = vld [vmem:[%s4768_s27 + $0x114] sm:$0xf0]  ;;  %v2860_v31 = vor.u32 %v3890_v18, %v2859_v16 }
 0x1ab   : > { %2508 = vmatpush.bf16.msra.mxu2 %v3196_v26  ;;  %v3115_v23 = vld [vmem:[%s4768_s27 + $0x208] sm:$0xf]  ;;  %v3954_v25 = vld [vmem:[%s4768_s27 + $0x214] sm:$0xf0]  ;;  %v2988_v35 = vor.u32 %v3922_v22, %v2987_v21 }
 0x1ac   : > { %2522 = vmatpush.bf16.msra.mxu3 %v3324_v30  ;;  %v3243_v26 = vld [vmem:[%s4768_s27 + $0x308] sm:$0xf]  ;;  %v3986_v27 = vld [vmem:[%s4768_s27 + $0x314] sm:$0xf0] }
 0x1ad   : > { %2481 = vmatpush.bf16.msra.mxu0 %v2924_v36  ;;  %v3483_v28 = vld [vmem:[%s4768_s27 + $0x4e8] sm:$0xf]  ;;  %v4046_v29 = vld [vmem:[%s4768_s27 + $0x4f4] sm:$0xf0]  ;;  %v3116_v36 = vor.u32 %v3954_v25, %v3115_v23  ;;  %v3244_v40 = vor.u32 %v3986_v27, %v3243_v26 }
 0x1ae   : > { %2495 = vmatpush.bf16.msra.mxu1 %v3052_v37  ;;  %v3611_v30 = vld [vmem:[%s4768_s27 + $0x5e8] sm:$0xf]  ;;  %v4078_v32 = vld [vmem:[%s4768_s27 + $0x5f4] sm:$0xf0]  ;;  %v3484_v41 = vor.u32 %v4046_v29, %v3483_v28 }
 0x1af   : > { %2509 = vmatpush.bf16.msra.mxu2 %v3180_v38  ;;  %v3739_v33 = vld [vmem:[%s4768_s27 + $0x6e8] sm:$0xf]  ;;  %v4110_v34 = vld [vmem:[%s4768_s27 + $0x6f4] sm:$0xf0]  ;;  %v3612_v42 = vor.u32 %v4078_v32, %v3611_v30 }
 0x1b0   : > { %2523 = vmatpush.bf16.msra.mxu3 %v3308_v45  ;;  %v3867_v37 = vld [vmem:[%s4768_s27 + $0x7e8] sm:$0xf]  ;;  %v4142_v38 = vld [vmem:[%s4768_s27 + $0x7f4] sm:$0xf0]  ;;  %v3740_v45 = vor.u32 %v4110_v34, %v3739_v33 }
 0x1b1   : > { %2482 = vmatpush.bf16.msra.mxu0 %v2908_v52  ;;  %v3467_v46 = vld [vmem:[%s4768_s27 + $0x4c8] sm:$0xf]  ;;  %v4042_v48 = vld [vmem:[%s4768_s27 + $0x4d4] sm:$0xf0]  ;;  %v3868_v50 = vor.u32 %v4142_v38, %v3867_v37 }
 0x1b2   : > { %2496 = vmatpush.bf16.msra.mxu1 %v3036_v53  ;;  %v3595_v49 = vld [vmem:[%s4768_s27 + $0x5c8] sm:$0xf]  ;;  %v4074_v51 = vld [vmem:[%s4768_s27 + $0x5d4] sm:$0xf0]  ;;  %v3468_v56 = vor.u32 %v4042_v48, %v3467_v46 }
 0x1b3   : > { %2510 = vmatpush.bf16.msra.mxu2 %v3164_v54  ;;  %v3723_v52 = vld [vmem:[%s4768_s27 + $0x6c8] sm:$0xf]  ;;  %v4106_v53 = vld [vmem:[%s4768_s27 + $0x6d4] sm:$0xf0]  ;;  %v3596_v57 = vor.u32 %v4074_v51, %v3595_v49 }
 0x1b4   : > { %2524 = vmatpush.bf16.msra.mxu3 %v3292_v59  ;;  %v3851_v54 = vld [vmem:[%s4768_s27 + $0x7c8] sm:$0xf]  ;;  %v4138_v55 = vld [vmem:[%s4768_s27 + $0x7d4] sm:$0xf0]  ;;  %v3724_v59 = vor.u32 %v4106_v53, %v3723_v52 }
 0x1b5   : > { %2483 = vmatpush.bf16.msra.mxu0 %v2892_v2  ;;  %v3451_v60 = vld [vmem:[%s4768_s27 + $0x4a8] sm:$0xf]  ;;  %v4038_v61 = vld [vmem:[%s4768_s27 + $0x4b4] sm:$0xf0]  ;;  %v3852_v63 = vor.u32 %v4138_v55, %v3851_v54 }
 0x1b6   : > { %2497 = vmatpush.bf16.msra.mxu1 %v3020_v3  ;;  %v3579_v62 = vld [vmem:[%s4768_s27 + $0x5a8] sm:$0xf]  ;;  %v4070_v0 = vld [vmem:[%s4768_s27 + $0x5b4] sm:$0xf0]  ;;  %v3452_v6 = vor.u32 %v4038_v61, %v3451_v60 }
 0x1b7   : > { %2511 = vmatpush.bf16.msra.mxu2 %v3148_v4  ;;  %v3707_v2 = vld [vmem:[%s4768_s27 + $0x6a8] sm:$0xf]  ;;  %v4102_v3 = vld [vmem:[%s4768_s27 + $0x6b4] sm:$0xf0]  ;;  %v3580_v7 = vor.u32 %v4070_v0, %v3579_v62 }
 0x1b8   : > { %2525 = vmatpush.bf16.msra.mxu3 %v3276_v8  ;;  %v3835_v4 = vld [vmem:[%s4768_s27 + $0x7a8] sm:$0xf]  ;;  %v4134_v5 = vld [vmem:[%s4768_s27 + $0x7b4] sm:$0xf0]  ;;  %v3708_v8 = vor.u32 %v4102_v3, %v3707_v2 }
 0x1b9   : > { %2484 = vmatpush.bf16.msra.mxu0 %v2876_v15  ;;  %v3435_v9 = vld [vmem:[%s4768_s27 + $0x488] sm:$0xf]  ;;  %v4034_v11 = vld [vmem:[%s4768_s27 + $0x494] sm:$0xf0]  ;;  %v3836_v13 = vor.u32 %v4134_v5, %v3835_v4 }
 0x1ba   : > { %2498 = vmatpush.bf16.msra.mxu1 %v3004_v19  ;;  %v3563_v12 = vld [vmem:[%s4768_s27 + $0x588] sm:$0xf]  ;;  %v4066_v14 = vld [vmem:[%s4768_s27 + $0x594] sm:$0xf0] }
 0x1bb   : > { %2512 = vmatpush.bf16.msra.mxu2 %v3132_v20  ;;  %v3691_v15 = vld [vmem:[%s4768_s27 + $0x688] sm:$0xf]  ;;  %v4098_v16 = vld [vmem:[%s4768_s27 + $0x694] sm:$0xf0]  ;;  %v3436_v20 = vor.u32 %v4034_v11, %v3435_v9  ;;  %v3564_v21 = vor.u32 %v4066_v14, %v3563_v12  ;;  %v2973_v14 = vld [vmem:[%s4768_s27 + $0xf8] sm:$0xf0] }
 0x1bc   : > { %2526 = vmatpush.bf16.msra.mxu3 %v3260_v24  ;;  %v3819_v18 = vld [vmem:[%s4768_s27 + $0x788] sm:$0xf]  ;;  %v4130_v19 = vld [vmem:[%s4768_s27 + $0x794] sm:$0xf0]  ;;  %v3692_v22 = vor.u32 %v4098_v16, %v3691_v15  ;;  %v2277_v60 = vpop.f32.mrf.mxu1  ;;  %v3948_v15 = vld [vmem:[%s4768_s27 + $0x1ec] sm:$0xf] }
 0x1bd   : > { %2485 = vmatpush.bf16.msra.mxu0 %v2860_v31  ;;  %v3419_v23 = vld [vmem:[%s4768_s27 + $0x468] sm:$0xf]  ;;  %v4030_v24 = vld [vmem:[%s4768_s27 + $0x474] sm:$0xf0]  ;;  %v3820_v26 = vor.u32 %v4130_v19, %v3819_v18  ;;  %v3101_v18 = vld [vmem:[%s4768_s27 + $0x1f8] sm:$0xf0] }
 0x1be   : > { %2499 = vmatpush.bf16.msra.mxu1 %v2988_v35  ;;  %v3547_v25 = vld [vmem:[%s4768_s27 + $0x568] sm:$0xf]  ;;  %v4062_v27 = vld [vmem:[%s4768_s27 + $0x574] sm:$0xf0]  ;;  %v3420_v32 = vor.u32 %v4030_v24, %v3419_v23  ;;  %v3980_v19 = vld [vmem:[%s4768_s27 + $0x2ec] sm:$0xf] }
 0x1bf   : > { %2513 = vmatpush.bf16.msra.mxu2 %v3116_v36  ;;  %v3675_v28 = vld [vmem:[%s4768_s27 + $0x668] sm:$0xf]  ;;  %v4094_v29 = vld [vmem:[%s4768_s27 + $0x674] sm:$0xf0]  ;;  %v3548_v33 = vor.u32 %v4062_v27, %v3547_v25  ;;  %v4012_v24 = vld [vmem:[%s4768_s27 + $0x3ec] sm:$0xf] }
 0x1c0   : > { %2527 = vmatpush.bf16.msra.mxu3 %v3244_v40  ;;  %2486 = vmatmul.bf16.vlgmr.msra.gmra.mxu0 %v4861_v58  ;;  %v3803_v30 = vld [vmem:[%s4768_s27 + $0x768] sm:$0xf]  ;;  %v4126_v31 = vld [vmem:[%s4768_s27 + $0x774] sm:$0xf0]  ;;  %v3676_v34 = vor.u32 %v4094_v29, %v3675_v28  ;;  %v3357_v25 = vld [vmem:[%s4768_s27 + $0x3f8] sm:$0xf0] }
 0x1c1   : > { %2534 = vmatpush.bf16.msrb.mxu0 %v3484_v41  ;;  %2500 = vmatmul.bf16.vlgmr.msra.gmra.mxu1 %v4885_v10  ;;  %v3403_v35 = vld [vmem:[%s4768_s27 + $0x448] sm:$0xf]  ;;  %v4026_v36 = vld [vmem:[%s4768_s27 + $0x454] sm:$0xf0]  ;;  %v3804_v38 = vor.u32 %v4126_v31, %v3803_v30  ;;  %v3104_v30 = vor.u32 %v3948_v15, %v3101_v18  ;;  %v3309_v15 = vld [vmem:[%s4768_s27 + $0x398] sm:$0xf0] }
 0x1c2   : > { %2548 = vmatpush.bf16.msrb.mxu1 %v3612_v42  ;;  %2514 = vmatmul.bf16.vlgmr.msra.gmra.mxu2 %v4869_v1  ;;  %v3531_v37 = vld [vmem:[%s4768_s27 + $0x548] sm:$0xf]  ;;  %v4058_v40 = vld [vmem:[%s4768_s27 + $0x554] sm:$0xf0]  ;;  %v3404_v48 = vor.u32 %v4026_v36, %v3403_v35  ;;  %v3944_v35 = vld [vmem:[%s4768_s27 + $0x1cc] sm:$0xf]  ;;  %v3360_v36 = vor.u32 %v4012_v24, %v3357_v25 }
 0x1c3   : > { %2562 = vmatpush.bf16.msrb.mxu2 %v3740_v45  ;;  %2528 = vmatmul.bf16.vlgmr.msra.gmra.mxu3 %v4893_v17  ;;  %v3659_v41 = vld [vmem:[%s4768_s27 + $0x648] sm:$0xf]  ;;  %v4090_v42 = vld [vmem:[%s4768_s27 + $0x654] sm:$0xf0]  ;;  %v3532_v49 = vor.u32 %v4058_v40, %v3531_v37  ;;  %v3085_v37 = vld [vmem:[%s4768_s27 + $0x1d8] sm:$0xf0] }
 0x1c4   : > { %2576 = vmatpush.bf16.msrb.mxu3 %v3868_v50  ;;  %v3787_v45 = vld [vmem:[%s4768_s27 + $0x748] sm:$0xf]  ;;  %v4122_v46 = vld [vmem:[%s4768_s27 + $0x754] sm:$0xf0]  ;;  %v3660_v50 = vor.u32 %v4090_v42, %v3659_v41  ;;  %v3213_v40 = vld [vmem:[%s4768_s27 + $0x2d8] sm:$0xf0]  ;;  %v2279_v41 = vpop.f32.mrf.mxu1 }
 0x1c5   : > { %2535 = vmatpush.bf16.msrb.mxu0 %v3468_v56  ;;  %v2263_v51 = vpop.f32.mrf.mxu0  ;;  %v3387_v52 = vld [vmem:[%s4768_s27 + $0x428] sm:$0xf]  ;;  %v4022_v53 = vld [vmem:[%s4768_s27 + $0x434] sm:$0xf0]  ;;  %v3788_v55 = vor.u32 %v4122_v46, %v3787_v45  ;;  %v4008_v42 = vld [vmem:[%s4768_s27 + $0x3cc] sm:$0xf] }
 0x1c6   : > { %2549 = vmatpush.bf16.msrb.mxu1 %v3596_v57  ;;  %v3515_v54 = vld [vmem:[%s4768_s27 + $0x528] sm:$0xf]  ;;  %v4054_v56 = vld [vmem:[%s4768_s27 + $0x534] sm:$0xf0]  ;;  %v2278_v27 = vadd.f32 %v2277_v60, %v2263_v51  ;;  %v3341_v45 = vld [vmem:[%s4768_s27 + $0x3d8] sm:$0xf0] }
 0x1c7   : > { %2563 = vmatpush.bf16.msrb.mxu2 %v3724_v59  ;;  %v3643_v57 = vld [vmem:[%s4768_s27 + $0x628] sm:$0xf]  ;;  %v4086_v59 = vld [vmem:[%s4768_s27 + $0x634] sm:$0xf0]  ;;  %v3516_v3 = vor.u32 %v4054_v56, %v3515_v54  ;;  %v3908_v51 = vld [vmem:[%s4768_s27 + $0xac] sm:$0xf]  ;;  %v3344_v54 = vor.u32 %v4008_v42, %v3341_v45 }
 0x1c8   : > { %2577 = vmatpush.bf16.msrb.mxu3 %v3852_v63  ;;  %v3771_v61 = vld [vmem:[%s4768_s27 + $0x728] sm:$0xf]  ;;  %v4118_v62 = vld [vmem:[%s4768_s27 + $0x734] sm:$0xf0]  ;;  %v3388_v63 = vor.u32 %v4022_v53, %v3387_v52  ;;  %v3644_v4 = vor.u32 %v4086_v59, %v3643_v57  ;;  %v2941_v52 = vld [vmem:[%s4768_s27 + $0xb8] sm:$0xf0] }
 0x1c9   : > { %2536 = vmatpush.bf16.msrb.mxu0 %v3452_v6  ;;  %v3371_v0 = vld [vmem:[%s4768_s27 + $0x408] sm:$0xf]  ;;  %v4018_v2 = vld [vmem:[%s4768_s27 + $0x414] sm:$0xf0]  ;;  %v3940_v53 = vld [vmem:[%s4768_s27 + $0x1ac] sm:$0xf] }
 0x1ca   : > { %2550 = vmatpush.bf16.msrb.mxu1 %v3580_v7  ;;  %v3499_v5 = vld [vmem:[%s4768_s27 + $0x508] sm:$0xf]  ;;  %v4050_v6 = vld [vmem:[%s4768_s27 + $0x514] sm:$0xf0]  ;;  %v3372_v16 = vor.u32 %v4018_v2, %v3371_v0  ;;  %v3972_v56 = vld [vmem:[%s4768_s27 + $0x2ac] sm:$0xf] }
 0x1cb   : > { %2564 = vmatpush.bf16.msrb.mxu2 %v3708_v8  ;;  %v3627_v7 = vld [vmem:[%s4768_s27 + $0x608] sm:$0xf]  ;;  %v3772_v8 = vor.u32 %v4118_v62, %v3771_v61  ;;  %v4082_v9 = vld [vmem:[%s4768_s27 + $0x614] sm:$0xf0]  ;;  %v3197_v57 = vld [vmem:[%s4768_s27 + $0x2b8] sm:$0xf0]  ;;  %v2944_v62 = vor.u32 %v3908_v51, %v2941_v52 }
 0x1cc   : > { %2578 = vmatpush.bf16.msrb.mxu3 %v3836_v13  ;;  %v3755_v11 = vld [vmem:[%s4768_s27 + $0x708] sm:$0xf]  ;;  %v4114_v12 = vld [vmem:[%s4768_s27 + $0x714] sm:$0xf0]  ;;  %v3916_v13 = vld [vmem:[%s4768_s27 + $0xec] sm:$0xf]  ;;  %v3628_v23 = vor.u32 %v4082_v9, %v3627_v7  ;;  %v3200_v2 = vor.u32 %v3972_v56, %v3197_v57 }
 0x1cd   : > { %2537 = vmatpush.bf16.msrb.mxu0 %v3436_v20  ;;  %v3229_v20 = vld [vmem:[%s4768_s27 + $0x2f8] sm:$0xf0]  ;;  %v3756_v28 = vor.u32 %v4114_v12, %v3755_v11  ;;  %v2976_v29 = vor.u32 %v3916_v13, %v2973_v14  ;;  %v4004_v59 = vld [vmem:[%s4768_s27 + $0x3ac] sm:$0xf] }
 0x1ce   : > { %2551 = vmatpush.bf16.msrb.mxu1 %v3564_v21  ;;  %v2291_v21 = vpop.f32.mrf.mxu2  ;;  %v3232_v31 = vor.u32 %v3980_v19, %v3229_v20  ;;  %v3325_v60 = vld [vmem:[%s4768_s27 + $0x3b8] sm:$0xf0]  ;;  %v3968_v9 = vld [vmem:[%s4768_s27 + $0x28c] sm:$0xf] }
 0x1cf   : > { %2565 = vmatpush.bf16.msrb.mxu2 %v3692_v22  ;;  %v3500_v22 = vor.u32 %v4050_v6, %v3499_v5  ;;  %v2292_v46 = vadd.f32 %v2291_v21, %v2278_v27  ;;  %v2925_v5 = vld [vmem:[%s4768_s27 + $0x98] sm:$0xf0]  ;;  %v3936_v6 = vld [vmem:[%s4768_s27 + $0x18c] sm:$0xf]  ;;  %v3328_v7 = vor.u32 %v4004_v59, %v3325_v60 }
 0x1d0   : > { %2579 = vmatpush.bf16.msrb.mxu3 %v3820_v26  ;;  %v2305_v26 = vpop.f32.mrf.mxu3  ;;  %v3181_v11 = vld [vmem:[%s4768_s27 + $0x298] sm:$0xf0]  ;;  %v4000_v14 = vld [vmem:[%s4768_s27 + $0x38c] sm:$0xf] }
 0x1d1   : > { %2538 = vmatpush.bf16.msrb.mxu0 %v3420_v32  ;;  %v2265_v32 = vpop.f32.mrf.mxu0  ;;  %v2306_v61 = vadd.f32 %v2305_v26, %v2292_v46  ;;  %v3184_v21 = vor.u32 %v3968_v9, %v3181_v11  ;;  %v3932_v24 = vld [vmem:[%s4768_s27 + $0x16c] sm:$0xf]  ;;  %v3312_v25 = vor.u32 %v4000_v14, %v3309_v15  ;;  %v3037_v26 = vld [vmem:[%s4768_s27 + $0x178] sm:$0xf0] }
 0x1d2   : > { %2552 = vmatpush.bf16.msrb.mxu1 %v3548_v33  ;;  %v3912_v33 = vld [vmem:[%s4768_s27 + $0xcc] sm:$0xf]  ;;  %v2280_v12 = vadd.f32 %v2279_v41, %v2265_v32  ;;  %v3293_v32 = vld [vmem:[%s4768_s27 + $0x378] sm:$0xf0] }
 0x1d3   : > { %2566 = vmatpush.bf16.msrb.mxu2 %v3676_v34  ;;  %v2957_v34 = vld [vmem:[%s4768_s27 + $0xd8] sm:$0xf0]  ;;  %v3964_v27 = vld [vmem:[%s4768_s27 + $0x26c] sm:$0xf] }
 0x1d4   : > { %2580 = vmatpush.bf16.msrb.mxu3 %v3804_v38  ;;  %v3976_v38 = vld [vmem:[%s4768_s27 + $0x2cc] sm:$0xf]  ;;  %v3149_v46 = vld [vmem:[%s4768_s27 + $0x258] sm:$0xf0] }
 0x1d5   : > { %2539 = vmatpush.bf16.msrb.mxu0 %v3404_v48  ;;  %v2960_v48 = vor.u32 %v3912_v33, %v2957_v34  ;;  %v3896_v34 = vld [vmem:[%s4768_s27 + $0x4c] sm:$0xf]  ;;  %v2861_v9 = vld [vmem:[%s4768_s27 + $0x18] sm:$0xf0] }
 0x1d6   : > { %2553 = vmatpush.bf16.msrb.mxu1 %v3532_v49  ;;  %v3088_v49 = vor.u32 %v3944_v35, %v3085_v37  ;;  %v3040_v35 = vor.u32 %v3932_v24, %v3037_v26  ;;  %v2893_v37 = vld [vmem:[%s4768_s27 + $0x58] sm:$0xf0]  ;;  %v3960_v45 = vld [vmem:[%s4768_s27 + $0x24c] sm:$0xf] }
 0x1d7   : > { %2567 = vmatpush.bf16.msrb.mxu2 %v3660_v50  ;;  %v3216_v50 = vor.u32 %v3976_v38, %v3213_v40  ;;  %v3928_v38 = vld [vmem:[%s4768_s27 + $0x14c] sm:$0xf]  ;;  %v3021_v40 = vld [vmem:[%s4768_s27 + $0x158] sm:$0xf0]  ;;  %v3152_v59 = vor.u32 %v3960_v45, %v3149_v46 }
 0x1d8   : > { %2581 = vmatpush.bf16.msrb.mxu3 %v3788_v55  ;;  %v3069_v55 = vld [vmem:[%s4768_s27 + $0x1b8] sm:$0xf0]  ;;  %v3992_v52 = vld [vmem:[%s4768_s27 + $0x34c] sm:$0xf] }
 0x1d9   : > { %2540 = vmatpush.bf16.msrb.mxu0 %v3388_v63  ;;  %v2293_v63 = vpop.f32.mrf.mxu2  ;;  %v3072_v0 = vor.u32 %v3940_v53, %v3069_v55  ;;  %v3277_v53 = vld [vmem:[%s4768_s27 + $0x358] sm:$0xf0]  ;;  %v3024_v55 = vor.u32 %v3928_v38, %v3021_v40  ;;  %v3892_v60 = vld [vmem:[%s4768_s27 + $0x2c] sm:$0xf] }
 0x1da   : > { %2554 = vmatpush.bf16.msrb.mxu1 %v3516_v3  ;;  %v2307_v3 = vpop.f32.mrf.mxu3  ;;  %v3920_v14 = vld [vmem:[%s4768_s27 + $0x10c] sm:$0xf]  ;;  %v2989_v15 = vld [vmem:[%s4768_s27 + $0x118] sm:$0xf0] }
 0x1db   : > { %2568 = vmatpush.bf16.msrb.mxu2 %v3644_v4  ;;  %v3904_v4 = vld [vmem:[%s4768_s27 + $0x8c] sm:$0xf]  ;;  %v3485_v26 = vld [vmem:[%s4768_s27 + $0x4f8] sm:$0xf0] }
 0x1dc   : > { %2582 = vmatpush.bf16.msrb.mxu3 %v3772_v8  ;;  %v3053_v8 = vld [vmem:[%s4768_s27 + $0x198] sm:$0xf0]  ;;  %v2928_v18 = vor.u32 %v3904_v4, %v2925_v5  ;;  %v3988_v5 = vld [vmem:[%s4768_s27 + $0x32c] sm:$0xf] }
 0x1dd   : > { %2541 = vmatpush.bf16.msrb.mxu0 %v3372_v16  ;;  %v2319_v13 = vpop.f32.mrf.mxu0  ;;  %v3056_v20 = vor.u32 %v3936_v6, %v3053_v8  ;;  %v3133_v4 = vld [vmem:[%s4768_s27 + $0x238] sm:$0xf0]  ;;  %v3888_v8 = vld [vmem:[%s4768_s27 + $0xc] sm:$0xf] }
 0x1de   : > { %2555 = vmatpush.bf16.msrb.mxu1 %v3500_v22  ;;  %v2320_v16 = vadd.f32 %v2319_v13, %v2306_v61  ;;  %v2333_v19 = vpop.f32.mrf.mxu1  ;;  %v3900_v22 = vld [vmem:[%s4768_s27 + $0x6c] sm:$0xf]  ;;  %v2877_v61 = vld [vmem:[%s4768_s27 + $0x38] sm:$0xf0] }
 0x1df   : > { %2569 = vmatpush.bf16.msrb.mxu2 %v3628_v23  ;;  %v2909_v23 = vld [vmem:[%s4768_s27 + $0x78] sm:$0xf0]  ;;  %v4040_v40 = vld [vmem:[%s4768_s27 + $0x4cc] sm:$0xf] }
 0x1e0   : > { %2583 = vmatpush.bf16.msrb.mxu3 %v3756_v28  ;;  %2542 = vmatmul.bf16.vlgmr.msrb.gmra.mxu0 %v4969_v39  ;;  %v3165_v28 = vld [vmem:[%s4768_s27 + $0x278] sm:$0xf0]  ;;  %v2912_v33 = vor.u32 %v3900_v22, %v2909_v23  ;;  %v4072_v46 = vld [vmem:[%s4768_s27 + $0x5cc] sm:$0xf] }
 0x1e1   : > { %2590 = vmatpush.bf16.msra.mxu0 %v2976_v29  ;;  %2556 = vmatmul.bf16.vlgmr.msrb.gmra.mxu1 %v4976_v44  ;;  %v2294_v29 = vadd.f32 %v2293_v63, %v2280_v12  ;;  %v3280_v63 = vor.u32 %v3992_v52, %v3277_v53  ;;  %v3261_v6 = vld [vmem:[%s4768_s27 + $0x338] sm:$0xf0]  ;;  %v4136_v52 = vld [vmem:[%s4768_s27 + $0x7cc] sm:$0xf] }
 0x1e2   : > { %2604 = vmatpush.bf16.msra.mxu1 %v3104_v30  ;;  %2570 = vmatmul.bf16.vlgmr.msrb.gmra.mxu2 %v4974_v43  ;;  %v2334_v30 = vadd.f32 %v2333_v19, %v2320_v16  ;;  %v3952_v16 = vld [vmem:[%s4768_s27 + $0x20c] sm:$0xf]  ;;  %v3245_v22 = vld [vmem:[%s4768_s27 + $0x318] sm:$0xf0] }
 0x1e3   : > { %2618 = vmatpush.bf16.msra.mxu2 %v3232_v31  ;;  %2584 = vmatmul.bf16.vlgmr.msrb.gmra.mxu3 %v4980_v47  ;;  %v3996_v31 = vld [vmem:[%s4768_s27 + $0x36c] sm:$0xf]  ;;  %v3469_v45 = vld [vmem:[%s4768_s27 + $0x4d8] sm:$0xf0] }
 0x1e4   : > { %2632 = vmatpush.bf16.msra.mxu3 %v3360_v36  ;;  %v3168_v36 = vor.u32 %v3964_v27, %v3165_v28  ;;  %v3296_v41 = vor.u32 %v3996_v31, %v3293_v32  ;;  %v4076_v27 = vld [vmem:[%s4768_s27 + $0x5ec] sm:$0xf]  ;;  %v2864_v28 = vor.u32 %v3888_v8, %v2861_v9  ;;  %v3741_v31 = vld [vmem:[%s4768_s27 + $0x6f8] sm:$0xf0] }
 0x1e5   : > { %2591 = vmatpush.bf16.msra.mxu0 %v2960_v48  ;;  %v2347_v42 = vpop.f32.mrf.mxu2  ;;  %v2308_v48 = vadd.f32 %v2307_v3, %v2294_v29  ;;  %v3956_v3 = vld [vmem:[%s4768_s27 + $0x22c] sm:$0xf]  ;;  %v3613_v29 = vld [vmem:[%s4768_s27 + $0x5f8] sm:$0xf0] }
 0x1e6   : > { %2605 = vmatpush.bf16.msra.mxu1 %v3088_v49  ;;  %v2348_v49 = vadd.f32 %v2347_v42, %v2334_v30  ;;  %v2361_v51 = vpop.f32.mrf.mxu3  ;;  %v3136_v13 = vor.u32 %v3956_v3, %v3133_v4  ;;  %v4108_v30 = vld [vmem:[%s4768_s27 + $0x6ec] sm:$0xf]  ;;  %v3853_v53 = vld [vmem:[%s4768_s27 + $0x7d8] sm:$0xf0] }
 0x1e7   : > { %2619 = vmatpush.bf16.msra.mxu2 %v3216_v50  ;;  %v2321_v50 = vpop.f32.mrf.mxu0  ;;  %v3744_v42 = vor.u32 %v4108_v30, %v3741_v31  ;;  %v3837_v3 = vld [vmem:[%s4768_s27 + $0x7b8] sm:$0xf0]  ;;  %v4056_v31 = vld [vmem:[%s4768_s27 + $0x54c] sm:$0xf] }
 0x1e8   : > { %2633 = vmatpush.bf16.msra.mxu3 %v3344_v54  ;;  %v2896_v54 = vor.u32 %v3896_v34, %v2893_v37  ;;  %v2322_v56 = vadd.f32 %v2321_v50, %v2308_v48  ;;  %v2362_v57 = vadd.f32 %v2361_v51, %v2348_v49  ;;  %v3597_v49 = vld [vmem:[%s4768_s27 + $0x5d8] sm:$0xf0]  ;;  %v4104_v50 = vld [vmem:[%s4768_s27 + $0x6cc] sm:$0xf] }
 0x1e9   : > { %2592 = vmatpush.bf16.msra.mxu0 %v2944_v62  ;;  %v3924_v62 = vld [vmem:[%s4768_s27 + $0x12c] sm:$0xf]  ;;  %v3725_v51 = vld [vmem:[%s4768_s27 + $0x6d8] sm:$0xf0] }
 0x1ea   : > { %2606 = vmatpush.bf16.msra.mxu1 %v3072_v0  ;;  %v2335_v0 = vpop.f32.mrf.mxu1  ;;  %2702 = vst [vmem:[%s5301_s9] sm:$0xff] %v2362_v57  ;;  %v4036_v57 = vld [vmem:[%s4768_s27 + $0x4ac] sm:$0xf]  ;;  %v3565_v9 = vld [vmem:[%s4768_s27 + $0x598] sm:$0xf0] }
 0x1eb   : > { %2620 = vmatpush.bf16.msra.mxu2 %v3200_v2  ;;  %v3005_v2 = vld [vmem:[%s4768_s27 + $0x138] sm:$0xf0]  ;;  %v2336_v11 = vadd.f32 %v2335_v0, %v2322_v56  ;;  %v3728_v56 = vor.u32 %v4104_v50, %v3725_v51  ;;  %v4084_v51 = vld [vmem:[%s4768_s27 + $0x62c] sm:$0xf] }
 0x1ec   : > { %2634 = vmatpush.bf16.msra.mxu3 %v3328_v7  ;;  %v2880_v7 = vor.u32 %v3892_v60, %v2877_v61  ;;  %v3008_v12 = vor.u32 %v3924_v62, %v3005_v2  ;;  %v4068_v60 = vld [vmem:[%s4768_s27 + $0x5ac] sm:$0xf]  ;;  %v3856_v61 = vor.u32 %v4136_v52, %v3853_v53  ;;  %v3581_v62 = vld [vmem:[%s4768_s27 + $0x5b8] sm:$0xf0] }
 0x1ed   : > { %2593 = vmatpush.bf16.msra.mxu0 %v2928_v18  ;;  %v3264_v18 = vor.u32 %v3988_v5, %v3261_v6  ;;  %v2349_v19 = vpop.f32.mrf.mxu2  ;;  %v3709_v0 = vld [vmem:[%s4768_s27 + $0x6b8] sm:$0xf0]  ;;  %v4132_v2 = vld [vmem:[%s4768_s27 + $0x7ac] sm:$0xf] }
 0x1ee   : > { %2607 = vmatpush.bf16.msra.mxu1 %v3056_v20  ;;  %v3117_v20 = vld [vmem:[%s4768_s27 + $0x218] sm:$0xf0]  ;;  %v2350_v23 = vadd.f32 %v2349_v19, %v2336_v11  ;;  %v2363_v24 = vpop.f32.mrf.mxu3  ;;  %v4032_v6 = vld [vmem:[%s4768_s27 + $0x48c] sm:$0xf]  ;;  %v3840_v8 = vor.u32 %v4132_v2, %v3837_v3 }
 0x1ef   : > { %2621 = vmatpush.bf16.msra.mxu2 %v3184_v21  ;;  %v3984_v21 = vld [vmem:[%s4768_s27 + $0x30c] sm:$0xf]  ;;  %v3120_v34 = vor.u32 %v3952_v16, %v3117_v20  ;;  %v3693_v11 = vld [vmem:[%s4768_s27 + $0x698] sm:$0xf0] }
 0x1f0   : > { %2635 = vmatpush.bf16.msra.mxu3 %v3312_v25  ;;  %v4044_v25 = vld [vmem:[%s4768_s27 + $0x4ec] sm:$0xf]  ;;  %v2364_v32 = vadd.f32 %v2363_v24, %v2350_v23  ;;  %v3248_v37 = vor.u32 %v3984_v21, %v3245_v22  ;;  %v3549_v21 = vld [vmem:[%s4768_s27 + $0x578] sm:$0xf0] }
 0x1f1   : > { %2594 = vmatpush.bf16.msra.mxu0 %v2912_v33  ;;  %v2992_v33 = vor.u32 %v3920_v14, %v2989_v15  ;;  %v3488_v38 = vor.u32 %v4044_v25, %v3485_v26  ;;  %v4028_v16 = vld [vmem:[%s4768_s27 + $0x46c] sm:$0xf]  ;;  %v3677_v23 = vld [vmem:[%s4768_s27 + $0x678] sm:$0xf0] }
 0x1f2   : > { %2608 = vmatpush.bf16.msra.mxu1 %v3040_v35  ;;  %v4140_v35 = vld [vmem:[%s4768_s27 + $0x7ec] sm:$0xf]  ;;  %2706 = vst [vmem:[%s5301_s9 + $0x20] sm:$0xff] %v2364_v32  ;;  %v3805_v25 = vld [vmem:[%s4768_s27 + $0x778] sm:$0xf0] }
 0x1f3   : > { %2622 = vmatpush.bf16.msra.mxu2 %v3168_v36  ;;  %v3869_v36 = vld [vmem:[%s4768_s27 + $0x7f8] sm:$0xf0]  ;;  %v4060_v19 = vld [vmem:[%s4768_s27 + $0x56c] sm:$0xf] }
 0x1f4   : > { %2636 = vmatpush.bf16.msra.mxu3 %v3296_v41  ;;  %v3616_v41 = vor.u32 %v4076_v27, %v3613_v29  ;;  %v3872_v48 = vor.u32 %v4140_v35, %v3869_v36  ;;  %v4092_v22 = vld [vmem:[%s4768_s27 + $0x66c] sm:$0xf]  ;;  %v3552_v27 = vor.u32 %v4060_v19, %v3549_v21  ;;  %v3405_v30 = vld [vmem:[%s4768_s27 + $0x458] sm:$0xf0] }
 0x1f5   : > { %2595 = vmatpush.bf16.msra.mxu0 %v2896_v54  ;;  %v3472_v54 = vor.u32 %v4040_v40, %v3469_v45  ;;  %v4124_v24 = vld [vmem:[%s4768_s27 + $0x76c] sm:$0xf]  ;;  %v3661_v35 = vld [vmem:[%s4768_s27 + $0x658] sm:$0xf0] }
 0x1f6   : > { %2609 = vmatpush.bf16.msra.mxu1 %v3024_v55  ;;  %v3600_v55 = vor.u32 %v4072_v46, %v3597_v49  ;;  %v4024_v29 = vld [vmem:[%s4768_s27 + $0x44c] sm:$0xf]  ;;  %v3808_v32 = vor.u32 %v4124_v24, %v3805_v25  ;;  %v3389_v46 = vld [vmem:[%s4768_s27 + $0x438] sm:$0xf0] }
 0x1f7   : > { %2623 = vmatpush.bf16.msra.mxu2 %v3152_v59  ;;  %v3453_v59 = vld [vmem:[%s4768_s27 + $0x4b8] sm:$0xf0]  ;;  %v4120_v36 = vld [vmem:[%s4768_s27 + $0x74c] sm:$0xf] }
 0x1f8   : > { %2637 = vmatpush.bf16.msra.mxu3 %v3280_v63  ;;  %v4100_v63 = vld [vmem:[%s4768_s27 + $0x6ac] sm:$0xf]  ;;  %v3456_v4 = vor.u32 %v4036_v57, %v3453_v59  ;;  %v3517_v50 = vld [vmem:[%s4768_s27 + $0x538] sm:$0xf0] }
 0x1f9   : > { %2596 = vmatpush.bf16.msra.mxu0 %v2880_v7  ;;  %v3712_v5 = vor.u32 %v4100_v63, %v3709_v0  ;;  %v4064_v7 = vld [vmem:[%s4768_s27 + $0x58c] sm:$0xf]  ;;  %v3645_v52 = vld [vmem:[%s4768_s27 + $0x638] sm:$0xf0] }
 0x1fa   : > { %2610 = vmatpush.bf16.msra.mxu1 %v3008_v12  ;;  %v4128_v12 = vld [vmem:[%s4768_s27 + $0x78c] sm:$0xf]  ;;  %v3568_v14 = vor.u32 %v4064_v7, %v3565_v9  ;;  %v3648_v59 = vor.u32 %v4084_v51, %v3645_v52  ;;  %v3501_v0 = vld [vmem:[%s4768_s27 + $0x518] sm:$0xf0] }
 0x1fb   : > { %2624 = vmatpush.bf16.msra.mxu2 %v3136_v13  ;;  %v4020_v45 = vld [vmem:[%s4768_s27 + $0x42c] sm:$0xf]  ;;  %v3629_v3 = vld [vmem:[%s4768_s27 + $0x618] sm:$0xf0] }
 0x1fc   : > { %2638 = vmatpush.bf16.msra.mxu3 %v3264_v18  ;;  %v3421_v18 = vld [vmem:[%s4768_s27 + $0x478] sm:$0xf0]  ;;  %v4080_v2 = vld [vmem:[%s4768_s27 + $0x60c] sm:$0xf] }
 0x1fd   : > { %2597 = vmatpush.bf16.msra.mxu0 %v2864_v28  ;;  %v3424_v26 = vor.u32 %v4028_v16, %v3421_v18  ;;  %v3680_v28 = vor.u32 %v4092_v22, %v3677_v23  ;;  %v3632_v7 = vor.u32 %v4080_v2, %v3629_v3 }
 0x1fe   : > { %2611 = vmatpush.bf16.msra.mxu1 %v2992_v33  ;;  %v3533_v33 = vld [vmem:[%s4768_s27 + $0x558] sm:$0xf0]  ;;  %v2389_v53 = vpop.f32.mrf.mxu1 }
 0x1ff   : > { %2625 = vmatpush.bf16.msra.mxu2 %v3120_v34  ;;  %v4088_v34 = vld [vmem:[%s4768_s27 + $0x64c] sm:$0xf]  ;;  %v3536_v40 = vor.u32 %v4056_v31, %v3533_v33 }
 0x200   : > { %2639 = vmatpush.bf16.msra.mxu3 %v3248_v37  ;;  %2598 = vmatmul.bf16.vlgmr.msra.gmra.mxu0 %v4861_v58  ;;  %v4096_v58 = vld [vmem:[%s4768_s27 + $0x68c] sm:$0xf]  ;;  %v3789_v37 = vld [vmem:[%s4768_s27 + $0x758] sm:$0xf0] }
 0x201   : > { %2646 = vmatpush.bf16.msrb.mxu0 %v3488_v38  ;;  %2612 = vmatmul.bf16.vlgmr.msra.gmra.mxu1 %v4885_v10  ;;  %v3821_v10 = vld [vmem:[%s4768_s27 + $0x798] sm:$0xf0]  ;;  %v3696_v15 = vor.u32 %v4096_v58, %v3693_v11  ;;  %v3408_v38 = vor.u32 %v4024_v29, %v3405_v30  ;;  %v3792_v49 = vor.u32 %v4120_v36, %v3789_v37 }
 0x202   : > { %2660 = vmatpush.bf16.msrb.mxu1 %v3616_v41  ;;  %2626 = vmatmul.bf16.vlgmr.msra.gmra.mxu2 %v4869_v1  ;;  %v3584_v1 = vor.u32 %v4068_v60, %v3581_v62  ;;  %v3824_v20 = vor.u32 %v4128_v12, %v3821_v10  ;;  %v3664_v41 = vor.u32 %v4088_v34, %v3661_v35  ;;  %v4016_v60 = vld [vmem:[%s4768_s27 + $0x40c] sm:$0xf] }
 0x203   : > { %2674 = vmatpush.bf16.msrb.mxu2 %v3744_v42  ;;  %2640 = vmatmul.bf16.vlgmr.msra.gmra.mxu3 %v4893_v17  ;;  %v3437_v17 = vld [vmem:[%s4768_s27 + $0x498] sm:$0xf0]  ;;  %v2375_v42 = vpop.f32.mrf.mxu0  ;;  %v4048_v62 = vld [vmem:[%s4768_s27 + $0x50c] sm:$0xf] }
 0x204   : > { %2688 = vmatpush.bf16.msrb.mxu3 %v3872_v48  ;;  %v3440_v13 = vor.u32 %v4032_v6, %v3437_v17  ;;  %v4052_v48 = vld [vmem:[%s4768_s27 + $0x52c] sm:$0xf]  ;;  %v3504_v17 = vor.u32 %v4048_v62, %v3501_v0  ;;  %v2390_v9 = vadd.f32 %v2389_v53, %v2375_v42 }
 0x205   : > { %2647 = vmatpush.bf16.msrb.mxu0 %v3472_v54  ;;  %v4116_v54 = vld [vmem:[%s4768_s27 + $0x72c] sm:$0xf]  ;;  %v3520_v57 = vor.u32 %v4052_v48, %v3517_v50  ;;  %v2403_v6 = vpop.f32.mrf.mxu2 }
 0x206   : > { %2661 = vmatpush.bf16.msrb.mxu1 %v3600_v55  ;;  %v3773_v55 = vld [vmem:[%s4768_s27 + $0x738] sm:$0xf0]  ;;  %v2391_v12 = vpop.f32.mrf.mxu1  ;;  %v2404_v10 = vadd.f32 %v2403_v6, %v2390_v9 }
 0x207   : > { %2675 = vmatpush.bf16.msrb.mxu2 %v3728_v56  ;;  %v3392_v56 = vor.u32 %v4020_v45, %v3389_v46  ;;  %v3776_v63 = vor.u32 %v4116_v54, %v3773_v55 }
 0x208   : > { %2689 = vmatpush.bf16.msrb.mxu3 %v3856_v61  ;;  %v3373_v61 = vld [vmem:[%s4768_s27 + $0x418] sm:$0xf0] }
 0x209   : > { %2648 = vmatpush.bf16.msrb.mxu0 %v3456_v4  ;;  %v4112_v4 = vld [vmem:[%s4768_s27 + $0x70c] sm:$0xf] }
 0x20a   : > { %2662 = vmatpush.bf16.msrb.mxu1 %v3584_v1  ;;  %v3757_v1 = vld [vmem:[%s4768_s27 + $0x718] sm:$0xf0] }
 0x20b   : > { %2676 = vmatpush.bf16.msrb.mxu2 %v3712_v5  ;;  %v3376_v5 = vor.u32 %v4016_v60, %v3373_v61  ;;  %v3760_v58 = vor.u32 %v4112_v4, %v3757_v1  ;;  %v2377_v11 = vpop.f32.mrf.mxu0 }
 0x20c   : > { %2690 = vmatpush.bf16.msrb.mxu3 %v3840_v8  ;;  %v2417_v8 = vpop.f32.mrf.mxu3  ;;  %v2392_v16 = vadd.f32 %v2391_v12, %v2377_v11 }
 0x20d   : > { %2649 = vmatpush.bf16.msrb.mxu0 %v3440_v13  ;;  %v2418_v13 = vadd.f32 %v2417_v8, %v2404_v10 }
 0x20e   : > { %2663 = vmatpush.bf16.msrb.mxu1 %v3568_v14  ;;  %v2405_v14 = vpop.f32.mrf.mxu2 }
 0x20f   : > { %2677 = vmatpush.bf16.msrb.mxu2 %v3696_v15  ;;  %v2406_v21 = vadd.f32 %v2405_v14, %v2392_v16 }
 0x210   : > { %2691 = vmatpush.bf16.msrb.mxu3 %v3824_v20 }
 0x211   : > { %2650 = vmatpush.bf16.msrb.mxu0 %v3424_v26 }
 0x212   : > { %2664 = vmatpush.bf16.msrb.mxu1 %v3552_v27 }
 0x213   : > { %2678 = vmatpush.bf16.msrb.mxu2 %v3680_v28 }
 0x214   : > { %2692 = vmatpush.bf16.msrb.mxu3 %v3808_v32  ;;  %v2419_v15 = vpop.f32.mrf.mxu3 }
 0x215   : > { %2651 = vmatpush.bf16.msrb.mxu0 %v3408_v38  ;;  %v2420_v24 = vadd.f32 %v2419_v15, %v2406_v21 }
 0x216   : > { %2665 = vmatpush.bf16.msrb.mxu1 %v3536_v40 }
 0x217   : > { %2679 = vmatpush.bf16.msrb.mxu2 %v3664_v41 }
 0x218   : > { %2693 = vmatpush.bf16.msrb.mxu3 %v3792_v49 }
 0x219   : > { %2652 = vmatpush.bf16.msrb.mxu0 %v3392_v56 }
 0x21a   : > { %2666 = vmatpush.bf16.msrb.mxu1 %v3520_v57 }
 0x21b   : > { %2680 = vmatpush.bf16.msrb.mxu2 %v3648_v59 }
 0x21c   : > { %2694 = vmatpush.bf16.msrb.mxu3 %v3776_v63 }
 0x21d   : > { %2653 = vmatpush.bf16.msrb.mxu0 %v3376_v5  ;;  %v2431_v18 = vpop.f32.mrf.mxu0 }
 0x21e   : > { %2667 = vmatpush.bf16.msrb.mxu1 %v3504_v17  ;;  %v2432_v19 = vadd.f32 %v2431_v18, %v2418_v13  ;;  %v2445_v20 = vpop.f32.mrf.mxu1 }
 0x21f   : > { %2681 = vmatpush.bf16.msrb.mxu2 %v3632_v7 }
 0x220   : > { %2695 = vmatpush.bf16.msrb.mxu3 %v3760_v58  ;;  %2654 = vmatmul.bf16.vlgmr.msrb.gmra.mxu0 %v4969_v39  ;;  %v2446_v22 = vadd.f32 %v2445_v20, %v2432_v19 }
 0x221   : > { %2668 = vmatmul.bf16.vlgmr.msrb.gmra.mxu1 %v4976_v44 }
 0x222   : > { %2682 = vmatmul.bf16.vlgmr.msrb.gmra.mxu2 %v4974_v43 }
 0x223   : > { %2696 = vmatmul.bf16.vlgmr.msrb.gmra.mxu3 %v4980_v47 }
 0x225   : > { %v2459_v23 = vpop.f32.mrf.mxu2  ;;  %v2433_v25 = vpop.f32.mrf.mxu0 }
 0x226   : > { %v2460_v39 = vadd.f32 %v2459_v23, %v2446_v22  ;;  %v2473_v44 = vpop.f32.mrf.mxu3  ;;  %v2434_v26 = vadd.f32 %v2433_v25, %v2420_v24  ;;  %v2447_v27 = vpop.f32.mrf.mxu1 }
 0x228   : > { %v2474_v43 = vadd.f32 %v2473_v44, %v2460_v39  ;;  %v2448_v47 = vadd.f32 %v2447_v27, %v2434_v26 }
 0x22a   : > { %2703 = vst [vmem:[%s5301_s9 + $0x8] sm:$0xff] %v2474_v43 }
 0x22d   : > { %v2461_v28 = vpop.f32.mrf.mxu2 }
 0x22e   : > { %v2462_v29 = vadd.f32 %v2461_v28, %v2448_v47  ;;  %v2475_v30 = vpop.f32.mrf.mxu3  ;;  %v2732_v28 = vld [vmem:[%s5301_s9] sm:$0xff] (%p4237_p5) }
 0x22f   : > { %2733 = vst [vmem:[%s2719_s22] sm:$0xff] (%p4237_p5), %v2732_v28 }
 0x230   : > { %v2476_v31 = vadd.f32 %v2475_v30, %v2462_v29 }
 0x231   : > { %v2734_v29 = vld [vmem:[%s5301_s9 + $0x8] sm:$0xff] (%p4237_p5) }
 0x232   : > { %2707 = vst [vmem:[%s5301_s9 + $0x28] sm:$0xff] %v2476_v31 }
 0x233   : > { %2735 = vst [vmem:[%s2719_s22 + $0x8] sm:$0xff] (%p4237_p5), %v2734_v29 }
 0x23d   : > { %v2487_v32 = vpop.f32.mrf.mxu0 }
 0x23e   : > { %v2501_v33 = vpop.f32.mrf.mxu1 }
 0x23f   : > { %v2502_v36 = vadd.f32 %v2501_v33, %v2487_v32  ;;  %v2740_v32 = vld [vmem:[%s5301_s9 + $0x20] sm:$0xff] (%p4237_p5)  ;;  %v2742_v33 = vld [vmem:[%s5301_s9 + $0x28] sm:$0xff] (%p4237_p5) }
 0x240   : > { %2741 = vst [vmem:[%s2719_s22 + $0x40] sm:$0xff] (%p4237_p5), %v2740_v32 }
 0x241   : > { %2743 = vst [vmem:[%s2719_s22 + $0x48] sm:$0xff] (%p4237_p5), %v2742_v33 }
 0x245   : > { %v2515_v34 = vpop.f32.mrf.mxu2  ;;  %v2489_v37 = vpop.f32.mrf.mxu0 }
 0x246   : > { %v2529_v35 = vpop.f32.mrf.mxu3  ;;  %v2503_v38 = vpop.f32.mrf.mxu1  ;;  %v2516_v40 = vadd.f32 %v2515_v34, %v2502_v36 }
 0x247   : > { %v2504_v46 = vadd.f32 %v2503_v38, %v2489_v37 }
 0x248   : > { %v2530_v41 = vadd.f32 %v2529_v35, %v2516_v40 }
 0x24d   : > { %v2517_v42 = vpop.f32.mrf.mxu2 }
 0x24e   : > { %v2531_v45 = vpop.f32.mrf.mxu3  ;;  %v2518_v51 = vadd.f32 %v2517_v42, %v2504_v46 }
 0x250   : > { %v2532_v54 = vadd.f32 %v2531_v45, %v2518_v51 }
 0x25d   : > { %v2543_v48 = vpop.f32.mrf.mxu0 }
 0x25e   : > { %v2544_v49 = vadd.f32 %v2543_v48, %v2530_v41  ;;  %v2557_v50 = vpop.f32.mrf.mxu1 }
 0x260   : > { %v2558_v52 = vadd.f32 %v2557_v50, %v2544_v49 }
 0x265   : > { %v2571_v53 = vpop.f32.mrf.mxu2  ;;  %v2545_v56 = vpop.f32.mrf.mxu0 }
 0x266   : > { %v2572_v55 = vadd.f32 %v2571_v53, %v2558_v52  ;;  %v2585_v57 = vpop.f32.mrf.mxu3  ;;  %v2546_v59 = vadd.f32 %v2545_v56, %v2532_v54  ;;  %v2559_v61 = vpop.f32.mrf.mxu1 }
 0x268   : > { %v2586_v60 = vadd.f32 %v2585_v57, %v2572_v55  ;;  %v2560_v62 = vadd.f32 %v2559_v61, %v2546_v59 }
 0x26a   : > { %2704 = vst [vmem:[%s5301_s9 + $0x10] sm:$0xff] %v2586_v60 }
 0x26d   : > { %v2573_v63 = vpop.f32.mrf.mxu2 }
 0x26e   : > { %v2574_v0 = vadd.f32 %v2573_v63, %v2560_v62  ;;  %v2587_v2 = vpop.f32.mrf.mxu3 }
 0x270   : > { %v2588_v3 = vadd.f32 %v2587_v2, %v2574_v0 }
 0x271   : > { %v2736_v30 = vld [vmem:[%s5301_s9 + $0x10] sm:$0xff] (%p4237_p5) }
 0x272   : > { %2708 = vst [vmem:[%s5301_s9 + $0x30] sm:$0xff] %v2588_v3 }
 0x273   : > { %2737 = vst [vmem:[%s2719_s22 + $0x10] sm:$0xff] (%p4237_p5), %v2736_v30 }
 0x279   : > { %v2744_v34 = vld [vmem:[%s5301_s9 + $0x30] sm:$0xff] (%p4237_p5) }
 0x27a   : > { %2745 = vst [vmem:[%s2719_s22 + $0x50] sm:$0xff] (%p4237_p5), %v2744_v34 }
 0x27d   : > { %v2599_v4 = vpop.f32.mrf.mxu0 }
 0x27e   : > { %v2613_v1 = vpop.f32.mrf.mxu1 }
 0x27f   : > { %v2614_v17 = vadd.f32 %v2613_v1, %v2599_v4 }
 0x285   : > { %v2627_v5 = vpop.f32.mrf.mxu2  ;;  %v2601_v7 = vpop.f32.mrf.mxu0 }
 0x286   : > { %v2641_v6 = vpop.f32.mrf.mxu3  ;;  %v2615_v8 = vpop.f32.mrf.mxu1  ;;  %v2628_v9 = vadd.f32 %v2627_v5, %v2614_v17 }
 0x287   : > { %v2616_v12 = vadd.f32 %v2615_v8, %v2601_v7 }
 0x288   : > { %v2642_v11 = vadd.f32 %v2641_v6, %v2628_v9 }
 0x28d   : > { %v2629_v58 = vpop.f32.mrf.mxu2 }
 0x28e   : > { %v2643_v10 = vpop.f32.mrf.mxu3  ;;  %v2630_v16 = vadd.f32 %v2629_v58, %v2616_v12 }
 0x290   : > { %v2644_v20 = vadd.f32 %v2643_v10, %v2630_v16 }
 0x29d   : > { %v2655_v13 = vpop.f32.mrf.mxu0 }
 0x29e   : > { %v2656_v14 = vadd.f32 %v2655_v13, %v2642_v11  ;;  %v2669_v15 = vpop.f32.mrf.mxu1 }
 0x2a0   : > { %v2670_v18 = vadd.f32 %v2669_v15, %v2656_v14 }
 0x2a5   : > { %v2683_v19 = vpop.f32.mrf.mxu2  ;;  %v2657_v23 = vpop.f32.mrf.mxu0 }
 0x2a6   : > { %v2684_v21 = vadd.f32 %v2683_v19, %v2670_v18  ;;  %v2697_v22 = vpop.f32.mrf.mxu3  ;;  %v2658_v39 = vadd.f32 %v2657_v23, %v2644_v20  ;;  %v2671_v25 = vpop.f32.mrf.mxu1 }
 0x2a8   : > { %v2698_v24 = vadd.f32 %v2697_v22, %v2684_v21  ;;  %v2672_v44 = vadd.f32 %v2671_v25, %v2658_v39 }
 0x2aa   : > { %2705 = vst [vmem:[%s5301_s9 + $0x18] sm:$0xff] %v2698_v24 }
 0x2ad   : > { %v2685_v26 = vpop.f32.mrf.mxu2 }
 0x2ae   : > { %v2686_v43 = vadd.f32 %v2685_v26, %v2672_v44  ;;  %v2699_v27 = vpop.f32.mrf.mxu3  ;;  %2716 = sbr.rel (!%p4237_p5) target bundleno = 699 (0x2bb), region = 55 }
 0x2b0   : > { %v2700_v47 = vadd.f32 %v2699_v27, %v2686_v43 }
 0x2b1   : > { %v2738_v31 = vld [vmem:[%s5301_s9 + $0x18] sm:$0xff] (%p4237_p5) }
 0x2b2   : > { %2709 = vst [vmem:[%s5301_s9 + $0x38] sm:$0xff] %v2700_v47 }
 0x2b3   : > { %2739 = vst [vmem:[%s2719_s22 + $0x18] sm:$0xff] %v2738_v31 }
 0x2b9   : > { %v2746_v35 = vld [vmem:[%s5301_s9 + $0x38] sm:$0xff] }
 0x2ba   : > { %2747 = vst [vmem:[%s2719_s22 + $0x58] sm:$0xff] %v2746_v35 }
 0x2bb PF: > { %p9_p10 = scmp.ge.s32.totalorder %s4224_s13, 4   ;;  %s5422_s9 = smov %s4186_s10 }
 0x2bc   : > { %s5423_s10 = smov %s4235_s16  ;;  %s5424_s11 = smov %s4224_s13 }
 0x2bd   :  { %11 = sbr.rel (!%p9_p10) target bundleno = 2 (0x2), region = 109 }

// kernel: _lambda_.21
= control target key start
LH: loop header
LB: loop body
LE: loop exit
PB: predicated region body
PF: predicated region fallthrough
CT: control target
= control target key end

     0   :  { %s903_s9 = smov 0   ;;  %s905_s10 = smov 0   ;;  %s1113_s0 = inlined_call_operand.vmem [shape: bf16[16,256], index: 0, kind: input, shape index: {}]   ;;  %s1114_s1 = inlined_call_operand.vmem [shape: bf16[256,512], index: 1, kind: input, shape index: {}]   ;;  %s1115_s2 = inlined_call_operand.vmem [shape: f32[16,512], index: 2, kind: output, shape index: {}]  }
   0x1   :  { %s907_s11 = smov 0  }
   0x2 LB: > { %s653_s12 = sadd.s32 4294967295, %s886_s11   ;;  %s920_s13 = sadd.s32 1, %s886_s11   ;;  %s886_s11 = sphi %s907_s11, %s1119_s11   ;;  %s882_s10 = sphi %s905_s10, %s1118_s10   ;;  %s878_s9 = sphi %s903_s9, %s1117_s9  }
   0x3   : > { %s37_s14 = ssub.s32 %s886_s11, %s920_s13  ;;  %s40_s15 = sadd.s32 1, %s882_s10 }
   0x4   : > { %p38_p0 = scmp.eq.s32.totalorder %s37_s14, 0  ;;  %p47_p1 = scmp.ne.s32.totalorder %s882_s10, %s878_s9 }
   0x5   : > { %p48_p2 = scmp.eq.s32.totalorder %s886_s11, 0  ;;  %p77_p3 = scmp.eq.s32.totalorder %s653_s12, 1 }
   0x6   : > { %s931_s16 = scalar_select %p38_p0, %s882_s10, %s40_s15  }
   0x7   : > { %p49_p4 = por %p48_p2, %p47_p1  ;;  %p933_p5 = por %p77_p3, %p47_p1 }
   0x8   : > { %p656_p6 = scmp.ge.s32.totalorder %s886_s11, 2 }
   0xa   : > { %102 = sbr.rel (%p656_p6) target bundleno = 51 (0x33), region = 20 }
   0xf   : > { %105 = sbr.rel (!%p49_p4) target bundleno = 51 (0x33), region = 24  ;;  %s107_s18 = sand.u32 (%p49_p4), 1, %s882_s10  }
  0x10   : > { %s804_s19 = sshll.u32 (%p49_p4), %s886_s11, 3  ;;  %s657_s20 = sshll.u32 (%p49_p4), %s107_s18, 8 }
  0x11   : > { %s943_s23 = scalar_lea.vmem (%p49_p4), %s1114_s1, %s804_s19  ;;  %s948_s24 = scalar_lea.vmem (%p49_p4), [#allocation2], %s657_s20 }
  0x12   : > { %v203_v0 = vld [vmem:[%s943_s23] sm:$0xff] (%p49_p4)  ;;  %v205_v1 = vld [vmem:[%s943_s23 + $0x10] sm:$0xff] (%p49_p4) }
  0x13   : > { %v207_v2 = vld [vmem:[%s943_s23 + $0x20] sm:$0xff] (%p49_p4)  ;;  %204 = vst [vmem:[%s948_s24] sm:$0xff] (%p49_p4), %v203_v0  ;;  %v209_v3 = vld [vmem:[%s943_s23 + $0x30] sm:$0xff] (%p49_p4) }
  0x14   : > { %206 = vst [vmem:[%s948_s24 + $0x8] sm:$0xff] %v205_v1  ;;  %v211_v4 = vld [vmem:[%s943_s23 + $0x40] sm:$0xff]  ;;  %v213_v5 = vld [vmem:[%s943_s23 + $0x50] sm:$0xff] }
  0x15   : > { %208 = vst [vmem:[%s948_s24 + $0x10] sm:$0xff] %v207_v2  ;;  %v215_v6 = vld [vmem:[%s943_s23 + $0x60] sm:$0xff]  ;;  %v217_v7 = vld [vmem:[%s943_s23 + $0x70] sm:$0xff] }
  0x16   : > { %210 = vst [vmem:[%s948_s24 + $0x18] sm:$0xff] %v209_v3  ;;  %v219_v8 = vld [vmem:[%s943_s23 + $0x80] sm:$0xff]  ;;  %v221_v9 = vld [vmem:[%s943_s23 + $0x90] sm:$0xff] }
  0x17   : > { %212 = vst [vmem:[%s948_s24 + $0x20] sm:$0xff] %v211_v4  ;;  %v223_v10 = vld [vmem:[%s943_s23 + $0xa0] sm:$0xff]  ;;  %v225_v11 = vld [vmem:[%s943_s23 + $0xb0] sm:$0xff] }
  0x18   : > { %214 = vst [vmem:[%s948_s24 + $0x28] sm:$0xff] %v213_v5  ;;  %v227_v12 = vld [vmem:[%s943_s23 + $0xc0] sm:$0xff]  ;;  %v229_v13 = vld [vmem:[%s943_s23 + $0xd0] sm:$0xff] }
  0x19   : > { %216 = vst [vmem:[%s948_s24 + $0x30] sm:$0xff] %v215_v6  ;;  %v231_v14 = vld [vmem:[%s943_s23 + $0xe0] sm:$0xff]  ;;  %v233_v15 = vld [vmem:[%s943_s23 + $0xf0] sm:$0xff] }
  0x1a   : > { %218 = vst [vmem:[%s948_s24 + $0x38] sm:$0xff] %v217_v7  ;;  %v235_v16 = vld [vmem:[%s943_s23 + $0x100] sm:$0xff]  ;;  %v237_v17 = vld [vmem:[%s943_s23 + $0x110] sm:$0xff] }
  0x1b   : > { %220 = vst [vmem:[%s948_s24 + $0x40] sm:$0xff] %v219_v8  ;;  %v239_v18 = vld [vmem:[%s943_s23 + $0x120] sm:$0xff]  ;;  %v241_v19 = vld [vmem:[%s943_s23 + $0x130] sm:$0xff] }
  0x1c   : > { %222 = vst [vmem:[%s948_s24 + $0x48] sm:$0xff] %v221_v9  ;;  %v243_v20 = vld [vmem:[%s943_s23 + $0x140] sm:$0xff]  ;;  %v245_v21 = vld [vmem:[%s943_s23 + $0x150] sm:$0xff] }
  0x1d   : > { %224 = vst [vmem:[%s948_s24 + $0x50] sm:$0xff] %v223_v10  ;;  %v247_v22 = vld [vmem:[%s943_s23 + $0x160] sm:$0xff]  ;;  %v249_v23 = vld [vmem:[%s943_s23 + $0x170] sm:$0xff] }
  0x1e   : > { %226 = vst [vmem:[%s948_s24 + $0x58] sm:$0xff] %v225_v11  ;;  %v251_v24 = vld [vmem:[%s943_s23 + $0x180] sm:$0xff]  ;;  %v253_v25 = vld [vmem:[%s943_s23 + $0x190] sm:$0xff] }
  0x1f   : > { %228 = vst [vmem:[%s948_s24 + $0x60] sm:$0xff] %v227_v12  ;;  %v255_v26 = vld [vmem:[%s943_s23 + $0x1a0] sm:$0xff]  ;;  %v257_v27 = vld [vmem:[%s943_s23 + $0x1b0] sm:$0xff] }
  0x20   : > { %230 = vst [vmem:[%s948_s24 + $0x68] sm:$0xff] %v229_v13  ;;  %v259_v28 = vld [vmem:[%s943_s23 + $0x1c0] sm:$0xff]  ;;  %v261_v29 = vld [vmem:[%s943_s23 + $0x1d0] sm:$0xff] }
  0x21   : > { %232 = vst [vmem:[%s948_s24 + $0x70] sm:$0xff] %v231_v14  ;;  %v263_v30 = vld [vmem:[%s943_s23 + $0x1e0] sm:$0xff]  ;;  %v265_v31 = vld [vmem:[%s943_s23 + $0x1f0] sm:$0xff] }
  0x22   : > { %234 = vst [vmem:[%s948_s24 + $0x78] sm:$0xff] %v233_v15 }
  0x23   : > { %236 = vst [vmem:[%s948_s24 + $0x80] sm:$0xff] %v235_v16 }
  0x24   : > { %238 = vst [vmem:[%s948_s24 + $0x88] sm:$0xff] %v237_v17 }
  0x25   : > { %240 = vst [vmem:[%s948_s24 + $0x90] sm:$0xff] %v239_v18 }
  0x26   : > { %242 = vst [vmem:[%s948_s24 + $0x98] sm:$0xff] %v241_v19 }
  0x27   : > { %244 = vst [vmem:[%s948_s24 + $0xa0] sm:$0xff] %v243_v20 }
  0x28   : > { %246 = vst [vmem:[%s948_s24 + $0xa8] sm:$0xff] %v245_v21 }
  0x29   : > { %248 = vst [vmem:[%s948_s24 + $0xb0] sm:$0xff] %v247_v22 }
  0x2a   : > { %250 = vst [vmem:[%s948_s24 + $0xb8] sm:$0xff] %v249_v23 }
  0x2b   : > { %252 = vst [vmem:[%s948_s24 + $0xc0] sm:$0xff] %v251_v24 }
  0x2c   : > { %254 = vst [vmem:[%s948_s24 + $0xc8] sm:$0xff] %v253_v25 }
  0x2d   : > { %256 = vst [vmem:[%s948_s24 + $0xd0] sm:$0xff] %v255_v26 }
  0x2e   : > { %258 = vst [vmem:[%s948_s24 + $0xd8] sm:$0xff] %v257_v27 }
  0x2f   : > { %260 = vst [vmem:[%s948_s24 + $0xe0] sm:$0xff] %v259_v28 }
  0x30   : > { %262 = vst [vmem:[%s948_s24 + $0xe8] sm:$0xff] %v261_v29 }
  0x31   : > { %264 = vst [vmem:[%s948_s24 + $0xf0] sm:$0xff] %v263_v30 }
  0x32   : > { %266 = vst [vmem:[%s948_s24 + $0xf8] sm:$0xff] %v265_v31 }
  0x33 PF: > { %p660_p7 = scmp.ge.s32.totalorder %s886_s11, 1  ;;  %p271_p8 = scmp.lt.s32.totalorder %s886_s11, 3 }
  0x35   : > { %p272_p9 = pnand %p660_p7, %p271_p8 }
  0x36   : > { %s278_s25 = sand.u32 (!%p272_p9), 1, %s878_s9  }
  0x37   : > { %275 = sbr.rel (%p272_p9) target bundleno = 247 (0xf7), region = 62  ;;  %s661_s26 = sshll.u32 (!%p272_p9), %s278_s25, 8 }
  0x38   : > { %s1016_s27 = scalar_lea.vmem (!%p272_p9), [#allocation2], %s661_s26  ;;  %s662_s8 = sshll.u32 (!%p272_p9), %s278_s25, 5 }
  0x39   : > { %s297_s14 = scalar_lea.vmem (!%p272_p9), [#allocation3], %s662_s8 }
  0x3c   : > { %v729_v32 = vld [vmem:[%s1016_s27 + $0x70] sm:$0xf]  ;;  %v822_v33 = vld [vmem:[%s1016_s27 + $0x74] sm:$0xf0]  ;;  %v821_v37 = vld [vmem:[%s1016_s27 + $0x74] sm:$0xf] }
  0x3d   : > { %v793_v34 = vld [vmem:[%s1016_s27 + $0xf0] sm:$0xf]  ;;  %v730_v35 = vor.u32 %v822_v33, %v729_v32  ;;  %v838_v36 = vld [vmem:[%s1016_s27 + $0xf4] sm:$0xf0]  ;;  %v731_v38 = vld [vmem:[%s1016_s27 + $0x78] sm:$0xf0] }
  0x3e   : > { %v794_v39 = vor.u32 %v838_v36, %v793_v34  ;;  %v734_v40 = vor.u32 %v821_v37, %v731_v38  ;;  %v837_v41 = vld [vmem:[%s1016_s27 + $0xf4] sm:$0xf]  ;;  %v795_v42 = vld [vmem:[%s1016_s27 + $0xf8] sm:$0xf0]  ;;  %v721_v43 = vld [vmem:[%s1016_s27 + $0x60] sm:$0xf] }
  0x3f   : > { %504 = vmatpush.bf16.msra.mxu0 %v730_v35  ;;  %v798_v44 = vor.u32 %v837_v41, %v795_v42  ;;  %v820_v45 = vld [vmem:[%s1016_s27 + $0x64] sm:$0xf0]  ;;  %v785_v46 = vld [vmem:[%s1016_s27 + $0xe0] sm:$0xf]  ;;  %v819_v50 = vld [vmem:[%s1016_s27 + $0x64] sm:$0xf] }
  0x40   : > { %v836_v47 = vld [vmem:[%s1016_s27 + $0xe4] sm:$0xf0]  ;;  %518 = vmatpush.bf16.msra.mxu1 %v794_v39  ;;  %532 = vmatpush.bf16.msra.mxu2 %v734_v40  ;;  %v722_v48 = vor.u32 %v820_v45, %v721_v43  ;;  %v723_v51 = vld [vmem:[%s1016_s27 + $0x68] sm:$0xf0]  ;;  %v835_v52 = vld [vmem:[%s1016_s27 + $0xe4] sm:$0xf] }
  0x41   : > { %v786_v49 = vor.u32 %v836_v47, %v785_v46  ;;  %546 = vmatpush.bf16.msra.mxu3 %v798_v44  ;;  %v726_v53 = vor.u32 %v819_v50, %v723_v51  ;;  %v787_v54 = vld [vmem:[%s1016_s27 + $0xe8] sm:$0xf0]  ;;  %v713_v55 = vld [vmem:[%s1016_s27 + $0x50] sm:$0xf]  ;;  %v818_v56 = vld [vmem:[%s1016_s27 + $0x54] sm:$0xf0] }
  0x42   : > { %v790_v57 = vor.u32 %v835_v52, %v787_v54  ;;  %v777_v58 = vld [vmem:[%s1016_s27 + $0xd0] sm:$0xf]  ;;  %v834_v59 = vld [vmem:[%s1016_s27 + $0xd4] sm:$0xf0]  ;;  %v817_v60 = vld [vmem:[%s1016_s27 + $0x54] sm:$0xf]  ;;  %v714_v61 = vor.u32 %v818_v56, %v713_v55 }
  0x43   : > { %505 = vmatpush.bf16.msra.mxu0 %v722_v48  ;;  %v715_v62 = vld [vmem:[%s1016_s27 + $0x58] sm:$0xf0]  ;;  %v833_v63 = vld [vmem:[%s1016_s27 + $0xd4] sm:$0xf]  ;;  %v778_v1 = vor.u32 %v834_v59, %v777_v58  ;;  %v705_v3 = vld [vmem:[%s1016_s27 + $0x40] sm:$0xf] }
  0x44   : > { %v779_v0 = vld [vmem:[%s1016_s27 + $0xd8] sm:$0xf0]  ;;  %519 = vmatpush.bf16.msra.mxu1 %v786_v49  ;;  %533 = vmatpush.bf16.msra.mxu2 %v726_v53  ;;  %v718_v2 = vor.u32 %v817_v60, %v715_v62  ;;  %v816_v4 = vld [vmem:[%s1016_s27 + $0x44] sm:$0xf0]  ;;  %v769_v5 = vld [vmem:[%s1016_s27 + $0xc0] sm:$0xf] }
  0x45   : > { %547 = vmatpush.bf16.msra.mxu3 %v790_v57  ;;  %v782_v6 = vor.u32 %v833_v63, %v779_v0  ;;  %v832_v7 = vld [vmem:[%s1016_s27 + $0xc4] sm:$0xf0]  ;;  %v815_v8 = vld [vmem:[%s1016_s27 + $0x44] sm:$0xf]  ;;  %v707_v9 = vld [vmem:[%s1016_s27 + $0x48] sm:$0xf0]  ;;  %v706_v12 = vor.u32 %v816_v4, %v705_v3 }
  0x46   : > { %v831_v10 = vld [vmem:[%s1016_s27 + $0xc4] sm:$0xf]  ;;  %v771_v11 = vld [vmem:[%s1016_s27 + $0xc8] sm:$0xf0]  ;;  %v770_v13 = vor.u32 %v832_v7, %v769_v5  ;;  %v710_v14 = vor.u32 %v815_v8, %v707_v9  ;;  %v697_v15 = vld [vmem:[%s1016_s27 + $0x30] sm:$0xf] }
  0x47   : > { %506 = vmatpush.bf16.msra.mxu0 %v714_v61  ;;  %v814_v16 = vld [vmem:[%s1016_s27 + $0x34] sm:$0xf0]  ;;  %v761_v17 = vld [vmem:[%s1016_s27 + $0xb0] sm:$0xf]  ;;  %v774_v18 = vor.u32 %v831_v10, %v771_v11  ;;  %v813_v20 = vld [vmem:[%s1016_s27 + $0x34] sm:$0xf] }
  0x48   : > { %520 = vmatpush.bf16.msra.mxu1 %v778_v1  ;;  %534 = vmatpush.bf16.msra.mxu2 %v718_v2  ;;  %v830_v19 = vld [vmem:[%s1016_s27 + $0xb4] sm:$0xf0]  ;;  %v699_v21 = vld [vmem:[%s1016_s27 + $0x38] sm:$0xf0]  ;;  %v829_v22 = vld [vmem:[%s1016_s27 + $0xb4] sm:$0xf]  ;;  %v698_v24 = vor.u32 %v814_v16, %v697_v15 }
  0x49   : > { %548 = vmatpush.bf16.msra.mxu3 %v782_v6  ;;  %v763_v23 = vld [vmem:[%s1016_s27 + $0xb8] sm:$0xf0]  ;;  %v762_v25 = vor.u32 %v830_v19, %v761_v17  ;;  %v702_v26 = vor.u32 %v813_v20, %v699_v21  ;;  %v689_v27 = vld [vmem:[%s1016_s27 + $0x20] sm:$0xf]  ;;  %v812_v28 = vld [vmem:[%s1016_s27 + $0x24] sm:$0xf0] }
  0x4a   : > { %v753_v29 = vld [vmem:[%s1016_s27 + $0xa0] sm:$0xf]  ;;  %v766_v30 = vor.u32 %v829_v22, %v763_v23  ;;  %v828_v31 = vld [vmem:[%s1016_s27 + $0xa4] sm:$0xf0]  ;;  %v811_v32 = vld [vmem:[%s1016_s27 + $0x24] sm:$0xf]  ;;  %v690_v36 = vor.u32 %v812_v28, %v689_v27 }
  0x4b   : > { %507 = vmatpush.bf16.msra.mxu0 %v706_v12  ;;  %v691_v33 = vld [vmem:[%s1016_s27 + $0x28] sm:$0xf0]  ;;  %v827_v34 = vld [vmem:[%s1016_s27 + $0xa4] sm:$0xf]  ;;  %v754_v37 = vor.u32 %v828_v31, %v753_v29  ;;  %v681_v39 = vld [vmem:[%s1016_s27 + $0x10] sm:$0xf] }
  0x4c   : > { %521 = vmatpush.bf16.msra.mxu1 %v770_v13  ;;  %535 = vmatpush.bf16.msra.mxu2 %v710_v14  ;;  %v755_v35 = vld [vmem:[%s1016_s27 + $0xa8] sm:$0xf0]  ;;  %v694_v38 = vor.u32 %v811_v32, %v691_v33  ;;  %v810_v40 = vld [vmem:[%s1016_s27 + $0x14] sm:$0xf0]  ;;  %v745_v41 = vld [vmem:[%s1016_s27 + $0x90] sm:$0xf] }
  0x4d   : > { %549 = vmatpush.bf16.msra.mxu3 %v774_v18  ;;  %v758_v42 = vor.u32 %v827_v34, %v755_v35  ;;  %v826_v43 = vld [vmem:[%s1016_s27 + $0x94] sm:$0xf0]  ;;  %v809_v44 = vld [vmem:[%s1016_s27 + $0x14] sm:$0xf]  ;;  %v683_v45 = vld [vmem:[%s1016_s27 + $0x18] sm:$0xf0]  ;;  %v682_v48 = vor.u32 %v810_v40, %v681_v39 }
  0x4e   : > { %v825_v46 = vld [vmem:[%s1016_s27 + $0x94] sm:$0xf]  ;;  %v747_v47 = vld [vmem:[%s1016_s27 + $0x98] sm:$0xf0]  ;;  %v746_v49 = vor.u32 %v826_v43, %v745_v41  ;;  %v686_v50 = vor.u32 %v809_v44, %v683_v45  ;;  %v673_v51 = vld [vmem:[%s1016_s27] sm:$0xf] }
  0x4f   : > { %508 = vmatpush.bf16.msra.mxu0 %v698_v24  ;;  %v808_v52 = vld [vmem:[%s1016_s27 + $0x4] sm:$0xf0]  ;;  %v737_v53 = vld [vmem:[%s1016_s27 + $0x80] sm:$0xf]  ;;  %v750_v54 = vor.u32 %v825_v46, %v747_v47  ;;  %v807_v56 = vld [vmem:[%s1016_s27 + $0x4] sm:$0xf] }
  0x50   : > { %522 = vmatpush.bf16.msra.mxu1 %v762_v25  ;;  %536 = vmatpush.bf16.msra.mxu2 %v702_v26  ;;  %v824_v55 = vld [vmem:[%s1016_s27 + $0x84] sm:$0xf0]  ;;  %v675_v57 = vld [vmem:[%s1016_s27 + $0x8] sm:$0xf0]  ;;  %v823_v58 = vld [vmem:[%s1016_s27 + $0x84] sm:$0xf]  ;;  %v674_v60 = vor.u32 %v808_v52, %v673_v51 }
  0x51   : > { %550 = vmatpush.bf16.msra.mxu3 %v766_v30  ;;  %v739_v59 = vld [vmem:[%s1016_s27 + $0x88] sm:$0xf0]  ;;  %v665_v61 = vld [vmem:[%s1113_s0] sm:$0xf]  ;;  %v806_v62 = vld [vmem:[%s1113_s0 + $0x4] sm:$0xf0]  ;;  %v738_v63 = vor.u32 %v824_v55, %v737_v53  ;;  %v678_v0 = vor.u32 %v807_v56, %v675_v57 }
  0x52   : > { %v805_v1 = vld [vmem:[%s1113_s0 + $0x4] sm:$0xf]  ;;  %v667_v2 = vld [vmem:[%s1113_s0 + $0x8] sm:$0xf0]  ;;  %v742_v3 = vor.u32 %v823_v58, %v739_v59  ;;  %v666_v4 = vor.u32 %v806_v62, %v665_v61  ;;  %s839_s9 = sshll.u32 (%p933_p5), %s653_s12, 4 }
  0x53   : > { %509 = vmatpush.bf16.msra.mxu0 %v690_v36  ;;  %v670_v5 = vor.u32 %v805_v1, %v667_v2  ;;  %s573_s19 = scalar_lea.vmem (%p933_p5), %s1115_s2, %s839_s9 }
  0x54   : > { %523 = vmatpush.bf16.msra.mxu1 %v754_v37  ;;  %537 = vmatpush.bf16.msra.mxu2 %v694_v38 }
  0x55   : > { %551 = vmatpush.bf16.msra.mxu3 %v758_v42 }
  0x57   : > { %510 = vmatpush.bf16.msra.mxu0 %v682_v48 }
  0x58   : > { %524 = vmatpush.bf16.msra.mxu1 %v746_v49  ;;  %538 = vmatpush.bf16.msra.mxu2 %v686_v50 }
  0x59   : > { %552 = vmatpush.bf16.msra.mxu3 %v750_v54 }
  0x5b   : > { %511 = vmatpush.bf16.msra.mxu0 %v674_v60 }
  0x5c   : > { %525 = vmatpush.bf16.msra.mxu1 %v738_v63  ;;  %539 = vmatpush.bf16.msra.mxu2 %v678_v0 }
  0x5d   : > { %553 = vmatpush.bf16.msra.mxu3 %v742_v3 }
  0x5e   : > { %512 = vmatmul.bf16.vlgmr.msra.gmra.mxu0 %v666_v4 }
  0x5f   : > { %526 = vmatmul.bf16.vlgmr.msra.gmra.mxu1 %v670_v5  ;;  %540 = vmatmul.bf16.vlgmr.msra.gmra.mxu2 %v666_v4 }
  0x60   : > { %554 = vmatmul.bf16.vlgmr.msra.gmra.mxu3 %v670_v5 }
  0xdb   : > { %v513_v6 = vpop.f32.mrf.mxu0 }
  0xdc   : > { %v527_v7 = vpop.f32.mrf.mxu1 }
  0xdd   : > { %v528_v8 = vadd.f32 %v527_v7, %v513_v6 }
  0xdf   : > { %560 = vst [vmem:[%s297_s14] sm:$0xff] %v528_v8 }
  0xe2   : > { %v541_v9 = vpop.f32.mrf.mxu2 }
  0xe3   : > { %v555_v10 = vpop.f32.mrf.mxu3  ;;  %v515_v11 = vpop.f32.mrf.mxu0 }
  0xe4   : > { %v556_v12 = vadd.f32 %v555_v10, %v541_v9  ;;  %v529_v13 = vpop.f32.mrf.mxu1 }
  0xe5   : > { %v530_v14 = vadd.f32 %v529_v13, %v515_v11 }
  0xe6   : > { %561 = vst [vmem:[%s297_s14 + $0x8] sm:$0xff] %v556_v12  ;;  %v586_v18 = vld [vmem:[%s297_s14] sm:$0xff] (%p933_p5) }
  0xe7   : > { %562 = vst [vmem:[%s297_s14 + $0x10] sm:$0xff] %v530_v14 }
  0xe8   : > { %587 = vst [vmem:[%s573_s19] sm:$0xff] (%p933_p5), %v586_v18 }
  0xea   : > { %v543_v15 = vpop.f32.mrf.mxu2  ;;  %570 = sbr.rel (!%p933_p5) target bundleno = 247 (0xf7), region = 70 }
  0xeb   : > { %v557_v16 = vpop.f32.mrf.mxu3 }
  0xec   : > { %v558_v17 = vadd.f32 %v557_v16, %v543_v15 }
  0xed   : > { %v588_v19 = vld [vmem:[%s297_s14 + $0x8] sm:$0xff] (%p933_p5) }
  0xee   : > { %563 = vst [vmem:[%s297_s14 + $0x18] sm:$0xff] %v558_v17  ;;  %v590_v20 = vld [vmem:[%s297_s14 + $0x10] sm:$0xff] (%p933_p5) }
  0xef   : > { %589 = vst [vmem:[%s573_s19 + $0x8] sm:$0xff] %v588_v19 }
  0xf0   : > { %591 = vst [vmem:[%s573_s19 + $0x20] sm:$0xff] %v590_v20 }
  0xf5   : > { %v592_v21 = vld [vmem:[%s297_s14 + $0x18] sm:$0xff] }
  0xf6   : > { %593 = vst [vmem:[%s573_s19 + $0x28] sm:$0xff] %v592_v21 }
  0xf7 PF: > { %p9_p10 = scmp.ge.s32.totalorder %s920_s13, 4   ;;  %s1117_s9 = smov %s882_s10 }
  0xf8   : > { %s1118_s10 = smov %s931_s16  ;;  %s1119_s11 = smov %s920_s13 }
  0xf9   :  { %11 = sbr.rel (!%p9_p10) target bundleno = 2 (0x2), region = 124 }

// kernel: _lambda_.22
= control target key start
LH: loop header
LB: loop body
LE: loop exit
PB: predicated region body
PF: predicated region fallthrough
CT: control target
= control target key end

     0   :  { %s94_s0 = inlined_call_operand.vmem [shape: f32[16,512], index: 0, kind: input, shape index: {}]   ;;  %s95_s1 = inlined_call_operand.vmem [shape: f32[16,512], index: 1, kind: output, shape index: {}]  }
   0x1   :  { %v8_v0 = vld [vmem:[%s94_s0] sm:$0xff]  ;;  %v9_v1 = vld [vmem:[%s94_s0 + $0x8] sm:$0xff]  ;;  %v10_v2 = vld [vmem:[%s94_s0 + $0x10] sm:$0xff] }
   0x2   :  { %v16_v3 = vmax.f32 %v8_v0, 0.0  ;;  %v17_v4 = vmax.f32 %v9_v1, 0.0  ;;  %v18_v5 = vmax.f32 %v10_v2, 0.0  ;;  %v11_v6 = vld [vmem:[%s94_s0 + $0x18] sm:$0xff]  ;;  %v12_v7 = vld [vmem:[%s94_s0 + $0x20] sm:$0xff]  ;;  %v13_v8 = vld [vmem:[%s94_s0 + $0x28] sm:$0xff] }
   0x3   :  { %v19_v9 = vmax.f32 %v11_v6, 0.0  ;;  %v14_v10 = vld [vmem:[%s94_s0 + $0x30] sm:$0xff]  ;;  %v20_v11 = vmax.f32 %v12_v7, 0.0  ;;  %v15_v12 = vld [vmem:[%s94_s0 + $0x38] sm:$0xff]  ;;  %v21_v13 = vmax.f32 %v13_v8, 0.0 }
   0x4   :  { %24 = vst [vmem:[%s95_s1] sm:$0xff] %v16_v3  ;;  %v22_v14 = vmax.f32 %v14_v10, 0.0  ;;  %v23_v15 = vmax.f32 %v15_v12, 0.0 }
   0x5   :  { %25 = vst [vmem:[%s95_s1 + $0x8] sm:$0xff] %v17_v4 }
   0x6   :  { %26 = vst [vmem:[%s95_s1 + $0x10] sm:$0xff] %v18_v5 }
   0x7   :  { %27 = vst [vmem:[%s95_s1 + $0x18] sm:$0xff] %v19_v9 }
   0x8   :  { %28 = vst [vmem:[%s95_s1 + $0x20] sm:$0xff] %v20_v11 }
   0x9   :  { %29 = vst [vmem:[%s95_s1 + $0x28] sm:$0xff] %v21_v13 }
   0xa   :  { %30 = vst [vmem:[%s95_s1 + $0x30] sm:$0xff] %v22_v14 }
   0xb   :  { %31 = vst [vmem:[%s95_s1 + $0x38] sm:$0xff] %v23_v15 }

// kernel: _lambda_.23
= control target key start
LH: loop header
LB: loop body
LE: loop exit
PB: predicated region body
PF: predicated region fallthrough
CT: control target
= control target key end

     0   :  { %s1461_s9 = smov 0   ;;  %s1463_s10 = smov 0   ;;  %s1837_s0 = inlined_call_operand.vmem [shape: bf16[16,512], index: 0, kind: input, shape index: {}]   ;;  %s1838_s1 = inlined_call_operand.vmem [shape: bf16[512,512], index: 1, kind: input, shape index: {}]   ;;  %s1839_s2 = inlined_call_operand.vmem [shape: f32[16,512], index: 2, kind: output, shape index: {}]  }
   0x1   :  { %s1465_s11 = smov 0  }
   0x2 LB: > { %s1041_s12 = sadd.s32 4294967295, %s1444_s11   ;;  %s1478_s13 = sadd.s32 1, %s1444_s11   ;;  %s1444_s11 = sphi %s1465_s11, %s1843_s11   ;;  %s1440_s10 = sphi %s1463_s10, %s1842_s10   ;;  %s1436_s9 = sphi %s1461_s9, %s1841_s9  }
   0x3   : > { %s37_s14 = ssub.s32 %s1444_s11, %s1478_s13  ;;  %s40_s15 = sadd.s32 1, %s1440_s10 }
   0x4   : > { %p38_p0 = scmp.eq.s32.totalorder %s37_s14, 0  ;;  %p47_p1 = scmp.ne.s32.totalorder %s1440_s10, %s1436_s9 }
   0x5   : > { %p48_p2 = scmp.eq.s32.totalorder %s1444_s11, 0  ;;  %p77_p3 = scmp.eq.s32.totalorder %s1041_s12, 1 }
   0x6   : > { %s1489_s16 = scalar_select %p38_p0, %s1440_s10, %s40_s15  }
   0x7   : > { %p49_p4 = por %p48_p2, %p47_p1  ;;  %p1491_p5 = por %p77_p3, %p47_p1 }
   0x8   : > { %p1044_p6 = scmp.ge.s32.totalorder %s1444_s11, 2 }
   0xa   : > { %102 = sbr.rel (%p1044_p6) target bundleno = 83 (0x53), region = 20 }
   0xf   : > { %105 = sbr.rel (!%p49_p4) target bundleno = 83 (0x53), region = 24  ;;  %s107_s18 = sand.u32 (%p49_p4), 1, %s1440_s10  }
  0x10   : > { %s1328_s19 = sshll.u32 (%p49_p4), %s1444_s11, 3  ;;  %s1045_s20 = sshll.u32 (%p49_p4), %s107_s18, 9 }
  0x11   : > { %s1501_s23 = scalar_lea.vmem (%p49_p4), %s1838_s1, %s1328_s19  ;;  %s1506_s24 = scalar_lea.vmem (%p49_p4), [#allocation2], %s1045_s20 }
  0x12   : > { %v267_v0 = vld [vmem:[%s1501_s23] sm:$0xff] (%p49_p4)  ;;  %v269_v1 = vld [vmem:[%s1501_s23 + $0x10] sm:$0xff] (%p49_p4) }
  0x13   : > { %v271_v2 = vld [vmem:[%s1501_s23 + $0x20] sm:$0xff] (%p49_p4)  ;;  %268 = vst [vmem:[%s1506_s24] sm:$0xff] (%p49_p4), %v267_v0  ;;  %v273_v3 = vld [vmem:[%s1501_s23 + $0x30] sm:$0xff] (%p49_p4) }
  0x14   : > { %270 = vst [vmem:[%s1506_s24 + $0x8] sm:$0xff] %v269_v1  ;;  %v275_v4 = vld [vmem:[%s1501_s23 + $0x40] sm:$0xff]  ;;  %v277_v5 = vld [vmem:[%s1501_s23 + $0x50] sm:$0xff] }
  0x15   : > { %272 = vst [vmem:[%s1506_s24 + $0x10] sm:$0xff] %v271_v2  ;;  %v279_v6 = vld [vmem:[%s1501_s23 + $0x60] sm:$0xff]  ;;  %v281_v7 = vld [vmem:[%s1501_s23 + $0x70] sm:$0xff] }
  0x16   : > { %274 = vst [vmem:[%s1506_s24 + $0x18] sm:$0xff] %v273_v3  ;;  %v283_v8 = vld [vmem:[%s1501_s23 + $0x80] sm:$0xff]  ;;  %v285_v9 = vld [vmem:[%s1501_s23 + $0x90] sm:$0xff] }
  0x17   : > { %276 = vst [vmem:[%s1506_s24 + $0x20] sm:$0xff] %v275_v4  ;;  %v287_v10 = vld [vmem:[%s1501_s23 + $0xa0] sm:$0xff]  ;;  %v289_v11 = vld [vmem:[%s1501_s23 + $0xb0] sm:$0xff] }
  0x18   : > { %278 = vst [vmem:[%s1506_s24 + $0x28] sm:$0xff] %v277_v5  ;;  %v291_v12 = vld [vmem:[%s1501_s23 + $0xc0] sm:$0xff]  ;;  %v293_v13 = vld [vmem:[%s1501_s23 + $0xd0] sm:$0xff] }
  0x19   : > { %280 = vst [vmem:[%s1506_s24 + $0x30] sm:$0xff] %v279_v6  ;;  %v295_v14 = vld [vmem:[%s1501_s23 + $0xe0] sm:$0xff]  ;;  %v297_v15 = vld [vmem:[%s1501_s23 + $0xf0] sm:$0xff] }
  0x1a   : > { %282 = vst [vmem:[%s1506_s24 + $0x38] sm:$0xff] %v281_v7  ;;  %v299_v16 = vld [vmem:[%s1501_s23 + $0x100] sm:$0xff]  ;;  %v301_v17 = vld [vmem:[%s1501_s23 + $0x110] sm:$0xff] }
  0x1b   : > { %284 = vst [vmem:[%s1506_s24 + $0x40] sm:$0xff] %v283_v8  ;;  %v303_v18 = vld [vmem:[%s1501_s23 + $0x120] sm:$0xff]  ;;  %v305_v19 = vld [vmem:[%s1501_s23 + $0x130] sm:$0xff] }
  0x1c   : > { %286 = vst [vmem:[%s1506_s24 + $0x48] sm:$0xff] %v285_v9  ;;  %v307_v20 = vld [vmem:[%s1501_s23 + $0x140] sm:$0xff]  ;;  %v309_v21 = vld [vmem:[%s1501_s23 + $0x150] sm:$0xff] }
  0x1d   : > { %288 = vst [vmem:[%s1506_s24 + $0x50] sm:$0xff] %v287_v10  ;;  %v311_v22 = vld [vmem:[%s1501_s23 + $0x160] sm:$0xff]  ;;  %v313_v23 = vld [vmem:[%s1501_s23 + $0x170] sm:$0xff] }
  0x1e   : > { %290 = vst [vmem:[%s1506_s24 + $0x58] sm:$0xff] %v289_v11  ;;  %v315_v24 = vld [vmem:[%s1501_s23 + $0x180] sm:$0xff]  ;;  %v317_v25 = vld [vmem:[%s1501_s23 + $0x190] sm:$0xff] }
  0x1f   : > { %292 = vst [vmem:[%s1506_s24 + $0x60] sm:$0xff] %v291_v12  ;;  %v319_v26 = vld [vmem:[%s1501_s23 + $0x1a0] sm:$0xff]  ;;  %v321_v27 = vld [vmem:[%s1501_s23 + $0x1b0] sm:$0xff] }
  0x20   : > { %294 = vst [vmem:[%s1506_s24 + $0x68] sm:$0xff] %v293_v13  ;;  %v323_v28 = vld [vmem:[%s1501_s23 + $0x1c0] sm:$0xff]  ;;  %v325_v29 = vld [vmem:[%s1501_s23 + $0x1d0] sm:$0xff] }
  0x21   : > { %296 = vst [vmem:[%s1506_s24 + $0x70] sm:$0xff] %v295_v14  ;;  %v327_v30 = vld [vmem:[%s1501_s23 + $0x1e0] sm:$0xff]  ;;  %v329_v31 = vld [vmem:[%s1501_s23 + $0x1f0] sm:$0xff] }
  0x22   : > { %298 = vst [vmem:[%s1506_s24 + $0x78] sm:$0xff] %v297_v15  ;;  %v331_v32 = vld [vmem:[%s1501_s23 + $0x200] sm:$0xff]  ;;  %v333_v33 = vld [vmem:[%s1501_s23 + $0x210] sm:$0xff] }
  0x23   : > { %300 = vst [vmem:[%s1506_s24 + $0x80] sm:$0xff] %v299_v16  ;;  %v335_v34 = vld [vmem:[%s1501_s23 + $0x220] sm:$0xff]  ;;  %v337_v35 = vld [vmem:[%s1501_s23 + $0x230] sm:$0xff] }
  0x24   : > { %302 = vst [vmem:[%s1506_s24 + $0x88] sm:$0xff] %v301_v17  ;;  %v339_v36 = vld [vmem:[%s1501_s23 + $0x240] sm:$0xff]  ;;  %v341_v37 = vld [vmem:[%s1501_s23 + $0x250] sm:$0xff] }
  0x25   : > { %304 = vst [vmem:[%s1506_s24 + $0x90] sm:$0xff] %v303_v18  ;;  %v343_v38 = vld [vmem:[%s1501_s23 + $0x260] sm:$0xff]  ;;  %v345_v39 = vld [vmem:[%s1501_s23 + $0x270] sm:$0xff] }
  0x26   : > { %306 = vst [vmem:[%s1506_s24 + $0x98] sm:$0xff] %v305_v19  ;;  %v347_v40 = vld [vmem:[%s1501_s23 + $0x280] sm:$0xff]  ;;  %v349_v41 = vld [vmem:[%s1501_s23 + $0x290] sm:$0xff] }
  0x27   : > { %308 = vst [vmem:[%s1506_s24 + $0xa0] sm:$0xff] %v307_v20  ;;  %v351_v42 = vld [vmem:[%s1501_s23 + $0x2a0] sm:$0xff]  ;;  %v353_v43 = vld [vmem:[%s1501_s23 + $0x2b0] sm:$0xff] }
  0x28   : > { %310 = vst [vmem:[%s1506_s24 + $0xa8] sm:$0xff] %v309_v21  ;;  %v355_v44 = vld [vmem:[%s1501_s23 + $0x2c0] sm:$0xff]  ;;  %v357_v45 = vld [vmem:[%s1501_s23 + $0x2d0] sm:$0xff] }
  0x29   : > { %312 = vst [vmem:[%s1506_s24 + $0xb0] sm:$0xff] %v311_v22  ;;  %v359_v46 = vld [vmem:[%s1501_s23 + $0x2e0] sm:$0xff]  ;;  %v361_v47 = vld [vmem:[%s1501_s23 + $0x2f0] sm:$0xff] }
  0x2a   : > { %314 = vst [vmem:[%s1506_s24 + $0xb8] sm:$0xff] %v313_v23  ;;  %v363_v48 = vld [vmem:[%s1501_s23 + $0x300] sm:$0xff]  ;;  %v365_v49 = vld [vmem:[%s1501_s23 + $0x310] sm:$0xff] }
  0x2b   : > { %316 = vst [vmem:[%s1506_s24 + $0xc0] sm:$0xff] %v315_v24  ;;  %v367_v50 = vld [vmem:[%s1501_s23 + $0x320] sm:$0xff]  ;;  %v369_v51 = vld [vmem:[%s1501_s23 + $0x330] sm:$0xff] }
  0x2c   : > { %318 = vst [vmem:[%s1506_s24 + $0xc8] sm:$0xff] %v317_v25  ;;  %v371_v52 = vld [vmem:[%s1501_s23 + $0x340] sm:$0xff]  ;;  %v373_v53 = vld [vmem:[%s1501_s23 + $0x350] sm:$0xff] }
  0x2d   : > { %320 = vst [vmem:[%s1506_s24 + $0xd0] sm:$0xff] %v319_v26  ;;  %v375_v54 = vld [vmem:[%s1501_s23 + $0x360] sm:$0xff]  ;;  %v377_v55 = vld [vmem:[%s1501_s23 + $0x370] sm:$0xff] }
  0x2e   : > { %322 = vst [vmem:[%s1506_s24 + $0xd8] sm:$0xff] %v321_v27  ;;  %v379_v56 = vld [vmem:[%s1501_s23 + $0x380] sm:$0xff]  ;;  %v381_v57 = vld [vmem:[%s1501_s23 + $0x390] sm:$0xff] }
  0x2f   : > { %324 = vst [vmem:[%s1506_s24 + $0xe0] sm:$0xff] %v323_v28  ;;  %v383_v58 = vld [vmem:[%s1501_s23 + $0x3a0] sm:$0xff]  ;;  %v385_v59 = vld [vmem:[%s1501_s23 + $0x3b0] sm:$0xff] }
  0x30   : > { %326 = vst [vmem:[%s1506_s24 + $0xe8] sm:$0xff] %v325_v29  ;;  %v387_v60 = vld [vmem:[%s1501_s23 + $0x3c0] sm:$0xff]  ;;  %v389_v61 = vld [vmem:[%s1501_s23 + $0x3d0] sm:$0xff] }
  0x31   : > { %328 = vst [vmem:[%s1506_s24 + $0xf0] sm:$0xff] %v327_v30  ;;  %v391_v62 = vld [vmem:[%s1501_s23 + $0x3e0] sm:$0xff]  ;;  %v393_v63 = vld [vmem:[%s1501_s23 + $0x3f0] sm:$0xff] }
  0x32   : > { %330 = vst [vmem:[%s1506_s24 + $0xf8] sm:$0xff] %v329_v31 }
  0x33   : > { %332 = vst [vmem:[%s1506_s24 + $0x100] sm:$0xff] %v331_v32 }
  0x34   : > { %334 = vst [vmem:[%s1506_s24 + $0x108] sm:$0xff] %v333_v33 }
  0x35   : > { %336 = vst [vmem:[%s1506_s24 + $0x110] sm:$0xff] %v335_v34 }
  0x36   : > { %338 = vst [vmem:[%s1506_s24 + $0x118] sm:$0xff] %v337_v35 }
  0x37   : > { %340 = vst [vmem:[%s1506_s24 + $0x120] sm:$0xff] %v339_v36 }
  0x38   : > { %342 = vst [vmem:[%s1506_s24 + $0x128] sm:$0xff] %v341_v37 }
  0x39   : > { %344 = vst [vmem:[%s1506_s24 + $0x130] sm:$0xff] %v343_v38 }
  0x3a   : > { %346 = vst [vmem:[%s1506_s24 + $0x138] sm:$0xff] %v345_v39 }
  0x3b   : > { %348 = vst [vmem:[%s1506_s24 + $0x140] sm:$0xff] %v347_v40 }
  0x3c   : > { %350 = vst [vmem:[%s1506_s24 + $0x148] sm:$0xff] %v349_v41 }
  0x3d   : > { %352 = vst [vmem:[%s1506_s24 + $0x150] sm:$0xff] %v351_v42 }
  0x3e   : > { %354 = vst [vmem:[%s1506_s24 + $0x158] sm:$0xff] %v353_v43 }
  0x3f   : > { %356 = vst [vmem:[%s1506_s24 + $0x160] sm:$0xff] %v355_v44 }
  0x40   : > { %358 = vst [vmem:[%s1506_s24 + $0x168] sm:$0xff] %v357_v45 }
  0x41   : > { %360 = vst [vmem:[%s1506_s24 + $0x170] sm:$0xff] %v359_v46 }
  0x42   : > { %362 = vst [vmem:[%s1506_s24 + $0x178] sm:$0xff] %v361_v47 }
  0x43   : > { %364 = vst [vmem:[%s1506_s24 + $0x180] sm:$0xff] %v363_v48 }
  0x44   : > { %366 = vst [vmem:[%s1506_s24 + $0x188] sm:$0xff] %v365_v49 }
  0x45   : > { %368 = vst [vmem:[%s1506_s24 + $0x190] sm:$0xff] %v367_v50 }
  0x46   : > { %370 = vst [vmem:[%s1506_s24 + $0x198] sm:$0xff] %v369_v51 }
  0x47   : > { %372 = vst [vmem:[%s1506_s24 + $0x1a0] sm:$0xff] %v371_v52 }
  0x48   : > { %374 = vst [vmem:[%s1506_s24 + $0x1a8] sm:$0xff] %v373_v53 }
  0x49   : > { %376 = vst [vmem:[%s1506_s24 + $0x1b0] sm:$0xff] %v375_v54 }
  0x4a   : > { %378 = vst [vmem:[%s1506_s24 + $0x1b8] sm:$0xff] %v377_v55 }
  0x4b   : > { %380 = vst [vmem:[%s1506_s24 + $0x1c0] sm:$0xff] %v379_v56 }
  0x4c   : > { %382 = vst [vmem:[%s1506_s24 + $0x1c8] sm:$0xff] %v381_v57 }
  0x4d   : > { %384 = vst [vmem:[%s1506_s24 + $0x1d0] sm:$0xff] %v383_v58 }
  0x4e   : > { %386 = vst [vmem:[%s1506_s24 + $0x1d8] sm:$0xff] %v385_v59 }
  0x4f   : > { %388 = vst [vmem:[%s1506_s24 + $0x1e0] sm:$0xff] %v387_v60 }
  0x50   : > { %390 = vst [vmem:[%s1506_s24 + $0x1e8] sm:$0xff] %v389_v61 }
  0x51   : > { %392 = vst [vmem:[%s1506_s24 + $0x1f0] sm:$0xff] %v391_v62 }
  0x52   : > { %394 = vst [vmem:[%s1506_s24 + $0x1f8] sm:$0xff] %v393_v63 }
  0x53 PF: > { %p1048_p7 = scmp.ge.s32.totalorder %s1444_s11, 1  ;;  %p399_p8 = scmp.lt.s32.totalorder %s1444_s11, 3 }
  0x55   : > { %p400_p9 = pnand %p1048_p7, %p399_p8 }
  0x56   : > { %s406_s25 = sand.u32 (!%p400_p9), 1, %s1436_s9  }
  0x57   : > { %403 = sbr.rel (%p400_p9) target bundleno = 313 (0x139), region = 62  ;;  %s1049_s26 = sshll.u32 (!%p400_p9), %s406_s25, 9 }
  0x58   : > { %s1638_s27 = scalar_lea.vmem (!%p400_p9), [#allocation2], %s1049_s26  ;;  %s1050_s23 = sshll.u32 (!%p400_p9), %s406_s25, 5 }
  0x59   : > { %s1810_s24 = scalar_lea.vmem (!%p400_p9), [#allocation3], %s1050_s23 }
  0x5c   : > { %v1125_v0 = vld [vmem:[%s1638_s27 + $0x70] sm:$0xf]  ;;  %v1348_v1 = vld [vmem:[%s1638_s27 + $0x74] sm:$0xf0]  ;;  %v1117_v11 = vld [vmem:[%s1638_s27 + $0x60] sm:$0xf] }
  0x5d   : > { %v1189_v2 = vld [vmem:[%s1638_s27 + $0xf0] sm:$0xf]  ;;  %v1126_v3 = vor.u32 %v1348_v1, %v1125_v0  ;;  %v1364_v4 = vld [vmem:[%s1638_s27 + $0xf4] sm:$0xf0]  ;;  %v1346_v13 = vld [vmem:[%s1638_s27 + $0x64] sm:$0xf0] }
  0x5e   : > { %v1253_v5 = vld [vmem:[%s1638_s27 + $0x170] sm:$0xf]  ;;  %v1380_v6 = vld [vmem:[%s1638_s27 + $0x174] sm:$0xf0]  ;;  %v1190_v7 = vor.u32 %v1364_v4, %v1189_v2  ;;  %v1181_v14 = vld [vmem:[%s1638_s27 + $0xe0] sm:$0xf]  ;;  %v1118_v16 = vor.u32 %v1346_v13, %v1117_v11 }
  0x5f   : > { %v1254_v8 = vor.u32 %v1380_v6, %v1253_v5  ;;  %v1317_v9 = vld [vmem:[%s1638_s27 + $0x1f0] sm:$0xf]  ;;  %v1396_v10 = vld [vmem:[%s1638_s27 + $0x1f4] sm:$0xf0]  ;;  %836 = vmatpush.bf16.msra.mxu0 %v1126_v3  ;;  %v1362_v15 = vld [vmem:[%s1638_s27 + $0xe4] sm:$0xf0] }
  0x60   : > { %v1318_v12 = vor.u32 %v1396_v10, %v1317_v9  ;;  %850 = vmatpush.bf16.msra.mxu1 %v1190_v7  ;;  %v1182_v17 = vor.u32 %v1362_v15, %v1181_v14  ;;  %v1245_v18 = vld [vmem:[%s1638_s27 + $0x160] sm:$0xf]  ;;  %v1378_v19 = vld [vmem:[%s1638_s27 + $0x164] sm:$0xf0]  ;;  %v1109_v23 = vld [vmem:[%s1638_s27 + $0x50] sm:$0xf] }
  0x61   : > { %864 = vmatpush.bf16.msra.mxu2 %v1254_v8  ;;  %v1309_v20 = vld [vmem:[%s1638_s27 + $0x1e0] sm:$0xf]  ;;  %v1246_v21 = vor.u32 %v1378_v19, %v1245_v18  ;;  %v1394_v22 = vld [vmem:[%s1638_s27 + $0x1e4] sm:$0xf0]  ;;  %v1344_v24 = vld [vmem:[%s1638_s27 + $0x54] sm:$0xf0] }
  0x62   : > { %878 = vmatpush.bf16.msra.mxu3 %v1318_v12  ;;  %v1310_v25 = vor.u32 %v1394_v22, %v1309_v20  ;;  %v1173_v26 = vld [vmem:[%s1638_s27 + $0xd0] sm:$0xf]  ;;  %v1360_v27 = vld [vmem:[%s1638_s27 + $0xd4] sm:$0xf0]  ;;  %v1110_v29 = vor.u32 %v1344_v24, %v1109_v23  ;;  %v1101_v35 = vld [vmem:[%s1638_s27 + $0x40] sm:$0xf] }
  0x63   : > { %v1237_v28 = vld [vmem:[%s1638_s27 + $0x150] sm:$0xf]  ;;  %837 = vmatpush.bf16.msra.mxu0 %v1118_v16  ;;  %v1376_v30 = vld [vmem:[%s1638_s27 + $0x154] sm:$0xf0]  ;;  %v1174_v33 = vor.u32 %v1360_v27, %v1173_v26  ;;  %v1342_v36 = vld [vmem:[%s1638_s27 + $0x44] sm:$0xf0] }
  0x64   : > { %v1301_v31 = vld [vmem:[%s1638_s27 + $0x1d0] sm:$0xf]  ;;  %v1392_v32 = vld [vmem:[%s1638_s27 + $0x1d4] sm:$0xf0]  ;;  %851 = vmatpush.bf16.msra.mxu1 %v1182_v17  ;;  %v1238_v34 = vor.u32 %v1376_v30, %v1237_v28  ;;  %v1165_v37 = vld [vmem:[%s1638_s27 + $0xc0] sm:$0xf]  ;;  %v1102_v44 = vor.u32 %v1342_v36, %v1101_v35 }
  0x65   : > { %865 = vmatpush.bf16.msra.mxu2 %v1246_v21  ;;  %v1302_v38 = vor.u32 %v1392_v32, %v1301_v31  ;;  %v1358_v39 = vld [vmem:[%s1638_s27 + $0xc4] sm:$0xf0]  ;;  %v1229_v40 = vld [vmem:[%s1638_s27 + $0x140] sm:$0xf]  ;;  %v1093_v47 = vld [vmem:[%s1638_s27 + $0x30] sm:$0xf] }
  0x66   : > { %879 = vmatpush.bf16.msra.mxu3 %v1310_v25  ;;  %v1374_v41 = vld [vmem:[%s1638_s27 + $0x144] sm:$0xf0]  ;;  %v1293_v42 = vld [vmem:[%s1638_s27 + $0x1c0] sm:$0xf]  ;;  %v1166_v45 = vor.u32 %v1358_v39, %v1165_v37  ;;  %v1340_v48 = vld [vmem:[%s1638_s27 + $0x34] sm:$0xf0] }
  0x67   : > { %v1390_v43 = vld [vmem:[%s1638_s27 + $0x1c4] sm:$0xf0]  ;;  %838 = vmatpush.bf16.msra.mxu0 %v1110_v29  ;;  %v1230_v46 = vor.u32 %v1374_v41, %v1229_v40  ;;  %v1157_v49 = vld [vmem:[%s1638_s27 + $0xb0] sm:$0xf]  ;;  %v1356_v51 = vld [vmem:[%s1638_s27 + $0xb4] sm:$0xf0]  ;;  %v1094_v56 = vor.u32 %v1340_v48, %v1093_v47 }
  0x68   : > { %852 = vmatpush.bf16.msra.mxu1 %v1174_v33  ;;  %v1294_v50 = vor.u32 %v1390_v43, %v1293_v42  ;;  %v1221_v52 = vld [vmem:[%s1638_s27 + $0x130] sm:$0xf]  ;;  %v1372_v53 = vld [vmem:[%s1638_s27 + $0x134] sm:$0xf0]  ;;  %v1158_v57 = vor.u32 %v1356_v51, %v1157_v49  ;;  %v1085_v59 = vld [vmem:[%s1638_s27 + $0x20] sm:$0xf] }
  0x69   : > { %866 = vmatpush.bf16.msra.mxu2 %v1238_v34  ;;  %v1285_v54 = vld [vmem:[%s1638_s27 + $0x1b0] sm:$0xf]  ;;  %v1388_v55 = vld [vmem:[%s1638_s27 + $0x1b4] sm:$0xf0]  ;;  %v1222_v58 = vor.u32 %v1372_v53, %v1221_v52  ;;  %v1338_v60 = vld [vmem:[%s1638_s27 + $0x24] sm:$0xf0] }
  0x6a   : > { %880 = vmatpush.bf16.msra.mxu3 %v1302_v38  ;;  %v1149_v61 = vld [vmem:[%s1638_s27 + $0xa0] sm:$0xf]  ;;  %v1286_v62 = vor.u32 %v1388_v55, %v1285_v54  ;;  %v1354_v63 = vld [vmem:[%s1638_s27 + $0xa4] sm:$0xf0]  ;;  %v1086_v4 = vor.u32 %v1338_v60, %v1085_v59  ;;  %v1077_v7 = vld [vmem:[%s1638_s27 + $0x10] sm:$0xf] }
  0x6b   : > { %839 = vmatpush.bf16.msra.mxu0 %v1102_v44  ;;  %v1213_v0 = vld [vmem:[%s1638_s27 + $0x120] sm:$0xf]  ;;  %v1370_v1 = vld [vmem:[%s1638_s27 + $0x124] sm:$0xf0]  ;;  %v1150_v5 = vor.u32 %v1354_v63, %v1149_v61  ;;  %v1336_v8 = vld [vmem:[%s1638_s27 + $0x14] sm:$0xf0] }
  0x6c   : > { %853 = vmatpush.bf16.msra.mxu1 %v1166_v45  ;;  %v1277_v2 = vld [vmem:[%s1638_s27 + $0x1a0] sm:$0xf]  ;;  %v1386_v3 = vld [vmem:[%s1638_s27 + $0x1a4] sm:$0xf0]  ;;  %v1214_v6 = vor.u32 %v1370_v1, %v1213_v0  ;;  %v1141_v9 = vld [vmem:[%s1638_s27 + $0x90] sm:$0xf]  ;;  %v1078_v17 = vor.u32 %v1336_v8, %v1077_v7 }
  0x6d   : > { %867 = vmatpush.bf16.msra.mxu2 %v1230_v46  ;;  %v1278_v10 = vor.u32 %v1386_v3, %v1277_v2  ;;  %v1352_v11 = vld [vmem:[%s1638_s27 + $0x94] sm:$0xf0]  ;;  %v1205_v12 = vld [vmem:[%s1638_s27 + $0x110] sm:$0xf]  ;;  %v1069_v16 = vld [vmem:[%s1638_s27] sm:$0xf] }
  0x6e   : > { %881 = vmatpush.bf16.msra.mxu3 %v1294_v50  ;;  %v1368_v13 = vld [vmem:[%s1638_s27 + $0x114] sm:$0xf0]  ;;  %v1269_v14 = vld [vmem:[%s1638_s27 + $0x190] sm:$0xf]  ;;  %v1334_v18 = vld [vmem:[%s1638_s27 + $0x4] sm:$0xf0]  ;;  %v1142_v21 = vor.u32 %v1352_v11, %v1141_v9 }
  0x6f   : > { %840 = vmatpush.bf16.msra.mxu0 %v1094_v56  ;;  %v1384_v15 = vld [vmem:[%s1638_s27 + $0x194] sm:$0xf0]  ;;  %v1133_v19 = vld [vmem:[%s1638_s27 + $0x80] sm:$0xf]  ;;  %v1350_v20 = vld [vmem:[%s1638_s27 + $0x84] sm:$0xf0]  ;;  %v1206_v22 = vor.u32 %v1368_v13, %v1205_v12  ;;  %v1070_v33 = vor.u32 %v1334_v18, %v1069_v16 }
  0x70   : > { %854 = vmatpush.bf16.msra.mxu1 %v1158_v57  ;;  %v1197_v23 = vld [vmem:[%s1638_s27 + $0x100] sm:$0xf]  ;;  %v1366_v24 = vld [vmem:[%s1638_s27 + $0x104] sm:$0xf0]  ;;  %v1270_v26 = vor.u32 %v1384_v15, %v1269_v14  ;;  %v1347_v28 = vld [vmem:[%s1638_s27 + $0x74] sm:$0xf]  ;;  %v1134_v37 = vor.u32 %v1350_v20, %v1133_v19 }
  0x71   : > { %868 = vmatpush.bf16.msra.mxu2 %v1222_v58  ;;  %v1261_v25 = vld [vmem:[%s1638_s27 + $0x180] sm:$0xf]  ;;  %v1382_v27 = vld [vmem:[%s1638_s27 + $0x184] sm:$0xf0]  ;;  %v1127_v29 = vld [vmem:[%s1638_s27 + $0x78] sm:$0xf0]  ;;  %v1198_v38 = vor.u32 %v1366_v24, %v1197_v23 }
  0x72   : > { %882 = vmatpush.bf16.msra.mxu3 %v1286_v62  ;;  %v1363_v30 = vld [vmem:[%s1638_s27 + $0xf4] sm:$0xf]  ;;  %v1191_v31 = vld [vmem:[%s1638_s27 + $0xf8] sm:$0xf0]  ;;  %v1345_v39 = vld [vmem:[%s1638_s27 + $0x64] sm:$0xf]  ;;  %v1262_v43 = vor.u32 %v1382_v27, %v1261_v25  ;;  %v1130_v44 = vor.u32 %v1347_v28, %v1127_v29 }
  0x73   : > { %841 = vmatpush.bf16.msra.mxu0 %v1086_v4  ;;  %v1379_v32 = vld [vmem:[%s1638_s27 + $0x174] sm:$0xf]  ;;  %v1255_v34 = vld [vmem:[%s1638_s27 + $0x178] sm:$0xf0]  ;;  %v1119_v40 = vld [vmem:[%s1638_s27 + $0x68] sm:$0xf0]  ;;  %v1194_v49 = vor.u32 %v1363_v30, %v1191_v31 }
  0x74   : > { %855 = vmatpush.bf16.msra.mxu1 %v1150_v5  ;;  %v1395_v35 = vld [vmem:[%s1638_s27 + $0x1f4] sm:$0xf]  ;;  %v1319_v36 = vld [vmem:[%s1638_s27 + $0x1f8] sm:$0xf0]  ;;  %v1061_v41 = vld [vmem:[%s1837_s0 + $0x8] sm:$0xf]  ;;  %v1258_v50 = vor.u32 %v1379_v32, %v1255_v34  ;;  %v1122_v63 = vor.u32 %v1345_v39, %v1119_v40 }
  0x75   : > { %869 = vmatpush.bf16.msra.mxu2 %v1214_v6  ;;  %v1332_v42 = vld [vmem:[%s1837_s0 + $0x14] sm:$0xf0]  ;;  %v1361_v45 = vld [vmem:[%s1638_s27 + $0xe4] sm:$0xf]  ;;  %v1183_v46 = vld [vmem:[%s1638_s27 + $0xe8] sm:$0xf0]  ;;  %v1322_v54 = vor.u32 %v1395_v35, %v1319_v36 }
  0x76   : > { %883 = vmatpush.bf16.msra.mxu3 %v1278_v10  ;;  %v1377_v47 = vld [vmem:[%s1638_s27 + $0x164] sm:$0xf]  ;;  %v1247_v48 = vld [vmem:[%s1638_s27 + $0x168] sm:$0xf0]  ;;  %v1063_v52 = vld [vmem:[%s1837_s0 + $0x18] sm:$0xf0]  ;;  %v1733_v55 = vor.u32 %v1332_v42, %v1061_v41  ;;  %v1186_v1 = vor.u32 %v1361_v45, %v1183_v46 }
  0x77   : > { %842 = vmatpush.bf16.msra.mxu0 %v1078_v17  ;;  %v1330_v51 = vld [vmem:[%s1837_s0 + $0xc] sm:$0xf]  ;;  %v1053_v53 = vld [vmem:[%s1837_s0] sm:$0xf]  ;;  %v1331_v56 = vld [vmem:[%s1837_s0 + $0xc] sm:$0xf0]  ;;  %v1250_v2 = vor.u32 %v1377_v47, %v1247_v48 }
  0x78   : > { %856 = vmatpush.bf16.msra.mxu1 %v1142_v21  ;;  %v1329_v57 = vld [vmem:[%s1837_s0 + $0x4] sm:$0xf]  ;;  %v1055_v58 = vld [vmem:[%s1837_s0 + $0x10] sm:$0xf0]  ;;  %v1311_v60 = vld [vmem:[%s1638_s27 + $0x1e8] sm:$0xf0]  ;;  %v1746_v61 = vor.u32 %v1330_v51, %v1063_v52  ;;  %v1748_v62 = vor.u32 %v1331_v56, %v1053_v53 }
  0x79   : > { %870 = vmatpush.bf16.msra.mxu2 %v1206_v22  ;;  %v1393_v59 = vld [vmem:[%s1638_s27 + $0x1e4] sm:$0xf]  ;;  %v1750_v0 = vor.u32 %v1329_v57, %v1055_v58  ;;  %v1343_v3 = vld [vmem:[%s1638_s27 + $0x54] sm:$0xf]  ;;  %v1111_v4 = vld [vmem:[%s1638_s27 + $0x58] sm:$0xf0] }
  0x7a   : > { %884 = vmatpush.bf16.msra.mxu3 %v1270_v26  ;;  %v1359_v5 = vld [vmem:[%s1638_s27 + $0xd4] sm:$0xf]  ;;  %v1314_v6 = vor.u32 %v1393_v59, %v1311_v60  ;;  %v1175_v7 = vld [vmem:[%s1638_s27 + $0xd8] sm:$0xf0]  ;;  %v1114_v12 = vor.u32 %v1343_v3, %v1111_v4  ;;  %v1341_v15 = vld [vmem:[%s1638_s27 + $0x44] sm:$0xf] }
  0x7b   : > { %843 = vmatpush.bf16.msra.mxu0 %v1070_v33  ;;  %v1375_v8 = vld [vmem:[%s1638_s27 + $0x154] sm:$0xf]  ;;  %v1239_v9 = vld [vmem:[%s1638_s27 + $0x158] sm:$0xf0]  ;;  %v1178_v13 = vor.u32 %v1359_v5, %v1175_v7  ;;  %v1103_v16 = vld [vmem:[%s1638_s27 + $0x48] sm:$0xf0] }
  0x7c   : > { %857 = vmatpush.bf16.msra.mxu1 %v1134_v37  ;;  %v1391_v10 = vld [vmem:[%s1638_s27 + $0x1d4] sm:$0xf]  ;;  %v1303_v11 = vld [vmem:[%s1638_s27 + $0x1d8] sm:$0xf0]  ;;  %v1242_v14 = vor.u32 %v1375_v8, %v1239_v9  ;;  %v1357_v17 = vld [vmem:[%s1638_s27 + $0xc4] sm:$0xf]  ;;  %v1106_v24 = vor.u32 %v1341_v15, %v1103_v16 }
  0x7d   : > { %871 = vmatpush.bf16.msra.mxu2 %v1198_v38  ;;  %v1306_v18 = vor.u32 %v1391_v10, %v1303_v11  ;;  %v1167_v19 = vld [vmem:[%s1638_s27 + $0xc8] sm:$0xf0]  ;;  %v1373_v20 = vld [vmem:[%s1638_s27 + $0x144] sm:$0xf]  ;;  %v1339_v27 = vld [vmem:[%s1638_s27 + $0x34] sm:$0xf] }
  0x7e   : > { %885 = vmatpush.bf16.msra.mxu3 %v1262_v43  ;;  %844 = vmatmul.bf16.vlgmr.msra.gmra.mxu0 %v1748_v62  ;;  %v1231_v21 = vld [vmem:[%s1638_s27 + $0x148] sm:$0xf0]  ;;  %v1389_v22 = vld [vmem:[%s1638_s27 + $0x1c4] sm:$0xf]  ;;  %v1170_v25 = vor.u32 %v1357_v17, %v1167_v19  ;;  %v1095_v28 = vld [vmem:[%s1638_s27 + $0x38] sm:$0xf0] }
  0x7f   : > { %892 = vmatpush.bf16.msrb.mxu0 %v1130_v44  ;;  %858 = vmatmul.bf16.vlgmr.msra.gmra.mxu1 %v1750_v0  ;;  %v1295_v23 = vld [vmem:[%s1638_s27 + $0x1c8] sm:$0xf0]  ;;  %v1234_v26 = vor.u32 %v1373_v20, %v1231_v21  ;;  %v1355_v29 = vld [vmem:[%s1638_s27 + $0xb4] sm:$0xf]  ;;  %v1159_v31 = vld [vmem:[%s1638_s27 + $0xb8] sm:$0xf0]  ;;  %v1098_v36 = vor.u32 %v1339_v27, %v1095_v28 }
  0x80   : > { %906 = vmatpush.bf16.msrb.mxu1 %v1194_v49  ;;  %872 = vmatmul.bf16.vlgmr.msra.gmra.mxu2 %v1733_v55  ;;  %v1298_v30 = vor.u32 %v1389_v22, %v1295_v23  ;;  %v1371_v32 = vld [vmem:[%s1638_s27 + $0x134] sm:$0xf]  ;;  %v1223_v33 = vld [vmem:[%s1638_s27 + $0x138] sm:$0xf0]  ;;  %v1162_v37 = vor.u32 %v1355_v29, %v1159_v31  ;;  %v1337_v39 = vld [vmem:[%s1638_s27 + $0x24] sm:$0xf] }
  0x81   : > { %920 = vmatpush.bf16.msrb.mxu2 %v1258_v50  ;;  %886 = vmatmul.bf16.vlgmr.msra.gmra.mxu3 %v1746_v61  ;;  %v1387_v34 = vld [vmem:[%s1638_s27 + $0x1b4] sm:$0xf]  ;;  %v1287_v35 = vld [vmem:[%s1638_s27 + $0x1b8] sm:$0xf0]  ;;  %v1226_v38 = vor.u32 %v1371_v32, %v1223_v33  ;;  %v1087_v40 = vld [vmem:[%s1638_s27 + $0x28] sm:$0xf0] }
  0x82   : > { %934 = vmatpush.bf16.msrb.mxu3 %v1322_v54  ;;  %v1353_v41 = vld [vmem:[%s1638_s27 + $0xa4] sm:$0xf]  ;;  %v1290_v42 = vor.u32 %v1387_v34, %v1287_v35  ;;  %v1151_v43 = vld [vmem:[%s1638_s27 + $0xa8] sm:$0xf0]  ;;  %v1090_v48 = vor.u32 %v1337_v39, %v1087_v40  ;;  %v1335_v51 = vld [vmem:[%s1638_s27 + $0x14] sm:$0xf] }
  0x83   : > { %893 = vmatpush.bf16.msrb.mxu0 %v1122_v63  ;;  %v1369_v44 = vld [vmem:[%s1638_s27 + $0x124] sm:$0xf]  ;;  %v1215_v45 = vld [vmem:[%s1638_s27 + $0x128] sm:$0xf0]  ;;  %v1154_v49 = vor.u32 %v1353_v41, %v1151_v43  ;;  %v1079_v52 = vld [vmem:[%s1638_s27 + $0x18] sm:$0xf0] }
  0x84   : > { %907 = vmatpush.bf16.msrb.mxu1 %v1186_v1  ;;  %v1385_v46 = vld [vmem:[%s1638_s27 + $0x1a4] sm:$0xf]  ;;  %v1279_v47 = vld [vmem:[%s1638_s27 + $0x1a8] sm:$0xf0]  ;;  %v1218_v50 = vor.u32 %v1369_v44, %v1215_v45  ;;  %v1351_v53 = vld [vmem:[%s1638_s27 + $0x94] sm:$0xf]  ;;  %v1082_v63 = vor.u32 %v1335_v51, %v1079_v52 }
  0x85   : > { %921 = vmatpush.bf16.msrb.mxu2 %v1250_v2  ;;  %v1282_v54 = vor.u32 %v1385_v46, %v1279_v47  ;;  %v1143_v56 = vld [vmem:[%s1638_s27 + $0x98] sm:$0xf0]  ;;  %v1367_v57 = vld [vmem:[%s1638_s27 + $0x114] sm:$0xf]  ;;  %v1333_v3 = vld [vmem:[%s1638_s27 + $0x4] sm:$0xf] }
  0x86   : > { %935 = vmatpush.bf16.msrb.mxu3 %v1314_v6  ;;  %v1207_v58 = vld [vmem:[%s1638_s27 + $0x118] sm:$0xf0]  ;;  %v1383_v59 = vld [vmem:[%s1638_s27 + $0x194] sm:$0xf]  ;;  %v1146_v1 = vor.u32 %v1351_v53, %v1143_v56  ;;  %v1071_v4 = vld [vmem:[%s1638_s27 + $0x8] sm:$0xf0] }
  0x87   : > { %894 = vmatpush.bf16.msrb.mxu0 %v1114_v12  ;;  %v1271_v60 = vld [vmem:[%s1638_s27 + $0x198] sm:$0xf0]  ;;  %v1210_v2 = vor.u32 %v1367_v57, %v1207_v58  ;;  %v1349_v5 = vld [vmem:[%s1638_s27 + $0x84] sm:$0xf]  ;;  %v1135_v7 = vld [vmem:[%s1638_s27 + $0x88] sm:$0xf0]  ;;  %v1074_v12 = vor.u32 %v1333_v3, %v1071_v4 }
  0x88   : > { %908 = vmatpush.bf16.msrb.mxu1 %v1178_v13  ;;  %v1274_v6 = vor.u32 %v1383_v59, %v1271_v60  ;;  %v1365_v8 = vld [vmem:[%s1638_s27 + $0x104] sm:$0xf]  ;;  %v1199_v9 = vld [vmem:[%s1638_s27 + $0x108] sm:$0xf0]  ;;  %v1138_v13 = vor.u32 %v1349_v5, %v1135_v7  ;;  %s1397_s9 = sshll.u32 (%p1491_p5), %s1041_s12, 4 }
  0x89   : > { %922 = vmatpush.bf16.msrb.mxu2 %v1242_v14  ;;  %v1381_v10 = vld [vmem:[%s1638_s27 + $0x184] sm:$0xf]  ;;  %v1263_v11 = vld [vmem:[%s1638_s27 + $0x188] sm:$0xf0]  ;;  %v1202_v14 = vor.u32 %v1365_v8, %v1199_v9  ;;  %s961_s27 = scalar_lea.vmem (%p1491_p5), %s1839_s2, %s1397_s9 }
  0x8a   : > { %936 = vmatpush.bf16.msrb.mxu3 %v1306_v18  ;;  %v1266_v15 = vor.u32 %v1381_v10, %v1263_v11 }
  0x8b   : > { %895 = vmatpush.bf16.msrb.mxu0 %v1106_v24 }
  0x8c   : > { %909 = vmatpush.bf16.msrb.mxu1 %v1170_v25 }
  0x8d   : > { %923 = vmatpush.bf16.msrb.mxu2 %v1234_v26 }
  0x8e   : > { %937 = vmatpush.bf16.msrb.mxu3 %v1298_v30 }
  0x8f   : > { %896 = vmatpush.bf16.msrb.mxu0 %v1098_v36 }
  0x90   : > { %910 = vmatpush.bf16.msrb.mxu1 %v1162_v37 }
  0x91   : > { %924 = vmatpush.bf16.msrb.mxu2 %v1226_v38 }
  0x92   : > { %938 = vmatpush.bf16.msrb.mxu3 %v1290_v42 }
  0x93   : > { %897 = vmatpush.bf16.msrb.mxu0 %v1090_v48 }
  0x94   : > { %911 = vmatpush.bf16.msrb.mxu1 %v1154_v49 }
  0x95   : > { %925 = vmatpush.bf16.msrb.mxu2 %v1218_v50 }
  0x96   : > { %939 = vmatpush.bf16.msrb.mxu3 %v1282_v54 }
  0x97   : > { %898 = vmatpush.bf16.msrb.mxu0 %v1082_v63 }
  0x98   : > { %912 = vmatpush.bf16.msrb.mxu1 %v1146_v1 }
  0x99   : > { %926 = vmatpush.bf16.msrb.mxu2 %v1210_v2 }
  0x9a   : > { %940 = vmatpush.bf16.msrb.mxu3 %v1274_v6 }
  0x9b   : > { %899 = vmatpush.bf16.msrb.mxu0 %v1074_v12 }
  0x9c   : > { %913 = vmatpush.bf16.msrb.mxu1 %v1138_v13 }
  0x9d   : > { %927 = vmatpush.bf16.msrb.mxu2 %v1202_v14 }
  0x9e   : > { %941 = vmatpush.bf16.msrb.mxu3 %v1266_v15  ;;  %900 = vmatmul.bf16.vlgmr.msrb.gmra.mxu0 %v1748_v62 }
  0x9f   : > { %914 = vmatmul.bf16.vlgmr.msrb.gmra.mxu1 %v1750_v0 }
  0xa0   : > { %928 = vmatmul.bf16.vlgmr.msrb.gmra.mxu2 %v1733_v55 }
  0xa1   : > { %942 = vmatmul.bf16.vlgmr.msrb.gmra.mxu3 %v1746_v61 }
  0xfb   : > { %v845_v16 = vpop.f32.mrf.mxu0 }
  0xfc   : > { %v859_v17 = vpop.f32.mrf.mxu1 }
  0xfd   : > { %v860_v18 = vadd.f32 %v859_v17, %v845_v16 }
 0x103   : > { %v873_v19 = vpop.f32.mrf.mxu2  ;;  %v847_v23 = vpop.f32.mrf.mxu0 }
 0x104   : > { %v874_v20 = vadd.f32 %v873_v19, %v860_v18  ;;  %v887_v21 = vpop.f32.mrf.mxu3  ;;  %v861_v24 = vpop.f32.mrf.mxu1 }
 0x105   : > { %v862_v55 = vadd.f32 %v861_v24, %v847_v23 }
 0x106   : > { %v888_v22 = vadd.f32 %v887_v21, %v874_v20 }
 0x108   : > { %948 = vst [vmem:[%s1810_s24] sm:$0xff] %v888_v22 }
 0x10b   : > { %v875_v62 = vpop.f32.mrf.mxu2 }
 0x10c   : > { %v876_v61 = vadd.f32 %v875_v62, %v862_v55  ;;  %v889_v0 = vpop.f32.mrf.mxu3 }
 0x10e   : > { %v890_v25 = vadd.f32 %v889_v0, %v876_v61 }
 0x10f   : > { %v974_v40 = vld [vmem:[%s1810_s24] sm:$0xff] (%p1491_p5) }
 0x110   : > { %950 = vst [vmem:[%s1810_s24 + $0x10] sm:$0xff] %v890_v25 }
 0x111   : > { %975 = vst [vmem:[%s961_s27] sm:$0xff] (%p1491_p5), %v974_v40 }
 0x117   : > { %v978_v42 = vld [vmem:[%s1810_s24 + $0x10] sm:$0xff] (%p1491_p5) }
 0x118   : > { %979 = vst [vmem:[%s961_s27 + $0x20] sm:$0xff] (%p1491_p5), %v978_v42 }
 0x11b   : > { %v901_v26 = vpop.f32.mrf.mxu0 }
 0x11c   : > { %v915_v27 = vpop.f32.mrf.mxu1 }
 0x11d   : > { %v916_v28 = vadd.f32 %v915_v27, %v901_v26 }
 0x123   : > { %v929_v29 = vpop.f32.mrf.mxu2  ;;  %v903_v33 = vpop.f32.mrf.mxu0 }
 0x124   : > { %v930_v30 = vadd.f32 %v929_v29, %v916_v28  ;;  %v943_v31 = vpop.f32.mrf.mxu3  ;;  %v917_v34 = vpop.f32.mrf.mxu1 }
 0x125   : > { %v918_v35 = vadd.f32 %v917_v34, %v903_v33 }
 0x126   : > { %v944_v32 = vadd.f32 %v943_v31, %v930_v30 }
 0x128   : > { %949 = vst [vmem:[%s1810_s24 + $0x8] sm:$0xff] %v944_v32 }
 0x12b   : > { %v931_v36 = vpop.f32.mrf.mxu2 }
 0x12c   : > { %v932_v37 = vadd.f32 %v931_v36, %v918_v35  ;;  %v945_v38 = vpop.f32.mrf.mxu3  ;;  %958 = sbr.rel (!%p1491_p5) target bundleno = 313 (0x139), region = 70 }
 0x12e   : > { %v946_v39 = vadd.f32 %v945_v38, %v932_v37 }
 0x12f   : > { %v976_v41 = vld [vmem:[%s1810_s24 + $0x8] sm:$0xff] (%p1491_p5) }
 0x130   : > { %951 = vst [vmem:[%s1810_s24 + $0x18] sm:$0xff] %v946_v39 }
 0x131   : > { %977 = vst [vmem:[%s961_s27 + $0x8] sm:$0xff] %v976_v41 }
 0x137   : > { %v980_v43 = vld [vmem:[%s1810_s24 + $0x18] sm:$0xff] }
 0x138   : > { %981 = vst [vmem:[%s961_s27 + $0x28] sm:$0xff] %v980_v43 }
 0x139 PF: > { %p9_p10 = scmp.ge.s32.totalorder %s1478_s13, 4   ;;  %s1841_s9 = smov %s1440_s10 }
 0x13a   : > { %s1842_s10 = smov %s1489_s16  ;;  %s1843_s11 = smov %s1478_s13 }
 0x13b   :  { %11 = sbr.rel (!%p9_p10) target bundleno = 2 (0x2), region = 124 }

// kernel: _lambda_.25
= control target key start
LH: loop header
LB: loop body
LE: loop exit
PB: predicated region body
PF: predicated region fallthrough
CT: control target
= control target key end

     0   :  { %s552_s9 = smov 0   ;;  %s554_s10 = smov 0   ;;  %s633_s0 = inlined_call_operand.vmem [shape: bf16[16,128], index: 0, kind: input, shape index: {}]   ;;  %s634_s1 = inlined_call_operand.vmem [shape: bf16[128,256], index: 1, kind: input, shape index: {}]   ;;  %s635_s2 = inlined_call_operand.vmem [shape: f32[16,256], index: 2, kind: output, shape index: {}]  }
   0x1   :  { %s556_s11 = smov 0  }
   0x2 LB: > { %s431_s12 = sadd.s32 4294967295, %s535_s11   ;;  %s569_s13 = sadd.s32 1, %s535_s11   ;;  %s535_s11 = sphi %s556_s11, %s639_s11   ;;  %s531_s10 = sphi %s554_s10, %s638_s10   ;;  %s527_s9 = sphi %s552_s9, %s637_s9  }
   0x3   : > { %s37_s14 = ssub.s32 %s535_s11, %s569_s13  ;;  %s40_s15 = sadd.s32 1, %s531_s10 }
   0x4   : > { %p38_p0 = scmp.eq.s32.totalorder %s37_s14, 0  ;;  %p47_p1 = scmp.ne.s32.totalorder %s531_s10, %s527_s9 }
   0x5   : > { %p48_p2 = scmp.eq.s32.totalorder %s535_s11, 0  ;;  %p77_p3 = scmp.eq.s32.totalorder %s431_s12, 1 }
   0x6   : > { %s580_s16 = scalar_select %p38_p0, %s531_s10, %s40_s15  }
   0x7   : > { %p49_p4 = por %p48_p2, %p47_p1  ;;  %p582_p5 = por %p77_p3, %p47_p1 }
   0x8   : > { %p434_p6 = scmp.ge.s32.totalorder %s535_s11, 2 }
   0xa   : > { %102 = sbr.rel (%p434_p6) target bundleno = 35 (0x23), region = 20 }
   0xf   : > { %105 = sbr.rel (!%p49_p4) target bundleno = 35 (0x23), region = 24  ;;  %s107_s18 = sand.u32 (%p49_p4), 1, %s531_s10  }
  0x10   : > { %s436_s19 = sshll.u32 (%p49_p4), %s535_s11, 2  ;;  %s435_s20 = sshll.u32 (%p49_p4), %s107_s18, 6 }
  0x11   : > { %s592_s23 = scalar_lea.vmem (%p49_p4), %s634_s1, %s436_s19  ;;  %s109_s24 = scalar_lea.vmem (%p49_p4), [#allocation2], %s435_s20 }
  0x12   : > { %v128_v0 = vld [vmem:[%s592_s23] sm:$0xf] (%p49_p4)  ;;  %v130_v1 = vld [vmem:[%s592_s23 + $0x8] sm:$0xf] (%p49_p4)  ;;  %v132_v2 = vld [vmem:[%s592_s23 + $0x10] sm:$0xf] (%p49_p4) }
  0x13   : > { %129 = vst [vmem:[%s109_s24] sm:$0xf] (%p49_p4), %v128_v0  ;;  %v134_v3 = vld [vmem:[%s592_s23 + $0x18] sm:$0xf] (%p49_p4)  ;;  %v136_v4 = vld [vmem:[%s592_s23 + $0x20] sm:$0xf] (%p49_p4) }
  0x14   : > { %131 = vst [vmem:[%s109_s24 + $0x4] sm:$0xf] %v130_v1  ;;  %v138_v5 = vld [vmem:[%s592_s23 + $0x28] sm:$0xf]  ;;  %v140_v6 = vld [vmem:[%s592_s23 + $0x30] sm:$0xf] }
  0x15   : > { %133 = vst [vmem:[%s109_s24 + $0x8] sm:$0xf] %v132_v2  ;;  %v142_v7 = vld [vmem:[%s592_s23 + $0x38] sm:$0xf]  ;;  %v144_v8 = vld [vmem:[%s592_s23 + $0x40] sm:$0xf] }
  0x16   : > { %135 = vst [vmem:[%s109_s24 + $0xc] sm:$0xf] %v134_v3  ;;  %v146_v9 = vld [vmem:[%s592_s23 + $0x48] sm:$0xf]  ;;  %v148_v10 = vld [vmem:[%s592_s23 + $0x50] sm:$0xf] }
  0x17   : > { %137 = vst [vmem:[%s109_s24 + $0x10] sm:$0xf] %v136_v4  ;;  %v150_v11 = vld [vmem:[%s592_s23 + $0x58] sm:$0xf]  ;;  %v152_v12 = vld [vmem:[%s592_s23 + $0x60] sm:$0xf] }
  0x18   : > { %139 = vst [vmem:[%s109_s24 + $0x14] sm:$0xf] %v138_v5  ;;  %v154_v13 = vld [vmem:[%s592_s23 + $0x68] sm:$0xf]  ;;  %v156_v14 = vld [vmem:[%s592_s23 + $0x70] sm:$0xf] }
  0x19   : > { %141 = vst [vmem:[%s109_s24 + $0x18] sm:$0xf] %v140_v6  ;;  %v158_v15 = vld [vmem:[%s592_s23 + $0x78] sm:$0xf] }
  0x1a   : > { %143 = vst [vmem:[%s109_s24 + $0x1c] sm:$0xf] %v142_v7 }
  0x1b   : > { %145 = vst [vmem:[%s109_s24 + $0x20] sm:$0xf] %v144_v8 }
  0x1c   : > { %147 = vst [vmem:[%s109_s24 + $0x24] sm:$0xf] %v146_v9 }
  0x1d   : > { %149 = vst [vmem:[%s109_s24 + $0x28] sm:$0xf] %v148_v10 }
  0x1e   : > { %151 = vst [vmem:[%s109_s24 + $0x2c] sm:$0xf] %v150_v11 }
  0x1f   : > { %153 = vst [vmem:[%s109_s24 + $0x30] sm:$0xf] %v152_v12 }
  0x20   : > { %155 = vst [vmem:[%s109_s24 + $0x34] sm:$0xf] %v154_v13 }
  0x21   : > { %157 = vst [vmem:[%s109_s24 + $0x38] sm:$0xf] %v156_v14 }
  0x22   : > { %159 = vst [vmem:[%s109_s24 + $0x3c] sm:$0xf] %v158_v15 }
  0x23 PF: > { %p437_p7 = scmp.ge.s32.totalorder %s535_s11, 1  ;;  %p214_p8 = scmp.lt.s32.totalorder %s535_s11, 3 }
  0x25   : > { %p215_p9 = pnand %p437_p7, %p214_p8 }
  0x26   : > { %s221_s25 = sand.u32 (!%p215_p9), 1, %s527_s9  }
  0x27   : > { %218 = sbr.rel (%p215_p9) target bundleno = 219 (0xdb), region = 65  ;;  %s438_s26 = sshll.u32 (!%p215_p9), %s221_s25, 6 }
  0x28   : > { %s223_s27 = scalar_lea.vmem (!%p215_p9), [#allocation2], %s438_s26  ;;  %s439_s30 = sshll.u32 (!%p215_p9), %s221_s25, 4 }
  0x29   : > { %s240_s3 = scalar_lea.vmem (!%p215_p9), [#allocation3], %s439_s30 }
  0x2c   : > { %v488_v16 = vld [vmem:[%s223_s27 + $0x38] sm:$0xff]  ;;  %v487_v17 = vld [vmem:[%s223_s27 + $0x30] sm:$0xff]  ;;  %v486_v18 = vld [vmem:[%s223_s27 + $0x28] sm:$0xff]  ;;  %s477_s4 = sshll.u32 (%p582_p5), %s431_s12, 3 }
  0x2d   : > { %313 = vmatpush.bf16.msra.mxu0 %v488_v16  ;;  %v485_v19 = vld [vmem:[%s223_s27 + $0x20] sm:$0xff]  ;;  %v484_v20 = vld [vmem:[%s223_s27 + $0x18] sm:$0xff]  ;;  %v483_v21 = vld [vmem:[%s223_s27 + $0x10] sm:$0xff]  ;;  %s337_s7 = scalar_lea.vmem (%p582_p5), %s635_s2, %s477_s4 }
  0x2e   : > { %v482_v22 = vld [vmem:[%s223_s27 + $0x8] sm:$0xff]  ;;  %v481_v23 = vld [vmem:[%s223_s27] sm:$0xff] }
  0x2f   : > { %v480_v24 = vld [vmem:[%s633_s0] sm:$0xff] }
  0x31   : > { %314 = vmatpush.bf16.msra.mxu0 %v487_v17 }
  0x35   : > { %315 = vmatpush.bf16.msra.mxu0 %v486_v18 }
  0x39   : > { %316 = vmatpush.bf16.msra.mxu0 %v485_v19 }
  0x3d   : > { %317 = vmatpush.bf16.msra.mxu0 %v484_v20 }
  0x41   : > { %318 = vmatpush.bf16.msra.mxu0 %v483_v21 }
  0x45   : > { %319 = vmatpush.bf16.msra.mxu0 %v482_v22 }
  0x49   : > { %320 = vmatpush.bf16.msra.mxu0 %v481_v23 }
  0x4c   : > { %321 = vmatmul.bf16.vlgmr.msra.gmra.mxu0 %v480_v24 }
  0xc9   : > { %v322_v25 = vpop.f32.mrf.mxu0 }
  0xca   : > { %327 = vst [vmem:[%s240_s3] sm:$0xff] %v322_v25 }
  0xce   : > { %335 = sbr.rel (!%p582_p5) target bundleno = 219 (0xdb), region = 73 }
  0xd1   : > { %v324_v26 = vpop.f32.mrf.mxu0  ;;  %v368_v27 = vld [vmem:[%s240_s3] sm:$0xff] (%p582_p5) }
  0xd2   : > { %328 = vst [vmem:[%s240_s3 + $0x8] sm:$0xff] %v324_v26 }
  0xd3   : > { %369 = vst [vmem:[%s337_s7] sm:$0xff] %v368_v27 }
  0xd9   : > { %v370_v28 = vld [vmem:[%s240_s3 + $0x8] sm:$0xff] }
  0xda   : > { %371 = vst [vmem:[%s337_s7 + $0x10] sm:$0xff] %v370_v28 }
  0xdb PF: > { %p9_p10 = scmp.ge.s32.totalorder %s569_s13, 4   ;;  %s637_s9 = smov %s531_s10 }
  0xdc   : > { %s638_s10 = smov %s580_s16  ;;  %s639_s11 = smov %s569_s13 }
  0xdd   :  { %11 = sbr.rel (!%p9_p10) target bundleno = 2 (0x2), region = 142 }

// kernel: _lambda_.26
= control target key start
LH: loop header
LB: loop body
LE: loop exit
PB: predicated region body
PF: predicated region fallthrough
CT: control target
= control target key end

     0   :  { %s58_s0 = inlined_call_operand.vmem [shape: f32[8,512], index: 0, kind: input, shape index: {}]   ;;  %s59_s1 = inlined_call_operand.vmem [shape: f32[8,512], index: 1, kind: output, shape index: {}]  }
   0x1   :  { %v8_v0 = vld [vmem:[%s58_s0] sm:$0xff]  ;;  %v9_v1 = vld [vmem:[%s58_s0 + $0x8] sm:$0xff]  ;;  %v10_v2 = vld [vmem:[%s58_s0 + $0x10] sm:$0xff] }
   0x2   :  { %v12_v3 = vmax.f32 %v8_v0, 0.0  ;;  %v13_v4 = vmax.f32 %v9_v1, 0.0  ;;  %v14_v5 = vmax.f32 %v10_v2, 0.0  ;;  %v11_v6 = vld [vmem:[%s58_s0 + $0x18] sm:$0xff] }
   0x3   :  { %v15_v7 = vmax.f32 %v11_v6, 0.0 }
   0x4   :  { %16 = vst [vmem:[%s59_s1] sm:$0xff] %v12_v3 }
   0x5   :  { %17 = vst [vmem:[%s59_s1 + $0x8] sm:$0xff] %v13_v4 }
   0x6   :  { %18 = vst [vmem:[%s59_s1 + $0x10] sm:$0xff] %v14_v5 }
   0x7   :  { %19 = vst [vmem:[%s59_s1 + $0x18] sm:$0xff] %v15_v7 }

// kernel: _lambda_.29
= control target key start
LH: loop header
LB: loop body
LE: loop exit
PB: predicated region body
PF: predicated region fallthrough
CT: control target
= control target key end

     0   :  { %vm34_vm0 = vcmask 1041408   ;;  %vm36_vm1 = vcmask 1045508   ;;  %vm38_vm2 = vcmask 1043456   ;;  %vm90_vm3 = vcmask 1024   ;;  %s146_s1 = inlined_call_operand.vmem [shape: f32[1,1024], index: 1, kind: input, shape index: {}]   ;;  %s147_s2 = inlined_call_operand.<no memory space> [shape: f32[1,1], index: 2, kind: input, shape index: {}]   ;;  %s148_s0 = inlined_call_operand.vmem [shape: f32[2,1024], index: 0, kind: input, shape index: {}]   ;;  %s149_s3 = inlined_call_operand.vmem [shape: f32[2,1], index: 3, kind: output, shape index: {}]  }
   0x1   :  { %v18_v0 = vld [vmem:[%s146_s1] sm:$0xff]  ;;  %v8_v12 = vstv %s147_s2  ;;  %v17_v17 = vld [vmem:[%s148_s0 + $0x8] sm:$0xff] }
   0x2   :  { %v20_v1 = vperm.slane %v18_v0, 0  ;;  %v21_v2 = vperm.slane %v18_v0, 1  ;;  %v22_v3 = vperm.slane %v18_v0, 2  ;;  %v23_v4 = vperm.slane %v18_v0, 3  ;;  %v16_v13 = vld [vmem:[%s148_s0] sm:$0xff] }
   0x3   :  { %v24_v5 = vperm.slane %v18_v0, 4  ;;  %v25_v6 = vperm.slane %v18_v0, 5  ;;  %v26_v7 = vperm.slane %v18_v0, 6  ;;  %v27_v8 = vperm.slane %v18_v0, 7  ;;  %9 = vst [vmem:[#allocation2] sm:$0x1] %v8_v12 }
   0x4   :  { %v28_v9 = vrot.slane %v21_v2, 6  ;;  %v29_v10 = vrot.slane %v22_v3, 4  ;;  %v30_v11 = vrot.slane %v23_v4, 2 }
   0x5   :  { %v31_v14 = vrot.slane %v25_v6, 6  ;;  %v32_v15 = vrot.slane %v26_v7, 4  ;;  %v33_v16 = vrot.slane %v27_v8, 2 }
   0x6   :  { %v35_v18 = vsel %vm34_vm0, %v20_v1, %v28_v9  ;;  %v37_v19 = vsel %vm36_vm1, %v29_v10, %v30_v11 }
   0x7   :  { %v39_v20 = vsel %vm38_vm2, %v35_v18, %v37_v19  ;;  %v40_v21 = vsel %vm34_vm0, %v24_v5, %v31_v14  ;;  %v41_v22 = vsel %vm36_vm1, %v32_v15, %v33_v16 }
   0x8   :  { %v42_v23 = vsel %vm38_vm2, %v40_v21, %v41_v22  ;;  %v45_v24 = vmul.f32 %v39_v20, %v16_v13 }
   0x9   :  { %v46_v25 = vmul.f32 %v42_v23, %v17_v17 }
   0xa   :  { %49 = vst [vmem:[#allocation1] ss:$4 sm:$0xff] %v45_v24  ;;  %v96_v49 = vld [vmem:[#allocation2] ss:$0 sm:$0xff] }
   0xb   :  { %51 = vst [vmem:[#allocation1 + $0x20] ss:$4 sm:$0xff] %v46_v25 }
  0x11   :  { %v52_v26 = vld.sshfl [vmem:[#allocation1] sm:$0xff pattern:$0x73625140]  ;;  %v53_v27 = vld.sshfl [vmem:[#allocation1 + $0x8] sm:$0xff pattern:$0x73625140] }
  0x12   :  { %v54_v28 = vld.sshfl [vmem:[#allocation1 + $0x10] sm:$0xff pattern:$0x73625140]  ;;  %v55_v29 = vld.sshfl [vmem:[#allocation1 + $0x18] sm:$0xff pattern:$0x73625140] }
  0x13   :  { %v68_v30 = vsel %vm34_vm0, %v52_v26, 0.0  ;;  %v69_v31 = vsel %vm34_vm0, %v53_v27, 0.0  ;;  %v71_v32 = vsel %vm34_vm0, %v54_v28, 0.0  ;;  %v56_v33 = vld.sshfl [vmem:[#allocation1 + $0x20] sm:$0xff pattern:$0x73625140] }
  0x14   :  { %v70_v34 = vadd.f32 %v69_v31, %v68_v30  ;;  %v73_v35 = vsel %vm34_vm0, %v55_v29, 0.0  ;;  %v57_v36 = vld.sshfl [vmem:[#allocation1 + $0x28] sm:$0xff pattern:$0x73625140]  ;;  %v75_v38 = vsel %vm34_vm0, %v56_v33, 0.0 }
  0x15   :  { %v58_v39 = vld.sshfl [vmem:[#allocation1 + $0x30] sm:$0xff pattern:$0x73625140]  ;;  %v77_v41 = vsel %vm34_vm0, %v57_v36, 0.0 }
  0x16   :  { %v72_v37 = vadd.f32 %v71_v32, %v70_v34  ;;  %v59_v42 = vld.sshfl [vmem:[#allocation1 + $0x38] sm:$0xff pattern:$0x73625140]  ;;  %v79_v44 = vsel %vm34_vm0, %v58_v39, 0.0 }
  0x17   :  { %v81_v46 = vsel %vm34_vm0, %v59_v42, 0.0 }
  0x18   :  { %v74_v40 = vadd.f32 %v73_v35, %v72_v37 }
  0x1a   :  { %v76_v43 = vadd.f32 %v75_v38, %v74_v40 }
  0x1c   :  { %v78_v45 = vadd.f32 %v77_v41, %v76_v43 }
  0x1e   :  { %v80_v47 = vadd.f32 %v79_v44, %v78_v45 }
  0x20   :  { %v82_v48 = vadd.f32 %v81_v46, %v80_v47 }
  0x22   :  { %83 = vadd.xlane.f32.xlu0 %v82_v48 }
  0x95   :  { %v84_v50 = vpop.xlane.xlu0 %83 }
  0x96   :  { %v89_v51 = vadd.f32 %v96_v49, %v84_v50 }
  0x98   :  { %91 = vst.msk [vmem:[%s149_s3] sm:$0x3] %vm90_vm3, %v89_v51 }

</bundles_post_ra>
